<compile_context>
chip_gen: v7x
topology: tpu7x:2x2x1
jax: 0.10.0
libtpu: 0.0.40
codegen_flags: <defaults>
</compile_context>

<pallas_src>
import math
from functools import partial

import jax
import jax.numpy as jnp
from jax import lax
from jax.experimental import pallas as pl
from jax.experimental.pallas import tpu as pltpu


# ----------------------------------------------------------------------------
# Hyper-parameter helpers (mirror the PyTorch __init__)
# ----------------------------------------------------------------------------
def make_divisible(v, divisor=8, min_value=None, round_limit=0.9):
    min_value = min_value or divisor
    new_v = max(min_value, int(v + divisor / 2) // divisor * divisor)
    if new_v < round_limit * v:
        new_v += divisor
    return new_v


def tce_hparams(channels, gamma=2, beta=1, rd_ratio=1 / 8, rd_divisor=8):
    t = int(abs(math.log(channels, 2) + beta) / gamma)
    kernel_size = max(t if t % 2 else t + 1, 3)
    assert kernel_size % 2 == 1
    rd_channels = make_divisible(channels * rd_ratio, divisor=rd_divisor)
    return kernel_size, rd_channels


# ----------------------------------------------------------------------------
# Fused kernel: pool -> gate -> apply for one tile of whole groups-of-16
# ----------------------------------------------------------------------------
def tce_fused_kernel(x_ref, w1_ref, w2_ref, w3_ref, b1_ref, b3_ref, o_ref, *,
                     group, rd, hw):
    f32 = jnp.float32
    x = x_ref[...]                               # (TB, C, HWp)
    tb, c, hwp = x.shape
    rows = 2 * tb                                # [max branch rows ; avg branch rows]
    frows = rd * rows                            # rd folded into the matmul M dim

    # ---- adaptive max / avg pool over the (lane-padded) spatial axis ---------
    if hwp == hw:
        maxp = jnp.max(x, axis=-1)
    else:
        lane = lax.broadcasted_iota(jnp.int32, (1, 1, hwp), 2)
        neg = jnp.full((), jnp.finfo(x.dtype).min, x.dtype)
        maxp = jnp.max(jnp.where(lane < hw, x, neg), axis=-1)
    sump = jnp.sum(x.astype(f32), axis=-1)       # pad lanes are zero -> harmless
    p = jnp.concatenate([maxp.astype(f32), sump * (1.0 / hw)], axis=0)  # (2*TB, C)

    gd = w1_ref.dtype                            # gate-math operand dtype (f32 / bf16)
    p = p.astype(gd)

    # ---- eca_conv_1: Conv1d(1 -> rd, k) over the channel axis ----------------
    # one banded (C, C) matmul per reduced channel r; results stacked along the
    # row (M) axis, r-major -> (rd*2*TB, C).
    parts = []
    for r in range(rd):
        o1 = jnp.dot(p, w1_ref[r], preferred_element_type=f32) + b1_ref[r]
        parts.append(o1.astype(gd))
    fold = jnp.concatenate(parts, axis=0)        # (rd*2*TB, C)

    # ---- action_p2_conv1: temporal conv (k=3) over the within-group batch ----
    # axis with full C->C mixing.  +/-1 temporal shift = sublane roll + boundary
    # mask; rows of all rd pieces feed the MXU together with (C, C) weights.
    pos = lax.broadcasted_iota(jnp.int32, (frows, 1), 0) % group
    out2 = jnp.dot(fold, w2_ref[1], preferred_element_type=f32)          # tap dt=1 (s=0)
    shm = pltpu.roll(fold, shift=1, axis=0)                              # row j <- j-1
    out2 = out2 + jnp.dot(jnp.where(pos > 0, shm, 0.0).astype(gd),
                          w2_ref[0], preferred_element_type=f32)         # tap dt=0 (s=-1)
    shp = pltpu.roll(fold, shift=frows - 1, axis=0)                      # row j <- j+1
    out2 = out2 + jnp.dot(jnp.where(pos + 1 < group, shp, 0.0).astype(gd),
                          w2_ref[2], preferred_element_type=f32)         # tap dt=2 (s=+1)
    out2 = jnp.maximum(out2, 0.0).astype(gd)                             # ReLU

    # ---- eca_conv_2: Conv1d(rd -> 1, k) over channels, sum over rd slices ----
    g = jnp.dot(out2[0:rows, :], w3_ref[0], preferred_element_type=f32)
    for r in range(1, rd):
        g = g + jnp.dot(out2[r * rows:(r + 1) * rows, :], w3_ref[r],
                        preferred_element_type=f32)                      # (2*TB, C)

    # ---- combine branches, sigmoid * 2, apply to x ---------------------------
    y = g[:tb] + g[tb:] + 2.0 * b3_ref[0]        # each branch carries +b3
    gate = (jax.nn.sigmoid(y) * 2.0).astype(o_ref.dtype)                 # (TB, C)
    o_ref[...] = x_ref[...] * gate[:, :, None]


# ----------------------------------------------------------------------------
# Host-side construction of the dense conv matrices (tiny, runs fused under jit)
# ----------------------------------------------------------------------------
def _gate_matrices(w1, w2, w3, *, k, c, dtype):
    f32 = jnp.float32
    pad = (k - 1) // 2
    ci = jnp.arange(c)[:, None]
    co = jnp.arange(c)[None, :]
    d = ci - co + pad                            # tap index: ci = co + d - pad
    band = (d >= 0) & (d < k)                    # (C, C)
    dcl = jnp.clip(d, 0, k - 1)

    # eca_conv_1: (rd, C, C), w1_3d[r, ci, co] = w1[r, ci - co + pad] (banded)
    w1_3d = jnp.where(band[None], w1.astype(f32)[:, dcl], 0.0)
    # action_p2_conv1: (3, C, C), w2_3d[dt, ci, co] = w2[co, ci, dt]
    w2_3d = jnp.transpose(w2.astype(f32), (2, 1, 0))
    # eca_conv_2: (rd, C, C), w3_3d[r, ci, co] = w3[r, ci - co + pad] (banded)
    w3_3d = jnp.where(band[None], w3.astype(f32)[:, dcl], 0.0)
    return w1_3d.astype(dtype), w2_3d.astype(dtype), w3_3d.astype(dtype)


# ----------------------------------------------------------------------------
# Wrapper
# ----------------------------------------------------------------------------
@partial(jax.jit, static_argnames=("rd", "k", "group"))
def tce_forward(x, w1, b1, w2, w3, b3, *, rd, k, group=16):
    b, c, h, w = x.shape
    assert b % group == 0, "batch must be a multiple of 16 (module requirement)"
    hw = h * w
    hw_pad = pl.cdiv(hw, 128) * 128              # lane-dense stores for any H, W
    n_groups = b // group
    itemsize = x.dtype.itemsize

    # ---- tile-size heuristic: big tiles, whole groups, >=4 steps if cheap ----
    bytes_per_group = group * c * hw_pad * itemsize
    target_tile = 8 * 1024 * 1024
    min_tile = 2 * 1024 * 1024
    gpt = max(1, min(n_groups, target_tile // bytes_per_group))
    for steps in (4, 2):                         # prefer >= 4 steps (2 per v7x core)
        cand = n_groups // steps
        if cand >= 1 and cand * bytes_per_group >= min_tile:
            gpt = min(gpt, cand)
            break
    while n_groups % gpt:
        gpt -= 1
    tb = gpt * group
    assert tb % group == 0                       # required by the temporal-shift mask
    grid = (n_groups // gpt,)

    # ---- gate parameters -----------------------------------------------------
    gate_dtype = jnp.float32 if x.dtype == jnp.float32 else jnp.bfloat16
    w1_3d, w2_3d, w3_3d = _gate_matrices(w1, w2, w3, k=k, c=c, dtype=gate_dtype)
    b1f = b1.astype(jnp.float32).reshape(rd)
    b3f = b3.astype(jnp.float32).reshape(1)

    x3 = x.reshape(b, c, hw)
    if hw_pad != hw:
        x3 = jnp.pad(x3, ((0, 0), (0, 0), (0, hw_pad - hw)))

    # ---- VMEM budget: 2x(in + out tile) + weights + slack, per-generation cap -
    x_tile_bytes = tb * c * hw_pad * itemsize
    w_bytes = (2 * rd + 3) * c * c * jnp.dtype(gate_dtype).itemsize
    try:
        vmem_cap = int(pltpu.get_tpu_info().vmem_capacity_bytes)
    except Exception:
        vmem_cap = 64 * 1024 * 1024              # conservative (v7x) default
    vmem_limit = int(min(max(4 * x_tile_bytes + 2 * w_bytes + (4 << 20), 32 << 20),
                         int(vmem_cap * 0.75)))

    cost = pl.CostEstimate(
        flops=int(2 * b * c * hw_pad + 2 * (2 * b) * rd * c * c * 5),
        transcendentals=int(b * c),
        bytes_accessed=int(2 * b * c * hw_pad * itemsize + 2 * w_bytes),
    )

    y3 = pl.pallas_call(
        partial(tce_fused_kernel, group=group, rd=rd, hw=hw),
        out_shape=jax.ShapeDtypeStruct((b, c, hw_pad), x.dtype),
        grid=grid,
        in_specs=[
            pl.BlockSpec((tb, c, hw_pad), lambda i: (i, 0, 0)),       # x tile
            pl.BlockSpec((rd, c, c), lambda i: (0, 0, 0)),            # eca_conv_1
            pl.BlockSpec((3, c, c), lambda i: (0, 0, 0)),             # action conv
            pl.BlockSpec((rd, c, c), lambda i: (0, 0, 0)),            # eca_conv_2
            pl.BlockSpec(memory_space=pltpu.MemorySpace.SMEM),        # conv_1 bias
            pl.BlockSpec(memory_space=pltpu.MemorySpace.SMEM),        # conv_2 bias
        ],
        out_specs=pl.BlockSpec((tb, c, hw_pad), lambda i: (i, 0, 0)),
        compiler_params=pltpu.CompilerParams(
            dimension_semantics=("parallel",),
            vmem_limit_bytes=vmem_limit,
        ),
        cost_estimate=cost,
    )(x3, w1_3d, w2_3d, w3_3d, b1f, b3f)

    if hw_pad != hw:
        y3 = y3[:, :, :hw]
    return y3.reshape(b, c, h, w)


# ----------------------------------------------------------------------------
# Pure-JAX reference (mirrors the PyTorch forward) for a correctness check
# ----------------------------------------------------------------------------
def tce_reference(x, w1, b1, w2, w3, b3, *, rd, k, group=16):
    b, c, h, w_ = x.shape
    pad = (k - 1) // 2
    maxp = jnp.max(x, axis=(2, 3))
    avgp = jnp.mean(x, axis=(2, 3))

    def branch(p):
        p_pad = jnp.pad(p, ((0, 0), (pad, pad)))
        sh = jnp.stack([p_pad[:, d:d + c] for d in range(k)], axis=0)
        out1 = jnp.einsum('rd,dbc->brc', w1, sh) + b1[None, :, None]
        G = b // group
        o = out1.reshape(G, group, rd, c).transpose(0, 2, 3, 1).reshape(
            G * rd, c, group)
        opad = jnp.pad(o, ((0, 0), (0, 0), (1, 1)))
        sh2 = jnp.stack([opad[:, :, dt:dt + group] for dt in range(3)], axis=-1)
        out2 = jnp.einsum('nitd,oid->not', sh2, w2)
        out2 = out2.reshape(G, rd, c, group).transpose(0, 3, 1, 2).reshape(
            b, rd, c)
        out2 = jnp.maximum(out2, 0.0)
        rp = jnp.pad(out2, ((0, 0), (0, 0), (pad, pad)))
        sh3 = jnp.stack([rp[:, :, d:d + c] for d in range(k)], axis=-1)
        return jnp.einsum('brcd,rd->bc', sh3, w3) + b3[0]

    gate = jax.nn.sigmoid(branch(maxp) + branch(avgp)) * 2.0
    return x * gate[:, :, None, None]


# ----------------------------------------------------------------------------
if __name__ == "__main__":
    # Batch must be a multiple of 16 (the module's hardcoded temporal group);
    # H=W=16 -> HW=256 keeps stores lane-dense without padding.
    B, C, H, W = 32, 32, 16, 16
    K, RD = tce_hparams(C)          # kernel_size=3, rd_channels=8

    key = jax.random.PRNGKey(0)
    kx, k1, k2, k3, k4, k5 = jax.random.split(key, 6)
    x = jax.random.normal(kx, (B, C, H, W), jnp.float32)
    # Deterministic synthetic parameters (shapes from the module __init__):
    w1 = jax.random.normal(k1, (RD, K), jnp.float32) * 0.2    # eca_conv_1 weight (rd,1,k) squeezed
    b1 = jax.random.normal(k2, (RD,), jnp.float32) * 0.2      # eca_conv_1 bias
    w2 = jax.random.normal(k3, (C, C, 3), jnp.float32) * 0.1  # action_p2_conv1 weight (no bias)
    w3 = jax.random.normal(k4, (RD, K), jnp.float32) * 0.2    # eca_conv_2 weight (1,rd,k) squeezed
    b3 = jax.random.normal(k5, (1,), jnp.float32) * 0.2       # eca_conv_2 bias

    y = tce_forward(x, w1, b1, w2, w3, b3, rd=RD, k=K)
    y = jax.block_until_ready(y)

    y_ref = tce_reference(x, w1, b1, w2, w3, b3, rd=RD, k=K)
    if not jnp.allclose(y, y_ref, rtol=2e-4, atol=2e-4):
        max_err = float(jnp.max(jnp.abs(y - y_ref)))
        raise AssertionError(f"Pallas result mismatch, max abs err = {max_err}")

    print("KERNEL_OK")
</pallas_src>

<mosaic_0001>
module attributes {stable_mosaic.version = 11 : i64} {
  func.func @tce_fused_kernel(%arg0: i32, %arg1: memref<32x32x256xf32, #tpu.memory_space<vmem>>, %arg2: memref<8x32x32xf32, #tpu.memory_space<vmem>>, %arg3: memref<3x32x32xf32, #tpu.memory_space<vmem>>, %arg4: memref<8x32x32xf32, #tpu.memory_space<vmem>>, %arg5: memref<8xf32, #tpu.memory_space<smem>>, %arg6: memref<1xf32, #tpu.memory_space<smem>>, %arg7: memref<32x32x256xf32, #tpu.memory_space<vmem>>) attributes {dimension_semantics = [#tpu.dimension_semantics<parallel>], iteration_bounds = array<i64: 1>, scalar_prefetch = 0 : i64, scratch_operands = 0 : i64, tpu.core_type = #tpu.core_type<tc>, window_params = [{transform_indices = @transform_0, window_bounds = array<i64: 32, 32, 256>}, {pipeline_mode = #tpu.pipeline_mode<synchronous>, transform_indices = @transform_1, window_bounds = array<i64: 8, 32, 32>}, {pipeline_mode = #tpu.pipeline_mode<synchronous>, transform_indices = @transform_2, window_bounds = array<i64: 3, 32, 32>}, {pipeline_mode = #tpu.pipeline_mode<synchronous>, transform_indices = @transform_3, window_bounds = array<i64: 8, 32, 32>}, {transform_indices = @transform_4, window_bounds = array<i64: 8>}, {transform_indices = @transform_5, window_bounds = array<i64: 1>}, {transform_indices = @transform_6, window_bounds = array<i64: 32, 32, 256>}]} {
    %c0 = arith.constant 0 : index
    %c0_0 = arith.constant 0 : index
    %c0_1 = arith.constant 0 : index
    %0 = vector.load %arg1[%c0, %c0_0, %c0_1] : memref<32x32x256xf32, #tpu.memory_space<vmem>>, vector<32x32x256xf32>
    %cst = arith.constant dense<0xFF800000> : vector<32x32xf32>
    %1 = vector.multi_reduction <maximumf>, %0, %cst [2] : vector<32x32x256xf32> to vector<32x32xf32>
    %cst_2 = arith.constant dense<0.000000e+00> : vector<32x32xf32>
    %2 = vector.multi_reduction <add>, %0, %cst_2 [2] : vector<32x32x256xf32> to vector<32x32xf32>
    %cst_3 = arith.constant 3.906250e-03 : f32
    %3 = vector.broadcast %cst_3 : f32 to vector<32x32xf32>
    %4 = arith.mulf %2, %3 : vector<32x32xf32>
    %5 = tpu.concatenate %1, %4 in 0 : vector<32x32xf32>, vector<32x32xf32> -> vector<64x32xf32>
    %c0_4 = arith.constant 0 : index
    %c0_5 = arith.constant 0 : index
    %c0_6 = arith.constant 0 : index
    %6 = vector.load %arg2[%c0_4, %c0_5, %c0_6] : memref<8x32x32xf32, #tpu.memory_space<vmem>>, vector<1x32x32xf32>
    %7 = vector.shape_cast %6 : vector<1x32x32xf32> to vector<32x32xf32>
    %cst_7 = arith.constant dense<0.000000e+00> : vector<64x32xf32>
    %8 = tpu.matmul %5, %7, %cst_7 {dimension_numbers = #tpu.dot_dimension_numbers<[1], [0], [0], [1], [0, 0, 1, 1], [], []>} : vector<64x32xf32>, vector<32x32xf32>, vector<64x32xf32> -> vector<64x32xf32>
    %c0_8 = arith.constant 0 : index
    %9 = memref.load %arg5[%c0_8] : memref<8xf32, #tpu.memory_space<smem>>
    %10 = vector.broadcast %9 : f32 to vector<64x32xf32>
    %11 = arith.addf %8, %10 : vector<64x32xf32>
    %c1 = arith.constant 1 : index
    %c0_9 = arith.constant 0 : index
    %c0_10 = arith.constant 0 : index
    %12 = vector.load %arg2[%c1, %c0_9, %c0_10] : memref<8x32x32xf32, #tpu.memory_space<vmem>>, vector<1x32x32xf32>
    %13 = vector.shape_cast %12 : vector<1x32x32xf32> to vector<32x32xf32>
    %cst_11 = arith.constant dense<0.000000e+00> : vector<64x32xf32>
    %14 = tpu.matmul %5, %13, %cst_11 {dimension_numbers = #tpu.dot_dimension_numbers<[1], [0], [0], [1], [0, 0, 1, 1], [], []>} : vector<64x32xf32>, vector<32x32xf32>, vector<64x32xf32> -> vector<64x32xf32>
    %c1_12 = arith.constant 1 : index
    %15 = memref.load %arg5[%c1_12] : memref<8xf32, #tpu.memory_space<smem>>
    %16 = vector.broadcast %15 : f32 to vector<64x32xf32>
    %17 = arith.addf %14, %16 : vector<64x32xf32>
    %c2 = arith.constant 2 : index
    %c0_13 = arith.constant 0 : index
    %c0_14 = arith.constant 0 : index
    %18 = vector.load %arg2[%c2, %c0_13, %c0_14] : memref<8x32x32xf32, #tpu.memory_space<vmem>>, vector<1x32x32xf32>
    %19 = vector.shape_cast %18 : vector<1x32x32xf32> to vector<32x32xf32>
    %cst_15 = arith.constant dense<0.000000e+00> : vector<64x32xf32>
    %20 = tpu.matmul %5, %19, %cst_15 {dimension_numbers = #tpu.dot_dimension_numbers<[1], [0], [0], [1], [0, 0, 1, 1], [], []>} : vector<64x32xf32>, vector<32x32xf32>, vector<64x32xf32> -> vector<64x32xf32>
    %c2_16 = arith.constant 2 : index
    %21 = memref.load %arg5[%c2_16] : memref<8xf32, #tpu.memory_space<smem>>
    %22 = vector.broadcast %21 : f32 to vector<64x32xf32>
    %23 = arith.addf %20, %22 : vector<64x32xf32>
    %c3 = arith.constant 3 : index
    %c0_17 = arith.constant 0 : index
    %c0_18 = arith.constant 0 : index
    %24 = vector.load %arg2[%c3, %c0_17, %c0_18] : memref<8x32x32xf32, #tpu.memory_space<vmem>>, vector<1x32x32xf32>
    %25 = vector.shape_cast %24 : vector<1x32x32xf32> to vector<32x32xf32>
    %cst_19 = arith.constant dense<0.000000e+00> : vector<64x32xf32>
    %26 = tpu.matmul %5, %25, %cst_19 {dimension_numbers = #tpu.dot_dimension_numbers<[1], [0], [0], [1], [0, 0, 1, 1], [], []>} : vector<64x32xf32>, vector<32x32xf32>, vector<64x32xf32> -> vector<64x32xf32>
    %c3_20 = arith.constant 3 : index
    %27 = memref.load %arg5[%c3_20] : memref<8xf32, #tpu.memory_space<smem>>
    %28 = vector.broadcast %27 : f32 to vector<64x32xf32>
    %29 = arith.addf %26, %28 : vector<64x32xf32>
    %c4 = arith.constant 4 : index
    %c0_21 = arith.constant 0 : index
    %c0_22 = arith.constant 0 : index
    %30 = vector.load %arg2[%c4, %c0_21, %c0_22] : memref<8x32x32xf32, #tpu.memory_space<vmem>>, vector<1x32x32xf32>
    %31 = vector.shape_cast %30 : vector<1x32x32xf32> to vector<32x32xf32>
    %cst_23 = arith.constant dense<0.000000e+00> : vector<64x32xf32>
    %32 = tpu.matmul %5, %31, %cst_23 {dimension_numbers = #tpu.dot_dimension_numbers<[1], [0], [0], [1], [0, 0, 1, 1], [], []>} : vector<64x32xf32>, vector<32x32xf32>, vector<64x32xf32> -> vector<64x32xf32>
    %c4_24 = arith.constant 4 : index
    %33 = memref.load %arg5[%c4_24] : memref<8xf32, #tpu.memory_space<smem>>
    %34 = vector.broadcast %33 : f32 to vector<64x32xf32>
    %35 = arith.addf %32, %34 : vector<64x32xf32>
    %c5 = arith.constant 5 : index
    %c0_25 = arith.constant 0 : index
    %c0_26 = arith.constant 0 : index
    %36 = vector.load %arg2[%c5, %c0_25, %c0_26] : memref<8x32x32xf32, #tpu.memory_space<vmem>>, vector<1x32x32xf32>
    %37 = vector.shape_cast %36 : vector<1x32x32xf32> to vector<32x32xf32>
    %cst_27 = arith.constant dense<0.000000e+00> : vector<64x32xf32>
    %38 = tpu.matmul %5, %37, %cst_27 {dimension_numbers = #tpu.dot_dimension_numbers<[1], [0], [0], [1], [0, 0, 1, 1], [], []>} : vector<64x32xf32>, vector<32x32xf32>, vector<64x32xf32> -> vector<64x32xf32>
    %c5_28 = arith.constant 5 : index
    %39 = memref.load %arg5[%c5_28] : memref<8xf32, #tpu.memory_space<smem>>
    %40 = vector.broadcast %39 : f32 to vector<64x32xf32>
    %41 = arith.addf %38, %40 : vector<64x32xf32>
    %c6 = arith.constant 6 : index
    %c0_29 = arith.constant 0 : index
    %c0_30 = arith.constant 0 : index
    %42 = vector.load %arg2[%c6, %c0_29, %c0_30] : memref<8x32x32xf32, #tpu.memory_space<vmem>>, vector<1x32x32xf32>
    %43 = vector.shape_cast %42 : vector<1x32x32xf32> to vector<32x32xf32>
    %cst_31 = arith.constant dense<0.000000e+00> : vector<64x32xf32>
    %44 = tpu.matmul %5, %43, %cst_31 {dimension_numbers = #tpu.dot_dimension_numbers<[1], [0], [0], [1], [0, 0, 1, 1], [], []>} : vector<64x32xf32>, vector<32x32xf32>, vector<64x32xf32> -> vector<64x32xf32>
    %c6_32 = arith.constant 6 : index
    %45 = memref.load %arg5[%c6_32] : memref<8xf32, #tpu.memory_space<smem>>
    %46 = vector.broadcast %45 : f32 to vector<64x32xf32>
    %47 = arith.addf %44, %46 : vector<64x32xf32>
    %c7 = arith.constant 7 : index
    %c0_33 = arith.constant 0 : index
    %c0_34 = arith.constant 0 : index
    %48 = vector.load %arg2[%c7, %c0_33, %c0_34] : memref<8x32x32xf32, #tpu.memory_space<vmem>>, vector<1x32x32xf32>
    %49 = vector.shape_cast %48 : vector<1x32x32xf32> to vector<32x32xf32>
    %cst_35 = arith.constant dense<0.000000e+00> : vector<64x32xf32>
    %50 = tpu.matmul %5, %49, %cst_35 {dimension_numbers = #tpu.dot_dimension_numbers<[1], [0], [0], [1], [0, 0, 1, 1], [], []>} : vector<64x32xf32>, vector<32x32xf32>, vector<64x32xf32> -> vector<64x32xf32>
    %c7_36 = arith.constant 7 : index
    %51 = memref.load %arg5[%c7_36] : memref<8xf32, #tpu.memory_space<smem>>
    %52 = vector.broadcast %51 : f32 to vector<64x32xf32>
    %53 = arith.addf %50, %52 : vector<64x32xf32>
    %54 = tpu.concatenate %11, %17, %23, %29, %35, %41, %47, %53 in 0 : vector<64x32xf32>, vector<64x32xf32>, vector<64x32xf32>, vector<64x32xf32>, vector<64x32xf32>, vector<64x32xf32>, vector<64x32xf32>, vector<64x32xf32> -> vector<512x32xf32>
    %55 = tpu.iota {dimensions = array<i32: 0>} : vector<512x1xi32>
    %c16_i32 = arith.constant 16 : i32
    %c0_i32 = arith.constant 0 : i32
    %56 = arith.cmpi eq, %c16_i32, %c0_i32 : i32
    %c1_i32 = arith.constant 1 : i32
    %57 = arith.select %56, %c1_i32, %c16_i32 : i32
    %58 = vector.broadcast %57 : i32 to vector<512x1xi32>
    %59 = arith.remsi %55, %58 : vector<512x1xi32>
    %c0_i32_37 = arith.constant 0 : i32
    %60 = vector.broadcast %c0_i32_37 : i32 to vector<512x1xi32>
    %61 = arith.cmpi ne, %59, %60 : vector<512x1xi32>
    %c0_i32_38 = arith.constant 0 : i32
    %62 = vector.broadcast %c0_i32_38 : i32 to vector<512x1xi32>
    %63 = arith.cmpi slt, %59, %62 : vector<512x1xi32>
    %c0_i32_39 = arith.constant 0 : i32
    %64 = arith.cmpi slt, %57, %c0_i32_39 : i32
    %65 = vector.broadcast %64 : i1 to vector<512x1xi1>
    %66 = vector.broadcast %65 : vector<512x1xi1> to vector<512x1xi1>
    %67 = arith.xori %63, %66 : vector<512x1xi1>
    %68 = arith.andi %67, %61 : vector<512x1xi1>
    %69 = vector.broadcast %57 : i32 to vector<512x1xi32>
    %70 = arith.addi %59, %69 : vector<512x1xi32>
    %71 = arith.select %68, %70, %59 : vector<512x1xi1>, vector<512x1xi32>
    %c1_40 = arith.constant 1 : index
    %c0_41 = arith.constant 0 : index
    %c0_42 = arith.constant 0 : index
    %72 = vector.load %arg3[%c1_40, %c0_41, %c0_42] : memref<3x32x32xf32, #tpu.memory_space<vmem>>, vector<1x32x32xf32>
    %73 = vector.shape_cast %72 : vector<1x32x32xf32> to vector<32x32xf32>
    %cst_43 = arith.constant dense<0.000000e+00> : vector<512x32xf32>
    %74 = tpu.matmul %54, %73, %cst_43 {dimension_numbers = #tpu.dot_dimension_numbers<[1], [0], [0], [1], [0, 0, 1, 1], [], []>} : vector<512x32xf32>, vector<32x32xf32>, vector<512x32xf32> -> vector<512x32xf32>
    %c1_i32_44 = arith.constant 1 : i32
    %75 = tpu.dynamic_rotate %54 by %c1_i32_44 dim 0 : vector<512x32xf32>, i32 -> vector<512x32xf32>
    %c0_i32_45 = arith.constant 0 : i32
    %76 = vector.broadcast %c0_i32_45 : i32 to vector<512x1xi32>
    %77 = arith.cmpi sgt, %71, %76 : vector<512x1xi32>
    %cst_46 = arith.constant 0.000000e+00 : f32
    %78 = vector.shape_cast %77 : vector<512x1xi1> to vector<512x1xi1>
    %79 = vector.broadcast %78 : vector<512x1xi1> to vector<512x32xi1>
    %80 = vector.broadcast %cst_46 : f32 to vector<512x32xf32>
    %81 = arith.select %79, %75, %80 : vector<512x32xi1>, vector<512x32xf32>
    %c0_47 = arith.constant 0 : index
    %c0_48 = arith.constant 0 : index
    %c0_49 = arith.constant 0 : index
    %82 = vector.load %arg3[%c0_47, %c0_48, %c0_49] : memref<3x32x32xf32, #tpu.memory_space<vmem>>, vector<1x32x32xf32>
    %83 = vector.shape_cast %82 : vector<1x32x32xf32> to vector<32x32xf32>
    %cst_50 = arith.constant dense<0.000000e+00> : vector<512x32xf32>
    %84 = tpu.matmul %81, %83, %cst_50 {dimension_numbers = #tpu.dot_dimension_numbers<[1], [0], [0], [1], [0, 0, 1, 1], [], []>} : vector<512x32xf32>, vector<32x32xf32>, vector<512x32xf32> -> vector<512x32xf32>
    %85 = arith.addf %74, %84 : vector<512x32xf32>
    %c511_i32 = arith.constant 511 : i32
    %86 = tpu.dynamic_rotate %54 by %c511_i32 dim 0 : vector<512x32xf32>, i32 -> vector<512x32xf32>
    %c1_i32_51 = arith.constant 1 : i32
    %87 = vector.broadcast %c1_i32_51 : i32 to vector<512x1xi32>
    %88 = arith.addi %71, %87 : vector<512x1xi32>
    %c16_i32_52 = arith.constant 16 : i32
    %89 = vector.broadcast %c16_i32_52 : i32 to vector<512x1xi32>
    %90 = arith.cmpi slt, %88, %89 : vector<512x1xi32>
    %cst_53 = arith.constant 0.000000e+00 : f32
    %91 = vector.shape_cast %90 : vector<512x1xi1> to vector<512x1xi1>
    %92 = vector.broadcast %91 : vector<512x1xi1> to vector<512x32xi1>
    %93 = vector.broadcast %cst_53 : f32 to vector<512x32xf32>
    %94 = arith.select %92, %86, %93 : vector<512x32xi1>, vector<512x32xf32>
    %c2_54 = arith.constant 2 : index
    %c0_55 = arith.constant 0 : index
    %c0_56 = arith.constant 0 : index
    %95 = vector.load %arg3[%c2_54, %c0_55, %c0_56] : memref<3x32x32xf32, #tpu.memory_space<vmem>>, vector<1x32x32xf32>
    %96 = vector.shape_cast %95 : vector<1x32x32xf32> to vector<32x32xf32>
    %cst_57 = arith.constant dense<0.000000e+00> : vector<512x32xf32>
    %97 = tpu.matmul %94, %96, %cst_57 {dimension_numbers = #tpu.dot_dimension_numbers<[1], [0], [0], [1], [0, 0, 1, 1], [], []>} : vector<512x32xf32>, vector<32x32xf32>, vector<512x32xf32> -> vector<512x32xf32>
    %98 = arith.addf %85, %97 : vector<512x32xf32>
    %cst_58 = arith.constant 0.000000e+00 : f32
    %99 = vector.broadcast %cst_58 : f32 to vector<512x32xf32>
    %100 = arith.maximumf %98, %99 : vector<512x32xf32>
    %101 = vector.extract_strided_slice %100 {offsets = [0, 0], sizes = [64, 32], strides = [1, 1]} : vector<512x32xf32> to vector<64x32xf32>
    %c0_59 = arith.constant 0 : index
    %c0_60 = arith.constant 0 : index
    %c0_61 = arith.constant 0 : index
    %102 = vector.load %arg4[%c0_59, %c0_60, %c0_61] : memref<8x32x32xf32, #tpu.memory_space<vmem>>, vector<1x32x32xf32>
    %103 = vector.shape_cast %102 : vector<1x32x32xf32> to vector<32x32xf32>
    %cst_62 = arith.constant dense<0.000000e+00> : vector<64x32xf32>
    %104 = tpu.matmul %101, %103, %cst_62 {dimension_numbers = #tpu.dot_dimension_numbers<[1], [0], [0], [1], [0, 0, 1, 1], [], []>} : vector<64x32xf32>, vector<32x32xf32>, vector<64x32xf32> -> vector<64x32xf32>
    %105 = vector.extract_strided_slice %100 {offsets = [64, 0], sizes = [64, 32], strides = [1, 1]} : vector<512x32xf32> to vector<64x32xf32>
    %c1_63 = arith.constant 1 : index
    %c0_64 = arith.constant 0 : index
    %c0_65 = arith.constant 0 : index
    %106 = vector.load %arg4[%c1_63, %c0_64, %c0_65] : memref<8x32x32xf32, #tpu.memory_space<vmem>>, vector<1x32x32xf32>
    %107 = vector.shape_cast %106 : vector<1x32x32xf32> to vector<32x32xf32>
    %cst_66 = arith.constant dense<0.000000e+00> : vector<64x32xf32>
    %108 = tpu.matmul %105, %107, %cst_66 {dimension_numbers = #tpu.dot_dimension_numbers<[1], [0], [0], [1], [0, 0, 1, 1], [], []>} : vector<64x32xf32>, vector<32x32xf32>, vector<64x32xf32> -> vector<64x32xf32>
    %109 = arith.addf %104, %108 : vector<64x32xf32>
    %110 = vector.extract_strided_slice %100 {offsets = [128, 0], sizes = [64, 32], strides = [1, 1]} : vector<512x32xf32> to vector<64x32xf32>
    %c2_67 = arith.constant 2 : index
    %c0_68 = arith.constant 0 : index
    %c0_69 = arith.constant 0 : index
    %111 = vector.load %arg4[%c2_67, %c0_68, %c0_69] : memref<8x32x32xf32, #tpu.memory_space<vmem>>, vector<1x32x32xf32>
    %112 = vector.shape_cast %111 : vector<1x32x32xf32> to vector<32x32xf32>
    %cst_70 = arith.constant dense<0.000000e+00> : vector<64x32xf32>
    %113 = tpu.matmul %110, %112, %cst_70 {dimension_numbers = #tpu.dot_dimension_numbers<[1], [0], [0], [1], [0, 0, 1, 1], [], []>} : vector<64x32xf32>, vector<32x32xf32>, vector<64x32xf32> -> vector<64x32xf32>
    %114 = arith.addf %109, %113 : vector<64x32xf32>
    %115 = vector.extract_strided_slice %100 {offsets = [192, 0], sizes = [64, 32], strides = [1, 1]} : vector<512x32xf32> to vector<64x32xf32>
    %c3_71 = arith.constant 3 : index
    %c0_72 = arith.constant 0 : index
    %c0_73 = arith.constant 0 : index
    %116 = vector.load %arg4[%c3_71, %c0_72, %c0_73] : memref<8x32x32xf32, #tpu.memory_space<vmem>>, vector<1x32x32xf32>
    %117 = vector.shape_cast %116 : vector<1x32x32xf32> to vector<32x32xf32>
    %cst_74 = arith.constant dense<0.000000e+00> : vector<64x32xf32>
    %118 = tpu.matmul %115, %117, %cst_74 {dimension_numbers = #tpu.dot_dimension_numbers<[1], [0], [0], [1], [0, 0, 1, 1], [], []>} : vector<64x32xf32>, vector<32x32xf32>, vector<64x32xf32> -> vector<64x32xf32>
    %119 = arith.addf %114, %118 : vector<64x32xf32>
    %120 = vector.extract_strided_slice %100 {offsets = [256, 0], sizes = [64, 32], strides = [1, 1]} : vector<512x32xf32> to vector<64x32xf32>
    %c4_75 = arith.constant 4 : index
    %c0_76 = arith.constant 0 : index
    %c0_77 = arith.constant 0 : index
    %121 = vector.load %arg4[%c4_75, %c0_76, %c0_77] : memref<8x32x32xf32, #tpu.memory_space<vmem>>, vector<1x32x32xf32>
    %122 = vector.shape_cast %121 : vector<1x32x32xf32> to vector<32x32xf32>
    %cst_78 = arith.constant dense<0.000000e+00> : vector<64x32xf32>
    %123 = tpu.matmul %120, %122, %cst_78 {dimension_numbers = #tpu.dot_dimension_numbers<[1], [0], [0], [1], [0, 0, 1, 1], [], []>} : vector<64x32xf32>, vector<32x32xf32>, vector<64x32xf32> -> vector<64x32xf32>
    %124 = arith.addf %119, %123 : vector<64x32xf32>
    %125 = vector.extract_strided_slice %100 {offsets = [320, 0], sizes = [64, 32], strides = [1, 1]} : vector<512x32xf32> to vector<64x32xf32>
    %c5_79 = arith.constant 5 : index
    %c0_80 = arith.constant 0 : index
    %c0_81 = arith.constant 0 : index
    %126 = vector.load %arg4[%c5_79, %c0_80, %c0_81] : memref<8x32x32xf32, #tpu.memory_space<vmem>>, vector<1x32x32xf32>
    %127 = vector.shape_cast %126 : vector<1x32x32xf32> to vector<32x32xf32>
    %cst_82 = arith.constant dense<0.000000e+00> : vector<64x32xf32>
    %128 = tpu.matmul %125, %127, %cst_82 {dimension_numbers = #tpu.dot_dimension_numbers<[1], [0], [0], [1], [0, 0, 1, 1], [], []>} : vector<64x32xf32>, vector<32x32xf32>, vector<64x32xf32> -> vector<64x32xf32>
    %129 = arith.addf %124, %128 : vector<64x32xf32>
    %130 = vector.extract_strided_slice %100 {offsets = [384, 0], sizes = [64, 32], strides = [1, 1]} : vector<512x32xf32> to vector<64x32xf32>
    %c6_83 = arith.constant 6 : index
    %c0_84 = arith.constant 0 : index
    %c0_85 = arith.constant 0 : index
    %131 = vector.load %arg4[%c6_83, %c0_84, %c0_85] : memref<8x32x32xf32, #tpu.memory_space<vmem>>, vector<1x32x32xf32>
    %132 = vector.shape_cast %131 : vector<1x32x32xf32> to vector<32x32xf32>
    %cst_86 = arith.constant dense<0.000000e+00> : vector<64x32xf32>
    %133 = tpu.matmul %130, %132, %cst_86 {dimension_numbers = #tpu.dot_dimension_numbers<[1], [0], [0], [1], [0, 0, 1, 1], [], []>} : vector<64x32xf32>, vector<32x32xf32>, vector<64x32xf32> -> vector<64x32xf32>
    %134 = arith.addf %129, %133 : vector<64x32xf32>
    %135 = vector.extract_strided_slice %100 {offsets = [448, 0], sizes = [64, 32], strides = [1, 1]} : vector<512x32xf32> to vector<64x32xf32>
    %c7_87 = arith.constant 7 : index
    %c0_88 = arith.constant 0 : index
    %c0_89 = arith.constant 0 : index
    %136 = vector.load %arg4[%c7_87, %c0_88, %c0_89] : memref<8x32x32xf32, #tpu.memory_space<vmem>>, vector<1x32x32xf32>
    %137 = vector.shape_cast %136 : vector<1x32x32xf32> to vector<32x32xf32>
    %cst_90 = arith.constant dense<0.000000e+00> : vector<64x32xf32>
    %138 = tpu.matmul %135, %137, %cst_90 {dimension_numbers = #tpu.dot_dimension_numbers<[1], [0], [0], [1], [0, 0, 1, 1], [], []>} : vector<64x32xf32>, vector<32x32xf32>, vector<64x32xf32> -> vector<64x32xf32>
    %139 = arith.addf %134, %138 : vector<64x32xf32>
    %140 = vector.extract_strided_slice %139 {offsets = [0, 0], sizes = [32, 32], strides = [1, 1]} : vector<64x32xf32> to vector<32x32xf32>
    %141 = vector.extract_strided_slice %139 {offsets = [32, 0], sizes = [32, 32], strides = [1, 1]} : vector<64x32xf32> to vector<32x32xf32>
    %142 = arith.addf %140, %141 : vector<32x32xf32>
    %c0_91 = arith.constant 0 : index
    %143 = memref.load %arg6[%c0_91] : memref<1xf32, #tpu.memory_space<smem>>
    %cst_92 = arith.constant 2.000000e+00 : f32
    %144 = arith.mulf %cst_92, %143 : f32
    %145 = vector.broadcast %144 : f32 to vector<32x32xf32>
    %146 = arith.addf %142, %145 : vector<32x32xf32>
    %147 = arith.negf %146 : vector<32x32xf32>
    %148 = math.exp %147 : vector<32x32xf32>
    %cst_93 = arith.constant 1.000000e+00 : f32
    %149 = vector.broadcast %cst_93 : f32 to vector<32x32xf32>
    %150 = arith.addf %149, %148 : vector<32x32xf32>
    %151 = arith.divf %149, %150 : vector<32x32xf32>
    %cst_94 = arith.constant 2.000000e+00 : f32
    %152 = vector.broadcast %cst_94 : f32 to vector<32x32xf32>
    %153 = arith.mulf %151, %152 : vector<32x32xf32>
    %c0_95 = arith.constant 0 : index
    %c0_96 = arith.constant 0 : index
    %c0_97 = arith.constant 0 : index
    %154 = vector.load %arg1[%c0_95, %c0_96, %c0_97] : memref<32x32x256xf32, #tpu.memory_space<vmem>>, vector<32x32x256xf32>
    %155 = vector.shape_cast %153 : vector<32x32xf32> to vector<32x32x1xf32>
    %156 = vector.broadcast %155 : vector<32x32x1xf32> to vector<32x32x256xf32>
    %157 = arith.mulf %154, %156 : vector<32x32x256xf32>
    %c0_98 = arith.constant 0 : index
    %c0_99 = arith.constant 0 : index
    %c0_100 = arith.constant 0 : index
    %158 = vector.load %arg7[%c0_98, %c0_99, %c0_100] : memref<32x32x256xf32, #tpu.memory_space<vmem>>, vector<32x32x256xf32>
    tpu.vector_store %arg7[%c0_98, %c0_99, %c0_100], %157 {strides = array<i32>} : memref<32x32x256xf32, #tpu.memory_space<vmem>>, vector<32x32x256xf32>,
    return
  }
  func.func @transform_0(%arg0: i32) -> (i32, i32, i32) {
    %c0_i32 = arith.constant 0 : i32
    %c0_i32_0 = arith.constant 0 : i32
    %c0_i32_1 = arith.constant 0 : i32
    return %arg0, %c0_i32, %c0_i32_0 : i32, i32, i32
  }
  func.func @transform_1(%arg0: i32) -> (i32, i32, i32) {
    %c0_i32 = arith.constant 0 : i32
    %c0_i32_0 = arith.constant 0 : i32
    %c0_i32_1 = arith.constant 0 : i32
    %c0_i32_2 = arith.constant 0 : i32
    return %c0_i32, %c0_i32_0, %c0_i32_1 : i32, i32, i32
  }
  func.func @transform_2(%arg0: i32) -> (i32, i32, i32) {
    %c0_i32 = arith.constant 0 : i32
    %c0_i32_0 = arith.constant 0 : i32
    %c0_i32_1 = arith.constant 0 : i32
    %c0_i32_2 = arith.constant 0 : i32
    return %c0_i32, %c0_i32_0, %c0_i32_1 : i32, i32, i32
  }
  func.func @transform_3(%arg0: i32) -> (i32, i32, i32) {
    %c0_i32 = arith.constant 0 : i32
    %c0_i32_0 = arith.constant 0 : i32
    %c0_i32_1 = arith.constant 0 : i32
    %c0_i32_2 = arith.constant 0 : i32
    return %c0_i32, %c0_i32_0, %c0_i32_1 : i32, i32, i32
  }
  func.func @transform_4(%arg0: i32) -> i32 {
    %c0_i32 = arith.constant 0 : i32
    %c0_i32_0 = arith.constant 0 : i32
    return %c0_i32 : i32
  }
  func.func @transform_5(%arg0: i32) -> i32 {
    %c0_i32 = arith.constant 0 : i32
    %c0_i32_0 = arith.constant 0 : i32
    return %c0_i32 : i32
  }
  func.func @transform_6(%arg0: i32) -> (i32, i32, i32) {
    %c0_i32 = arith.constant 0 : i32
    %c0_i32_0 = arith.constant 0 : i32
    %c0_i32_1 = arith.constant 0 : i32
    return %arg0, %c0_i32, %c0_i32_0 : i32, i32, i32
  }
}

</mosaic_0001>

<bundles_post_ra>
// kernel: tce_forward.1
= control target key start
LH: loop header
LB: loop body
LE: loop exit
PB: predicated region body
PF: predicated region fallthrough
CT: control target
= control target key end

     0   :  { %12 = vsyncpa [#allocation4], 0  ;;  %s18278_s0 = inlined_call_operand.vmem [shape: f32[32,32,256], index: 0, kind: input, shape index: {}]   ;;  %s18279_s1 = inlined_call_operand.vmem [shape: f32[8,32,32], index: 1, kind: input, shape index: {}]   ;;  %s18280_s2 = inlined_call_operand.vmem [shape: f32[3,32,32], index: 2, kind: input, shape index: {}]   ;;  %s18281_s3 = inlined_call_operand.vmem [shape: f32[8,32,32], index: 3, kind: input, shape index: {}]   ;;  %s18282_s4 = inlined_call_operand.vmem [shape: f32[8], index: 4, kind: input, shape index: {}]   ;;  %s18283_s5 = inlined_call_operand.<no memory space> [shape: f32[1], index: 5, kind: input, shape index: {}]   ;;  %s18284_s6 = inlined_call_operand.vmem [shape: f32[32,32,256], index: 6, kind: output, shape index: {}]  }
   0x1   :  { %s27_s23 = sshll.u32 %s18282_s4, 4  ;;  %s28_s23 = int_to_ptr.vmem [resolvable:$true] %s27_s23 }
   0x2   :  { %s11707_s24 = scalar_lea.vmem %s28_s23, 16  ;;  %p11712_p1 = scmp.lt.s32.totalorder %s28_s23, %s28_s23 }
   0x3   :  { %p11708_p0 = scmp.ne.s32.totalorder %s28_s23, %s11707_s24  ;;  %p11713_p2 = scmp.lt.s32.totalorder %s11707_s24, %s11707_s24 }
   0x5   :  { %p11714_p3 = por %p11713_p2, %p11712_p1 }
   0x7   :  { %p11715_p4 = pnand %p11714_p3, %p11708_p0 }
   0x9   :  { %11718 = shalt.err (!%p11715_p4)
}
   0xa   :  { %s11721_s25 = smov [#allocation3]  }
   0xb   :  { %30 = dma.vmem_to_smem %s28_s23, 16, %s11721_s25, [#allocation4]  }
   0xc   :  { %11719 = dma.done.wait [#allocation4], 16  }
   0xd   :  { %11720 = vsyncadd [#allocation4], 4294967280 }
   0xe   :  { %36 = sfence }
   0xf   :  { %v11763_v0 = vld [vmem:[%s18278_s0 + $0x40] sm:$0xff]  ;;  %v11768_v1 = vld [vmem:[%s18278_s0 + $0x48] sm:$0xff]  ;;  %v11785_v5 = vld [vmem:[%s18278_s0 + $0x50] sm:$0xff]  ;;  %vm1328_vm0 = vcmask 130112   ;;  %vm1335_vm1 = vcmask 195712   ;;  %vm1342_vm2 = vcmask 261312  }
  0x10   :  { %v11773_v2 = vld [vmem:[%s18278_s0] sm:$0xff]  ;;  %v305_v3 = vmax.f32 %v11763_v0, %v11768_v1  ;;  %v11780_v4 = vld [vmem:[%s18278_s0 + $0x8] sm:$0xff]  ;;  %v11790_v6 = vld [vmem:[%s18278_s0 + $0x58] sm:$0xff]  ;;  %vm1933_vm3 = vcmask 1041409   ;;  %vm1935_vm4 = vcmask 1042434   ;;  %vm1937_vm5 = vcmask 1043459  }
  0x11   :  { %v293_v7 = vmax.f32 %v11773_v2, %v11780_v4  ;;  %v11797_v8 = vld [vmem:[%s18278_s0 + $0x10] sm:$0xff]  ;;  %v11802_v9 = vld [vmem:[%s18278_s0 + $0x18] sm:$0xff]  ;;  %v308_v10 = vmax.f32 %v11785_v5, %v11790_v6  ;;  %v11811_v12 = vld [vmem:[%s18278_s0 + $0x60] sm:$0xff]  ;;  %vm1939_vm6 = vcmask 1044484   ;;  %vm1941_vm7 = vcmask 1045509   ;;  %s2736_s17 = sld [smem:[#allocation3]] }
  0x12   :  { %306 = vmax.xlane.f32.xlu1 %v305_v3  ;;  %v296_v11 = vmax.f32 %v11797_v8, %v11802_v9  ;;  %v11816_v13 = vld [vmem:[%s18278_s0 + $0x68] sm:$0xff]  ;;  %v11821_v14 = vld [vmem:[%s18278_s0 + $0x20] sm:$0xff]  ;;  %v11835_v18 = vld [vmem:[%s18278_s0 + $0x90] sm:$0xff]  ;;  %vm1943_vm8 = vcmask 1046534   ;;  %vm1945_vm9 = vcmask 1047559   ;;  %vm2738_vm10 = vcmask 261120  }
  0x13   :  { %294 = vmax.xlane.f32.xlu0 %v293_v7  ;;  %v11826_v15 = vld [vmem:[%s18278_s0 + $0x28] sm:$0xff]  ;;  %v311_v16 = vmax.f32 %v11811_v12, %v11816_v13  ;;  %v11840_v19 = vld [vmem:[%s18278_s0 + $0x98] sm:$0xff]  ;;  %v11845_v20 = vld [vmem:[%s18278_s0 + $0x80] sm:$0xff]  ;;  %s9492_s9 = sld [smem:[#allocation3 + $0x2]]  ;;  %s9505_s10 = sld [smem:[#allocation3 + $0x3]] }
  0x14   :  { %v299_v17 = vmax.f32 %v11821_v14, %v11826_v15  ;;  %v11850_v21 = vld [vmem:[%s18278_s0 + $0x88] sm:$0xff]  ;;  %v320_v22 = vmax.f32 %v11835_v18, %v11840_v19  ;;  %v11859_v24 = vld [vmem:[%s18278_s0 + $0x210] sm:$0xff]  ;;  %v11864_v25 = vld [vmem:[%s18278_s0 + $0x218] sm:$0xff]  ;;  %s14830_s11 = sld [smem:[#allocation3 + $0x4]]  ;;  %s14910_s12 = sld [smem:[#allocation3 + $0x5]] }
  0x15   :  { %v317_v23 = vmax.f32 %v11845_v20, %v11850_v21  ;;  %v11869_v26 = vld [vmem:[%s18278_s0 + $0x200] sm:$0xff]  ;;  %v11874_v27 = vld [vmem:[%s18278_s0 + $0x208] sm:$0xff]  ;;  %v392_v28 = vmax.f32 %v11859_v24, %v11864_v25  ;;  %v11883_v30 = vld [vmem:[%s18278_s0 + $0x250] sm:$0xff]  ;;  %s14922_s13 = sld [smem:[#allocation3 + $0x7]]  ;;  %s8308_s25 = smul.f32 2.0, %s18283_s5 }
  0x16   :  { %309 = vmax.xlane.f32.xlu1 %v308_v10  ;;  %v389_v29 = vmax.f32 %v11869_v26, %v11874_v27  ;;  %v11888_v31 = vld [vmem:[%s18278_s0 + $0x258] sm:$0xff]  ;;  %v11893_v32 = vld [vmem:[%s18278_s0 + $0x240] sm:$0xff]  ;;  %v11898_v33 = vld [vmem:[%s18278_s0 + $0x248] sm:$0xff] }
  0x17   :  { %297 = vmax.xlane.f32.xlu0 %v296_v11  ;;  %v404_v34 = vmax.f32 %v11883_v30, %v11888_v31  ;;  %v401_v35 = vmax.f32 %v11893_v32, %v11898_v33  ;;  %v51_v36 = vld [vmem:[%s18278_s0 + $0x70] sm:$0xff]  ;;  %v52_v37 = vld [vmem:[%s18278_s0 + $0x78] sm:$0xff]  ;;  %v61_v42 = vld [vmem:[%s18278_s0 + $0xc0] sm:$0xff] }
  0x18   :  { %v11913_v38 = vld [vmem:[%s18278_s0 + $0x30] sm:$0xff]  ;;  %v11918_v39 = vld [vmem:[%s18278_s0 + $0x38] sm:$0xff]  ;;  %v314_v40 = vmax.f32 %v51_v36, %v52_v37  ;;  %v62_v43 = vld [vmem:[%s18278_s0 + $0xc8] sm:$0xff] }
  0x19   :  { %v302_v41 = vmax.f32 %v11913_v38, %v11918_v39  ;;  %v11931_v44 = vld [vmem:[%s18278_s0 + $0xa0] sm:$0xff]  ;;  %v11936_v45 = vld [vmem:[%s18278_s0 + $0xa8] sm:$0xff]  ;;  %v329_v46 = vmax.f32 %v61_v42, %v62_v43  ;;  %v11949_v50 = vld [vmem:[%s18278_s0 + $0xd0] sm:$0xff] }
  0x1a   :  { %312 = vmax.xlane.f32.xlu1 %v311_v16  ;;  %v323_v47 = vmax.f32 %v11931_v44, %v11936_v45  ;;  %v105_v48 = vld [vmem:[%s18278_s0 + $0x220] sm:$0xff]  ;;  %v106_v49 = vld [vmem:[%s18278_s0 + $0x228] sm:$0xff]  ;;  %v11954_v51 = vld [vmem:[%s18278_s0 + $0xd8] sm:$0xff] }
  0x1b   :  { %300 = vmax.xlane.f32.xlu0 %v299_v17  ;;  %v395_v52 = vmax.f32 %v105_v48, %v106_v49  ;;  %v332_v53 = vmax.f32 %v11949_v50, %v11954_v51  ;;  %v117_v54 = vld [vmem:[%s18278_s0 + $0x280] sm:$0xff]  ;;  %v118_v55 = vld [vmem:[%s18278_s0 + $0x288] sm:$0xff]  ;;  %v59_v60 = vld [vmem:[%s18278_s0 + $0xb0] sm:$0xff] }
  0x1c   :  { %v11967_v56 = vld [vmem:[%s18278_s0 + $0x260] sm:$0xff]  ;;  %v11972_v57 = vld [vmem:[%s18278_s0 + $0x268] sm:$0xff]  ;;  %v413_v58 = vmax.f32 %v117_v54, %v118_v55  ;;  %v60_v61 = vld [vmem:[%s18278_s0 + $0xb8] sm:$0xff] }
  0x1d   :  { %v407_v59 = vmax.f32 %v11967_v56, %v11972_v57  ;;  %v119_v62 = vld [vmem:[%s18278_s0 + $0x290] sm:$0xff]  ;;  %v120_v63 = vld [vmem:[%s18278_s0 + $0x298] sm:$0xff]  ;;  %v326_v3 = vmax.f32 %v59_v60, %v60_v61  ;;  %v69_v10 = vld [vmem:[%s18278_s0 + $0x100] sm:$0xff] }
  0x1e   :  { %321 = vmax.xlane.f32.xlu1 %v320_v22  ;;  %v416_v7 = vmax.f32 %v119_v62, %v120_v63  ;;  %v70_v11 = vld [vmem:[%s18278_s0 + $0x108] sm:$0xff]  ;;  %v65_v16 = vld [vmem:[%s18278_s0 + $0xe0] sm:$0xff]  ;;  %v115_v42 = vld [vmem:[%s18278_s0 + $0x270] sm:$0xff] }
  0x1f   :  { %318 = vmax.xlane.f32.xlu0 %v317_v23  ;;  %v66_v17 = vld [vmem:[%s18278_s0 + $0xe8] sm:$0xff]  ;;  %v341_v22 = vmax.f32 %v69_v10, %v70_v11  ;;  %v116_v43 = vld [vmem:[%s18278_s0 + $0x278] sm:$0xff]  ;;  %v127_v48 = vld [vmem:[%s18278_s0 + $0x2d0] sm:$0xff] }
  0x20   :  { %v335_v23 = vmax.f32 %v65_v16, %v66_v17  ;;  %v128_v49 = vld [vmem:[%s18278_s0 + $0x2d8] sm:$0xff]  ;;  %v67_v60 = vld [vmem:[%s18278_s0 + $0xf0] sm:$0xff]  ;;  %v77_v10 = vld [vmem:[%s18278_s0 + $0x140] sm:$0xff] }
  0x21   :  { %v428_v54 = vmax.f32 %v127_v48, %v128_v49  ;;  %v68_v61 = vld [vmem:[%s18278_s0 + $0xf8] sm:$0xff]  ;;  %v78_v11 = vld [vmem:[%s18278_s0 + $0x148] sm:$0xff]  ;;  %v165_v48 = vld [vmem:[%s18278_s0 + $0x400] sm:$0xff] }
  0x22   :  { %393 = vmax.xlane.f32.xlu1 %v392_v28  ;;  %v107_v28 = vld [vmem:[%s18278_s0 + $0x230] sm:$0xff]  ;;  %v338_v63 = vmax.f32 %v67_v60, %v68_v61  ;;  %v353_v17 = vmax.f32 %v77_v10, %v78_v11  ;;  %v166_v49 = vld [vmem:[%s18278_s0 + $0x408] sm:$0xff] }
  0x23   :  { %390 = vmax.xlane.f32.xlu0 %v389_v29  ;;  %v108_v29 = vld [vmem:[%s18278_s0 + $0x238] sm:$0xff] }
  0x24   :  { %v398_v36 = vmax.f32 %v107_v28, %v108_v29  ;;  %v123_v28 = vld [vmem:[%s18278_s0 + $0x2b0] sm:$0xff]  ;;  %v124_v29 = vld [vmem:[%s18278_s0 + $0x2b8] sm:$0xff] }
  0x26   :  { %405 = vmax.xlane.f32.xlu1 %v404_v34  ;;  %v71_v34 = vld [vmem:[%s18278_s0 + $0x110] sm:$0xff] }
  0x27   :  { %402 = vmax.xlane.f32.xlu0 %v401_v35  ;;  %v72_v35 = vld [vmem:[%s18278_s0 + $0x118] sm:$0xff] }
  0x28   :  { %v344_v37 = vmax.f32 %v71_v34, %v72_v35  ;;  %v422_v35 = vmax.f32 %v123_v28, %v124_v29 }
  0x2a   :  { %315 = vmax.xlane.f32.xlu1 %v314_v40  ;;  %v121_v40 = vld [vmem:[%s18278_s0 + $0x2a0] sm:$0xff] }
  0x2b   :  { %303 = vmax.xlane.f32.xlu0 %v302_v41  ;;  %v122_v41 = vld [vmem:[%s18278_s0 + $0x2a8] sm:$0xff] }
  0x2e   :  { %330 = vmax.xlane.f32.xlu1 %v329_v46  ;;  %v419_v46 = vmax.f32 %v121_v40, %v122_v41  ;;  %v133_v40 = vld [vmem:[%s18278_s0 + $0x300] sm:$0xff]  ;;  %v134_v41 = vld [vmem:[%s18278_s0 + $0x308] sm:$0xff] }
  0x2f   :  { %324 = vmax.xlane.f32.xlu0 %v323_v47  ;;  %v410_v47 = vmax.f32 %v115_v42, %v116_v43  ;;  %v437_v43 = vmax.f32 %v133_v40, %v134_v41 }
  0x32   :  { %396 = vmax.xlane.f32.xlu1 %v395_v52  ;;  %v125_v52 = vld [vmem:[%s18278_s0 + $0x2c0] sm:$0xff] }
  0x33   :  { %333 = vmax.xlane.f32.xlu0 %v332_v53  ;;  %v126_v53 = vld [vmem:[%s18278_s0 + $0x2c8] sm:$0xff] }
  0x34   :  { %v425_v55 = vmax.f32 %v125_v52, %v126_v53  ;;  %v485_v53 = vmax.f32 %v165_v48, %v166_v49 }
  0x36   :  { %414 = vmax.xlane.f32.xlu1 %v413_v58  ;;  %v73_v58 = vld [vmem:[%s18278_s0 + $0x120] sm:$0xff] }
  0x37   :  { %408 = vmax.xlane.f32.xlu0 %v407_v59  ;;  %v74_v59 = vld [vmem:[%s18278_s0 + $0x128] sm:$0xff] }
  0x38   :  { %v347_v62 = vmax.f32 %v73_v58, %v74_v59  ;;  %v173_v58 = vld [vmem:[%s18278_s0 + $0x440] sm:$0xff]  ;;  %v174_v59 = vld [vmem:[%s18278_s0 + $0x448] sm:$0xff] }
  0x39   :  { %v497_v61 = vmax.f32 %v173_v58, %v174_v59 }
  0x3a   :  { %327 = vmax.xlane.f32.xlu1 %v326_v3  ;;  %v79_v3 = vld [vmem:[%s18278_s0 + $0x150] sm:$0xff] }
  0x3b   :  { %417 = vmax.xlane.f32.xlu0 %v416_v7  ;;  %v80_v7 = vld [vmem:[%s18278_s0 + $0x158] sm:$0xff] }
  0x3c   :  { %v356_v16 = vmax.f32 %v79_v3, %v80_v7  ;;  %v75_v3 = vld [vmem:[%s18278_s0 + $0x130] sm:$0xff]  ;;  %v76_v7 = vld [vmem:[%s18278_s0 + $0x138] sm:$0xff] }
  0x3d   :  { %v350_v11 = vmax.f32 %v75_v3, %v76_v7 }
  0x3e   :  { %342 = vmax.xlane.f32.xlu1 %v341_v22  ;;  %v129_v22 = vld [vmem:[%s18278_s0 + $0x2e0] sm:$0xff] }
  0x3f   :  { %336 = vmax.xlane.f32.xlu0 %v335_v23  ;;  %v130_v23 = vld [vmem:[%s18278_s0 + $0x2e8] sm:$0xff] }
  0x40   :  { %v431_v34 = vmax.f32 %v129_v22, %v130_v23  ;;  %v85_v22 = vld [vmem:[%s18278_s0 + $0x180] sm:$0xff]  ;;  %v86_v23 = vld [vmem:[%s18278_s0 + $0x188] sm:$0xff] }
  0x41   :  { %v365_v29 = vmax.f32 %v85_v22, %v86_v23 }
  0x42   :  { %399 = vmax.xlane.f32.xlu1 %v398_v36  ;;  %v135_v36 = vld [vmem:[%s18278_s0 + $0x310] sm:$0xff] }
  0x43   :  { %345 = vmax.xlane.f32.xlu0 %v344_v37  ;;  %v136_v37 = vld [vmem:[%s18278_s0 + $0x318] sm:$0xff] }
  0x44   :  { %v440_v42 = vmax.f32 %v135_v36, %v136_v37  ;;  %v131_v36 = vld [vmem:[%s18278_s0 + $0x2f0] sm:$0xff]  ;;  %v132_v37 = vld [vmem:[%s18278_s0 + $0x2f8] sm:$0xff] }
  0x45   :  { %v434_v41 = vmax.f32 %v131_v36, %v132_v37 }
  0x46   :  { %420 = vmax.xlane.f32.xlu1 %v419_v46  ;;  %v167_v46 = vld [vmem:[%s18278_s0 + $0x410] sm:$0xff] }
  0x47   :  { %411 = vmax.xlane.f32.xlu0 %v410_v47  ;;  %v168_v47 = vld [vmem:[%s18278_s0 + $0x418] sm:$0xff] }
  0x48   :  { %v488_v52 = vmax.f32 %v167_v46, %v168_v47  ;;  %v141_v46 = vld [vmem:[%s18278_s0 + $0x340] sm:$0xff]  ;;  %v142_v47 = vld [vmem:[%s18278_s0 + $0x348] sm:$0xff] }
  0x49   :  { %v449_v49 = vmax.f32 %v141_v46, %v142_v47 }
  0x4a   :  { %429 = vmax.xlane.f32.xlu1 %v428_v54  ;;  %v175_v54 = vld [vmem:[%s18278_s0 + $0x450] sm:$0xff] }
  0x4b   :  { %426 = vmax.xlane.f32.xlu0 %v425_v55  ;;  %v176_v55 = vld [vmem:[%s18278_s0 + $0x458] sm:$0xff] }
  0x4c   :  { %v500_v60 = vmax.f32 %v175_v54, %v176_v55  ;;  %v169_v54 = vld [vmem:[%s18278_s0 + $0x420] sm:$0xff]  ;;  %v170_v55 = vld [vmem:[%s18278_s0 + $0x428] sm:$0xff] }
  0x4d   :  { %v491_v59 = vmax.f32 %v169_v54, %v170_v55 }
  0x4e   :  { %348 = vmax.xlane.f32.xlu1 %v347_v62  ;;  %v81_v62 = vld [vmem:[%s18278_s0 + $0x160] sm:$0xff] }
  0x4f   :  { %339 = vmax.xlane.f32.xlu0 %v338_v63  ;;  %v82_v63 = vld [vmem:[%s18278_s0 + $0x168] sm:$0xff] }
  0x50   :  { %v359_v10 = vmax.f32 %v81_v62, %v82_v63  ;;  %v181_v62 = vld [vmem:[%s18278_s0 + $0x480] sm:$0xff]  ;;  %v182_v63 = vld [vmem:[%s18278_s0 + $0x488] sm:$0xff] }
  0x51   :  { %v509_v7 = vmax.f32 %v181_v62, %v182_v63 }
  0x52   :  { %357 = vmax.xlane.f32.xlu1 %v356_v16  ;;  %v87_v16 = vld [vmem:[%s18278_s0 + $0x190] sm:$0xff] }
  0x53   :  { %354 = vmax.xlane.f32.xlu0 %v353_v17  ;;  %v88_v17 = vld [vmem:[%s18278_s0 + $0x198] sm:$0xff] }
  0x54   :  { %v368_v28 = vmax.f32 %v87_v16, %v88_v17  ;;  %v229_v16 = vld [vmem:[%s18278_s0 + $0x600] sm:$0xff]  ;;  %v230_v17 = vld [vmem:[%s18278_s0 + $0x608] sm:$0xff] }
  0x55   :  { %v581_v23 = vmax.f32 %v229_v16, %v230_v17 }
  0x56   :  { %432 = vmax.xlane.f32.xlu1 %v431_v34  ;;  %v137_v34 = vld [vmem:[%s18278_s0 + $0x320] sm:$0xff] }
  0x57   :  { %423 = vmax.xlane.f32.xlu0 %v422_v35  ;;  %v138_v35 = vld [vmem:[%s18278_s0 + $0x328] sm:$0xff] }
  0x58   :  { %v443_v40 = vmax.f32 %v137_v34, %v138_v35  ;;  %v237_v34 = vld [vmem:[%s18278_s0 + $0x640] sm:$0xff]  ;;  %v238_v35 = vld [vmem:[%s18278_s0 + $0x648] sm:$0xff] }
  0x59   :  { %v593_v37 = vmax.f32 %v237_v34, %v238_v35 }
  0x5a   :  { %441 = vmax.xlane.f32.xlu1 %v440_v42  ;;  %v143_v42 = vld [vmem:[%s18278_s0 + $0x350] sm:$0xff] }
  0x5b   :  { %438 = vmax.xlane.f32.xlu0 %v437_v43  ;;  %v144_v43 = vld [vmem:[%s18278_s0 + $0x358] sm:$0xff] }
  0x5c   :  { %v452_v48 = vmax.f32 %v143_v42, %v144_v43  ;;  %v83_v42 = vld [vmem:[%s18278_s0 + $0x170] sm:$0xff]  ;;  %v84_v43 = vld [vmem:[%s18278_s0 + $0x178] sm:$0xff] }
  0x5d   :  { %v362_v47 = vmax.f32 %v83_v42, %v84_v43  ;;  %v1317_v43 = vlaneseq }
  0x5e   :  { %489 = vmax.xlane.f32.xlu1 %v488_v52  ;;  %v177_v52 = vld [vmem:[%s18278_s0 + $0x460] sm:$0xff] }
  0x5f   :  { %486 = vmax.xlane.f32.xlu0 %v485_v53  ;;  %v178_v53 = vld [vmem:[%s18278_s0 + $0x468] sm:$0xff] }
  0x60   :  { %v503_v58 = vmax.f32 %v177_v52, %v178_v53  ;;  %v93_v52 = vld [vmem:[%s18278_s0 + $0x1c0] sm:$0xff]  ;;  %v94_v53 = vld [vmem:[%s18278_s0 + $0x1c8] sm:$0xff] }
  0x61   :  { %v377_v55 = vmax.f32 %v93_v52, %v94_v53  ;;  %v192_v52 = vld [vmem:[%s18278_s0 + $0x4d8] sm:$0xff] }
  0x62   :  { %501 = vmax.xlane.f32.xlu1 %v500_v60  ;;  %v183_v60 = vld [vmem:[%s18278_s0 + $0x490] sm:$0xff] }
  0x63   :  { %498 = vmax.xlane.f32.xlu0 %v497_v61  ;;  %v184_v61 = vld [vmem:[%s18278_s0 + $0x498] sm:$0xff] }
  0x64   :  { %v512_v3 = vmax.f32 %v183_v60, %v184_v61  ;;  %v139_v60 = vld [vmem:[%s18278_s0 + $0x330] sm:$0xff]  ;;  %v140_v61 = vld [vmem:[%s18278_s0 + $0x338] sm:$0xff] }
  0x65   :  { %v446_v63 = vmax.f32 %v139_v60, %v140_v61  ;;  %v12296_v60 = vshrl.u32 %v1317_v43, 7  ;;  %v241_v61 = vld [vmem:[%s18278_s0 + $0x660] sm:$0xff] }
  0x66   :  { %360 = vmax.xlane.f32.xlu1 %v359_v10  ;;  %v231_v10 = vld [vmem:[%s18278_s0 + $0x610] sm:$0xff] }
  0x67   :  { %351 = vmax.xlane.f32.xlu0 %v350_v11  ;;  %v232_v11 = vld [vmem:[%s18278_s0 + $0x618] sm:$0xff]  ;;  %18348 = vst [vmem:[#allocation6_spill] sm:$0xff] %v12296_v60 }
  0x68   :  { %v584_v22 = vmax.f32 %v231_v10, %v232_v11  ;;  %v149_v10 = vld [vmem:[%s18278_s0 + $0x380] sm:$0xff]  ;;  %v150_v11 = vld [vmem:[%s18278_s0 + $0x388] sm:$0xff] }
  0x69   :  { %v461_v17 = vmax.f32 %v149_v10, %v150_v11 }
  0x6a   :  { %369 = vmax.xlane.f32.xlu1 %v368_v28  ;;  %v239_v28 = vld [vmem:[%s18278_s0 + $0x650] sm:$0xff] }
  0x6b   :  { %366 = vmax.xlane.f32.xlu0 %v365_v29  ;;  %v240_v29 = vld [vmem:[%s18278_s0 + $0x658] sm:$0xff] }
  0x6c   :  { %v596_v36 = vmax.f32 %v239_v28, %v240_v29  ;;  %v171_v28 = vld [vmem:[%s18278_s0 + $0x430] sm:$0xff]  ;;  %v172_v29 = vld [vmem:[%s18278_s0 + $0x438] sm:$0xff] }
  0x6d   :  { %v494_v35 = vmax.f32 %v171_v28, %v172_v29  ;;  %v677_v29 = vadd.f32 %v11780_v4, %v11773_v2  ;;  %v689_v2 = vadd.f32 %v11768_v1, %v11763_v0 }
  0x6e   :  { %444 = vmax.xlane.f32.xlu1 %v443_v40  ;;  %v89_v40 = vld [vmem:[%s18278_s0 + $0x1a0] sm:$0xff] }
  0x6f   :  { %435 = vmax.xlane.f32.xlu0 %v434_v41  ;;  %v90_v41 = vld [vmem:[%s18278_s0 + $0x1a8] sm:$0xff] }
  0x70   :  { %v371_v46 = vmax.f32 %v89_v40, %v90_v41  ;;  %v185_v40 = vld [vmem:[%s18278_s0 + $0x4a0] sm:$0xff]  ;;  %v186_v41 = vld [vmem:[%s18278_s0 + $0x4a8] sm:$0xff] }
  0x72   :  { %453 = vmax.xlane.f32.xlu1 %v452_v48  ;;  %v95_v48 = vld [vmem:[%s18278_s0 + $0x1d0] sm:$0xff] }
  0x73   :  { %450 = vmax.xlane.f32.xlu0 %v449_v49  ;;  %v96_v49 = vld [vmem:[%s18278_s0 + $0x1d8] sm:$0xff] }
  0x74   :  { %v380_v54 = vmax.f32 %v95_v48, %v96_v49  ;;  %v234_v48 = vld [vmem:[%s18278_s0 + $0x628] sm:$0xff]  ;;  %v191_v49 = vld [vmem:[%s18278_s0 + $0x4d0] sm:$0xff] }
  0x76   :  { %504 = vmax.xlane.f32.xlu1 %v503_v58  ;;  %v145_v58 = vld [vmem:[%s18278_s0 + $0x360] sm:$0xff] }
  0x77   :  { %492 = vmax.xlane.f32.xlu0 %v491_v59  ;;  %v146_v59 = vld [vmem:[%s18278_s0 + $0x368] sm:$0xff] }
  0x78   :  { %v455_v62 = vmax.f32 %v145_v58, %v146_v59  ;;  %v245_v58 = vld [vmem:[%s18278_s0 + $0x680] sm:$0xff]  ;;  %v246_v59 = vld [vmem:[%s18278_s0 + $0x688] sm:$0xff] }
  0x7a   :  { %513 = vmax.xlane.f32.xlu1 %v512_v3  ;;  %v151_v3 = vld [vmem:[%s18278_s0 + $0x390] sm:$0xff] }
  0x7b   :  { %510 = vmax.xlane.f32.xlu0 %v509_v7  ;;  %v152_v7 = vld [vmem:[%s18278_s0 + $0x398] sm:$0xff] }
  0x7c   :  { %v464_v16 = vmax.f32 %v151_v3, %v152_v7  ;;  %v605_v3 = vmax.f32 %v245_v58, %v246_v59 }
  0x7e   :  { %585 = vmax.xlane.f32.xlu1 %v584_v22  ;;  %v179_v22 = vld [vmem:[%s18278_s0 + $0x470] sm:$0xff] }
  0x7f   :  { %582 = vmax.xlane.f32.xlu0 %v581_v23  ;;  %v180_v23 = vld [vmem:[%s18278_s0 + $0x478] sm:$0xff] }
  0x80   :  { %v506_v34 = vmax.f32 %v179_v22, %v180_v23  ;;  %v247_v22 = vld [vmem:[%s18278_s0 + $0x690] sm:$0xff]  ;;  %v248_v23 = vld [vmem:[%s18278_s0 + $0x698] sm:$0xff] }
  0x82   :  { %597 = vmax.xlane.f32.xlu1 %v596_v36  ;;  %v189_v36 = vld [vmem:[%s18278_s0 + $0x4c0] sm:$0xff] }
  0x83   :  { %594 = vmax.xlane.f32.xlu0 %v593_v37  ;;  %v190_v37 = vld [vmem:[%s18278_s0 + $0x4c8] sm:$0xff] }
  0x84   :  { %v521_v42 = vmax.f32 %v189_v36, %v190_v37 }
  0x86   :  { %372 = vmax.xlane.f32.xlu1 %v371_v46  ;;  %v515_v46 = vmax.f32 %v185_v40, %v186_v41 }
  0x87   :  { %363 = vmax.xlane.f32.xlu0 %v362_v47  ;;  %v233_v47 = vld [vmem:[%s18278_s0 + $0x620] sm:$0xff] }
  0x88   :  { %v587_v53 = vmax.f32 %v233_v47, %v234_v48  ;;  %v680_v48 = vadd.f32 %v11802_v9, %v11797_v8  ;;  %v692_v9 = vadd.f32 %v11790_v6, %v11785_v5 }
  0x8a   :  { %381 = vmax.xlane.f32.xlu1 %v380_v54  ;;  %v12288_v54 = vand.u32 127, %v1317_v43 }
  0x8b   :  { %378 = vmax.xlane.f32.xlu0 %v377_v55  ;;  %v524_v55 = vmax.f32 %v191_v49, %v192_v52  ;;  %v91_v49 = vld [vmem:[%s18278_s0 + $0x1b0] sm:$0xff]  ;;  %v92_v52 = vld [vmem:[%s18278_s0 + $0x1b8] sm:$0xff] }
  0x8c   :  { %v12307_v11 = vsub.s32 %v12288_v54, %v12296_v60  ;;  %v1330_v28 = vadd.s32 4294967280, %v12288_v54  ;;  %v374_v58 = vmax.f32 %v91_v49, %v92_v52 }
  0x8e   :  { %456 = vmax.xlane.f32.xlu1 %v455_v62  ;;  %v242_v62 = vld [vmem:[%s18278_s0 + $0x668] sm:$0xff]  ;;  %v12324_v41 = vsub.s32 %v1330_v28, %v12296_v60  ;;  %v157_v28 = vld [vmem:[%s18278_s0 + $0x3c0] sm:$0xff] }
  0x8f   :  { %447 = vmax.xlane.f32.xlu0 %v446_v63  ;;  %v1323_v63 = vadd.s32 4294967288, %v12288_v54  ;;  %v599_v10 = vmax.f32 %v241_v61, %v242_v62  ;;  %v147_v61 = vld [vmem:[%s18278_s0 + $0x370] sm:$0xff]  ;;  %v148_v62 = vld [vmem:[%s18278_s0 + $0x378] sm:$0xff] }
  0x90   :  { %v458_v6 = vmax.f32 %v147_v61, %v148_v62  ;;  %v197_v62 = vld [vmem:[%s18278_s0 + $0x500] sm:$0xff] }
  0x92   :  { %465 = vmax.xlane.f32.xlu1 %v464_v16 }
  0x93   :  { %462 = vmax.xlane.f32.xlu0 %v461_v17  ;;  %v12310_v17 = vsub.s32 %v1323_v63, %v12296_v60 }
  0x96   :  { %507 = vmax.xlane.f32.xlu1 %v506_v34 }
  0x97   :  { %495 = vmax.xlane.f32.xlu0 %v494_v35  ;;  %v608_v35 = vmax.f32 %v247_v22, %v248_v23 }
  0x9a   :  { %522 = vmax.xlane.f32.xlu1 %v521_v42 }
  0x9b   :  { %516 = vmax.xlane.f32.xlu0 %v515_v46 }
  0x9e   :  { %588 = vmax.xlane.f32.xlu1 %v587_v53 }
  0x9f   :  { %525 = vmax.xlane.f32.xlu0 %v524_v55  ;;  %v307_v7 = vpop.xlane.xlu1 %306 }
  0xa0   :  { %v295_v16 = vpop.xlane.xlu0 %294  ;;  %v1347_v36 = vrot.slane %v307_v7, %v12307_v11  ;;  %v97_v7 = vld [vmem:[%s18278_s0 + $0x1e0] sm:$0xff] }
  0xa1   :  { %v1322_v42 = vrot.slane %v295_v16, %v12307_v11 }
  0xa2   :  { %606 = vmax.xlane.f32.xlu1 %v605_v3 }
  0xa3   :  { %600 = vmax.xlane.f32.xlu0 %v599_v10  ;;  %v310_v34 = vpop.xlane.xlu1 %309  ;;  %v98_v10 = vld [vmem:[%s18278_s0 + $0x1e8] sm:$0xff] }
  0xa4   :  { %v1351_v37 = vrot.slane %v310_v34, %v12310_v17  ;;  %v298_v40 = vpop.xlane.xlu0 %297  ;;  %v383_v23 = vmax.f32 %v97_v7, %v98_v10  ;;  %v193_v10 = vld [vmem:[%s18278_s0 + $0x4e0] sm:$0xff] }
  0xa5   :  { %v1327_v43 = vrot.slane %v298_v40, %v12310_v17  ;;  %v1337_v40 = vadd.s32 4294967272, %v12288_v54 }
  0xa6   :  { %v1352_v46 = vsel %vm1328_vm0, %v1351_v37, %v1347_v36  ;;  %678 = vadd.xlane.f32.xlu1 %v677_v29  ;;  %v158_v29 = vld [vmem:[%s18278_s0 + $0x3c8] sm:$0xff]  ;;  %v153_v36 = vld [vmem:[%s18278_s0 + $0x3a0] sm:$0xff] }
  0xa7   :  { %v1329_v4 = vsel %vm1328_vm0, %v1327_v43, %v1322_v42  ;;  %609 = vmax.xlane.f32.xlu0 %v608_v35  ;;  %v313_v47 = vpop.xlane.xlu1 %312  ;;  %v154_v37 = vld [vmem:[%s18278_s0 + $0x3a8] sm:$0xff]  ;;  %v473_v43 = vmax.f32 %v157_v28, %v158_v29  ;;  %v12385_v52 = vsub.s32 %v1337_v40, %v12296_v60 }
  0xa8   :  { %v1356_v53 = vrot.slane %v313_v47, %v12324_v41  ;;  %v301_v55 = vpop.xlane.xlu0 %300  ;;  %v187_v47 = vld [vmem:[%s18278_s0 + $0x4b0] sm:$0xff] }
  0xa9   :  { %v1334_v0 = vrot.slane %v301_v55, %v12324_v41  ;;  %v160_v55 = vld [vmem:[%s18278_s0 + $0x3d8] sm:$0xff] }
  0xaa   :  { %v1357_v1 = vsel %vm1335_vm1, %v1356_v53, %v1352_v46  ;;  %690 = vadd.xlane.f32.xlu1 %v689_v2  ;;  %v159_v53 = vld [vmem:[%s18278_s0 + $0x3d0] sm:$0xff] }
  0xab   :  { %v1336_v59 = vsel %vm1335_vm1, %v1334_v0, %v1329_v4  ;;  %681 = vadd.xlane.f32.xlu0 %v680_v48  ;;  %v322_v8 = vpop.xlane.xlu1 %321  ;;  %v467_v4 = vmax.f32 %v153_v36, %v154_v37  ;;  %v188_v48 = vld [vmem:[%s18278_s0 + $0x4b8] sm:$0xff]  ;;  %v476_v61 = vmax.f32 %v159_v53, %v160_v55  ;;  %v243_v55 = vld [vmem:[%s18278_s0 + $0x670] sm:$0xff] }
  0xac   :  { %v1370_v63 = vrot.slane %v322_v8, %v12310_v17  ;;  %v319_v3 = vpop.xlane.xlu0 %318  ;;  %v236_v36 = vld [vmem:[%s18278_s0 + $0x638] sm:$0xff] }
  0xad   :  { %v1366_v5 = vrot.slane %v319_v3, %v12307_v11 }
  0xae   :  { %375 = vmax.xlane.f32.xlu1 %v374_v58  ;;  %v518_v58 = vmax.f32 %v187_v47, %v188_v48  ;;  %v249_v48 = vld [vmem:[%s18278_s0 + $0x6a0] sm:$0xff] }
  0xaf   :  { %v1371_v16 = vsel %vm1328_vm0, %v1370_v63, %v1366_v5  ;;  %693 = vadd.xlane.f32.xlu0 %v692_v9  ;;  %v394_v22 = vpop.xlane.xlu1 %393  ;;  %v198_v63 = vld [vmem:[%s18278_s0 + $0x508] sm:$0xff] }
  0xb0   :  { %v1484_v34 = vrot.slane %v394_v22, %v12310_v17  ;;  %v391_v35 = vpop.xlane.xlu0 %390  ;;  %v194_v5 = vld [vmem:[%s18278_s0 + $0x4e8] sm:$0xff] }
  0xb1   :  { %v1480_v42 = vrot.slane %v391_v35, %v12307_v11  ;;  %v235_v35 = vld [vmem:[%s18278_s0 + $0x630] sm:$0xff] }
  0xb2   :  { %459 = vmax.xlane.f32.xlu1 %v458_v6 }
  0xb3   :  { %v1485_v46 = vsel %vm1328_vm0, %v1484_v34, %v1480_v42  ;;  %384 = vmax.xlane.f32.xlu0 %v383_v23  ;;  %v406_v2 = vpop.xlane.xlu1 %405  ;;  %v533_v23 = vmax.f32 %v197_v62, %v198_v63  ;;  %v527_v34 = vmax.f32 %v193_v10, %v194_v5  ;;  %v256_v10 = vld [vmem:[%s18278_s0 + $0x6d8] sm:$0xff] }
  0xb4   :  { %v1503_v49 = vrot.slane %v406_v2, %v12310_v17  ;;  %v403_v54 = vpop.xlane.xlu0 %402 }
  0xb5   :  { %v1499_v0 = vrot.slane %v403_v54, %v12307_v11 }
  0xb6   :  { %474 = vmax.xlane.f32.xlu1 %v473_v43  ;;  %v590_v43 = vmax.f32 %v235_v35, %v236_v36 }
  0xb7   :  { %v1504_v8 = vsel %vm1328_vm0, %v1503_v49, %v1499_v0  ;;  %468 = vmax.xlane.f32.xlu0 %v467_v4  ;;  %v316_v9 = vpop.xlane.xlu1 %315  ;;  %v250_v49 = vld [vmem:[%s18278_s0 + $0x6a8] sm:$0xff] }
  0xb8   :  { %v1361_v3 = vrot.slane %v316_v9, %v12385_v52  ;;  %v304_v7 = vpop.xlane.xlu0 %303 }
  0xb9   :  { %v1341_v6 = vrot.slane %v304_v7, %v12385_v52  ;;  %v255_v7 = vld [vmem:[%s18278_s0 + $0x6d0] sm:$0xff] }
  0xba   :  { %v1362_v22 = vsel %vm1342_vm2, %v1361_v3, %v1357_v1  ;;  %519 = vmax.xlane.f32.xlu1 %v518_v58  ;;  %v199_v1 = vld [vmem:[%s18278_s0 + $0x510] sm:$0xff] }
  0xbb   :  { %v1343_v28 = vsel %vm1342_vm2, %v1341_v6, %v1336_v59  ;;  %477 = vmax.xlane.f32.xlu0 %v476_v61  ;;  %v331_v29 = vpop.xlane.xlu1 %330  ;;  %v200_v59 = vld [vmem:[%s18278_s0 + $0x518] sm:$0xff]  ;;  %v611_v61 = vmax.f32 %v249_v48, %v250_v49  ;;  %v254_v6 = vld [vmem:[%s18278_s0 + $0x6c8] sm:$0xff] }
  0xbc   :  { %v1934_v37 = vsel %vm1933_vm3, %v1362_v22, %v1343_v28  ;;  %v325_v40 = vpop.xlane.xlu0 %324  ;;  %v536_v47 = vmax.f32 %v199_v1, %v200_v59  ;;  %v1385_v0 = vrot.slane %v331_v29, %v12307_v11 }
  0xbd   :  { %v1375_v42 = vrot.slane %v325_v40, %v12324_v41 }
  0xbe   :  { %534 = vmax.xlane.f32.xlu1 %v533_v23  ;;  %v620_v23 = vmax.f32 %v255_v7, %v256_v10 }
  0xbf   :  { %v1376_v2 = vsel %vm1335_vm1, %v1375_v42, %v1371_v16  ;;  %528 = vmax.xlane.f32.xlu0 %v527_v34  ;;  %v397_v4 = vpop.xlane.xlu1 %396  ;;  %v244_v16 = vld [vmem:[%s18278_s0 + $0x678] sm:$0xff]  ;;  %v695_v42 = vadd.f32 %v11816_v13, %v11811_v12  ;;  %v701_v13 = vadd.f32 %v11850_v21, %v11845_v20  ;;  %v773_v20 = vadd.f32 %v11874_v27, %v11869_v26  ;;  %v155_v26 = vld [vmem:[%s18278_s0 + $0x3b0] sm:$0xff] }
  0xc0   :  { %v1489_v54 = vrot.slane %v397_v4, %v12324_v41  ;;  %v334_v53 = vpop.xlane.xlu0 %333  ;;  %v602_v3 = vmax.f32 %v243_v55, %v244_v16  ;;  %v156_v27 = vld [vmem:[%s18278_s0 + $0x3b8] sm:$0xff] }
  0xc1   :  { %v1389_v58 = vrot.slane %v334_v53, %v12310_v17  ;;  %v470_v7 = vmax.f32 %v155_v26, %v156_v27 }
  0xc2   :  { %v1490_v9 = vsel %vm1335_vm1, %v1489_v54, %v1485_v46  ;;  %591 = vmax.xlane.f32.xlu1 %v590_v43  ;;  %v253_v46 = vld [vmem:[%s18278_s0 + $0x6c0] sm:$0xff] }
  0xc3   :  { %v1390_v62 = vsel %vm1328_vm0, %v1389_v58, %v1385_v0  ;;  %537 = vmax.xlane.f32.xlu0 %v536_v47  ;;  %v415_v63 = vpop.xlane.xlu1 %414  ;;  %v617_v34 = vmax.f32 %v253_v46, %v254_v6  ;;  %v683_v47 = vadd.f32 %v11826_v15, %v11821_v14  ;;  %v195_v6 = vld [vmem:[%s18278_s0 + $0x4f0] sm:$0xff] }
  0xc4   :  { %v409_v5 = vpop.xlane.xlu0 %408  ;;  %v1518_v40 = vrot.slane %v415_v63, %v12307_v11 }
  0xc5   :  { %v1508_v22 = vrot.slane %v409_v5, %v12324_v41 }
  0xc6   :  { %612 = vmax.xlane.f32.xlu1 %v611_v61 }
  0xc7   :  { %v1509_v28 = vsel %vm1335_vm1, %v1508_v22, %v1504_v8  ;;  %603 = vmax.xlane.f32.xlu0 %v602_v3  ;;  %v328_v29 = vpop.xlane.xlu1 %327  ;;  %v196_v22 = vld [vmem:[%s18278_s0 + $0x4f8] sm:$0xff] }
  0xc8   :  { %v1380_v35 = vrot.slane %v328_v29, %v12385_v52  ;;  %v418_v36 = vpop.xlane.xlu0 %417  ;;  %v161_v29 = vld [vmem:[%s18278_s0 + $0x3e0] sm:$0xff] }
  0xc9   :  { %v1522_v1 = vrot.slane %v418_v36, %v12310_v17 }
  0xca   :  { %v1381_v59 = vsel %vm1342_vm2, %v1380_v35, %v1376_v2  ;;  %621 = vmax.xlane.f32.xlu1 %v620_v23  ;;  %v704_v2 = vadd.f32 %v11840_v19, %v11835_v18  ;;  %v776_v18 = vadd.f32 %v11864_v25, %v11859_v24 }
  0xcb   :  { %v12464_v43 = vsel %vm1935_vm4, %v1381_v59, %v1934_v37  ;;  %v1523_v8 = vsel %vm1328_vm0, %v1522_v1, %v1518_v40  ;;  %618 = vmax.xlane.f32.xlu0 %v617_v34  ;;  %v343_v4 = vpop.xlane.xlu1 %342  ;;  %v162_v34 = vld [vmem:[%s18278_s0 + $0x3e8] sm:$0xff]  ;;  %v530_v40 = vmax.f32 %v195_v6, %v196_v22  ;;  %v264_v6 = vld [vmem:[%s18278_s0 + $0x718] sm:$0xff] }
  0xcc   :  { %v337_v48 = vpop.xlane.xlu0 %336  ;;  %v1404_v55 = vrot.slane %v343_v4, %v12307_v11  ;;  %v206_v4 = vld [vmem:[%s18278_s0 + $0x548] sm:$0xff] }
  0xcd   :  { %v1394_v49 = vrot.slane %v337_v48, %v12324_v41 }
  0xce   :  { %696 = vadd.xlane.f32.xlu1 %v695_v42  ;;  %v479_v42 = vmax.f32 %v161_v29, %v162_v34 }
  0xcf   :  { %v1395_v54 = vsel %vm1335_vm1, %v1394_v49, %v1390_v62  ;;  %684 = vadd.xlane.f32.xlu0 %v683_v47  ;;  %v400_v12 = vpop.xlane.xlu1 %399  ;;  %v785_v62 = vadd.f32 %v11898_v33, %v11893_v32  ;;  %v100_v32 = vld [vmem:[%s18278_s0 + $0x1f8] sm:$0xff] }
  0xd0   :  { %v1494_v37 = vrot.slane %v400_v12, %v12385_v52  ;;  %v346_v53 = vpop.xlane.xlu0 %345 }
  0xd1   :  { %v1408_v14 = vrot.slane %v346_v53, %v12310_v17 }
  0xd2   :  { %v1495_v15 = vsel %vm1342_vm2, %v1494_v37, %v1490_v9  ;;  %705 = vadd.xlane.f32.xlu1 %v704_v2  ;;  %v788_v9 = vadd.f32 %v11888_v31, %v11883_v30  ;;  %v99_v31 = vld [vmem:[%s18278_s0 + $0x1f0] sm:$0xff]  ;;  %v201_v2 = vld [vmem:[%s18278_s0 + $0x520] sm:$0xff] }
  0xd3   :  { %v1409_v19 = vsel %vm1328_vm0, %v1408_v14, %v1404_v55  ;;  %702 = vadd.xlane.f32.xlu0 %v701_v13  ;;  %v421_v16 = vpop.xlane.xlu1 %420  ;;  %v386_v46 = vmax.f32 %v99_v31, %v100_v32  ;;  %v251_v55 = vld [vmem:[%s18278_s0 + $0x6b0] sm:$0xff]  ;;  %v252_v14 = vld [vmem:[%s18278_s0 + $0x6b8] sm:$0xff] }
  0xd4   :  { %v1527_v21 = vrot.slane %v421_v16, %v12324_v41  ;;  %v412_v0 = vpop.xlane.xlu0 %411  ;;  %v208_v16 = vld [vmem:[%s18278_s0 + $0x558] sm:$0xff] }
  0xd5   :  { %v1513_v58 = vrot.slane %v412_v0, %v12385_v52  ;;  %v614_v0 = vmax.f32 %v251_v55, %v252_v14  ;;  %v791_v55 = vadd.f32 %v11972_v57, %v11967_v56  ;;  %v11253_v57 = vld [vmem:[%s18278_s0 + $0x290] sm:$0xff] }
  0xd6   :  { %v1528_v61 = vsel %vm1335_vm1, %v1527_v21, %v1523_v8  ;;  %777 = vadd.xlane.f32.xlu1 %v776_v18  ;;  %v205_v8 = vld [vmem:[%s18278_s0 + $0x540] sm:$0xff] }
  0xd7   :  { %v1514_v24 = vsel %vm1342_vm2, %v1513_v58, %v1509_v28  ;;  %774 = vadd.xlane.f32.xlu0 %v773_v20  ;;  %v430_v25 = vpop.xlane.xlu1 %429  ;;  %v545_v13 = vmax.f32 %v205_v8, %v206_v4  ;;  %v11248_v8 = vld [vmem:[%s18278_s0 + $0x78] sm:$0xff] }
  0xd8   :  { %v1947_v63 = vsel %vm1933_vm3, %v1514_v24, %v1495_v15  ;;  %v1541_v3 = vrot.slane %v430_v25, %v12310_v17  ;;  %v427_v30 = vpop.xlane.xlu0 %426  ;;  %v261_v25 = vld [vmem:[%s18278_s0 + $0x700] sm:$0xff] }
  0xd9   :  { %v1537_v33 = vrot.slane %v427_v30, %v12307_v11  ;;  %v258_v30 = vld [vmem:[%s18278_s0 + $0x6e8] sm:$0xff] }
  0xda   :  { %789 = vadd.xlane.f32.xlu1 %v788_v9 }
  0xdb   :  { %v1542_v10 = vsel %vm1328_vm0, %v1541_v3, %v1537_v33  ;;  %786 = vadd.xlane.f32.xlu0 %v785_v62  ;;  %v349_v5 = vpop.xlane.xlu1 %348  ;;  %v262_v62 = vld [vmem:[%s18278_s0 + $0x708] sm:$0xff] }
  0xdc   :  { %v1413_v23 = vrot.slane %v349_v5, %v12324_v41  ;;  %v340_v28 = vpop.xlane.xlu0 %339  ;;  %v629_v32 = vmax.f32 %v261_v25, %v262_v62  ;;  %v11255_v62 = vld [vmem:[%s18278_s0 + $0x280] sm:$0xff] }
  0xdd   :  { %v1399_v35 = vrot.slane %v340_v28, %v12385_v52 }
  0xde   :  { %v12523_v36 = vsel %vm1335_vm1, %v1413_v23, %v1409_v19  ;;  %471 = vmax.xlane.f32.xlu1 %v470_v7  ;;  %v207_v19 = vld [vmem:[%s18278_s0 + $0x550] sm:$0xff]  ;;  %v686_v23 = vadd.f32 %v11918_v39, %v11913_v38 }
  0xdf   :  { %v1400_v1 = vsel %vm1342_vm2, %v1399_v35, %v1395_v54  ;;  %387 = vmax.xlane.f32.xlu0 %v386_v46  ;;  %v358_v59 = vpop.xlane.xlu1 %357  ;;  %v202_v54 = vld [vmem:[%s18278_s0 + $0x528] sm:$0xff]  ;;  %v548_v24 = vmax.f32 %v207_v19, %v208_v16  ;;  %v263_v46 = vld [vmem:[%s18278_s0 + $0x710] sm:$0xff] }
  0xe0   :  { %v12534_v47 = vsel %vm1937_vm5, %v1400_v1, %v12464_v43  ;;  %v1427_v48 = vrot.slane %v358_v59, %v12310_v17  ;;  %v355_v49 = vpop.xlane.xlu0 %354  ;;  %v539_v53 = vmax.f32 %v201_v2, %v202_v54  ;;  %v632_v34 = vmax.f32 %v263_v46, %v264_v6  ;;  %v11247_v39 = vld [vmem:[%s18278_s0 + $0x70] sm:$0xff]  ;;  %v213_v6 = vld [vmem:[%s18278_s0 + $0x580] sm:$0xff] }
  0xe1   :  { %v1423_v12 = vrot.slane %v355_v49, %v12307_v11  ;;  %v707_v59 = vadd.f32 %v11936_v45, %v11931_v44  ;;  %v698_v4 = vadd.f32 %v11248_v8, %v11247_v39  ;;  %v716_v2 = vadd.f32 %v11954_v51, %v11949_v50 }
  0xe2   :  { %531 = vmax.xlane.f32.xlu1 %v530_v40 }
  0xe3   :  { %v1428_v37 = vsel %vm1328_vm0, %v1427_v48, %v1423_v12  ;;  %480 = vmax.xlane.f32.xlu0 %v479_v42  ;;  %v433_v43 = vpop.xlane.xlu1 %432 }
  0xe4   :  { %v1546_v15 = vrot.slane %v433_v43, %v12324_v41  ;;  %v424_v18 = vpop.xlane.xlu0 %423  ;;  %v11250_v43 = vld [vmem:[%s18278_s0 + $0xc8] sm:$0xff] }
  0xe5   :  { %v1532_v20 = vrot.slane %v424_v18, %v12385_v52  ;;  %v11251_v18 = vld [vmem:[%s18278_s0 + $0x220] sm:$0xff] }
  0xe6   :  { %v12560_v21 = vsel %vm1335_vm1, %v1546_v15, %v1542_v10  ;;  %546 = vmax.xlane.f32.xlu1 %v545_v13  ;;  %v11249_v13 = vld [vmem:[%s18278_s0 + $0xc0] sm:$0xff] }
  0xe7   :  { %v1533_v58 = vsel %vm1342_vm2, %v1532_v20, %v1528_v61  ;;  %540 = vmax.xlane.f32.xlu0 %v539_v53  ;;  %v442_v9 = vpop.xlane.xlu1 %441  ;;  %v257_v61 = vld [vmem:[%s18278_s0 + $0x6e0] sm:$0xff]  ;;  %v713_v53 = vadd.f32 %v11250_v43, %v11249_v13 }
  0xe8   :  { %v12570_v26 = vsel %vm1935_vm4, %v1533_v58, %v1947_v63  ;;  %v1560_v27 = vrot.slane %v442_v9, %v12310_v17  ;;  %v439_v3 = vpop.xlane.xlu0 %438  ;;  %v623_v7 = vmax.f32 %v257_v61, %v258_v30  ;;  %v11254_v58 = vld [vmem:[%s18278_s0 + $0x298] sm:$0xff]  ;;  %v203_v61 = vld [vmem:[%s18278_s0 + $0x530] sm:$0xff] }
  0xe9   :  { %v1556_v31 = vrot.slane %v439_v3, %v12307_v11  ;;  %v800_v9 = vadd.f32 %v11254_v58, %v11253_v57  ;;  %v204_v30 = vld [vmem:[%s18278_s0 + $0x538] sm:$0xff] }
  0xea   :  { %615 = vmax.xlane.f32.xlu1 %v614_v0 }
  0xeb   :  { %v1561_v33 = vsel %vm1328_vm0, %v1560_v27, %v1556_v31  ;;  %549 = vmax.xlane.f32.xlu0 %v548_v24  ;;  %v490_v63 = vpop.xlane.xlu1 %489  ;;  %v11256_v27 = vld [vmem:[%s18278_s0 + $0x288] sm:$0xff] }
  0xec   :  { %v1636_v10 = vrot.slane %v490_v63, %v12310_v17  ;;  %v487_v5 = vpop.xlane.xlu0 %486  ;;  %v797_v3 = vadd.f32 %v11256_v27, %v11255_v62  ;;  %v164_v63 = vld [vmem:[%s18278_s0 + $0x3f8] sm:$0xff]  ;;  %v271_v27 = vld [vmem:[%s18278_s0 + $0x750] sm:$0xff] }
  0xed   :  { %v1632_v22 = vrot.slane %v487_v5, %v12307_v11 }
  0xee   :  { %630 = vmax.xlane.f32.xlu1 %v629_v32 }
  0xef   :  { %v12592_v28 = vsel %vm1328_vm0, %v1636_v10, %v1632_v22  ;;  %624 = vmax.xlane.f32.xlu0 %v623_v7  ;;  %v502_v29 = vpop.xlane.xlu1 %501  ;;  %v542_v10 = vmax.f32 %v203_v61, %v204_v30  ;;  %v214_v22 = vld [vmem:[%s18278_s0 + $0x588] sm:$0xff] }
  0xf0   :  { %v1655_v35 = vrot.slane %v502_v29, %v12310_v17  ;;  %v499_v40 = vpop.xlane.xlu0 %498 }
  0xf1   :  { %v1651_v1 = vrot.slane %v499_v40, %v12307_v11 }
  0xf2   :  { %687 = vadd.xlane.f32.xlu1 %v686_v23 }
  0xf3   :  { %v12599_v42 = vsel %vm1328_vm0, %v1655_v35, %v1651_v1  ;;  %633 = vmax.xlane.f32.xlu0 %v632_v34  ;;  %v361_v38 = vpop.xlane.xlu1 %360  ;;  %v209_v34 = vld [vmem:[%s18278_s0 + $0x560] sm:$0xff]  ;;  %v210_v35 = vld [vmem:[%s18278_s0 + $0x568] sm:$0xff] }
  0xf4   :  { %v1432_v48 = vrot.slane %v361_v38, %v12324_v41  ;;  %v352_v49 = vpop.xlane.xlu0 %351  ;;  %v551_v8 = vmax.f32 %v209_v34, %v210_v35 }
  0xf5   :  { %v1418_v44 = vrot.slane %v352_v49, %v12385_v52 }
  0xf6   :  { %v12610_v45 = vsel %vm1335_vm1, %v1432_v48, %v1428_v37  ;;  %708 = vadd.xlane.f32.xlu1 %v707_v59  ;;  %v557_v59 = vmax.f32 %v213_v6, %v214_v22  ;;  %v260_v48 = vld [vmem:[%s18278_s0 + $0x6f8] sm:$0xff] }
  0xf7   :  { %v1419_v54 = vsel %vm1342_vm2, %v1418_v44, %v12523_v36  ;;  %699 = vadd.xlane.f32.xlu0 %v698_v4  ;;  %v370_v12 = vpop.xlane.xlu1 %369  ;;  %v259_v4 = vld [vmem:[%s18278_s0 + $0x6f0] sm:$0xff] }
  0xf8   :  { %v12624_v37 = vsel %vm1939_vm6, %v1419_v54, %v12534_v47  ;;  %v1446_v50 = vrot.slane %v370_v12, %v12310_v17  ;;  %v367_v51 = vpop.xlane.xlu0 %366  ;;  %v11252_v47 = vld [vmem:[%s18278_s0 + $0x228] sm:$0xff]  ;;  %v215_v44 = vld [vmem:[%s18278_s0 + $0x590] sm:$0xff]  ;;  %v626_v54 = vmax.f32 %v259_v4, %v260_v48 }
  0xf9   :  { %v1442_v36 = vrot.slane %v367_v51, %v12307_v11  ;;  %v779_v19 = vadd.f32 %v11252_v47, %v11251_v18 }
  0xfa   :  { %717 = vadd.xlane.f32.xlu1 %v716_v2 }
  0xfb   :  { %v12631_v14 = vsel %vm1328_vm0, %v1446_v50, %v1442_v36  ;;  %714 = vadd.xlane.f32.xlu0 %v713_v53  ;;  %v445_v15 = vpop.xlane.xlu1 %444  ;;  %v269_v53 = vld [vmem:[%s18278_s0 + $0x740] sm:$0xff]  ;;  %v270_v50 = vld [vmem:[%s18278_s0 + $0x748] sm:$0xff] }
  0xfc   :  { %v1565_v16 = vrot.slane %v445_v15, %v12324_v41  ;;  %v436_v20 = vpop.xlane.xlu0 %435  ;;  %v266_v15 = vld [vmem:[%s18278_s0 + $0x728] sm:$0xff]  ;;  %v641_v47 = vmax.f32 %v269_v53, %v270_v50 }
  0xfd   :  { %v1551_v0 = vrot.slane %v436_v20, %v12385_v52  ;;  %v9475_v20 = vld [vmem:[%s18279_s1 + $0x20] sm:$0xff] }
  0xfe   :  { %v12642_v56 = vsel %vm1335_vm1, %v1565_v16, %v1561_v33  ;;  %792 = vadd.xlane.f32.xlu1 %v791_v55  ;;  %v163_v33 = vld [vmem:[%s18278_s0 + $0x3f0] sm:$0xff]  ;;  %v265_v55 = vld [vmem:[%s18278_s0 + $0x720] sm:$0xff]  ;;  %v2733_v16 = vld [vmem:[%s18279_s1 + $0x8] sm:$0xff] }
  0xff   :  { %v1552_v24 = vsel %vm1342_vm2, %v1551_v0, %v12560_v21  ;;  %780 = vadd.xlane.f32.xlu0 %v779_v19  ;;  %v454_v25 = vpop.xlane.xlu1 %453  ;;  %v482_v46 = vmax.f32 %v163_v33, %v164_v63  ;;  %v2732_v19 = vld [vmem:[%s18279_s1] sm:$0xff]  ;;  %v635_v58 = vmax.f32 %v265_v55, %v266_v15  ;;  %v2734_v63 = vld [vmem:[%s18279_s1 + $0x10] sm:$0xff] }
 0x100   :  { %v12666_v21 = vsel %vm1937_vm5, %v1552_v24, %v12570_v26  ;;  %v1579_v31 = vrot.slane %v454_v25, %v12310_v17  ;;  %v451_v32 = vpop.xlane.xlu0 %450  ;;  %v9476_v24 = vld [vmem:[%s18279_s1 + $0x28] sm:$0xff] }
 0x101   :  { %v1575_v7 = vrot.slane %v451_v32, %v12307_v11  ;;  %v10898_v61 = vpack.c.bf16 %v9476_v24, %v9475_v20  ;;  %v11258_v32 = vld [vmem:[%s18278_s0 + $0xb8] sm:$0xff]  ;;  %v11268_v20 = vld [vmem:[%s18278_s0 + $0x2a8] sm:$0xff] }
 0x102   :  { %801 = vadd.xlane.f32.xlu1 %v800_v9  ;;  %v10890_v9 = vpack.c.bf16 %v2733_v16, %v2732_v19  ;;  %v11267_v16 = vld [vmem:[%s18278_s0 + $0x2a0] sm:$0xff]  ;;  %v11270_v24 = vld [vmem:[%s18278_s0 + $0x278] sm:$0xff] }
 0x103   :  { %v12677_v5 = vsel %vm1328_vm0, %v1579_v31, %v1575_v7  ;;  %798 = vadd.xlane.f32.xlu0 %v797_v3  ;;  %v505_v26 = vpop.xlane.xlu1 %504  ;;  %v272_v3 = vld [vmem:[%s18278_s0 + $0x758] sm:$0xff]  ;;  %v11257_v31 = vld [vmem:[%s18278_s0 + $0xb0] sm:$0xff]  ;;  %10899 = vmatprep.subr.bf16.mxu1 %v10898_v61 }
 0x104   :  { %v1660_v23 = vrot.slane %v505_v26, %v12324_v41  ;;  %v493_v29 = vpop.xlane.xlu0 %492  ;;  %10891 = vmatprep.subr.bf16.mxu0 %v10890_v9  ;;  %v710_v33 = vadd.f32 %v11258_v32, %v11257_v31  ;;  %v2735_v7 = vld [vmem:[%s18279_s1 + $0x18] sm:$0xff]  ;;  %v644_v6 = vmax.f32 %v271_v27, %v272_v3  ;;  %10901 = vmatpush3.bf16.msra.mxu1 %v10898_v61  ;;  %v11271_v61 = vld [vmem:[%s18278_s0 + $0x2d0] sm:$0xff] }
 0x105   :  { %v1641_v40 = vrot.slane %v493_v29, %v12324_v41  ;;  %10893 = vmatpush3.bf16.msra.mxu0 %v10890_v9  ;;  %v10894_v22 = vpack.c.bf16 %v2735_v7, %v2734_v63  ;;  %v11274_v63 = vld [vmem:[%s18278_s0 + $0x2c8] sm:$0xff] }
 0x106   :  { %v12695_v1 = vsel %vm1335_vm1, %v1660_v23, %v12599_v42  ;;  %543 = vmax.xlane.f32.xlu1 %v542_v10  ;;  %v9477_v10 = vld [vmem:[%s18279_s1 + $0x30] sm:$0xff]  ;;  %v9478_v23 = vld [vmem:[%s18279_s1 + $0x38] sm:$0xff] }
 0x107   :  { %v12699_v38 = vsel %vm1335_vm1, %v1641_v40, %v12592_v28  ;;  %483 = vmax.xlane.f32.xlu0 %v482_v46  ;;  %v514_v39 = vpop.xlane.xlu1 %513  ;;  %v216_v28 = vld [vmem:[%s18278_s0 + $0x598] sm:$0xff]  ;;  %v10902_v35 = vpack.c.bf16 %v9478_v23, %v9477_v10  ;;  %10895 = vmatprep.subr.bf16.mxu0 %v10894_v22  ;;  %v217_v10 = vld [vmem:[%s18278_s0 + $0x5a0] sm:$0xff]  ;;  %v211_v23 = vld [vmem:[%s18278_s0 + $0x570] sm:$0xff] }
 0x108   :  { %v1674_v42 = vrot.slane %v514_v39, %v12310_v17  ;;  %v511_v49 = vpop.xlane.xlu0 %510  ;;  %v560_v43 = vmax.f32 %v215_v44, %v216_v28  ;;  %v11259_v39 = vld [vmem:[%s18278_s0 + $0x100] sm:$0xff] }
 0x109   :  { %v1670_v2 = vrot.slane %v511_v49, %v12307_v11  ;;  %10903 = vmatprep.subr.bf16.mxu1 %v10902_v35  ;;  %v11262_v49 = vld [vmem:[%s18278_s0 + $0xe8] sm:$0xff]  ;;  %10897 = vmatpush3.bf16.msra.mxu0 %v10894_v22 }
 0x10a   :  { %558 = vmax.xlane.f32.xlu1 %v557_v59  ;;  %10905 = vmatpush3.bf16.msra.mxu1 %v10902_v35 }
 0x10b   :  { %v12716_v12 = vsel %vm1328_vm0, %v1674_v42, %v1670_v2  ;;  %552 = vmax.xlane.f32.xlu0 %v551_v8  ;;  %v586_v13 = vpop.xlane.xlu1 %585  ;;  %v11260_v8 = vld [vmem:[%s18278_s0 + $0x108] sm:$0xff] }
 0x10c   :  { %v1788_v51 = vrot.slane %v586_v13, %v12310_v17  ;;  %v583_v36 = vpop.xlane.xlu0 %582  ;;  %v725_v4 = vadd.f32 %v11260_v8, %v11259_v39  ;;  %v11263_v13 = vld [vmem:[%s18278_s0 + $0x230] sm:$0xff] }
 0x10d   :  { %v1784_v18 = vrot.slane %v583_v36, %v12307_v11  ;;  %v11266_v36 = vld [vmem:[%s18278_s0 + $0x118] sm:$0xff] }
 0x10e   :  { %627 = vmax.xlane.f32.xlu1 %v626_v54 }
 0x10f   :  { %v12742_v0 = vsel %vm1328_vm0, %v1788_v51, %v1784_v18  ;;  %561 = vmax.xlane.f32.xlu0 %v560_v43  ;;  %v598_v57 = vpop.xlane.xlu1 %597  ;;  %v11264_v43 = vld [vmem:[%s18278_s0 + $0x238] sm:$0xff]  ;;  %v11265_v51 = vld [vmem:[%s18278_s0 + $0x110] sm:$0xff] }
 0x110   :  { %v1807_v25 = vrot.slane %v598_v57, %v12310_v17  ;;  %v595_v62 = vpop.xlane.xlu0 %594  ;;  %v782_v53 = vadd.f32 %v11264_v43, %v11263_v13  ;;  %v728_v55 = vadd.f32 %v11266_v36, %v11265_v51  ;;  %v803_v57 = vadd.f32 %v11268_v20, %v11267_v16  ;;  %v273_v43 = vld [vmem:[%s18278_s0 + $0x760] sm:$0xff]  ;;  %v267_v36 = vld [vmem:[%s18278_s0 + $0x730] sm:$0xff] }
 0x111   :  { %v1803_v30 = vrot.slane %v595_v62, %v12307_v11 }
 0x112   :  { %642 = vmax.xlane.f32.xlu1 %v641_v47 }
 0x113   :  { %v12771_v26 = vsel %vm1328_vm0, %v1807_v25, %v1803_v30  ;;  %636 = vmax.xlane.f32.xlu0 %v635_v58  ;;  %v373_v46 = vpop.xlane.xlu1 %372  ;;  %v11272_v30 = vld [vmem:[%s18278_s0 + $0x2d8] sm:$0xff] }
 0x114   :  { %v1451_v29 = vrot.slane %v373_v46, %v12324_v41  ;;  %v364_v34 = vpop.xlane.xlu0 %363  ;;  %v812_v31 = vadd.f32 %v11272_v30, %v11271_v61  ;;  %v218_v46 = vld [vmem:[%s18278_s0 + $0x5a8] sm:$0xff] }
 0x115   :  { %v1437_v40 = vrot.slane %v364_v34, %v12385_v52 }
 0x116   :  { %v12780_v59 = vsel %vm1335_vm1, %v1451_v29, %v12631_v14  ;;  %711 = vadd.xlane.f32.xlu1 %v710_v33  ;;  %v11261_v14 = vld [vmem:[%s18278_s0 + $0xe0] sm:$0xff]  ;;  %v212_v29 = vld [vmem:[%s18278_s0 + $0x578] sm:$0xff] }
 0x117   :  { %v1438_v48 = vsel %vm1342_vm2, %v1437_v40, %v12610_v45  ;;  %645 = vmax.xlane.f32.xlu0 %v644_v6  ;;  %v382_v42 = vpop.xlane.xlu1 %381  ;;  %v719_v44 = vadd.f32 %v11262_v49, %v11261_v14  ;;  %v11273_v33 = vld [vmem:[%s18278_s0 + $0x2c0] sm:$0xff]  ;;  %v563_v40 = vmax.f32 %v217_v10, %v218_v46 }
 0x118   :  { %v12798_v28 = vsel %vm1941_vm7, %v1438_v48, %v12624_v37  ;;  %v1465_v2 = vrot.slane %v382_v42, %v12310_v17  ;;  %v379_v54 = vpop.xlane.xlu0 %378  ;;  %v809_v7 = vadd.f32 %v11274_v63, %v11273_v33  ;;  %v223_v48 = vld [vmem:[%s18278_s0 + $0x5d0] sm:$0xff]  ;;  %v224_v42 = vld [vmem:[%s18278_s0 + $0x5d8] sm:$0xff]  ;;  %v221_v49 = vld [vmem:[%s18278_s0 + $0x5c0] sm:$0xff] }
 0x119   :  { %v1461_v45 = vrot.slane %v379_v54, %v12307_v11  ;;  %v11275_v33 = vld [vmem:[%s18278_s0 + $0x120] sm:$0xff]  ;;  %v11276_v63 = vld [vmem:[%s18278_s0 + $0x128] sm:$0xff] }
 0x11a   :  { %726 = vadd.xlane.f32.xlu1 %v725_v4  ;;  %v554_v4 = vmax.f32 %v211_v23, %v212_v29 }
 0x11b   :  { %v12809_v50 = vsel %vm1328_vm0, %v1465_v2, %v1461_v45  ;;  %720 = vadd.xlane.f32.xlu0 %v719_v44  ;;  %v457_v37 = vpop.xlane.xlu1 %456  ;;  %v572_v2 = vmax.f32 %v223_v48, %v224_v42 }
 0x11c   :  { %v1584_v15 = vrot.slane %v457_v37, %v12324_v41  ;;  %v448_v18 = vpop.xlane.xlu0 %447 }
 0x11d   :  { %v1570_v47 = vrot.slane %v448_v18, %v12385_v52 }
 0x11e   :  { %v12821_v19 = vsel %vm1335_vm1, %v1584_v15, %v12677_v5  ;;  %783 = vadd.xlane.f32.xlu1 %v782_v53  ;;  %v11269_v5 = vld [vmem:[%s18278_s0 + $0x270] sm:$0xff]  ;;  %v274_v53 = vld [vmem:[%s18278_s0 + $0x768] sm:$0xff] }
 0x11f   :  { %v1571_v58 = vsel %vm1342_vm2, %v1570_v47, %v12642_v56  ;;  %729 = vadd.xlane.f32.xlu0 %v728_v55  ;;  %v466_v9 = vpop.xlane.xlu1 %465  ;;  %v794_v25 = vadd.f32 %v11270_v24, %v11269_v5  ;;  %v647_v47 = vmax.f32 %v273_v43, %v274_v53  ;;  %v278_v24 = vld [vmem:[%s18278_s0 + $0x788] sm:$0xff]  ;;  %v11283_v53 = vld [vmem:[%s18278_s0 + $0x2e0] sm:$0xff] }
 0x120   :  { %v12839_v62 = vsel %vm1939_vm6, %v1571_v58, %v12666_v21  ;;  %v1598_v27 = vrot.slane %v466_v9, %v12310_v17  ;;  %v463_v3 = vpop.xlane.xlu0 %462  ;;  %v279_v58 = vld [vmem:[%s18278_s0 + $0x790] sm:$0xff]  ;;  %v280_v9 = vld [vmem:[%s18278_s0 + $0x798] sm:$0xff] }
 0x121   :  { %v1594_v56 = vrot.slane %v463_v3, %v12307_v11 }
 0x122   :  { %804 = vadd.xlane.f32.xlu1 %v803_v57 }
 0x123   :  { %v12850_v32 = vsel %vm1328_vm0, %v1598_v27, %v1594_v56  ;;  %795 = vadd.xlane.f32.xlu0 %v794_v25  ;;  %v508_v21 = vpop.xlane.xlu1 %507  ;;  %v656_v27 = vmax.f32 %v279_v58, %v280_v9 }
 0x124   :  { %v1665_v6 = vrot.slane %v508_v21, %v12385_v52  ;;  %v496_v22 = vpop.xlane.xlu0 %495 }
 0x125   :  { %v1646_v34 = vrot.slane %v496_v22, %v12385_v52  ;;  %v11278_v22 = vld [vmem:[%s18278_s0 + $0xf8] sm:$0xff] }
 0x126   :  { %v1666_v35 = vsel %vm1342_vm2, %v1665_v6, %v12695_v1  ;;  %813 = vadd.xlane.f32.xlu1 %v812_v31  ;;  %v11277_v6 = vld [vmem:[%s18278_s0 + $0xf0] sm:$0xff] }
 0x127   :  { %v1647_v39 = vsel %vm1342_vm2, %v1646_v34, %v12699_v38  ;;  %810 = vadd.xlane.f32.xlu0 %v809_v7  ;;  %v523_v8 = vpop.xlane.xlu1 %522  ;;  %v222_v38 = vld [vmem:[%s18278_s0 + $0x5c8] sm:$0xff]  ;;  %v731_v7 = vadd.f32 %v11276_v63, %v11275_v33  ;;  %v722_v23 = vadd.f32 %v11278_v22, %v11277_v6 }
 0x128   :  { %v12883_v14 = vsel %vm1933_vm3, %v1666_v35, %v1647_v39  ;;  %v517_v1 = vpop.xlane.xlu0 %516  ;;  %v569_v13 = vmax.f32 %v221_v49, %v222_v38  ;;  %v1689_v55 = vrot.slane %v523_v8, %v12307_v11  ;;  %v11279_v35 = vld [vmem:[%s18278_s0 + $0x150] sm:$0xff]  ;;  %v11282_v49 = vld [vmem:[%s18278_s0 + $0x148] sm:$0xff] }
 0x129   :  { %v1679_v44 = vrot.slane %v517_v1, %v12324_v41  ;;  %v11281_v1 = vld [vmem:[%s18278_s0 + $0x140] sm:$0xff] }
 0x12a   :  { %564 = vmax.xlane.f32.xlu1 %v563_v40  ;;  %v11280_v40 = vld [vmem:[%s18278_s0 + $0x158] sm:$0xff]  ;;  %v737_v38 = vadd.f32 %v11282_v49, %v11281_v1  ;;  %v13058_v49 = vld [vmem:[%s18278_s0 + $0x5e0] sm:$0xff] }
 0x12b   :  { %v12894_v54 = vsel %vm1335_vm1, %v1679_v44, %v12716_v12  ;;  %555 = vmax.xlane.f32.xlu0 %v554_v4  ;;  %v589_v45 = vpop.xlane.xlu1 %588  ;;  %v268_v12 = vld [vmem:[%s18278_s0 + $0x738] sm:$0xff]  ;;  %v740_v39 = vadd.f32 %v11280_v40, %v11279_v35  ;;  %v11295_v35 = vld [vmem:[%s18278_s0 + $0x450] sm:$0xff] }
 0x12c   :  { %v1793_v37 = vrot.slane %v589_v45, %v12324_v41  ;;  %v526_v51 = vpop.xlane.xlu0 %525  ;;  %v638_v57 = vmax.f32 %v267_v36, %v268_v12  ;;  %v11296_v40 = vld [vmem:[%s18278_s0 + $0x458] sm:$0xff] }
 0x12d   :  { %v1693_v15 = vrot.slane %v526_v51, %v12310_v17 }
 0x12e   :  { %v12913_v18 = vsel %vm1335_vm1, %v1793_v37, %v12742_v0  ;;  %573 = vmax.xlane.f32.xlu1 %v572_v2  ;;  %v277_v0 = vld [vmem:[%s18278_s0 + $0x780] sm:$0xff]  ;;  %v11284_v37 = vld [vmem:[%s18278_s0 + $0x2e8] sm:$0xff] }
 0x12f   :  { %v12916_v16 = vsel %vm1328_vm0, %v1693_v15, %v1689_v55  ;;  %570 = vmax.xlane.f32.xlu0 %v569_v13  ;;  %v607_v20 = vpop.xlane.xlu1 %606  ;;  %v653_v61 = vmax.f32 %v277_v0, %v278_v24  ;;  %v815_v51 = vadd.f32 %v11284_v37, %v11283_v53  ;;  %v11285_v15 = vld [vmem:[%s18278_s0 + $0x2b0] sm:$0xff]  ;;  %v11288_v0 = vld [vmem:[%s18278_s0 + $0x318] sm:$0xff] }
 0x130   :  { %v601_v5 = vpop.xlane.xlu0 %600  ;;  %v1822_v31 = vrot.slane %v607_v20, %v12307_v11 }
 0x131   :  { %v1812_v25 = vrot.slane %v601_v5, %v12324_v41  ;;  %v11287_v5 = vld [vmem:[%s18278_s0 + $0x310] sm:$0xff] }
 0x132   :  { %648 = vmax.xlane.f32.xlu1 %v647_v47  ;;  %v11286_v47 = vld [vmem:[%s18278_s0 + $0x2b8] sm:$0xff]  ;;  %v824_v24 = vadd.f32 %v11288_v0, %v11287_v5 }
 0x133   :  { %v12933_v3 = vsel %vm1335_vm1, %v1812_v25, %v12771_v26  ;;  %639 = vmax.xlane.f32.xlu0 %v638_v57  ;;  %v679_v56 = vpop.xlane.xlu1 %678  ;;  %v806_v20 = vadd.f32 %v11286_v47, %v11285_v15  ;;  %v13103_v47 = vld [vmem:[%s18278_s0 + $0x778] sm:$0xff] }
 0x134   :  { %v610_v30 = vpop.xlane.xlu0 %609  ;;  %v1061_v26 = vmul.f32 0.00390625, %v679_v56  ;;  %v11290_v56 = vld [vmem:[%s18278_s0 + $0x308] sm:$0xff] }
 0x135   :  { %v1826_v21 = vrot.slane %v610_v30, %v12310_v17 }
 0x136   :  { %657 = vmax.xlane.f32.xlu1 %v656_v27  ;;  %v2099_v8 = vrot.slane %v1061_v26, %v12307_v11  ;;  %v11293_v26 = vld [vmem:[%s18278_s0 + $0x400] sm:$0xff] }
 0x137   :  { %v12944_v10 = vsel %vm1328_vm0, %v1826_v21, %v1822_v31  ;;  %654 = vmax.xlane.f32.xlu0 %v653_v61  ;;  %v691_v46 = vpop.xlane.xlu1 %690  ;;  %v11292_v21 = vld [vmem:[%s18278_s0 + $0x418] sm:$0xff] }
 0x138   :  { %v682_v29 = vpop.xlane.xlu0 %681  ;;  %v1065_v4 = vmul.f32 0.00390625, %v691_v46  ;;  %v11294_v46 = vld [vmem:[%s18278_s0 + $0x408] sm:$0xff] }
 0x139   :  { %v1062_v34 = vmul.f32 0.00390625, %v682_v29  ;;  %v869_v6 = vadd.f32 %v11294_v46, %v11293_v26 }
 0x13a   :  { %732 = vadd.xlane.f32.xlu1 %v731_v7  ;;  %v2118_v36 = vrot.slane %v1065_v4, %v12307_v11 }
 0x13b   :  { %v2103_v48 = vrot.slane %v1062_v34, %v12310_v17  ;;  %723 = vadd.xlane.f32.xlu0 %v722_v23  ;;  %v376_v42 = vpop.xlane.xlu1 %375 }
 0x13c   :  { %v1456_v44 = vrot.slane %v376_v42, %v12385_v52  ;;  %v694_v2 = vpop.xlane.xlu0 %693  ;;  %v11298_v42 = vld [vmem:[%s18278_s0 + $0x448] sm:$0xff] }
 0x13d   :  { %v12968_v45 = vsel %vm1328_vm0, %v2103_v48, %v2099_v8  ;;  %v1066_v13 = vmul.f32 0.00390625, %v694_v2  ;;  %v13073_v2 = vld [vmem:[%s18278_s0 + $0x5b8] sm:$0xff] }
 0x13e   :  { %v1457_v43 = vsel %vm1342_vm2, %v1456_v44, %v12780_v59  ;;  %741 = vadd.xlane.f32.xlu1 %v740_v39  ;;  %v884_v39 = vadd.f32 %v11296_v40, %v11295_v35  ;;  %v13068_v44 = vld [vmem:[%s18278_s0 + $0x5b0] sm:$0xff] }
 0x13f   :  { %v12981_v12 = vsel %vm1943_vm8, %v1457_v43, %v12798_v28  ;;  %v2122_v55 = vrot.slane %v1066_v13, %v12310_v17  ;;  %738 = vadd.xlane.f32.xlu0 %v737_v38  ;;  %v460_v59 = vpop.xlane.xlu1 %459  ;;  %v11301_v40 = vld [vmem:[%s18278_s0 + $0x130] sm:$0xff] }
 0x140   :  { %v1589_v57 = vrot.slane %v460_v59, %v12385_v52  ;;  %v12991_v58 = vpop.xlane.xlu0 %384 }
 0x141   :  { %v12994_v28 = vsel %vm1328_vm0, %v2122_v55, %v2118_v36  ;;  %v13087_v36 = vld [vmem:[%s18278_s0 + $0x7a0] sm:$0xff]  ;;  %v13092_v55 = vld [vmem:[%s18278_s0 + $0x7a8] sm:$0xff] }
 0x142   :  { %v1590_v9 = vsel %vm1342_vm2, %v1589_v57, %v12821_v19  ;;  %816 = vadd.xlane.f32.xlu1 %v815_v51  ;;  %v11289_v19 = vld [vmem:[%s18278_s0 + $0x300] sm:$0xff]  ;;  %v566_v51 = vmax.f32 %v13068_v44, %v13073_v2  ;;  %v659_v5 = vmax.f32 %v13087_v36, %v13092_v55 }
 0x143   :  { %v13006_v25 = vsel %vm1941_vm7, %v1590_v9, %v12839_v62  ;;  %807 = vadd.xlane.f32.xlu0 %v806_v20  ;;  %v475_v27 = vpop.xlane.xlu1 %474  ;;  %v821_v61 = vadd.f32 %v11290_v56, %v11289_v19  ;;  %v11291_v62 = vld [vmem:[%s18278_s0 + $0x410] sm:$0xff] }
 0x144   :  { %v469_v30 = vpop.xlane.xlu0 %468  ;;  %v872_v33 = vadd.f32 %v11292_v21, %v11291_v62  ;;  %v1613_v29 = vrot.slane %v475_v27, %v12307_v11  ;;  %v13119_v19 = vld [vmem:[%s18278_s0 + $0x7d0] sm:$0xff] }
 0x145   :  { %v1603_v31 = vrot.slane %v469_v30, %v12324_v41  ;;  %v13130_v30 = vld [vmem:[%s18278_s0 + $0x7c0] sm:$0xff] }
 0x146   :  { %825 = vadd.xlane.f32.xlu1 %v824_v24 }
 0x147   :  { %v13023_v63 = vsel %vm1335_vm1, %v1603_v31, %v12850_v32  ;;  %822 = vadd.xlane.f32.xlu0 %v821_v61  ;;  %v520_v7 = vpop.xlane.xlu1 %519  ;;  %v13135_v31 = vld [vmem:[%s18278_s0 + $0x7c8] sm:$0xff] }
 0x148   :  { %v1684_v22 = vrot.slane %v520_v7, %v12385_v52  ;;  %v478_v23 = vpop.xlane.xlu0 %477  ;;  %v665_v46 = vmax.f32 %v13130_v30, %v13135_v31 }
 0x149   :  { %v1617_v34 = vrot.slane %v478_v23, %v12310_v17 }
 0x14a   :  { %v1685_v32 = vsel %vm1342_vm2, %v1684_v22, %v12894_v54  ;;  %873 = vadd.xlane.f32.xlu1 %v872_v33  ;;  %v11297_v54 = vld [vmem:[%s18278_s0 + $0x440] sm:$0xff] }
 0x14b   :  { %v13044_v8 = vsel %vm1935_vm4, %v1685_v32, %v12883_v14  ;;  %v13047_v4 = vsel %vm1328_vm0, %v1617_v34, %v1613_v29  ;;  %870 = vadd.xlane.f32.xlu0 %v869_v6  ;;  %v535_v48 = vpop.xlane.xlu1 %534  ;;  %v881_v1 = vadd.f32 %v11298_v42, %v11297_v54  ;;  %v13063_v14 = vld [vmem:[%s18278_s0 + $0x5e8] sm:$0xff]  ;;  %v11299_v29 = vld [vmem:[%s18278_s0 + $0x160] sm:$0xff] }
 0x14c   :  { %v529_v38 = vpop.xlane.xlu0 %528  ;;  %v575_v43 = vmax.f32 %v13058_v49, %v13063_v14  ;;  %v1708_v20 = vrot.slane %v535_v48, %v12307_v11 }
 0x14d   :  { %v1698_v13 = vrot.slane %v529_v38, %v12324_v41 }
 0x14e   :  { %885 = vadd.xlane.f32.xlu1 %v884_v39  ;;  %v11302_v39 = vld [vmem:[%s18278_s0 + $0x138] sm:$0xff] }
 0x14f   :  { %v13080_v53 = vsel %vm1335_vm1, %v1698_v13, %v12916_v16  ;;  %882 = vadd.xlane.f32.xlu0 %v881_v1  ;;  %v592_v37 = vpop.xlane.xlu1 %591  ;;  %v13098_v16 = vld [vmem:[%s18278_s0 + $0x770] sm:$0xff]  ;;  %v734_v48 = vadd.f32 %v11302_v39, %v11301_v40  ;;  %v11312_v40 = vld [vmem:[%s18278_s0 + $0x358] sm:$0xff] }
 0x150   :  { %v1798_v59 = vrot.slane %v592_v37, %v12385_v52  ;;  %v538_v15 = vpop.xlane.xlu0 %537  ;;  %v650_v27 = vmax.f32 %v13098_v16, %v13103_v47  ;;  %v11303_v13 = vld [vmem:[%s18278_s0 + $0x190] sm:$0xff] }
 0x151   :  { %v1712_v57 = vrot.slane %v538_v15, %v12310_v17  ;;  %v11305_v15 = vld [vmem:[%s18278_s0 + $0x180] sm:$0xff] }
 0x152   :  { %v1799_v9 = vsel %vm1342_vm2, %v1798_v59, %v12913_v18  ;;  %576 = vmax.xlane.f32.xlu1 %v575_v43  ;;  %v13124_v18 = vld [vmem:[%s18278_s0 + $0x7d8] sm:$0xff] }
 0x153   :  { %v13112_v0 = vsel %vm1328_vm0, %v1712_v57, %v1708_v20  ;;  %567 = vmax.xlane.f32.xlu0 %v566_v51  ;;  %v613_v24 = vpop.xlane.xlu1 %612  ;;  %v668_v33 = vmax.f32 %v13119_v19, %v13124_v18  ;;  %v11304_v43 = vld [vmem:[%s18278_s0 + $0x198] sm:$0xff]  ;;  %v11306_v20 = vld [vmem:[%s18278_s0 + $0x188] sm:$0xff] }
 0x154   :  { %v1831_v56 = vrot.slane %v613_v24, %v12324_v41  ;;  %v604_v61 = vpop.xlane.xlu0 %603  ;;  %v752_v37 = vadd.f32 %v11304_v43, %v11303_v13  ;;  %v749_v57 = vadd.f32 %v11306_v20, %v11305_v15  ;;  %v11315_v20 = vld [vmem:[%s18278_s0 + $0x460] sm:$0xff] }
 0x155   :  { %v1817_v62 = vrot.slane %v604_v61, %v12385_v52 }
 0x156   :  { %v13140_v21 = vsel %vm1335_vm1, %v1831_v56, %v12944_v10  ;;  %660 = vmax.xlane.f32.xlu1 %v659_v5 }
 0x157   :  { %v1818_v7 = vsel %vm1342_vm2, %v1817_v62, %v12933_v3  ;;  %651 = vmax.xlane.f32.xlu0 %v650_v27  ;;  %v622_v26 = vpop.xlane.xlu1 %621  ;;  %v11300_v3 = vld [vmem:[%s18278_s0 + $0x168] sm:$0xff]  ;;  %v11307_v62 = vld [vmem:[%s18278_s0 + $0x320] sm:$0xff] }
 0x158   :  { %v13149_v6 = vsel %vm1933_vm3, %v1818_v7, %v1799_v9  ;;  %v1845_v22 = vrot.slane %v622_v26, %v12310_v17  ;;  %v619_v23 = vpop.xlane.xlu0 %618  ;;  %v743_v34 = vadd.f32 %v11300_v3, %v11299_v29 }
 0x159   :  { %v1841_v10 = vrot.slane %v619_v23, %v12307_v11 }
 0x15a   :  { %669 = vmax.xlane.f32.xlu1 %v668_v33  ;;  %v11308_v33 = vld [vmem:[%s18278_s0 + $0x328] sm:$0xff] }
 0x15b   :  { %v13160_v32 = vsel %vm1328_vm0, %v1845_v22, %v1841_v10  ;;  %666 = vmax.xlane.f32.xlu0 %v665_v46  ;;  %v697_v35 = vpop.xlane.xlu1 %696  ;;  %v11310_v46 = vld [vmem:[%s18278_s0 + $0x2f8] sm:$0xff] }
 0x15c   :  { %v1067_v54 = vmul.f32 0.00390625, %v697_v35  ;;  %v685_v42 = vpop.xlane.xlu0 %684  ;;  %v11311_v35 = vld [vmem:[%s18278_s0 + $0x350] sm:$0xff] }
 0x15d   :  { %v1063_v1 = vmul.f32 0.00390625, %v685_v42  ;;  %v836_v39 = vadd.f32 %v11312_v40, %v11311_v35  ;;  %v11313_v42 = vld [vmem:[%s18278_s0 + $0x340] sm:$0xff]  ;;  %v11322_v35 = vld [vmem:[%s18278_s0 + $0x488] sm:$0xff] }
 0x15e   :  { %v2127_v38 = vrot.slane %v1067_v54, %v12324_v41  ;;  %744 = vadd.xlane.f32.xlu1 %v743_v34 }
 0x15f   :  { %v2108_v51 = vrot.slane %v1063_v1, %v12324_v41  ;;  %735 = vadd.xlane.f32.xlu0 %v734_v48  ;;  %v706_v59 = vpop.xlane.xlu1 %705  ;;  %v11314_v1 = vld [vmem:[%s18278_s0 + $0x348] sm:$0xff] }
 0x160   :  { %v13184_v9 = vsel %vm1335_vm1, %v2127_v38, %v12994_v28  ;;  %v1070_v5 = vmul.f32 0.00390625, %v706_v59  ;;  %v703_v24 = vpop.xlane.xlu0 %702  ;;  %v827_v28 = vadd.f32 %v11308_v33, %v11307_v62  ;;  %v833_v38 = vadd.f32 %v11314_v1, %v11313_v42  ;;  %v11323_v42 = vld [vmem:[%s18278_s0 + $0x610] sm:$0xff] }
 0x161   :  { %v13188_v27 = vsel %vm1335_vm1, %v2108_v51, %v12968_v45  ;;  %v1069_v56 = vmul.f32 0.00390625, %v703_v24  ;;  %v11309_v45 = vld [vmem:[%s18278_s0 + $0x2f0] sm:$0xff]  ;;  %v1470_v59 = vrot.slane %v12991_v58, %v12324_v41  ;;  %v11317_v58 = vld [vmem:[%s18278_s0 + $0x420] sm:$0xff] }
 0x162   :  { %v2141_v61 = vrot.slane %v1070_v5, %v12310_v17  ;;  %753 = vadd.xlane.f32.xlu1 %v752_v37  ;;  %v818_v22 = vadd.f32 %v11310_v46, %v11309_v45 }
 0x163   :  { %v2137_v7 = vrot.slane %v1069_v56, %v12307_v11  ;;  %750 = vadd.xlane.f32.xlu0 %v749_v57  ;;  %v778_v26 = vpop.xlane.xlu1 %777  ;;  %v11316_v57 = vld [vmem:[%s18278_s0 + $0x468] sm:$0xff]  ;;  %v1471_v45 = vsel %vm1335_vm1, %v1470_v59, %v12809_v50 }
 0x164   :  { %v1094_v23 = vmul.f32 0.00390625, %v778_v26  ;;  %v775_v10 = vpop.xlane.xlu0 %774  ;;  %v887_v5 = vadd.f32 %v11316_v57, %v11315_v20  ;;  %v11328_v20 = vld [vmem:[%s18278_s0 + $0x658] sm:$0xff] }
 0x165   :  { %v13205_v29 = vsel %vm1328_vm0, %v2141_v61, %v2137_v7  ;;  %v1093_v3 = vmul.f32 0.00390625, %v775_v10  ;;  %v11318_v61 = vld [vmem:[%s18278_s0 + $0x428] sm:$0xff] }
 0x166   :  { %v2255_v34 = vrot.slane %v1094_v23, %v12310_v17  ;;  %828 = vadd.xlane.f32.xlu1 %v827_v28  ;;  %v875_v62 = vadd.f32 %v11318_v61, %v11317_v58  ;;  %v11320_v23 = vld [vmem:[%s18278_s0 + $0x498] sm:$0xff]  ;;  %v11330_v58 = vld [vmem:[%s18278_s0 + $0x648] sm:$0xff] }
 0x167   :  { %v2251_v48 = vrot.slane %v1093_v3, %v12307_v11  ;;  %819 = vadd.xlane.f32.xlu0 %v818_v22  ;;  %v790_v54 = vpop.xlane.xlu1 %789  ;;  %v11319_v22 = vld [vmem:[%s18278_s0 + $0x490] sm:$0xff] }
 0x168   :  { %v1098_v13 = vmul.f32 0.00390625, %v790_v54  ;;  %v787_v43 = vpop.xlane.xlu0 %786  ;;  %v896_v10 = vadd.f32 %v11320_v23, %v11319_v22 }
 0x169   :  { %v13222_v37 = vsel %vm1328_vm0, %v2255_v34, %v2251_v48  ;;  %v1097_v51 = vmul.f32 0.00390625, %v787_v43  ;;  %v11326_v43 = vld [vmem:[%s18278_s0 + $0x608] sm:$0xff] }
 0x16a   :  { %v2274_v15 = vrot.slane %v1098_v13, %v12310_v17  ;;  %837 = vadd.xlane.f32.xlu1 %v836_v39 }
 0x16b   :  { %v2270_v24 = vrot.slane %v1097_v51, %v12307_v11  ;;  %834 = vadd.xlane.f32.xlu0 %v833_v38  ;;  %v472_v56 = vpop.xlane.xlu1 %471 }
 0x16c   :  { %v1608_v33 = vrot.slane %v472_v56, %v12385_v52  ;;  %v388_v28 = vpop.xlane.xlu0 %387  ;;  %v11329_v56 = vld [vmem:[%s18278_s0 + $0x640] sm:$0xff] }
 0x16d   :  { %v13242_v7 = vsel %vm1328_vm0, %v2274_v15, %v2270_v24  ;;  %v1475_v26 = vrot.slane %v388_v28, %v12385_v52  ;;  %v977_v61 = vadd.f32 %v11330_v58, %v11329_v56  ;;  %v11335_v58 = vld [vmem:[%s18278_s0 + $0x1a0] sm:$0xff] }
 0x16e   :  { %v1609_v46 = vsel %vm1342_vm2, %v1608_v33, %v13023_v63  ;;  %888 = vadd.xlane.f32.xlu1 %v887_v5  ;;  %v11321_v63 = vld [vmem:[%s18278_s0 + $0x480] sm:$0xff] }
 0x16f   :  { %v13257_v3 = vsel %vm1943_vm8, %v1609_v46, %v13006_v25  ;;  %v1476_v50 = vsel %vm1342_vm2, %v1475_v26, %v1471_v45  ;;  %876 = vadd.xlane.f32.xlu0 %v875_v62  ;;  %v532_v34 = vpop.xlane.xlu1 %531  ;;  %v893_v40 = vadd.f32 %v11322_v35, %v11321_v63  ;;  %v13315_v62 = vld [vmem:[%s18278_s0 + $0x7b0] sm:$0xff]  ;;  %v13331_v45 = vld [vmem:[%s18278_s0 + $0x5f8] sm:$0xff] }
 0x170   :  { %v13268_v39 = vsel %vm1945_vm9, %v1476_v50, %v12981_v12  ;;  %v1703_v25 = vrot.slane %v532_v34, %v12385_v52  ;;  %v13271_v48 = vpop.xlane.xlu0 %480  ;;  %v11324_v12 = vld [vmem:[%s18278_s0 + $0x618] sm:$0xff]  ;;  %v13326_v26 = vld [vmem:[%s18278_s0 + $0x5f0] sm:$0xff] }
 0x171   :  { %18349 = vst [vmem:[#allocation7_spill] sm:$0xff] %v13268_v39  ;;  %10266 = vmatprep.mubr.msk.f32.mxu0 %vm2738_vm10, %v13268_v39  ;;  %10286 = vmatprep.mubr.msk.f32.mxu1 %vm2738_vm10, %v13268_v39  ;;  %v968_v1 = vadd.f32 %v11324_v12, %v11323_v42  ;;  %v578_v35 = vmax.f32 %v13326_v26, %v13331_v45  ;;  %v11332_v42 = vld [vmem:[%s18278_s0 + $0x178] sm:$0xff] }
 0x172   :  { %v1704_v54 = vsel %vm1342_vm2, %v1703_v25, %v13080_v53  ;;  %897 = vadd.xlane.f32.xlu1 %v896_v10  ;;  %v11325_v53 = vld [vmem:[%s18278_s0 + $0x600] sm:$0xff]  ;;  %v13356_v25 = vld [vmem:[%s18278_s0 + $0x7e8] sm:$0xff] }
 0x173   :  { %v13287_v38 = vsel %vm1937_vm5, %v1704_v54, %v13044_v8  ;;  %894 = vadd.xlane.f32.xlu0 %v893_v40  ;;  %v547_v13 = vpop.xlane.xlu1 %546  ;;  %v965_v51 = vadd.f32 %v11326_v43, %v11325_v53  ;;  %v11327_v8 = vld [vmem:[%s18278_s0 + $0x650] sm:$0xff] }
 0x174   :  { %v541_v59 = vpop.xlane.xlu0 %540  ;;  %v980_v57 = vadd.f32 %v11328_v20, %v11327_v8  ;;  %v1727_v46 = vrot.slane %v547_v13, %v12307_v11  ;;  %v11331_v54 = vld [vmem:[%s18278_s0 + $0x170] sm:$0xff]  ;;  %v11333_v20 = vld [vmem:[%s18278_s0 + $0x1c0] sm:$0xff] }
 0x175   :  { %v1717_v15 = vrot.slane %v541_v59, %v12324_v41  ;;  %v746_v12 = vadd.f32 %v11332_v42, %v11331_v54  ;;  %v11340_v42 = vld [vmem:[%s18278_s0 + $0x1d8] sm:$0xff] }
 0x176   :  { %969 = vadd.xlane.f32.xlu1 %v968_v1 }
 0x177   :  { %v13304_v5 = vsel %vm1335_vm1, %v1717_v15, %v13112_v0  ;;  %966 = vadd.xlane.f32.xlu0 %v965_v51  ;;  %v616_v24 = vpop.xlane.xlu1 %615  ;;  %v13320_v0 = vld [vmem:[%s18278_s0 + $0x7b8] sm:$0xff] }
 0x178   :  { %v1836_v33 = vrot.slane %v616_v24, %v12385_v52  ;;  %v550_v28 = vpop.xlane.xlu0 %549  ;;  %v662_v10 = vmax.f32 %v13315_v62, %v13320_v0 }
 0x179   :  { %v1731_v22 = vrot.slane %v550_v28, %v12310_v17 }
 0x17a   :  { %v1837_v23 = vsel %vm1342_vm2, %v1836_v33, %v13140_v21  ;;  %981 = vadd.xlane.f32.xlu1 %v980_v57  ;;  %v13351_v21 = vld [vmem:[%s18278_s0 + $0x7e0] sm:$0xff] }
 0x17b   :  { %v13341_v50 = vsel %vm1935_vm4, %v1837_v23, %v13149_v6  ;;  %v13344_v34 = vsel %vm1328_vm0, %v1731_v22, %v1727_v46  ;;  %978 = vadd.xlane.f32.xlu0 %v977_v61  ;;  %v631_v63 = vpop.xlane.xlu1 %630  ;;  %v671_v53 = vmax.f32 %v13351_v21, %v13356_v25  ;;  %v11336_v61 = vld [vmem:[%s18278_s0 + $0x1a8] sm:$0xff] }
 0x17c   :  { %v625_v40 = vpop.xlane.xlu0 %624  ;;  %v1860_v59 = vrot.slane %v631_v63, %v12307_v11  ;;  %v755_v33 = vadd.f32 %v11336_v61, %v11335_v58  ;;  %v11337_v63 = vld [vmem:[%s18278_s0 + $0x330] sm:$0xff]  ;;  %v11344_v58 = vld [vmem:[%s18278_s0 + $0x368] sm:$0xff] }
 0x17d   :  { %v1850_v6 = vrot.slane %v625_v40, %v12324_v41 }
 0x17e   :  { %663 = vmax.xlane.f32.xlu1 %v662_v10 }
 0x17f   :  { %v13367_v1 = vsel %vm1335_vm1, %v1850_v6, %v13160_v32  ;;  %579 = vmax.xlane.f32.xlu0 %v578_v35  ;;  %v688_v13 = vpop.xlane.xlu1 %687  ;;  %v11334_v32 = vld [vmem:[%s18278_s0 + $0x1c8] sm:$0xff]  ;;  %v11338_v35 = vld [vmem:[%s18278_s0 + $0x338] sm:$0xff] }
 0x180   :  { %v1064_v43 = vmul.f32 0.00390625, %v688_v13  ;;  %v634_v51 = vpop.xlane.xlu0 %633  ;;  %v761_v57 = vadd.f32 %v11334_v32, %v11333_v20  ;;  %v830_v40 = vadd.f32 %v11338_v35, %v11337_v63  ;;  %v11341_v20 = vld [vmem:[%s18278_s0 + $0x380] sm:$0xff]  ;;  %v11346_v63 = vld [vmem:[%s18278_s0 + $0x438] sm:$0xff] }
 0x181   :  { %v1864_v15 = vrot.slane %v634_v51, %v12310_v17 }
 0x182   :  { %v2113_v8 = vrot.slane %v1064_v43, %v12385_v52  ;;  %747 = vadd.xlane.f32.xlu1 %v746_v12 }
 0x183   :  { %v13381_v24 = vsel %vm1328_vm0, %v1864_v15, %v1860_v59  ;;  %672 = vmax.xlane.f32.xlu0 %v671_v53  ;;  %v709_v56 = vpop.xlane.xlu1 %708 }
 0x184   :  { %v2114_v28 = vsel %vm1342_vm2, %v2113_v8, %v13188_v27  ;;  %v1071_v46 = vmul.f32 0.00390625, %v709_v56  ;;  %v700_v22 = vpop.xlane.xlu0 %699  ;;  %v11339_v27 = vld [vmem:[%s18278_s0 + $0x1d0] sm:$0xff]  ;;  %v11343_v56 = vld [vmem:[%s18278_s0 + $0x360] sm:$0xff] }
 0x185   :  { %v1068_v23 = vmul.f32 0.00390625, %v700_v22  ;;  %v764_v12 = vadd.f32 %v11340_v42, %v11339_v27  ;;  %v839_v61 = vadd.f32 %v11344_v58, %v11343_v56  ;;  %v11348_v27 = vld [vmem:[%s18278_s0 + $0x398] sm:$0xff] }
 0x186   :  { %v2146_v10 = vrot.slane %v1071_v46, %v12324_v41  ;;  %762 = vadd.xlane.f32.xlu1 %v761_v57 }
 0x187   :  { %v2132_v6 = vrot.slane %v1068_v23, %v12385_v52  ;;  %756 = vadd.xlane.f32.xlu0 %v755_v33  ;;  %v718_v54 = vpop.xlane.xlu1 %717 }
 0x188   :  { %v13407_v13 = vsel %vm1335_vm1, %v2146_v10, %v13205_v29  ;;  %v1074_v53 = vmul.f32 0.00390625, %v718_v54  ;;  %v715_v43 = vpop.xlane.xlu0 %714  ;;  %v11342_v29 = vld [vmem:[%s18278_s0 + $0x388] sm:$0xff]  ;;  %v11345_v10 = vld [vmem:[%s18278_s0 + $0x430] sm:$0xff] }
 0x189   :  { %v2133_v51 = vsel %vm1342_vm2, %v2132_v6, %v13184_v9  ;;  %v1073_v59 = vmul.f32 0.00390625, %v715_v43  ;;  %v845_v32 = vadd.f32 %v11342_v29, %v11341_v20  ;;  %v878_v35 = vadd.f32 %v11346_v63, %v11345_v10  ;;  %v11347_v54 = vld [vmem:[%s18278_s0 + $0x390] sm:$0xff]  ;;  %v11349_v29 = vld [vmem:[%s18278_s0 + $0x4a0] sm:$0xff]  ;;  %v11354_v63 = vld [vmem:[%s18278_s0 + $0x4d8] sm:$0xff] }
 0x18a   :  { %v13412_v15 = vsel %vm1933_vm3, %v2133_v51, %v2114_v28  ;;  %v2160_v8 = vrot.slane %v1074_v53, %v12310_v17  ;;  %831 = vadd.xlane.f32.xlu1 %v830_v40  ;;  %v848_v42 = vadd.f32 %v11348_v27, %v11347_v54  ;;  %v11353_v10 = vld [vmem:[%s18278_s0 + $0x4d0] sm:$0xff]  ;;  %v11356_v54 = vld [vmem:[%s18278_s0 + $0x4c8] sm:$0xff] }
 0x18b   :  { %v2156_v57 = vrot.slane %v1073_v59, %v12307_v11  ;;  %765 = vadd.xlane.f32.xlu0 %v764_v12  ;;  %v793_v9 = vpop.xlane.xlu1 %792 }
 0x18c   :  { %v1099_v33 = vmul.f32 0.00390625, %v793_v9  ;;  %v781_v28 = vpop.xlane.xlu0 %780  ;;  %v11352_v9 = vld [vmem:[%s18278_s0 + $0x478] sm:$0xff] }
 0x18d   :  { %v13429_v46 = vsel %vm1328_vm0, %v2160_v8, %v2156_v57  ;;  %v1095_v22 = vmul.f32 0.00390625, %v781_v28  ;;  %v1622_v8 = vrot.slane %v13271_v48, %v12324_v41  ;;  %v11351_v48 = vld [vmem:[%s18278_s0 + $0x470] sm:$0xff] }
 0x18e   :  { %v2279_v23 = vrot.slane %v1099_v33, %v12324_v41  ;;  %846 = vadd.xlane.f32.xlu1 %v845_v32  ;;  %v890_v56 = vadd.f32 %v11352_v9, %v11351_v48 }
 0x18f   :  { %v2260_v40 = vrot.slane %v1095_v22, %v12324_v41  ;;  %840 = vadd.xlane.f32.xlu0 %v839_v61  ;;  %v802_v6 = vpop.xlane.xlu1 %801  ;;  %v1623_v22 = vsel %vm1335_vm1, %v1622_v8, %v13047_v4 }
 0x190   :  { %v13447_v12 = vsel %vm1335_vm1, %v2279_v23, %v13242_v7  ;;  %v1102_v53 = vmul.f32 0.00390625, %v802_v6  ;;  %v799_v43 = vpop.xlane.xlu0 %798  ;;  %v11350_v7 = vld [vmem:[%s18278_s0 + $0x4a8] sm:$0xff] }
 0x191   :  { %v13451_v51 = vsel %vm1335_vm1, %v2260_v40, %v13222_v37  ;;  %v1101_v59 = vmul.f32 0.00390625, %v799_v43  ;;  %v899_v32 = vadd.f32 %v11350_v7, %v11349_v29  ;;  %v11357_v43 = vld [vmem:[%s18278_s0 + $0x660] sm:$0xff]  ;;  %v11360_v7 = vld [vmem:[%s18278_s0 + $0x628] sm:$0xff] }
 0x192   :  { %v2293_v20 = vrot.slane %v1102_v53, %v12310_v17  ;;  %879 = vadd.xlane.f32.xlu1 %v878_v35  ;;  %v908_v35 = vadd.f32 %v11354_v63, %v11353_v10  ;;  %v11359_v29 = vld [vmem:[%s18278_s0 + $0x620] sm:$0xff]  ;;  %v11364_v10 = vld [vmem:[%s18278_s0 + $0x688] sm:$0xff] }
 0x193   :  { %v2289_v57 = vrot.slane %v1101_v59, %v12307_v11  ;;  %849 = vadd.xlane.f32.xlu0 %v848_v42  ;;  %v544_v37 = vpop.xlane.xlu1 %543  ;;  %v11358_v59 = vld [vmem:[%s18278_s0 + $0x668] sm:$0xff] }
 0x194   :  { %v1722_v58 = vrot.slane %v544_v37, %v12385_v52  ;;  %v484_v61 = vpop.xlane.xlu0 %483 }
 0x195   :  { %v13471_v33 = vsel %vm1328_vm0, %v2293_v20, %v2289_v57  ;;  %v1627_v28 = vrot.slane %v484_v61, %v12385_v52 }
 0x196   :  { %v1723_v23 = vsel %vm1342_vm2, %v1722_v58, %v13304_v5  ;;  %900 = vadd.xlane.f32.xlu1 %v899_v32  ;;  %v11355_v5 = vld [vmem:[%s18278_s0 + $0x4c0] sm:$0xff]  ;;  %v971_v32 = vadd.f32 %v11360_v7, %v11359_v29  ;;  %v11362_v58 = vld [vmem:[%s18278_s0 + $0x698] sm:$0xff] }
 0x197   :  { %v13486_v40 = vsel %vm1939_vm6, %v1723_v23, %v13287_v38  ;;  %v1628_v6 = vsel %vm1342_vm2, %v1627_v28, %v1623_v22  ;;  %891 = vadd.xlane.f32.xlu0 %v890_v56  ;;  %v559_v4 = vpop.xlane.xlu1 %558  ;;  %v905_v27 = vadd.f32 %v11356_v54, %v11355_v5  ;;  %v11361_v56 = vld [vmem:[%s18278_s0 + $0x690] sm:$0xff]  ;;  %v11366_v54 = vld [vmem:[%s18278_s0 + $0x1b8] sm:$0xff] }
 0x198   :  { %v13497_v42 = vsel %vm1945_vm9, %v1628_v6, %v13257_v3  ;;  %v553_v53 = vpop.xlane.xlu0 %552  ;;  %v983_v3 = vadd.f32 %v11358_v59, %v11357_v43  ;;  %v1746_v48 = vrot.slane %v559_v4, %v12307_v11  ;;  %v992_v61 = vadd.f32 %v11362_v58, %v11361_v56  ;;  %v13552_v6 = vld [vmem:[%s18278_s0 + $0x7f8] sm:$0xff]  ;;  %v11365_v5 = vld [vmem:[%s18278_s0 + $0x1b0] sm:$0xff] }
 0x199   :  { %18350 = vst [vmem:[#allocation8_spill] sm:$0xff] %v13497_v42  ;;  %v1736_v38 = vrot.slane %v553_v53, %v12324_v41  ;;  %10267 = vmatmul.mubr.msk.f32.vlgmr.msra.gmra.mrb[0].mxu0 %vm2738_vm10, %v13497_v42  ;;  %10287 = vmatmul.mubr.msk.f32.vlgmr.msra.gmra.mrb[0].mxu1 %vm2738_vm10, %v13497_v42 }
 0x19a   :  { %909 = vadd.xlane.f32.xlu1 %v908_v35 }
 0x19b   :  { %v13512_v8 = vsel %vm1335_vm1, %v1736_v38, %v13344_v34  ;;  %906 = vadd.xlane.f32.xlu0 %v905_v27  ;;  %v628_v20 = vpop.xlane.xlu1 %627  ;;  %v758_v27 = vadd.f32 %v11366_v54, %v11365_v5  ;;  %v11374_v54 = vld [vmem:[%s18278_s0 + $0x3a8] sm:$0xff] }
 0x19c   :  { %v1855_v57 = vrot.slane %v628_v20, %v12385_v52  ;;  %v562_v37 = vpop.xlane.xlu0 %561 }
 0x19d   :  { %v1750_v9 = vrot.slane %v562_v37, %v12310_v17 }
 0x19e   :  { %v1856_v34 = vsel %vm1342_vm2, %v1855_v57, %v13367_v1  ;;  %984 = vadd.xlane.f32.xlu1 %v983_v3  ;;  %v11363_v1 = vld [vmem:[%s18278_s0 + $0x680] sm:$0xff] }
 0x19f   :  { %v13533_v28 = vsel %vm1937_vm5, %v1856_v34, %v13341_v50  ;;  %v13536_v22 = vsel %vm1328_vm0, %v1750_v9, %v1746_v48  ;;  %972 = vadd.xlane.f32.xlu0 %v971_v32  ;;  %v643_v23 = vpop.xlane.xlu1 %642  ;;  %v989_v63 = vadd.f32 %v11364_v10, %v11363_v1  ;;  %v13547_v50 = vld [vmem:[%s18278_s0 + $0x7f0] sm:$0xff]  ;;  %v11369_v9 = vld [vmem:[%s18278_s0 + $0x1e0] sm:$0xff]  ;;  %v11370_v34 = vld [vmem:[%s18278_s0 + $0x1e8] sm:$0xff] }
 0x1a0   :  { %v637_v35 = vpop.xlane.xlu0 %636  ;;  %v674_v43 = vmax.f32 %v13547_v50, %v13552_v6  ;;  %v1879_v20 = vrot.slane %v643_v23, %v12307_v11  ;;  %v11367_v32 = vld [vmem:[%s18278_s0 + $0x370] sm:$0xff]  ;;  %v767_v56 = vadd.f32 %v11370_v34, %v11369_v9  ;;  %v11371_v10 = vld [vmem:[%s18278_s0 + $0x3c0] sm:$0xff]  ;;  %v11378_v9 = vld [vmem:[%s18278_s0 + $0x3d8] sm:$0xff] }
 0x1a1   :  { %v1869_v4 = vrot.slane %v637_v35, %v12324_v41 }
 0x1a2   :  { %993 = vadd.xlane.f32.xlu1 %v992_v61 }
 0x1a3   :  { %v13563_v53 = vsel %vm1335_vm1, %v1869_v4, %v13381_v24  ;;  %990 = vadd.xlane.f32.xlu0 %v989_v63  ;;  %v712_v38 = vpop.xlane.xlu1 %711  ;;  %v11368_v24 = vld [vmem:[%s18278_s0 + $0x378] sm:$0xff]  ;;  %v11372_v63 = vld [vmem:[%s18278_s0 + $0x3c8] sm:$0xff] }
 0x1a4   :  { %v1072_v59 = vmul.f32 0.00390625, %v712_v38  ;;  %v646_v3 = vpop.xlane.xlu0 %645  ;;  %v842_v57 = vadd.f32 %v11368_v24, %v11367_v32  ;;  %v857_v35 = vadd.f32 %v11372_v63, %v11371_v10 }
 0x1a5   :  { %v1883_v29 = vrot.slane %v646_v3, %v12310_v17 }
 0x1a6   :  { %v2151_v7 = vrot.slane %v1072_v59, %v12385_v52  ;;  %759 = vadd.xlane.f32.xlu1 %v758_v27 }
 0x1a7   :  { %v13577_v37 = vsel %vm1328_vm0, %v1883_v29, %v1879_v20  ;;  %675 = vmax.xlane.f32.xlu0 %v674_v43  ;;  %v727_v48 = vpop.xlane.xlu1 %726  ;;  %v11375_v29 = vld [vmem:[%s18278_s0 + $0x4b0] sm:$0xff] }
 0x1a8   :  { %v2152_v58 = vsel %vm1342_vm2, %v2151_v7, %v13407_v13  ;;  %v721_v61 = vpop.xlane.xlu0 %720  ;;  %v1077_v4 = vmul.f32 0.00390625, %v727_v48  ;;  %v11376_v7 = vld [vmem:[%s18278_s0 + $0x4b8] sm:$0xff]  ;;  %v11377_v48 = vld [vmem:[%s18278_s0 + $0x3d0] sm:$0xff] }
 0x1a9   :  { %v13589_v23 = vsel %vm1935_vm4, %v2152_v58, %v13412_v15  ;;  %v1075_v1 = vmul.f32 0.00390625, %v721_v61  ;;  %v11373_v15 = vld [vmem:[%s18278_s0 + $0x3a0] sm:$0xff]  ;;  %v902_v32 = vadd.f32 %v11376_v7, %v11375_v29  ;;  %v860_v34 = vadd.f32 %v11378_v9, %v11377_v48  ;;  %v11385_v48 = vld [vmem:[%s18278_s0 + $0x510] sm:$0xff]  ;;  %v11386_v9 = vld [vmem:[%s18278_s0 + $0x518] sm:$0xff] }
 0x1aa   :  { %843 = vadd.xlane.f32.xlu1 %v842_v57  ;;  %v851_v27 = vadd.f32 %v11374_v54, %v11373_v15  ;;  %v2175_v24 = vrot.slane %v1077_v4, %v12307_v11  ;;  %v11380_v4 = vld [vmem:[%s18278_s0 + $0x508] sm:$0xff]  ;;  %v11381_v15 = vld [vmem:[%s18278_s0 + $0x4e0] sm:$0xff] }
 0x1ab   :  { %v2165_v5 = vrot.slane %v1075_v1, %v12324_v41  ;;  %768 = vadd.xlane.f32.xlu0 %v767_v56  ;;  %v784_v13 = vpop.xlane.xlu1 %783  ;;  %v11382_v54 = vld [vmem:[%s18278_s0 + $0x4e8] sm:$0xff] }
 0x1ac   :  { %v1096_v38 = vmul.f32 0.00390625, %v784_v13  ;;  %v730_v43 = vpop.xlane.xlu0 %729 }
 0x1ad   :  { %v13606_v59 = vsel %vm1335_vm1, %v2165_v5, %v13429_v46  ;;  %v1078_v3 = vmul.f32 0.00390625, %v730_v43 }
 0x1ae   :  { %v2265_v20 = vrot.slane %v1096_v38, %v12385_v52  ;;  %858 = vadd.xlane.f32.xlu1 %v857_v35  ;;  %v11379_v35 = vld [vmem:[%s18278_s0 + $0x500] sm:$0xff] }
 0x1af   :  { %v2179_v57 = vrot.slane %v1078_v3, %v12310_v17  ;;  %852 = vadd.xlane.f32.xlu0 %v851_v27  ;;  %v805_v46 = vpop.xlane.xlu1 %804  ;;  %v917_v5 = vadd.f32 %v11380_v4, %v11379_v35  ;;  %v911_v27 = vadd.f32 %v11382_v54, %v11381_v15  ;;  %v11387_v35 = vld [vmem:[%s18278_s0 + $0x6a0] sm:$0xff]  ;;  %v11388_v4 = vld [vmem:[%s18278_s0 + $0x6a8] sm:$0xff]  ;;  %v11390_v15 = vld [vmem:[%s18278_s0 + $0x678] sm:$0xff] }
 0x1b0   :  { %v2266_v56 = vsel %vm1342_vm2, %v2265_v20, %v13451_v51  ;;  %v1103_v58 = vmul.f32 0.00390625, %v805_v46  ;;  %v796_v61 = vpop.xlane.xlu0 %795 }
 0x1b1   :  { %v13626_v1 = vsel %vm1328_vm0, %v2179_v57, %v2175_v24  ;;  %v1100_v10 = vmul.f32 0.00390625, %v796_v61  ;;  %v11383_v24 = vld [vmem:[%s18278_s0 + $0x630] sm:$0xff] }
 0x1b2   :  { %v2298_v63 = vrot.slane %v1103_v58, %v12324_v41  ;;  %903 = vadd.xlane.f32.xlu1 %v902_v32 }
 0x1b3   :  { %v2284_v51 = vrot.slane %v1100_v10, %v12385_v52  ;;  %861 = vadd.xlane.f32.xlu0 %v860_v34  ;;  %v814_v13 = vpop.xlane.xlu1 %813  ;;  %v920_v34 = vadd.f32 %v11386_v9, %v11385_v48 }
 0x1b4   :  { %v13644_v38 = vsel %vm1335_vm1, %v2298_v63, %v13471_v33  ;;  %v1106_v43 = vmul.f32 0.00390625, %v814_v13  ;;  %v811_v3 = vpop.xlane.xlu0 %810  ;;  %v11384_v33 = vld [vmem:[%s18278_s0 + $0x638] sm:$0xff] }
 0x1b5   :  { %v2285_v20 = vsel %vm1342_vm2, %v2284_v51, %v13447_v12  ;;  %v1105_v29 = vmul.f32 0.00390625, %v811_v3  ;;  %v974_v57 = vadd.f32 %v11384_v33, %v11383_v24  ;;  %v11393_v33 = vld [vmem:[%s18278_s0 + $0x6c0] sm:$0xff] }
 0x1b6   :  { %v13649_v7 = vsel %vm1933_vm3, %v2285_v20, %v2266_v56  ;;  %v2312_v32 = vrot.slane %v1106_v43, %v12310_v17  ;;  %918 = vadd.xlane.f32.xlu1 %v917_v5  ;;  %v995_v5 = vadd.f32 %v11388_v4, %v11387_v35  ;;  %v11391_v20 = vld [vmem:[%s18278_s0 + $0x6d0] sm:$0xff] }
 0x1b7   :  { %v2308_v46 = vrot.slane %v1105_v29, %v12307_v11  ;;  %912 = vadd.xlane.f32.xlu0 %v911_v27  ;;  %v565_v12 = vpop.xlane.xlu1 %564  ;;  %v11392_v29 = vld [vmem:[%s18278_s0 + $0x6d8] sm:$0xff] }
 0x1b8   :  { %v1755_v56 = vrot.slane %v565_v12, %v12324_v41  ;;  %v556_v58 = vpop.xlane.xlu0 %555 }
 0x1b9   :  { %v13667_v61 = vsel %vm1328_vm0, %v2312_v32, %v2308_v46  ;;  %v1741_v10 = vrot.slane %v556_v58, %v12385_v52  ;;  %v1004_v32 = vadd.f32 %v11392_v29, %v11391_v20  ;;  %v11396_v58 = vld [vmem:[%s18278_s0 + $0x3b8] sm:$0xff]  ;;  %v11401_v20 = vld [vmem:[%s18278_s0 + $0x3e0] sm:$0xff]  ;;  %v11402_v29 = vld [vmem:[%s18278_s0 + $0x3e8] sm:$0xff] }
 0x1ba   :  { %v13672_v63 = vsel %vm1335_vm1, %v1755_v56, %v13536_v22  ;;  %975 = vadd.xlane.f32.xlu1 %v974_v57  ;;  %v11389_v22 = vld [vmem:[%s18278_s0 + $0x670] sm:$0xff]  ;;  %v11394_v57 = vld [vmem:[%s18278_s0 + $0x6c8] sm:$0xff] }
 0x1bb   :  { %v1742_v51 = vsel %vm1342_vm2, %v1741_v10, %v13512_v8  ;;  %921 = vadd.xlane.f32.xlu0 %v920_v34  ;;  %v574_v13 = vpop.xlane.xlu1 %573  ;;  %v986_v54 = vadd.f32 %v11390_v15, %v11389_v22  ;;  %v1001_v46 = vadd.f32 %v11394_v57, %v11393_v33  ;;  %v11395_v56 = vld [vmem:[%s18278_s0 + $0x3b0] sm:$0xff] }
 0x1bc   :  { %v13690_v27 = vsel %vm1941_vm7, %v1742_v51, %v13486_v40  ;;  %v1769_v43 = vrot.slane %v574_v13, %v12310_v17  ;;  %v571_v3 = vpop.xlane.xlu0 %570  ;;  %v854_v10 = vadd.f32 %v11396_v58, %v11395_v56 }
 0x1bd   :  { %v1765_v8 = vrot.slane %v571_v3, %v12307_v11 }
 0x1be   :  { %996 = vadd.xlane.f32.xlu1 %v995_v5  ;;  %v11398_v5 = vld [vmem:[%s18278_s0 + $0x1f8] sm:$0xff] }
 0x1bf   :  { %v13701_v24 = vsel %vm1328_vm0, %v1769_v43, %v1765_v8  ;;  %987 = vadd.xlane.f32.xlu0 %v986_v54  ;;  %v649_v40 = vpop.xlane.xlu1 %648  ;;  %v11399_v54 = vld [vmem:[%s18278_s0 + $0x4f0] sm:$0xff]  ;;  %v11400_v43 = vld [vmem:[%s18278_s0 + $0x4f8] sm:$0xff] }
 0x1c0   :  { %v1888_v12 = vrot.slane %v649_v40, %v12324_v41  ;;  %v640_v48 = vpop.xlane.xlu0 %639  ;;  %v914_v3 = vadd.f32 %v11400_v43, %v11399_v54  ;;  %v11407_v43 = vld [vmem:[%s18278_s0 + $0x6b0] sm:$0xff] }
 0x1c1   :  { %v1874_v9 = vrot.slane %v640_v48, %v12385_v52  ;;  %v11404_v48 = vld [vmem:[%s18278_s0 + $0x548] sm:$0xff] }
 0x1c2   :  { %v13713_v34 = vsel %vm1335_vm1, %v1888_v12, %v13577_v37  ;;  %1005 = vadd.xlane.f32.xlu1 %v1004_v32  ;;  %v11397_v37 = vld [vmem:[%s18278_s0 + $0x1f0] sm:$0xff]  ;;  %v863_v32 = vadd.f32 %v11402_v29, %v11401_v20  ;;  %v11403_v12 = vld [vmem:[%s18278_s0 + $0x540] sm:$0xff]  ;;  %v11410_v20 = vld [vmem:[%s18278_s0 + $0x558] sm:$0xff] }
 0x1c3   :  { %v1875_v35 = vsel %vm1342_vm2, %v1874_v9, %v13563_v53  ;;  %1002 = vadd.xlane.f32.xlu0 %v1001_v46  ;;  %v658_v4 = vpop.xlane.xlu1 %657  ;;  %v770_v51 = vadd.f32 %v11398_v5, %v11397_v37  ;;  %v929_v9 = vadd.f32 %v11404_v48, %v11403_v12  ;;  %v11411_v12 = vld [vmem:[%s18278_s0 + $0x700] sm:$0xff]  ;;  %v11412_v48 = vld [vmem:[%s18278_s0 + $0x708] sm:$0xff] }
 0x1c4   :  { %v13731_v13 = vsel %vm1939_vm6, %v1875_v35, %v13533_v28  ;;  %v1902_v22 = vrot.slane %v658_v4, %v12310_v17  ;;  %v655_v15 = vpop.xlane.xlu0 %654  ;;  %v11406_v35 = vld [vmem:[%s18278_s0 + $0x528] sm:$0xff] }
 0x1c5   :  { %v1898_v53 = vrot.slane %v655_v15, %v12307_v11 }
 0x1c6   :  { %855 = vadd.xlane.f32.xlu1 %v854_v10  ;;  %v11405_v10 = vld [vmem:[%s18278_s0 + $0x520] sm:$0xff] }
 0x1c7   :  { %v13742_v8 = vsel %vm1328_vm0, %v1902_v22, %v1898_v53  ;;  %771 = vadd.xlane.f32.xlu0 %v770_v51  ;;  %v733_v28 = vpop.xlane.xlu1 %732  ;;  %v923_v4 = vadd.f32 %v11406_v35, %v11405_v10  ;;  %v11413_v10 = vld [vmem:[%s18278_s0 + $0x6e0] sm:$0xff]  ;;  %v11414_v35 = vld [vmem:[%s18278_s0 + $0x6e8] sm:$0xff] }
 0x1c8   :  { %v1079_v40 = vmul.f32 0.00390625, %v733_v28  ;;  %v724_v33 = vpop.xlane.xlu0 %723 }
 0x1c9   :  { %v1076_v57 = vmul.f32 0.00390625, %v724_v33 }
 0x1ca   :  { %v2184_v46 = vrot.slane %v1079_v40, %v12324_v41  ;;  %915 = vadd.xlane.f32.xlu1 %v914_v3 }
 0x1cb   :  { %v2170_v56 = vrot.slane %v1076_v57, %v12385_v52  ;;  %864 = vadd.xlane.f32.xlu0 %v863_v32  ;;  %v742_v58 = vpop.xlane.xlu1 %741 }
 0x1cc   :  { %v13766_v37 = vsel %vm1335_vm1, %v2184_v46, %v13626_v1  ;;  %v1082_v5 = vmul.f32 0.00390625, %v742_v58  ;;  %v739_v51 = vpop.xlane.xlu0 %738  ;;  %v11408_v1 = vld [vmem:[%s18278_s0 + $0x6b8] sm:$0xff] }
 0x1cd   :  { %v2171_v22 = vsel %vm1342_vm2, %v2170_v56, %v13606_v59  ;;  %v1081_v15 = vmul.f32 0.00390625, %v739_v51  ;;  %v998_v3 = vadd.f32 %v11408_v1, %v11407_v43 }
 0x1ce   :  { %v13772_v53 = vsel %vm1937_vm5, %v2171_v22, %v13589_v23  ;;  %v2198_v54 = vrot.slane %v1082_v5, %v12310_v17  ;;  %930 = vadd.xlane.f32.xlu1 %v929_v9  ;;  %v11409_v23 = vld [vmem:[%s18278_s0 + $0x550] sm:$0xff]  ;;  %v1013_v9 = vadd.f32 %v11412_v48, %v11411_v12  ;;  %v11419_v12 = vld [vmem:[%s18278_s0 + $0x560] sm:$0xff]  ;;  %v11420_v48 = vld [vmem:[%s18278_s0 + $0x568] sm:$0xff] }
 0x1cf   :  { %v2194_v28 = vrot.slane %v1081_v15, %v12307_v11  ;;  %924 = vadd.xlane.f32.xlu0 %v923_v4  ;;  %v817_v59 = vpop.xlane.xlu1 %816  ;;  %v932_v29 = vadd.f32 %v11410_v20, %v11409_v23  ;;  %v1007_v4 = vadd.f32 %v11414_v35, %v11413_v10  ;;  %v11418_v23 = vld [vmem:[%s18278_s0 + $0x718] sm:$0xff]  ;;  %v11421_v10 = vld [vmem:[%s18278_s0 + $0x530] sm:$0xff] }
 0x1d0   :  { %v1107_v32 = vmul.f32 0.00390625, %v817_v59  ;;  %v808_v40 = vpop.xlane.xlu0 %807  ;;  %v11422_v35 = vld [vmem:[%s18278_s0 + $0x538] sm:$0xff] }
 0x1d1   :  { %v13789_v33 = vsel %vm1328_vm0, %v2198_v54, %v2194_v28  ;;  %v1104_v57 = vmul.f32 0.00390625, %v808_v40 }
 0x1d2   :  { %v2317_v46 = vrot.slane %v1107_v32, %v12324_v41  ;;  %999 = vadd.xlane.f32.xlu1 %v998_v3  ;;  %v11415_v3 = vld [vmem:[%s18278_s0 + $0x3f0] sm:$0xff] }
 0x1d3   :  { %v2303_v56 = vrot.slane %v1104_v57, %v12385_v52  ;;  %933 = vadd.xlane.f32.xlu0 %v932_v29  ;;  %v826_v58 = vpop.xlane.xlu1 %825 }
 0x1d4   :  { %v13807_v5 = vsel %vm1335_vm1, %v2317_v46, %v13667_v61  ;;  %v1110_v51 = vmul.f32 0.00390625, %v826_v58  ;;  %v823_v22 = vpop.xlane.xlu0 %822  ;;  %v11416_v61 = vld [vmem:[%s18278_s0 + $0x3f8] sm:$0xff] }
 0x1d5   :  { %v2304_v15 = vsel %vm1342_vm2, %v2303_v56, %v13644_v38  ;;  %v1109_v54 = vmul.f32 0.00390625, %v823_v22  ;;  %v866_v28 = vadd.f32 %v11416_v61, %v11415_v3  ;;  %v11425_v61 = vld [vmem:[%s18278_s0 + $0x580] sm:$0xff] }
 0x1d6   :  { %v13813_v43 = vsel %vm1935_vm4, %v2304_v15, %v13649_v7  ;;  %v2331_v1 = vrot.slane %v1110_v51, %v12310_v17  ;;  %1014 = vadd.xlane.f32.xlu1 %v1013_v9  ;;  %v11417_v7 = vld [vmem:[%s18278_s0 + $0x710] sm:$0xff]  ;;  %v935_v9 = vadd.f32 %v11420_v48, %v11419_v12  ;;  %v11430_v12 = vld [vmem:[%s18278_s0 + $0x6f8] sm:$0xff] }
 0x1d7   :  { %v2327_v59 = vrot.slane %v1109_v54, %v12307_v11  ;;  %1008 = vadd.xlane.f32.xlu0 %v1007_v4  ;;  %v874_v38 = vpop.xlane.xlu1 %873  ;;  %v1016_v20 = vadd.f32 %v11418_v23, %v11417_v7  ;;  %v926_v4 = vadd.f32 %v11422_v35, %v11421_v10  ;;  %v11423_v15 = vld [vmem:[%s18278_s0 + $0x590] sm:$0xff]  ;;  %v11424_v54 = vld [vmem:[%s18278_s0 + $0x598] sm:$0xff]  ;;  %v11427_v23 = vld [vmem:[%s18278_s0 + $0x720] sm:$0xff] }
 0x1d8   :  { %v1126_v29 = vmul.f32 0.00390625, %v874_v38  ;;  %v871_v32 = vpop.xlane.xlu0 %870  ;;  %v11432_v35 = vld [vmem:[%s18278_s0 + $0x758] sm:$0xff] }
 0x1d9   :  { %v13830_v40 = vsel %vm1328_vm0, %v2331_v1, %v2327_v59  ;;  %v1125_v57 = vmul.f32 0.00390625, %v871_v32  ;;  %v944_v1 = vadd.f32 %v11424_v54, %v11423_v15 }
 0x1da   :  { %v2407_v46 = vrot.slane %v1126_v29, %v12310_v17  ;;  %867 = vadd.xlane.f32.xlu1 %v866_v28  ;;  %v11426_v28 = vld [vmem:[%s18278_s0 + $0x588] sm:$0xff] }
 0x1db   :  { %v2403_v56 = vrot.slane %v1125_v57, %v12307_v11  ;;  %1017 = vadd.xlane.f32.xlu0 %v1016_v20  ;;  %v13840_v58 = vpop.xlane.xlu1 %885  ;;  %v941_v59 = vadd.f32 %v11426_v28, %v11425_v61  ;;  %v11428_v20 = vld [vmem:[%s18278_s0 + $0x728] sm:$0xff] }
 0x1dc   :  { %v13848_v51 = vpop.xlane.xlu0 %882  ;;  %v1019_v29 = vadd.f32 %v11428_v20, %v11427_v23  ;;  %v11438_v20 = vld [vmem:[%s18278_s0 + $0x578] sm:$0xff] }
 0x1dd   :  { %v13851_v22 = vsel %vm1328_vm0, %v2407_v46, %v2403_v56  ;;  %v11429_v46 = vld [vmem:[%s18278_s0 + $0x6f0] sm:$0xff] }
 0x1de   :  { %936 = vadd.xlane.f32.xlu1 %v935_v9  ;;  %v1010_v48 = vadd.f32 %v11430_v12, %v11429_v46  ;;  %v11439_v12 = vld [vmem:[%s18278_s0 + $0x5d0] sm:$0xff] }
 0x1df   :  { %927 = vadd.xlane.f32.xlu0 %v926_v4  ;;  %v13859_v3 = vpop.xlane.xlu1 %576 }
 0x1e0   :  { %v568_v38 = vpop.xlane.xlu0 %567 }
 0x1e1   :  { %v1760_v7 = vrot.slane %v568_v38, %v12385_v52  ;;  %v11436_v38 = vld [vmem:[%s18278_s0 + $0x5a8] sm:$0xff] }
 0x1e2   :  { %945 = vadd.xlane.f32.xlu1 %v944_v1  ;;  %v11434_v1 = vld [vmem:[%s18278_s0 + $0x748] sm:$0xff] }
 0x1e3   :  { %v1761_v32 = vsel %vm1342_vm2, %v1760_v7, %v13672_v63  ;;  %942 = vadd.xlane.f32.xlu0 %v941_v59  ;;  %v13876_v57 = vpop.xlane.xlu1 %660  ;;  %v11431_v63 = vld [vmem:[%s18278_s0 + $0x750] sm:$0xff] }
 0x1e4   :  { %v13886_v9 = vsel %vm1943_vm8, %v1761_v32, %v13690_v27  ;;  %v652_v56 = vpop.xlane.xlu0 %651  ;;  %v1028_v4 = vadd.f32 %v11432_v35, %v11431_v63  ;;  %v11433_v27 = vld [vmem:[%s18278_s0 + $0x740] sm:$0xff] }
 0x1e5   :  { %v1893_v10 = vrot.slane %v652_v56, %v12385_v52  ;;  %v1025_v61 = vadd.f32 %v11434_v1, %v11433_v27  ;;  %v11441_v35 = vld [vmem:[%s18278_s0 + $0x5c0] sm:$0xff] }
 0x1e6   :  { %1020 = vadd.xlane.f32.xlu1 %v1019_v29 }
 0x1e7   :  { %v1894_v15 = vsel %vm1342_vm2, %v1893_v10, %v13713_v34  ;;  %1011 = vadd.xlane.f32.xlu0 %v1010_v48  ;;  %v13897_v54 = vpop.xlane.xlu1 %669  ;;  %v11435_v34 = vld [vmem:[%s18278_s0 + $0x5a0] sm:$0xff]  ;;  %v11440_v48 = vld [vmem:[%s18278_s0 + $0x5d8] sm:$0xff] }
 0x1e8   :  { %v13907_v28 = vsel %vm1941_vm7, %v1894_v15, %v13731_v13  ;;  %v13909_v59 = vpop.xlane.xlu0 %666  ;;  %v947_v7 = vadd.f32 %v11436_v38, %v11435_v34  ;;  %v11437_v13 = vld [vmem:[%s18278_s0 + $0x570] sm:$0xff]  ;;  %v956_v56 = vadd.f32 %v11440_v48, %v11439_v12  ;;  %v11443_v34 = vld [vmem:[%s18278_s0 + $0x760] sm:$0xff]  ;;  %v11444_v38 = vld [vmem:[%s18278_s0 + $0x768] sm:$0xff] }
 0x1e9   :  { %v938_v29 = vadd.f32 %v11438_v20, %v11437_v13  ;;  %v11448_v12 = vld [vmem:[%s18278_s0 + $0x798] sm:$0xff] }
 0x1ea   :  { %1029 = vadd.xlane.f32.xlu1 %v1028_v4  ;;  %v11442_v4 = vld [vmem:[%s18278_s0 + $0x5c8] sm:$0xff] }
 0x1eb   :  { %1026 = vadd.xlane.f32.xlu0 %v1025_v61  ;;  %v13917_v23 = vpop.xlane.xlu1 %744  ;;  %v953_v15 = vadd.f32 %v11442_v4, %v11441_v35  ;;  %v11449_v35 = vld [vmem:[%s18278_s0 + $0x780] sm:$0xff]  ;;  %v11450_v4 = vld [vmem:[%s18278_s0 + $0x788] sm:$0xff] }
 0x1ec   :  { %v736_v32 = vpop.xlane.xlu0 %735 }
 0x1ed   :  { %v1080_v46 = vmul.f32 0.00390625, %v736_v32 }
 0x1ee   :  { %948 = vadd.xlane.f32.xlu1 %v947_v7  ;;  %v1031_v7 = vadd.f32 %v11444_v38, %v11443_v34 }
 0x1ef   :  { %v2189_v10 = vrot.slane %v1080_v46, %v12385_v52  ;;  %939 = vadd.xlane.f32.xlu0 %v938_v29  ;;  %v13932_v63 = vpop.xlane.xlu1 %753  ;;  %v11447_v46 = vld [vmem:[%s18278_s0 + $0x790] sm:$0xff] }
 0x1f0   :  { %v13940_v27 = vpop.xlane.xlu0 %750  ;;  %v1040_v48 = vadd.f32 %v11448_v12, %v11447_v46 }
 0x1f1   :  { %v2190_v1 = vsel %vm1342_vm2, %v2189_v10, %v13766_v37  ;;  %v11445_v37 = vld [vmem:[%s18278_s0 + $0x730] sm:$0xff] }
 0x1f2   :  { %v13946_v61 = vsel %vm1939_vm6, %v2190_v1, %v13772_v53  ;;  %957 = vadd.xlane.f32.xlu1 %v956_v56  ;;  %v11446_v53 = vld [vmem:[%s18278_s0 + $0x738] sm:$0xff] }
 0x1f3   :  { %954 = vadd.xlane.f32.xlu0 %v953_v15  ;;  %v13954_v13 = vpop.xlane.xlu1 %828  ;;  %v1022_v20 = vadd.f32 %v11446_v53, %v11445_v37  ;;  %v1037_v15 = vadd.f32 %v11450_v4, %v11449_v35  ;;  %v950_v53 = vadd.f32 %v13073_v2, %v13068_v44  ;;  %v1049_v44 = vadd.f32 %v13135_v31, %v13130_v30 }
 0x1f4   :  { %v820_v29 = vpop.xlane.xlu0 %819  ;;  %v1058_v30 = vadd.f32 %v13552_v6, %v13547_v50  ;;  %v1083_v31 = vmul.f32 0.00390625, %v13917_v23 }
 0x1f5   :  { %v1108_v32 = vmul.f32 0.00390625, %v820_v29 }
 0x1f6   :  { %1032 = vadd.xlane.f32.xlu1 %v1031_v7  ;;  %v959_v7 = vadd.f32 %v13063_v14, %v13058_v49  ;;  %v1052_v49 = vadd.f32 %v13124_v18, %v13119_v19  ;;  %v1907_v19 = vrot.slane %v13876_v57, %v12324_v41  ;;  %v1774_v18 = vrot.slane %v13859_v3, %v12324_v41 }
 0x1f7   :  { %v2322_v56 = vrot.slane %v1108_v32, %v12385_v52  ;;  %1023 = vadd.xlane.f32.xlu0 %v1022_v20  ;;  %v13969_v10 = vpop.xlane.xlu1 %837  ;;  %v2203_v6 = vrot.slane %v1083_v31, %v12324_v41 }
 0x1f8   :  { %v13977_v1 = vpop.xlane.xlu0 %834  ;;  %v1908_v57 = vsel %vm1335_vm1, %v1907_v19, %v13742_v8  ;;  %v1775_v3 = vsel %vm1335_vm1, %v1774_v18, %v13701_v24  ;;  %v9488_v19 = vld [vmem:[%s18279_s1 + $0x40] sm:$0xff] }
 0x1f9   :  { %v2323_v34 = vsel %vm1342_vm2, %v2322_v56, %v13807_v5  ;;  %v1043_v5 = vadd.f32 %v13092_v55, %v13087_v36  ;;  %v1046_v36 = vadd.f32 %v13320_v0, %v13315_v62  ;;  %v1055_v0 = vadd.f32 %v13356_v25, %v13351_v21  ;;  %v9501_v18 = vld [vmem:[%s18279_s1 + $0x60] sm:$0xff] }
 0x1fa   :  { %v13983_v38 = vsel %vm1937_vm5, %v2323_v34, %v13813_v43  ;;  %1041 = vadd.xlane.f32.xlu1 %v1040_v48  ;;  %v1034_v43 = vadd.f32 %v13103_v47, %v13098_v16  ;;  %v962_v16 = vadd.f32 %v13331_v45, %v13326_v26  ;;  %v1111_v56 = vmul.f32 0.00390625, %v13954_v13 }
 0x1fb   :  { %1038 = vadd.xlane.f32.xlu0 %v1037_v15  ;;  %v13987_v37 = vpop.xlane.xlu1 %888 }
 0x1fc   :  { %v13991_v20 = vpop.xlane.xlu0 %876  ;;  %v2336_v34 = vrot.slane %v1111_v56, %v12324_v41  ;;  %v9514_v56 = vld [vmem:[%s18279_s1 + $0x80] sm:$0xff] }
 0x1fe   :  { %960 = vadd.xlane.f32.xlu1 %v959_v7  ;;  %v2337_v13 = vsel %vm1335_vm1, %v2336_v34, %v13830_v40  ;;  %v9489_v40 = vld [vmem:[%s18279_s1 + $0x48] sm:$0xff]  ;;  %v9527_v34 = vld [vmem:[%s18279_s1 + $0xa0] sm:$0xff] }
 0x1ff   :  { %951 = vadd.xlane.f32.xlu0 %v950_v53  ;;  %v13995_v29 = vpop.xlane.xlu1 %897 }
 0x200   :  { %v13999_v32 = vpop.xlane.xlu0 %894 }
 0x202   :  { %1044 = vadd.xlane.f32.xlu1 %v1043_v5 }
 0x203   :  { %1035 = vadd.xlane.f32.xlu0 %v1034_v43  ;;  %v14003_v14 = vpop.xlane.xlu1 %969 }
 0x204   :  { %v14007_v2 = vpop.xlane.xlu0 %966 }
 0x206   :  { %1053 = vadd.xlane.f32.xlu1 %v1052_v49 }
 0x207   :  { %1050 = vadd.xlane.f32.xlu0 %v1049_v44  ;;  %v14011_v55 = vpop.xlane.xlu1 %981 }
 0x208   :  { %v14015_v47 = vpop.xlane.xlu0 %978 }
 0x20a   :  { %1047 = vadd.xlane.f32.xlu1 %v1046_v36 }
 0x20b   :  { %963 = vadd.xlane.f32.xlu0 %v962_v16  ;;  %v664_v62 = vpop.xlane.xlu1 %663 }
 0x20c   :  { %v1912_v26 = vrot.slane %v664_v62, %v12385_v52  ;;  %v580_v45 = vpop.xlane.xlu0 %579 }
 0x20d   :  { %v1779_v46 = vrot.slane %v580_v45, %v12385_v52  ;;  %v9491_v45 = vld [vmem:[%s18279_s1 + $0x58] sm:$0xff] }
 0x20e   :  { %v1913_v50 = vsel %vm1342_vm2, %v1912_v26, %v1908_v57  ;;  %1059 = vadd.xlane.f32.xlu1 %v1058_v30  ;;  %v10906_v30 = vpack.c.bf16 %v9489_v40, %v9488_v19  ;;  %v9490_v26 = vld [vmem:[%s18279_s1 + $0x50] sm:$0xff] }
 0x20f   :  { %v14036_v23 = vsel %vm1943_vm8, %v1913_v50, %v13907_v28  ;;  %v1780_v21 = vsel %vm1342_vm2, %v1779_v46, %v1775_v3  ;;  %1056 = vadd.xlane.f32.xlu0 %v1055_v0  ;;  %v748_v25 = vpop.xlane.xlu1 %747  ;;  %v2204_v28 = vsel %vm1335_vm1, %v2203_v6, %v13789_v33  ;;  %v9503_v57 = vld [vmem:[%s18279_s1 + $0x70] sm:$0xff]  ;;  %v10910_v46 = vpack.c.bf16 %v9491_v45, %v9490_v26  ;;  %v9504_v3 = vld [vmem:[%s18279_s1 + $0x78] sm:$0xff] }
 0x210   :  { %v14041_v8 = vsel %vm1945_vm9, %v1780_v21, %v13886_v9  ;;  %v1084_v12 = vmul.f32 0.00390625, %v748_v25  ;;  %v14043_v48 = vpop.xlane.xlu0 %672  ;;  %10907 = vmatprep.subr.bf16.mxu0 %v10906_v30  ;;  %v10918_v50 = vpack.c.bf16 %v9504_v3, %v9503_v57 }
 0x211   :  { %18351 = vst [vmem:[#allocation9_spill] sm:$0xff] %v14041_v8  ;;  %10269 = vmatprep.mubr.msk.f32.mxu0 %vm2738_vm10, %v14041_v8  ;;  %10289 = vmatprep.mubr.msk.f32.mxu1 %vm2738_vm10, %v14041_v8 }
 0x212   :  { %v2208_v24 = vrot.slane %v1084_v12, %v12385_v52  ;;  %10909 = vmatpush3.bf16.msra.mxu0 %v10906_v30 }
 0x213   :  { %v14053_v35 = vpop.xlane.xlu1 %762  ;;  %10911 = vmatprep.subr.bf16.mxu0 %v10910_v46 }
 0x214   :  { %v2209_v9 = vsel %vm1342_vm2, %v2208_v24, %v2204_v28  ;;  %v14056_v4 = vpop.xlane.xlu0 %756 }
 0x215   :  { %v14060_v15 = vsel %vm1941_vm7, %v2209_v9, %v13946_v61  ;;  %v9515_v9 = vld [vmem:[%s18279_s1 + $0x88] sm:$0xff] }
 0x216   :  { %10913 = vmatpush3.bf16.msra.mxu0 %v10910_v46 }
 0x217   :  { %v832_v7 = vpop.xlane.xlu1 %831 }
 0x218   :  { %v1112_v53 = vmul.f32 0.00390625, %v832_v7  ;;  %v14063_v5 = vpop.xlane.xlu0 %765  ;;  %v1921_v7 = vrot.slane %v13897_v54, %v12310_v17 }
 0x21a   :  { %v2341_v33 = vrot.slane %v1112_v53, %v12385_v52  ;;  %v1917_v53 = vrot.slane %v13909_v59, %v12307_v11 }
 0x21b   :  { %v14068_v43 = vpop.xlane.xlu1 %846 }
 0x21c   :  { %v2342_v49 = vsel %vm1342_vm2, %v2341_v33, %v2337_v13  ;;  %v14071_v44 = vpop.xlane.xlu0 %840  ;;  %v14134_v33 = vpack.c.bf16 %v9515_v9, %v9514_v56  ;;  %v9528_v13 = vld [vmem:[%s18279_s1 + $0xa8] sm:$0xff]  ;;  %v1922_v54 = vsel %vm1328_vm0, %v1921_v7, %v1917_v53  ;;  %v1086_v7 = vmul.f32 0.00390625, %v13932_v63 }
 0x21d   :  { %v14075_v61 = vsel %vm1939_vm6, %v2342_v49, %v13983_v38  ;;  %v9502_v38 = vld [vmem:[%s18279_s1 + $0x68] sm:$0xff]  ;;  %v1926_v49 = vrot.slane %v14043_v48, %v12324_v41  ;;  %v14141_v19 = vpack.c.bf16 %v9528_v13, %v9527_v34  ;;  %v1085_v53 = vmul.f32 0.00390625, %v13940_v27 }
 0x21e   :  { %v10914_v31 = vpack.c.bf16 %v9502_v38, %v9501_v18  ;;  %18352 = vst [vmem:[#allocation10_spill] sm:$0xff] %v14134_v33  ;;  %10923 = vmatprep.subr.bf16.mxu0 %v14134_v33  ;;  %v1089_v63 = vmul.f32 0.00390625, %v14053_v35 }
 0x21f   :  { %v14077_v36 = vpop.xlane.xlu1 %879  ;;  %18353 = vst [vmem:[#allocation11_spill] sm:$0xff] %v14141_v19  ;;  %v1927_v30 = vsel %vm1335_vm1, %v1926_v49, %v1922_v54  ;;  %v1087_v49 = vmul.f32 0.00390625, %v14056_v4  ;;  %v1090_v54 = vmul.f32 0.00390625, %v14063_v5 }
 0x220   :  { %v14079_v16 = vpop.xlane.xlu0 %849  ;;  %10915 = vmatprep.subr.bf16.mxu1 %v10914_v31 }
 0x221   :  { %10917 = vmatpush3.bf16.msra.mxu1 %v10914_v31  ;;  %v2222_v27 = vrot.slane %v1087_v49, %v12324_v41  ;;  %v2236_v4 = vrot.slane %v1090_v54, %v12310_v17 }
 0x222   :  { %10919 = vmatprep.subr.bf16.mxu1 %v10918_v50 }
 0x223   :  { %v14093_v62 = vpop.xlane.xlu1 %900 }
 0x224   :  { %v14095_v0 = vpop.xlane.xlu0 %891 }
 0x225   :  { %10921 = vmatpush3.bf16.msra.mxu1 %v10918_v50 }
 0x226   :  { %10931 = vmatprep.subr.bf16.mxu1 %v14141_v19 }
 0x227   :  { %v14109_v6 = vpop.xlane.xlu1 %909 }
 0x228   :  { %v14111_v21 = vpop.xlane.xlu0 %906 }
 0x22b   :  { %v14113_v25 = vpop.xlane.xlu1 %984 }
 0x22c   :  { %v14115_v12 = vpop.xlane.xlu0 %972 }
 0x22f   :  { %v14117_v24 = vpop.xlane.xlu1 %993 }
 0x230   :  { %v14119_v28 = vpop.xlane.xlu0 %990 }
 0x233   :  { %v760_v40 = vpop.xlane.xlu1 %759 }
 0x234   :  { %v676_v18 = vpop.xlane.xlu0 %675 }
 0x235   :  { %v1931_v59 = vrot.slane %v676_v18, %v12385_v52  ;;  %v1088_v18 = vmul.f32 0.00390625, %v760_v40 }
 0x237   :  { %v1932_v38 = vsel %vm1342_vm2, %v1931_v59, %v1927_v30  ;;  %v844_v31 = vpop.xlane.xlu1 %843  ;;  %v2217_v30 = vrot.slane %v1086_v7, %v12310_v17  ;;  %v2227_v19 = vrot.slane %v1088_v18, %v12385_v52  ;;  %v2232_v7 = vrot.slane %v1089_v63, %v12307_v11 }
 0x238   :  { %v14151_v48 = vsel %vm1945_vm9, %v1932_v38, %v14036_v23  ;;  %v769_v26 = vpop.xlane.xlu0 %768  ;;  %v2213_v38 = vrot.slane %v1085_v53, %v12307_v11  ;;  %v1113_v63 = vmul.f32 0.00390625, %v13977_v1 }
 0x239   :  { %18354 = vst [vmem:[#allocation12_spill] sm:$0xff] %v14151_v48  ;;  %10270 = vmatmul.mubr.msk.f32.gmra.mrb[2].mxu0 %vm2738_vm10, %v14151_v48  ;;  %10290 = vmatmul.mubr.msk.f32.gmra.mrb[2].mxu1 %vm2738_vm10, %v14151_v48  ;;  %v1091_v60 = vmul.f32 0.00390625, %v769_v26  ;;  %v2237_v35 = vsel %vm1328_vm0, %v2236_v4, %v2232_v7  ;;  %v1116_v4 = vmul.f32 0.00390625, %v844_v31 }
 0x23a   :  { %v2218_v5 = vsel %vm1328_vm0, %v2217_v30, %v2213_v38 }
 0x23b   :  { %v859_v45 = vpop.xlane.xlu1 %858  ;;  %v2241_v33 = vrot.slane %v1091_v60, %v12324_v41  ;;  %v2223_v26 = vsel %vm1335_vm1, %v2222_v27, %v2218_v5  ;;  %v2360_v31 = vrot.slane %v1116_v4, %v12385_v52 }
 0x23c   :  { %v853_v57 = vpop.xlane.xlu0 %852  ;;  %v2228_v42 = vsel %vm1342_vm2, %v2227_v19, %v2223_v26  ;;  %v1117_v26 = vmul.f32 0.00390625, %v14068_v43 }
 0x23d   :  { %v2242_v54 = vsel %vm1335_vm1, %v2241_v33, %v2237_v35  ;;  %v2709_v60 = vsel %vm1943_vm8, %v2228_v42, %v14060_v15  ;;  %v1114_v33 = vmul.f32 0.00390625, %v13969_v10  ;;  %v1115_v42 = vmul.f32 0.00390625, %v14071_v44 }
 0x23e   :  { %v1118_v15 = vmul.f32 0.00390625, %v14079_v16  ;;  %v1119_v5 = vmul.f32 0.00390625, %v853_v57  ;;  %v1121_v57 = vmul.f32 0.00390625, %v859_v45  ;;  %v2365_v43 = vrot.slane %v1117_v26, %v12307_v11 }
 0x23f   :  { %v14157_v46 = vpop.xlane.xlu1 %903  ;;  %v2350_v35 = vrot.slane %v1114_v33, %v12310_v17  ;;  %v2355_v1 = vrot.slane %v1115_v42, %v12324_v41 }
 0x240   :  { %v862_v3 = vpop.xlane.xlu0 %861  ;;  %v2369_v44 = vrot.slane %v1118_v15, %v12310_v17  ;;  %v2384_v4 = vrot.slane %v1121_v57, %v12307_v11 }
 0x241   :  { %v1122_v10 = vmul.f32 0.00390625, %v862_v3 }
 0x243   :  { %v14159_v50 = vpop.xlane.xlu1 %918  ;;  %v2388_v33 = vrot.slane %v1122_v10, %v12310_v17 }
 0x244   :  { %v14161_v56 = vpop.xlane.xlu0 %912 }
 0x247   :  { %v14163_v9 = vpop.xlane.xlu1 %975 }
 0x248   :  { %v14165_v23 = vpop.xlane.xlu0 %921 }
 0x24b   :  { %v14167_v34 = vpop.xlane.xlu1 %996 }
 0x24c   :  { %v14171_v13 = vpop.xlane.xlu0 %987 }
 0x24f   :  { %v14175_v59 = vpop.xlane.xlu1 %1005 }
 0x250   :  { %v14179_v48 = vpop.xlane.xlu0 %1002 }
 0x253   :  { %v856_v40 = vpop.xlane.xlu1 %855 }
 0x254   :  { %v772_v8 = vpop.xlane.xlu0 %771 }
 0x255   :  { %v1092_v53 = vmul.f32 0.00390625, %v772_v8 }
 0x257   :  { %v2246_v49 = vrot.slane %v1092_v53, %v12385_v52  ;;  %v14192_v18 = vpop.xlane.xlu1 %915  ;;  %v1120_v53 = vmul.f32 0.00390625, %v856_v40 }
 0x258   :  { %v865_v39 = vpop.xlane.xlu0 %864 }
 0x259   :  { %v2247_v30 = vsel %vm1342_vm2, %v2246_v49, %v2242_v54  ;;  %v2346_v49 = vrot.slane %v1113_v63, %v12307_v11  ;;  %v1123_v54 = vmul.f32 0.00390625, %v865_v39  ;;  %v2379_v40 = vrot.slane %v1120_v53, %v12385_v52 }
 0x25a   :  { %v14199_v38 = vsel %vm1945_vm9, %v2247_v30, %v2709_v60  ;;  %v2374_v60 = vrot.slane %v1119_v5, %v12324_v41  ;;  %v2370_v39 = vsel %vm1328_vm0, %v2369_v44, %v2365_v43 }
 0x25b   :  { %18355 = vst [vmem:[#allocation13_spill] sm:$0xff] %v14199_v38  ;;  %10272 = vmatprep.mubr.msk.f32.mxu0 %vm2738_vm10, %v14199_v38  ;;  %10292 = vmatprep.mubr.msk.f32.mxu1 %vm2738_vm10, %v14199_v38  ;;  %v14205_v8 = vpop.xlane.xlu1 %930  ;;  %v2351_v3 = vsel %vm1328_vm0, %v2350_v35, %v2346_v49  ;;  %v2393_v42 = vrot.slane %v1123_v54, %v12324_v41 }
 0x25c   :  { %v14207_v19 = vpop.xlane.xlu0 %924  ;;  %v2356_v63 = vsel %vm1335_vm1, %v2355_v1, %v2351_v3  ;;  %v2375_v5 = vsel %vm1335_vm1, %v2374_v60, %v2370_v39  ;;  %v2389_v35 = vsel %vm1328_vm0, %v2388_v33, %v2384_v4  ;;  %v1130_v39 = vmul.f32 0.00390625, %v13840_v58 }
 0x25d   :  { %v2361_v45 = vsel %vm1342_vm2, %v2360_v31, %v2356_v63  ;;  %v2380_v53 = vsel %vm1342_vm2, %v2379_v40, %v2375_v5  ;;  %v2394_v1 = vsel %vm1335_vm1, %v2393_v42, %v2389_v35  ;;  %v1129_v42 = vmul.f32 0.00390625, %v13848_v51 }
 0x25e   :  { %v2715_v10 = vsel %vm1941_vm7, %v2361_v45, %v14075_v61  ;;  %v1127_v45 = vmul.f32 0.00390625, %v13991_v20  ;;  %v1134_v5 = vmul.f32 0.00390625, %v13995_v29  ;;  %v1157_v35 = vmul.f32 0.00390625, %v14007_v2 }
 0x25f   :  { %v14213_v27 = vpop.xlane.xlu1 %999  ;;  %v2716_v54 = vsel %vm1943_vm8, %v2380_v53, %v2715_v10  ;;  %v1158_v53 = vmul.f32 0.00390625, %v14003_v14  ;;  %v1161_v58 = vmul.f32 0.00390625, %v14015_v47  ;;  %v2426_v51 = vrot.slane %v1130_v39, %v12310_v17 }
 0x260   :  { %v14215_v7 = vpop.xlane.xlu0 %933  ;;  %v1128_v20 = vmul.f32 0.00390625, %v14077_v36  ;;  %v1135_v29 = vmul.f32 0.00390625, %v14093_v62  ;;  %v2412_v14 = vrot.slane %v1127_v45, %v12324_v41  ;;  %v1132_v2 = vmul.f32 0.00390625, %v14095_v0 }
 0x261   :  { %v2574_v62 = vrot.slane %v1161_v58, %v12307_v11  ;;  %v1136_v45 = vmul.f32 0.00390625, %v14157_v46 }
 0x262   :  { %v2417_v0 = vrot.slane %v1128_v20, %v12385_v52  ;;  %v1159_v20 = vmul.f32 0.00390625, %v14115_v12 }
 0x263   :  { %v14222_v16 = vpop.xlane.xlu1 %1014 }
 0x264   :  { %v14226_v30 = vpop.xlane.xlu0 %1008 }
 0x267   :  { %v868_v15 = vpop.xlane.xlu1 %867 }
 0x268   :  { %v1124_v26 = vmul.f32 0.00390625, %v868_v15  ;;  %v14238_v38 = vpop.xlane.xlu0 %1017  ;;  %v1131_v15 = vmul.f32 0.00390625, %v13987_v37  ;;  %v2422_v37 = vrot.slane %v1129_v42, %v12307_v11 }
 0x26a   :  { %v2398_v49 = vrot.slane %v1124_v26, %v12385_v52  ;;  %v1133_v26 = vmul.f32 0.00390625, %v13999_v32  ;;  %v2431_v32 = vrot.slane %v1131_v15, %v12324_v41  ;;  %v2427_v42 = vsel %vm1328_vm0, %v2426_v51, %v2422_v37 }
 0x26b   :  { %v14246_v44 = vpop.xlane.xlu1 %936  ;;  %v2450_v15 = vrot.slane %v1135_v29, %v12324_v41  ;;  %v1137_v51 = vmul.f32 0.00390625, %v14111_v21  ;;  %v1163_v37 = vmul.f32 0.00390625, %v14113_v25  ;;  %v2455_v21 = vrot.slane %v1136_v45, %v12385_v52 }
 0x26c   :  { %v2399_v31 = vsel %vm1342_vm2, %v2398_v49, %v2394_v1  ;;  %v14250_v57 = vpop.f32.mrb[0].mxu0  ;;  %v14252_v60 = vpop.f32.mrb[0].mxu1  ;;  %v1162_v49 = vmul.f32 0.00390625, %v14011_v55  ;;  %v2445_v55 = vrot.slane %v1134_v5, %v12310_v17  ;;  %v2441_v47 = vrot.slane %v1133_v26, %v12307_v11 }
 0x26d   :  { %v14255_v43 = vsel %vm1945_vm9, %v2399_v31, %v2716_v54  ;;  %v14257_v40 = vpop.xlane.xlu0 %927  ;;  %v14259_v3 = vpop.f32.mrb[1].mxu0  ;;  %v2559_v54 = vrot.slane %v1158_v53, %v12310_v17  ;;  %v2555_v31 = vrot.slane %v1157_v35, %v12307_v11  ;;  %v2432_v5 = vsel %vm1335_vm1, %v2431_v32, %v2427_v42 }
 0x26e   :  { %v14261_v61 = vpop.f32.mrb[1].mxu1  ;;  %10273 = vmatmul.mubr.msk.f32.gmra.mrb[4].mxu0 %vm2738_vm10, %v14255_v43  ;;  %10293 = vmatmul.mubr.msk.f32.gmra.mrb[4].mxu1 %vm2738_vm10, %v14255_v43  ;;  %v2578_v36 = vrot.slane %v1162_v49, %v12310_v17  ;;  %v2413_v26 = vsel %vm1335_vm1, %v2412_v14, %v13851_v22  ;;  %v2436_v53 = vrot.slane %v1132_v2, %v12385_v52  ;;  %v1138_v35 = vmul.f32 0.00390625, %v14109_v6 }
 0x26f   :  { %v14267_v33 = vpop.xlane.xlu1 %945  ;;  %v2446_v58 = vsel %vm1328_vm0, %v2445_v55, %v2441_v47  ;;  %v2560_v46 = vsel %vm1328_vm0, %v2559_v54, %v2555_v31  ;;  %v1166_v22 = vmul.f32 0.00390625, %v14117_v24  ;;  %v1165_v32 = vmul.f32 0.00390625, %v14119_v28 }
 0x270   :  { %v2579_v29 = vsel %vm1328_vm0, %v2578_v36, %v2574_v62  ;;  %v2418_v6 = vsel %vm1342_vm2, %v2417_v0, %v2413_v26  ;;  %v2451_v2 = vsel %vm1335_vm1, %v2450_v15, %v2446_v58  ;;  %v1139_v25 = vmul.f32 0.00390625, %v14161_v56 }
 0x271   :  { %v14269_v63 = vpop.xlane.xlu0 %942  ;;  %v2437_v12 = vsel %vm1342_vm2, %v2436_v53, %v2432_v5  ;;  %v2464_v55 = vrot.slane %v1138_v35, %v12310_v17  ;;  %v1160_v47 = vmul.f32 0.00390625, %v14163_v9  ;;  %v1164_v24 = vmul.f32 0.00390625, %v14171_v13 }
 0x272   :  { %v2460_v28 = vrot.slane %v1137_v51, %v12307_v11  ;;  %v2583_v31 = vrot.slane %v1163_v37, %v12324_v41  ;;  %v2564_v36 = vrot.slane %v1159_v20, %v12324_v41  ;;  %v1142_v62 = vmul.f32 0.00390625, %v14165_v23 }
 0x273   :  { %v14275_v4 = vpop.xlane.xlu1 %1020  ;;  %v2597_v56 = vrot.slane %v1166_v22, %v12310_v17  ;;  %v2593_v42 = vrot.slane %v1165_v32, %v12307_v11  ;;  %v1167_v0 = vmul.f32 0.00390625, %v14167_v34  ;;  %v1140_v9 = vmul.f32 0.00390625, %v14192_v18 }
 0x274   :  { %v2718_v13 = vsel %vm1933_vm3, %v2437_v12, %v2418_v6  ;;  %v2456_v45 = vsel %vm1342_vm2, %v2455_v21, %v2451_v2  ;;  %v1141_v5 = vmul.f32 0.00390625, %v14159_v50  ;;  %v2469_v26 = vrot.slane %v1139_v25, %v12324_v41 }
 0x275   :  { %v14283_v10 = vpop.xlane.xlu0 %1011  ;;  %v2569_v23 = vrot.slane %v1160_v47, %v12385_v52  ;;  %v2588_v53 = vrot.slane %v1164_v24, %v12385_v52  ;;  %v1170_v35 = vmul.f32 0.00390625, %v14175_v59  ;;  %v1169_v34 = vmul.f32 0.00390625, %v14179_v48 }
 0x276   :  { %v2465_v18 = vsel %vm1328_vm0, %v2464_v55, %v2460_v28  ;;  %v2584_v51 = vsel %vm1335_vm1, %v2583_v31, %v2579_v29  ;;  %v2483_v37 = vrot.slane %v1142_v62, %v12310_v17  ;;  %v1168_v50 = vmul.f32 0.00390625, %v14213_v27 }
 0x277   :  { %v14292_v1 = vpop.xlane.xlu1 %1029  ;;  %v2565_v20 = vsel %vm1335_vm1, %v2564_v36, %v2560_v46  ;;  %v2598_v22 = vsel %vm1328_vm0, %v2597_v56, %v2593_v42  ;;  %v2602_v32 = vrot.slane %v1167_v0, %v12324_v41  ;;  %v2474_v59 = vrot.slane %v1140_v9, %v12385_v52 }
 0x278   :  { %v2719_v48 = vsel %vm1935_vm4, %v2456_v45, %v2718_v13  ;;  %v2479_v2 = vrot.slane %v1141_v5, %v12307_v11  ;;  %v2470_v29 = vsel %vm1335_vm1, %v2469_v26, %v2465_v18  ;;  %v1143_v21 = vmul.f32 0.00390625, %v14207_v19 }
 0x279   :  { %v14300_v39 = vpop.xlane.xlu0 %1026  ;;  %v2570_v27 = vsel %vm1342_vm2, %v2569_v23, %v2565_v20  ;;  %v2589_v46 = vsel %vm1342_vm2, %v2588_v53, %v2584_v51  ;;  %v2616_v25 = vrot.slane %v1170_v35, %v12310_v17  ;;  %v2612_v12 = vrot.slane %v1169_v34, %v12307_v11 }
 0x27a   :  { %v2484_v47 = vsel %vm1328_vm0, %v2483_v37, %v2479_v2  ;;  %v1145_v24 = vmul.f32 0.00390625, %v14205_v8  ;;  %v2607_v28 = vrot.slane %v1168_v50, %v12385_v52  ;;  %v1144_v31 = vmul.f32 0.00390625, %v14257_v40 }
 0x27b   :  { %v14311_v49 = vpop.xlane.xlu1 %948  ;;  %v2603_v19 = vsel %vm1335_vm1, %v2602_v32, %v2598_v22  ;;  %v2475_v36 = vsel %vm1342_vm2, %v2474_v59, %v2470_v29  ;;  %v1146_v62 = vmul.f32 0.00390625, %v14215_v7  ;;  %v1171_v56 = vmul.f32 0.00390625, %v14226_v30 }
 0x27c   :  { %v2725_v0 = vsel %vm1933_vm3, %v2589_v46, %v2570_v27  ;;  %v2488_v9 = vrot.slane %v1143_v21, %v12324_v41  ;;  %v1174_v13 = vmul.f32 0.00390625, %v14238_v38  ;;  %v1147_v8 = vmul.f32 0.00390625, %v14246_v44 }
 0x27d   :  { %v14321_v14 = vpop.xlane.xlu0 %939  ;;  %v2617_v45 = vsel %vm1328_vm0, %v2616_v25, %v2612_v12  ;;  %v1173_v40 = vmul.f32 0.00390625, %v14222_v16  ;;  %v1150_v5 = vmul.f32 0.00390625, %v14267_v33  ;;  %v1149_v26 = vmul.f32 0.00390625, %v14269_v63 }
 0x27e   :  { %v2720_v30 = vsel %vm1937_vm5, %v2475_v36, %v2719_v48  ;;  %v2498_v23 = vrot.slane %v1145_v24, %v12307_v11  ;;  %v2608_v53 = vsel %vm1342_vm2, %v2607_v28, %v2603_v19  ;;  %v2493_v35 = vrot.slane %v1144_v31, %v12385_v52 }
 0x27f   :  { %v14331_v54 = vpop.xlane.xlu1 %957  ;;  %v2502_v38 = vrot.slane %v1146_v62, %v12310_v17  ;;  %v2621_v44 = vrot.slane %v1171_v56, %v12324_v41  ;;  %v1175_v34 = vmul.f32 0.00390625, %v14275_v4  ;;  %v1172_v16 = vmul.f32 0.00390625, %v14283_v10 }
 0x280   :  { %v2489_v63 = vsel %vm1335_vm1, %v2488_v9, %v2484_v47  ;;  %v2635_v18 = vrot.slane %v1174_v13, %v12310_v17  ;;  %v2507_v51 = vrot.slane %v1147_v8, %v12324_v41  ;;  %v1148_v37 = vmul.f32 0.00390625, %v14321_v14 }
 0x281   :  { %v14341_v15 = vpop.xlane.xlu0 %954  ;;  %v14402_v50 = vsel %vm1935_vm4, %v2608_v53, %v2725_v0  ;;  %v2631_v20 = vrot.slane %v1173_v40, %v12307_v11  ;;  %v2521_v22 = vrot.slane %v1150_v5, %v12310_v17  ;;  %v2517_v4 = vrot.slane %v1149_v26, %v12307_v11 }
 0x282   :  { %v2494_v10 = vsel %vm1342_vm2, %v2493_v35, %v2489_v63  ;;  %v1178_v59 = vmul.f32 0.00390625, %v14292_v1  ;;  %v1177_v48 = vmul.f32 0.00390625, %v14300_v39  ;;  %v1151_v2 = vmul.f32 0.00390625, %v14311_v49 }
 0x283   :  { %v14351_v58 = vpop.xlane.xlu1 %1032  ;;  %v2503_v14 = vsel %vm1328_vm0, %v2502_v38, %v2498_v23  ;;  %v2622_v29 = vsel %vm1335_vm1, %v2621_v44, %v2617_v45  ;;  %v2640_v21 = vrot.slane %v1175_v34, %v12324_v41  ;;  %v2626_v27 = vrot.slane %v1172_v16, %v12385_v52 }
 0x284   :  { %v2636_v25 = vsel %vm1328_vm0, %v2635_v18, %v2631_v20  ;;  %v2508_v12 = vsel %vm1335_vm1, %v2507_v51, %v2503_v14  ;;  %v2512_v47 = vrot.slane %v1148_v37, %v12385_v52  ;;  %v1154_v1 = vmul.f32 0.00390625, %v14331_v54 }
 0x285   :  { %v14361_v6 = vpop.xlane.xlu0 %1023  ;;  %v2721_v39 = vsel %vm1939_vm6, %v2494_v10, %v2720_v30  ;;  %v2522_v49 = vsel %vm1328_vm0, %v2521_v22, %v2517_v4  ;;  %v1153_v24 = vmul.f32 0.00390625, %v14341_v15  ;;  %v2654_v19 = vrot.slane %v1178_v59, %v12310_v17 }
 0x286   :  { %v2650_v36 = vrot.slane %v1177_v48, %v12307_v11  ;;  %v2526_v62 = vrot.slane %v1151_v2, %v12324_v41  ;;  %v1179_v56 = vmul.f32 0.00390625, %v14351_v58  ;;  %v2641_v0 = vsel %vm1335_vm1, %v2640_v21, %v2636_v25 }
 0x287   :  { %v14371_v55 = vpop.xlane.xlu1 %1041  ;;  %v2627_v54 = vsel %vm1342_vm2, %v2626_v27, %v2622_v29  ;;  %v1176_v9 = vmul.f32 0.00390625, %v14361_v6  ;;  %v2513_v15 = vsel %vm1342_vm2, %v2512_v47, %v2508_v12  ;;  %v2540_v45 = vrot.slane %v1154_v1, %v12310_v17 }
 0x288   :  { %v1182_v40 = vmul.f32 0.00390625, %v14371_v55  ;;  %v2536_v26 = vrot.slane %v1153_v24, %v12307_v11  ;;  %v2655_v35 = vsel %vm1328_vm0, %v2654_v19, %v2650_v36  ;;  %v2527_v6 = vsel %vm1335_vm1, %v2526_v62, %v2522_v49 }
 0x289   :  { %v1039_v42 = vpop.xlane.xlu0 %1038  ;;  %v2645_v44 = vrot.slane %v1176_v9, %v12385_v52  ;;  %v9529_v9 = vld [vmem:[%s18279_s1 + $0xb0] sm:$0xff] }
 0x28a   :  { %v1181_v5 = vmul.f32 0.00390625, %v1039_v42  ;;  %v2673_v63 = vrot.slane %v1182_v40, %v12310_v17  ;;  %v2541_v37 = vsel %vm1328_vm0, %v2540_v45, %v2536_v26  ;;  %v9540_v40 = vld [vmem:[%s18279_s1 + $0xc0] sm:$0xff]  ;;  %v9541_v26 = vld [vmem:[%s18279_s1 + $0xc8] sm:$0xff] }
 0x28b   :  { %v961_v7 = vpop.xlane.xlu1 %960  ;;  %v2646_v14 = vsel %vm1342_vm2, %v2645_v44, %v2641_v0  ;;  %v9516_v0 = vld [vmem:[%s18279_s1 + $0x90] sm:$0xff]  ;;  %v18362_v44 = vld [vmem:[#allocation13_spill] sm:$0xff] }
 0x28c   :  { %v1155_v13 = vmul.f32 0.00390625, %v961_v7  ;;  %v2659_v7 = vrot.slane %v1179_v56, %v12324_v41  ;;  %v2669_v18 = vrot.slane %v1181_v5, %v12307_v11  ;;  %v18357_v5 = vld [vmem:[#allocation8_spill] sm:$0xff] }
 0x28d   :  { %v952_v33 = vpop.xlane.xlu0 %951 }
 0x28e   :  { %v1152_v28 = vmul.f32 0.00390625, %v952_v33  ;;  %v2545_v34 = vrot.slane %v1155_v13, %v12324_v41  ;;  %v2722_v33 = vsel %vm1941_vm7, %v2513_v15, %v2721_v39  ;;  %v2660_v10 = vsel %vm1335_vm1, %v2659_v7, %v2655_v35  ;;  %v9530_v13 = vld [vmem:[%s18279_s1 + $0xb8] sm:$0xff]  ;;  %v18360_v35 = vld [vmem:[#allocation11_spill] sm:$0xff] }
 0x28f   :  { %v1045_v32 = vpop.xlane.xlu1 %1044  ;;  %v2674_v25 = vsel %vm1328_vm0, %v2673_v63, %v2669_v18  ;;  %v10934_v45 = vpack.c.bf16 %v9530_v13, %v9529_v9  ;;  %v9566_v18 = vld [vmem:[%s18280_s2 + $0x20] sm:$0xff] }
 0x290   :  { %v2531_v30 = vrot.slane %v1152_v28, %v12385_v52  ;;  %v1183_v58 = vmul.f32 0.00390625, %v1045_v32  ;;  %v2546_v29 = vsel %vm1335_vm1, %v2545_v34, %v2541_v37  ;;  %v9542_v34 = vld [vmem:[%s18279_s1 + $0xd0] sm:$0xff] }
 0x291   :  { %v1036_v46 = vpop.xlane.xlu0 %1035 }
 0x292   :  { %v1180_v23 = vmul.f32 0.00390625, %v1036_v46  ;;  %v2532_v20 = vsel %vm1342_vm2, %v2531_v30, %v2527_v6  ;;  %v2678_v22 = vrot.slane %v1183_v58, %v12324_v41  ;;  %v9553_v30 = vld [vmem:[%s18279_s1 + $0xe0] sm:$0xff]  ;;  %v9554_v58 = vld [vmem:[%s18279_s1 + $0xe8] sm:$0xff]  ;;  %v10938_v6 = vpack.c.bf16 %v9541_v26, %v9540_v40 }
 0x293   :  { %v1054_v31 = vpop.xlane.xlu1 %1053  ;;  %v2723_v12 = vsel %vm1943_vm8, %v2532_v20, %v2722_v33  ;;  %v10946_v7 = vpack.c.bf16 %v9554_v58, %v9553_v30  ;;  %v9568_v20 = vld [vmem:[%s18280_s2 + $0x30] sm:$0xff] }
 0x294   :  { %v1186_v55 = vmul.f32 0.00390625, %v1054_v31  ;;  %v2664_v4 = vrot.slane %v1180_v23, %v12385_v52  ;;  %v2679_v39 = vsel %vm1335_vm1, %v2678_v22, %v2674_v25  ;;  %v18358_v23 = vld [vmem:[#allocation9_spill] sm:$0xff] }
 0x295   :  { %v1051_v8 = vpop.xlane.xlu0 %1050  ;;  %v9569_v22 = vld [vmem:[%s18280_s2 + $0x38] sm:$0xff] }
 0x296   :  { %v1185_v42 = vmul.f32 0.00390625, %v1051_v8  ;;  %v2692_v21 = vrot.slane %v1186_v55, %v12310_v17  ;;  %v2665_v49 = vsel %vm1342_vm2, %v2664_v4, %v2660_v10  ;;  %v18356_v8 = vld [vmem:[#allocation7_spill] sm:$0xff]  ;;  %v9543_v55 = vld [vmem:[%s18279_s1 + $0xd8] sm:$0xff]  ;;  %v10966_v4 = vpack.c.bf16 %v9569_v22, %v9568_v20 }
 0x297   :  { %v1048_v53 = vpop.xlane.xlu1 %1047  ;;  %v10942_v33 = vpack.c.bf16 %v9543_v55, %v9542_v34  ;;  %v9699_v10 = vld [vmem:[%s18280_s2 + $0x48] sm:$0xff] }
 0x298   :  { %v1184_v38 = vmul.f32 0.00390625, %v1048_v53  ;;  %v2688_v27 = vrot.slane %v1185_v42, %v12307_v11  ;;  %v2727_v11 = vsel %vm1937_vm5, %v2627_v54, %v14402_v50  ;;  %v9517_v54 = vld [vmem:[%s18279_s1 + $0x98] sm:$0xff]  ;;  %v18359_v53 = vld [vmem:[#allocation10_spill] sm:$0xff]  ;;  %v9555_v42 = vld [vmem:[%s18279_s1 + $0xf0] sm:$0xff] }
 0x299   :  { %v964_v16 = vpop.xlane.xlu0 %963  ;;  %v2728_v19 = vsel %vm1939_vm6, %v2646_v14, %v2727_v11  ;;  %v10926_v15 = vpack.c.bf16 %v9517_v54, %v9516_v0 }
 0x29a   :  { %v1156_v51 = vmul.f32 0.00390625, %v964_v16  ;;  %v2683_v59 = vrot.slane %v1184_v38, %v12385_v52  ;;  %v2693_v36 = vsel %vm1328_vm0, %v2692_v21, %v2688_v27  ;;  %v2729_v62 = vsel %vm1941_vm7, %v2665_v49, %v2728_v19  ;;  %v18361_v38 = vld [vmem:[#allocation12_spill] sm:$0xff]  ;;  %v9556_v16 = vld [vmem:[%s18279_s1 + $0xf8] sm:$0xff]  ;;  %s14920_s1 = sld [smem:[#allocation3 + $0x6]] }
 0x29b   :  { %v1060_v32 = vpop.xlane.xlu1 %1059  ;;  %v10950_v63 = vpack.c.bf16 %v9556_v16, %v9555_v42  ;;  %v14734_v42 = vstv %s9492_s9 }
 0x29c   :  { %v2550_v48 = vrot.slane %v1156_v51, %v12385_v52  ;;  %v1188_v2 = vmul.f32 0.00390625, %v1060_v32  ;;  %v2684_v17 = vsel %vm1342_vm2, %v2683_v59, %v2679_v39  ;;  %v9567_v51 = vld [vmem:[%s18280_s2 + $0x28] sm:$0xff]  ;;  %v9698_v32 = vld [vmem:[%s18280_s2 + $0x40] sm:$0xff] }
 0x29d   :  { %v1057_v46 = vpop.xlane.xlu0 %1056  ;;  %v2730_v50 = vsel %vm1943_vm8, %v2684_v17, %v2729_v62  ;;  %v10962_v37 = vpack.c.bf16 %v9567_v51, %v9566_v18  ;;  %v10970_v59 = vpack.c.bf16 %v9699_v10, %v9698_v32  ;;  %v4869_v17 = vld [vmem:[%s18280_s2 + $0x10] sm:$0xff]  ;;  %v9701_v62 = vld [vmem:[%s18280_s2 + $0x58] sm:$0xff] }
 0x29e   :  { %v2551_v47 = vsel %vm1342_vm2, %v2550_v48, %v2546_v29  ;;  %v1187_v1 = vmul.f32 0.00390625, %v1057_v46  ;;  %v2702_v28 = vrot.slane %v1188_v2, %v12385_v52  ;;  %v14623_v48 = vstv %s2736_s17 }
 0x29f   :  { %v14459_v24 = vsel %vm1945_vm9, %v2551_v47, %v2723_v12  ;;  %v14635_v2 = vadd.f32 %v14259_v3, %v14623_v48 }
 0x2a0   :  { %v2697_v31 = vrot.slane %v1187_v1, %v12324_v41  ;;  %10275 = vmatprep.mubr.msk.f32.mxu0 %vm2738_vm10, %v14459_v24  ;;  %10295 = vmatprep.mubr.msk.f32.mxu1 %vm2738_vm10, %v14459_v24  ;;  %v18366_v1 = vld [vmem:[#allocation6_spill] sm:$0xff] }
 0x2a1   :  { %18363 = vst [vmem:[#allocation7_spill] sm:$0xff] %v14635_v2  ;;  %vm4546_vm11 = vcmp.lt.s32.totalorder %v18366_v1, 1  ;;  %vm6089_vm12 = vcmp.lt.s32.totalorder %v18366_v1, 7 }
 0x2a2   :  { %v2698_v52 = vsel %vm1335_vm1, %v2697_v31, %v2693_v36  ;;  %v4870_v31 = vld [vmem:[%s18280_s2 + $0x18] sm:$0xff]  ;;  %v9700_v36 = vld [vmem:[%s18280_s2 + $0x50] sm:$0xff] }
 0x2a3   :  { %v2703_v56 = vsel %vm1342_vm2, %v2702_v28, %v2698_v52  ;;  %v4868_v28 = vld [vmem:[%s18280_s2 + $0x8] sm:$0xff]  ;;  %v10958_v19 = vpack.c.bf16 %v4870_v31, %v4869_v17  ;;  %v10974_v52 = vpack.c.bf16 %v9701_v62, %v9700_v36  ;;  %v3647_v17 = vadd.s32 16, %v18366_v1 }
 0x2a4   :  { %v14477_v41 = vsel %vm1945_vm9, %v2703_v56, %v2730_v50 }
 0x2a5   :  { %10276 = vmatmul.mubr.msk.f32.gmra.mrb[6].mxu0 %vm2738_vm10, %v14477_v41  ;;  %10296 = vmatmul.mubr.msk.f32.gmra.mrb[6].mxu1 %vm2738_vm10, %v14477_v41 }
 0x2a6   :  { %10306 = vmatprep.mubr.msk.f32.mxu0 %vm2738_vm10, %v18356_v8  ;;  %10326 = vmatprep.mubr.msk.f32.mxu1 %vm2738_vm10, %v18356_v8 }
 0x2a9   :  { %10307 = vmatmul.mubr.msk.f32.vlgmr.msra.gmra.mrb[8].mxu0 %vm2738_vm10, %v18357_v5  ;;  %10327 = vmatmul.mubr.msk.f32.vlgmr.msra.gmra.mrb[8].mxu1 %vm2738_vm10, %v18357_v5 }
 0x2aa   :  { %10309 = vmatprep.mubr.msk.f32.mxu0 %vm2738_vm10, %v18358_v23  ;;  %10329 = vmatprep.mubr.msk.f32.mxu1 %vm2738_vm10, %v18358_v23 }
 0x2ab   :  { %10925 = vmatpush3.bf16.msra.mxu0 %v18359_v53  ;;  %10933 = vmatpush3.bf16.msra.mxu1 %v18360_v35 }
 0x2ac   :  { %10927 = vmatprep.subr.bf16.mxu0 %v10926_v15  ;;  %10935 = vmatprep.subr.bf16.mxu1 %v10934_v45 }
 0x2ad   :  { %10310 = vmatmul.mubr.msk.f32.gmra.mrb[10].mxu0 %vm2738_vm10, %v18361_v38  ;;  %10330 = vmatmul.mubr.msk.f32.gmra.mrb[10].mxu1 %vm2738_vm10, %v18361_v38 }
 0x2ae   :  { %10312 = vmatprep.mubr.msk.f32.mxu0 %vm2738_vm10, %v18362_v44  ;;  %10332 = vmatprep.mubr.msk.f32.mxu1 %vm2738_vm10, %v18362_v44 }
 0x2af   :  { %10929 = vmatpush3.bf16.msra.mxu0 %v10926_v15  ;;  %10937 = vmatpush3.bf16.msra.mxu1 %v10934_v45 }
 0x2b0   :  { %10939 = vmatprep.subr.bf16.mxu0 %v10938_v6  ;;  %10947 = vmatprep.subr.bf16.mxu1 %v10946_v7 }
 0x2b1   :  { %10313 = vmatmul.mubr.msk.f32.gmra.mrb[12].mxu0 %vm2738_vm10, %v14255_v43  ;;  %10333 = vmatmul.mubr.msk.f32.gmra.mrb[12].mxu1 %vm2738_vm10, %v14255_v43 }
 0x2b2   :  { %10315 = vmatprep.mubr.msk.f32.mxu0 %vm2738_vm10, %v14459_v24  ;;  %10335 = vmatprep.mubr.msk.f32.mxu1 %vm2738_vm10, %v14459_v24 }
 0x2b5   :  { %10316 = vmatmul.mubr.msk.f32.gmra.mrb[14].mxu0 %vm2738_vm10, %v14477_v41  ;;  %10336 = vmatmul.mubr.msk.f32.gmra.mrb[14].mxu1 %vm2738_vm10, %v14477_v41 }
 0x2b6   :  { %10346 = vmatprep.mubr.msk.f32.mxu0 %vm2738_vm10, %v18356_v8  ;;  %10366 = vmatprep.mubr.msk.f32.mxu1 %vm2738_vm10, %v18356_v8 }
 0x2b9   :  { %10347 = vmatmul.mubr.msk.f32.vlgmr.msra.gmra.mrb[16].mxu0 %vm2738_vm10, %v18357_v5  ;;  %10367 = vmatmul.mubr.msk.f32.vlgmr.msra.gmra.mrb[16].mxu1 %vm2738_vm10, %v18357_v5 }
 0x2ba   :  { %10349 = vmatprep.mubr.msk.f32.mxu0 %vm2738_vm10, %v18358_v23  ;;  %10369 = vmatprep.mubr.msk.f32.mxu1 %vm2738_vm10, %v18358_v23 }
 0x2bb   :  { %10941 = vmatpush3.bf16.msra.mxu0 %v10938_v6  ;;  %10949 = vmatpush3.bf16.msra.mxu1 %v10946_v7 }
 0x2bc   :  { %10943 = vmatprep.subr.bf16.mxu0 %v10942_v33  ;;  %10951 = vmatprep.subr.bf16.mxu1 %v10950_v63 }
 0x2bd   :  { %10350 = vmatmul.mubr.msk.f32.gmra.mrb[18].mxu0 %vm2738_vm10, %v18361_v38  ;;  %10370 = vmatmul.mubr.msk.f32.gmra.mrb[18].mxu1 %vm2738_vm10, %v18361_v38 }
 0x2be   :  { %10352 = vmatprep.mubr.msk.f32.mxu0 %vm2738_vm10, %v18362_v44  ;;  %10372 = vmatprep.mubr.msk.f32.mxu1 %vm2738_vm10, %v18362_v44 }
 0x2bf   :  { %10945 = vmatpush3.bf16.msra.mxu0 %v10942_v33  ;;  %10953 = vmatpush3.bf16.msra.mxu1 %v10950_v63 }
 0x2c0   :  { %10963 = vmatprep.subr.bf16.mxu0 %v10962_v37 }
 0x2c1   :  { %10353 = vmatmul.mubr.msk.f32.gmra.mrb[20].mxu0 %vm2738_vm10, %v14255_v43  ;;  %10373 = vmatmul.mubr.msk.f32.gmra.mrb[20].mxu1 %vm2738_vm10, %v14255_v43 }
 0x2c2   :  { %10355 = vmatprep.mubr.msk.f32.mxu0 %vm2738_vm10, %v14459_v24  ;;  %10375 = vmatprep.mubr.msk.f32.mxu1 %vm2738_vm10, %v14459_v24 }
 0x2c5   :  { %10356 = vmatmul.mubr.msk.f32.gmra.mrb[22].mxu0 %vm2738_vm10, %v14477_v41  ;;  %10376 = vmatmul.mubr.msk.f32.gmra.mrb[22].mxu1 %vm2738_vm10, %v14477_v41 }
 0x2c6   :  { %10386 = vmatprep.mubr.msk.f32.mxu0 %vm2738_vm10, %v18356_v8  ;;  %10406 = vmatprep.mubr.msk.f32.mxu1 %vm2738_vm10, %v18356_v8 }
 0x2c9   :  { %10387 = vmatmul.mubr.msk.f32.vlgmr.msra.gmra.mrb[24].mxu0 %vm2738_vm10, %v18357_v5  ;;  %10407 = vmatmul.mubr.msk.f32.vlgmr.msra.gmra.mrb[24].mxu1 %vm2738_vm10, %v18357_v5 }
 0x2ca   :  { %10389 = vmatprep.mubr.msk.f32.mxu0 %vm2738_vm10, %v18358_v23  ;;  %10409 = vmatprep.mubr.msk.f32.mxu1 %vm2738_vm10, %v18358_v23 }
 0x2cb   :  { %10965 = vmatpush3.bf16.msra.mxu0 %v10962_v37 }
 0x2cc   :  { %10967 = vmatprep.subr.bf16.mxu0 %v10966_v4 }
 0x2cd   :  { %10390 = vmatmul.mubr.msk.f32.gmra.mrb[26].mxu0 %vm2738_vm10, %v18361_v38  ;;  %10410 = vmatmul.mubr.msk.f32.gmra.mrb[26].mxu1 %vm2738_vm10, %v18361_v38 }
 0x2ce   :  { %10392 = vmatprep.mubr.msk.f32.mxu0 %vm2738_vm10, %v18362_v44  ;;  %10412 = vmatprep.mubr.msk.f32.mxu1 %vm2738_vm10, %v18362_v44 }
 0x2cf   :  { %10969 = vmatpush3.bf16.msra.mxu0 %v10966_v4 }
 0x2d0   :  { %10971 = vmatprep.subr.bf16.mxu0 %v10970_v59 }
 0x2d1   :  { %10393 = vmatmul.mubr.msk.f32.gmra.mrb[28].mxu0 %vm2738_vm10, %v14255_v43  ;;  %10413 = vmatmul.mubr.msk.f32.gmra.mrb[28].mxu1 %vm2738_vm10, %v14255_v43  ;;  %v14645_v43 = vadd.f32 %v14250_v57, %v14623_v48 }
 0x2d2   :  { %10395 = vmatprep.mubr.msk.f32.mxu0 %vm2738_vm10, %v14459_v24  ;;  %10415 = vmatprep.mubr.msk.f32.mxu1 %vm2738_vm10, %v14459_v24  ;;  %v4867_v24 = vld [vmem:[%s18280_s2] sm:$0xff]  ;;  %s9479_s2 = sld [smem:[#allocation3 + $0x1]] }
 0x2d3   :  { %18364 = vst [vmem:[#allocation8_spill] sm:$0xff] %v14645_v43  ;;  %v10954_v11 = vpack.c.bf16 %v4868_v28, %v4867_v24 }
 0x2d5   :  { %10396 = vmatmul.mubr.msk.f32.gmra.mrb[30].mxu0 %vm2738_vm10, %v14477_v41  ;;  %10416 = vmatmul.mubr.msk.f32.gmra.mrb[30].mxu1 %vm2738_vm10, %v14477_v41 }
 0x2d6   :  { %10530 = vmatprep.mubr.msk.f32.mxu0 %vm2738_vm10, %v14635_v2  ;;  %10955 = vmatprep.subr.bf16.mxu1 %v10954_v11 }
 0x2d7   :  { %10957 = vmatpush3.bf16.msra.mxu1 %v10954_v11 }
 0x2d8   :  { %10959 = vmatprep.subr.bf16.mxu1 %v10958_v19  ;;  %v2866_v58 = vstv %s9479_s2 }
 0x2d9   :  { %10531 = vmatmul.mubr.msk.f32.vlgmr.msra.gmra.mrb[32].mxu0 %vm2738_vm10, %v14645_v43  ;;  %v14737_v16 = vadd.f32 %v14261_v61, %v2866_v58 }
 0x2da   :  { %10973 = vmatpush3.bf16.msra.mxu0 %v10970_v59  ;;  %v14765_v59 = vadd.f32 %v14252_v60, %v2866_v58 }
 0x2db   :  { %10961 = vmatpush3.bf16.msra.mxu1 %v10958_v19  ;;  %10975 = vmatprep.subr.bf16.mxu0 %v10974_v52  ;;  %18374 = vst [vmem:[#allocation16_spill] sm:$0xff] %v14737_v16  ;;  %v14794_v19 = vstv %s9505_s10 }
 0x2dc   :  { %18376 = vst [vmem:[#allocation18_spill] sm:$0xff] %v14765_v59 }
 0x2de   :  { %10977 = vmatpush3.bf16.msra.mxu0 %v10974_v52 }
 0x30c   :  { %v10271_v14 = vpop.f32.mrb[2].mxu0  ;;  %v14649_v3 = vpop.f32.mrb[2].mxu1 }
 0x30d   :  { %v2837_v29 = vadd.f32 %v10271_v14, %v14623_v48  ;;  %v2831_v21 = vpop.f32.mrb[3].mxu0  ;;  %v14652_v27 = vpop.f32.mrb[3].mxu1  ;;  %v14789_v11 = vadd.f32 %v14649_v3, %v2866_v58 }
 0x30e   :  { %v14655_v46 = vadd.f32 %v2831_v21, %v14623_v48 }
 0x30f   :  { %v4485_v25 = vrot.slane %v2837_v29, 7  ;;  %v6028_v12 = vrot.slane %v2837_v29, 1  ;;  %18379 = vst [vmem:[#allocation21_spill] sm:$0xff] %v14789_v11 }
 0x310   :  { %18365 = vst [vmem:[#allocation9_spill] sm:$0xff] %v14655_v46  ;;  %v18303_v57 = vrot.slane %v14655_v46, 7  ;;  %v18299_v47 = vrot.slane %v14655_v46, 1  ;;  %10533 = vmatprep.mubr.msk.f32.mxu0 %vm2738_vm10, %v14655_v46 }
 0x311   :  { %10534 = vmatmul.mubr.msk.f32.gmra.mrb[34].mxu0 %vm2738_vm10, %v2837_v29 }
 0x312   :  { %v14667_v39 = vsel %vm4546_vm11, %v18303_v57, %v4485_v25  ;;  %v14674_v49 = vsel %vm6089_vm12, %v18299_v47, %v6028_v12 }
 0x313   :  { %18367 = vst [vmem:[#allocation10_spill] sm:$0xff] %v14667_v39  ;;  %18368 = vst [vmem:[#allocation11_spill] sm:$0xff] %v14674_v49  ;;  %v18409_v39 = vrot.slane %v14645_v43, 7 }
 0x341   :  { %v10274_v50 = vpop.f32.mrb[4].mxu0  ;;  %v14694_v56 = vpop.f32.mrb[4].mxu1 }
 0x342   :  { %v14697_v41 = vadd.f32 %v10274_v50, %v14623_v48  ;;  %v2841_v0 = vpop.f32.mrb[5].mxu0  ;;  %v2953_v54 = vpop.f32.mrb[5].mxu1 }
 0x343   :  { %v2842_v9 = vadd.f32 %v2841_v0, %v14623_v48  ;;  %v14792_v31 = vadd.f32 %v2953_v54, %v2866_v58 }
 0x344   :  { %v4487_v13 = vrot.slane %v14697_v41, 7  ;;  %v18301_v8 = vrot.slane %v14697_v41, 1 }
 0x345   :  { %v4486_v15 = vrot.slane %v2842_v9, 7  ;;  %v6029_v45 = vrot.slane %v2842_v9, 1  ;;  %10536 = vmatprep.mubr.msk.f32.mxu0 %vm2738_vm10, %v2842_v9  ;;  %18380 = vst [vmem:[#allocation22_spill] sm:$0xff] %v14792_v31 }
 0x346   :  { %10537 = vmatmul.mubr.msk.f32.gmra.mrb[36].mxu0 %vm2738_vm10, %v14697_v41 }
 0x347   :  { %v14707_v40 = vsel %vm4546_vm11, %v4485_v25, %v4486_v15  ;;  %v14711_v5 = vsel %vm4546_vm11, %v4486_v15, %v4487_v13  ;;  %v14715_v26 = vsel %vm6089_vm12, %v6028_v12, %v6029_v45  ;;  %v14721_v30 = vsel %vm6089_vm12, %v6029_v45, %v18301_v8 }
 0x348   :  { %18369 = vst [vmem:[#allocation12_spill] sm:$0xff] %v14707_v40  ;;  %18370 = vst [vmem:[#allocation13_spill] sm:$0xff] %v14711_v5  ;;  %v3653_v8 = vadd.s32 64, %v18366_v1  ;;  %v18408_v5 = vrot.slane %v14655_v46, 7 }
 0x349   :  { %18371 = vst [vmem:[#allocation6_spill] sm:$0xff] %v14715_v26  ;;  %18372 = vst [vmem:[#allocation14_spill] sm:$0xff] %v14721_v30 }
 0x378   :  { %v10277_v23 = vpop.f32.mrb[6].mxu0  ;;  %v10297_v53 = vpop.f32.mrb[6].mxu1 }
 0x379   :  { %v14724_v35 = vadd.f32 %v10277_v23, %v14623_v48  ;;  %v14726_v6 = vadd.f32 %v10297_v53, %v2866_v58  ;;  %v2851_v7 = vpop.f32.mrb[7].mxu0  ;;  %v2963_v38 = vpop.f32.mrb[7].mxu1  ;;  %v14821_v53 = vadd.f32 %v14694_v56, %v2866_v58 }
 0x37a   :  { %v14729_v44 = vadd.f32 %v2851_v7, %v14623_v48  ;;  %v14731_v34 = vadd.f32 %v2963_v38, %v2866_v58  ;;  %v14768_v48 = vadd.f32 %v14652_v27, %v2866_v58  ;;  %v3727_v7 = vand.u32 15, %v3647_v17 }
 0x37b   :  { %18373 = vst [vmem:[#allocation15_spill] sm:$0xff] %v14724_v35  ;;  %v18302_v55 = vrot.slane %v14724_v35, 7  ;;  %v4497_v51 = vrot.slane %v14726_v6, 7  ;;  %18383 = vst [vmem:[#allocation25_spill] sm:$0xff] %v14821_v53  ;;  %v14824_v38 = vadd.s32 80, %v18366_v1 }
 0x37c   :  { %v4488_v33 = vrot.slane %v14729_v44, 7  ;;  %v10308_v63 = vpop.f32.mrb[8].mxu0  ;;  %v10328_v18 = vpop.f32.mrb[8].mxu1  ;;  %10539 = vmatprep.mubr.msk.f32.mxu0 %vm2738_vm10, %v14729_v44  ;;  %v18300_v37 = vrot.slane %v14731_v34, 7  ;;  %18377 = vst [vmem:[#allocation19_spill] sm:$0xff] %v14768_v48  ;;  %vm14887_vm13 = vcmp.gt.s32.totalorder %v3727_v7, 0 }
 0x37d   :  { %v3045_v20 = vpop.f32.mrb[9].mxu0  ;;  %v3157_v22 = vpop.f32.mrb[9].mxu1  ;;  %10540 = vmatmul.mubr.msk.f32.gmra.mrb[38].mxu0 %vm2738_vm10, %v14724_v35  ;;  %v14747_v61 = vadd.f32 %v10308_v63, %v14734_v42  ;;  %v3783_v57 = vand.u32 15, %v14824_v38  ;;  %v4492_v49 = vrot.slane %v14768_v48, 7 }
 0x37e   :  { %v14750_v4 = vadd.f32 %v3045_v20, %v14734_v42  ;;  %10542 = vmatprep.mubr.msk.f32.mxu0 %vm2738_vm10, %v14737_v16  ;;  %v14756_v32 = vsel %vm4546_vm11, %v4487_v13, %v4488_v33  ;;  %v14762_v10 = vsel %vm4546_vm11, %v4488_v33, %v18302_v55  ;;  %v14786_v27 = vsel %vm4546_vm11, %v18300_v37, %v4497_v51 }
 0x37f   :  { %18375 = vst [vmem:[#allocation17_spill] sm:$0xff] %v14762_v10  ;;  %v4499_v28 = vrot.slane %v14747_v61, 7  ;;  %18378 = vst [vmem:[#allocation20_spill] sm:$0xff] %v14786_v27  ;;  %v14827_v33 = vadd.f32 %v10328_v18, %v14794_v19  ;;  %v3651_v37 = vadd.s32 48, %v18366_v1  ;;  %vm14968_vm14 = vcmp.gt.s32.totalorder %v3783_v57, 0 }
 0x380   :  { %v10311_v14 = vpop.f32.mrb[10].mxu0  ;;  %v10331_v29 = vpop.f32.mrb[10].mxu1  ;;  %v4498_v21 = vrot.slane %v14750_v4, 7 }
 0x381   :  { %v14772_v25 = vadd.f32 %v10311_v14, %v14734_v42  ;;  %v3055_v12 = vpop.f32.mrb[11].mxu0  ;;  %v3167_v24 = vpop.f32.mrb[11].mxu1  ;;  %10543 = vmatmul.mubr.msk.f32.gmra.mrb[40].mxu0 %vm2738_vm10, %v14765_v59  ;;  %v14833_v14 = vadd.s32 32, %v18366_v1  ;;  %v14878_v23 = vadd.f32 %v10331_v29, %v14794_v19 }
 0x382   :  { %v14778_v60 = vadd.f32 %v3055_v12, %v14734_v42  ;;  %10545 = vmatprep.mubr.msk.f32.mxu0 %vm2738_vm10, %v14768_v48  ;;  %v14807_v3 = vsel %vm4546_vm11, %v4497_v51, %v4498_v21  ;;  %v14817_v45 = vsel %vm4546_vm11, %v4498_v21, %v4499_v28  ;;  %v18399_v48 = vrot.slane %v14737_v16, 7 }
 0x383   :  { %v4501_v52 = vrot.slane %v14772_v25, 7  ;;  %18381 = vst [vmem:[#allocation23_spill] sm:$0xff] %v14807_v3  ;;  %18382 = vst [vmem:[#allocation24_spill] sm:$0xff] %v14817_v45 }
 0x384   :  { %v10314_v36 = vpop.f32.mrb[12].mxu0  ;;  %v14796_v62 = vpop.f32.mrb[12].mxu1  ;;  %v4500_v50 = vrot.slane %v14778_v60, 7 }
 0x385   :  { %v14801_v0 = vadd.f32 %v10314_v36, %v14734_v42  ;;  %v3065_v9 = vpop.f32.mrb[13].mxu0  ;;  %v3177_v13 = vpop.f32.mrb[13].mxu1  ;;  %10546 = vmatmul.mubr.msk.f32.gmra.mrb[42].mxu0 %vm2738_vm10, %v14789_v11  ;;  %v14881_v36 = vadd.f32 %v3167_v24, %v14794_v19  ;;  %v14944_v3 = vadd.f32 %v14796_v62, %v14794_v19 }
 0x386   :  { %v14811_v15 = vadd.f32 %v3065_v9, %v14734_v42  ;;  %10548 = vmatprep.mubr.msk.f32.mxu0 %vm2738_vm10, %v14792_v31  ;;  %v14843_v18 = vsel %vm4546_vm11, %v4499_v28, %v4500_v50  ;;  %v14847_v17 = vsel %vm4546_vm11, %v4500_v50, %v4501_v52  ;;  %v14851_v9 = vadd.f32 %v3157_v22, %v14794_v19 }
 0x387   :  { %v4503_v21 = vrot.slane %v14801_v0, 7  ;;  %18384 = vst [vmem:[#allocation26_spill] sm:$0xff] %v14843_v18  ;;  %18385 = vst [vmem:[#allocation27_spill] sm:$0xff] %v14847_v17  ;;  %v4507_v28 = vrot.slane %v14827_v33, 7  ;;  %v14897_v24 = vadd.f32 %v3177_v13, %v14794_v19  ;;  %v14913_v13 = vadd.s32 112, %v18366_v1 }
 0x388   :  { %v4502_v63 = vrot.slane %v14811_v15, 7  ;;  %v10317_v51 = vpop.f32.mrb[14].mxu0  ;;  %v10337_v20 = vpop.f32.mrb[14].mxu1  ;;  %v4506_v29 = vrot.slane %v14851_v9, 7  ;;  %v4508_v45 = vrot.slane %v14881_v36, 7  ;;  %18401 = vst [vmem:[#allocation37_spill] sm:$0xff] %v14944_v3 }
 0x389   :  { %v14837_v56 = vadd.f32 %v10317_v51, %v14734_v42  ;;  %v3075_v58 = vpop.f32.mrb[15].mxu0  ;;  %v3187_v12 = vpop.f32.mrb[15].mxu1  ;;  %10549 = vmatmul.mubr.msk.f32.gmra.mrb[44].mxu0 %vm2738_vm10, %v14821_v53  ;;  %18391 = vst [vmem:[#allocation31_spill] sm:$0xff] %v14897_v24  ;;  %18394 = vst [vmem:[#allocation34_spill] sm:$0xff] %v14913_v13  ;;  %v4511_v46 = vrot.slane %v14944_v3, 7  ;;  %v18432_v53 = vrot.slane %v14737_v16, 7 }
 0x38a   :  { %v14854_v51 = vadd.f32 %v3075_v58, %v14734_v42  ;;  %10551 = vmatprep.mubr.msk.f32.mxu0 %vm2738_vm10, %v14731_v34  ;;  %v14860_v47 = vsel %vm4546_vm11, %v4501_v52, %v4502_v63  ;;  %v3741_v58 = vand.u32 15, %v14833_v14  ;;  %v14874_v52 = vadd.s32 96, %v18366_v1 }
 0x38b   :  { %18386 = vst [vmem:[#allocation28_spill] sm:$0xff] %v14860_v47  ;;  %v4505_v50 = vrot.slane %v14837_v56, 7  ;;  %v14893_v14 = vsel %vm4546_vm11, %v4502_v63, %v4503_v21  ;;  %v3755_v63 = vand.u32 15, %v3651_v37  ;;  %v14916_v47 = vstv %s14830_s11 }
 0x38c   :  { %v4504_v22 = vrot.slane %v14854_v51, 7  ;;  %v14867_v55 = vpop.f32.mrb[16].mxu0  ;;  %v14869_v42 = vpop.f32.mrb[16].mxu1  ;;  %18387 = vst [vmem:[#allocation29_spill] sm:$0xff] %v14874_v52  ;;  %18390 = vst [vmem:[#allocation30_spill] sm:$0xff] %v14893_v14  ;;  %v3769_v14 = vand.u32 15, %v3653_v8  ;;  %v14965_v62 = vsel %vm4546_vm11, %v4506_v29, %v4507_v28 }
 0x38d   :  { %v3269_v54 = vpop.f32.mrb[17].mxu0  ;;  %v14883_v30 = vpop.f32.mrb[17].mxu1  ;;  %10552 = vmatmul.mubr.msk.f32.gmra.mrb[46].mxu0 %vm2738_vm10, %v14726_v6  ;;  %v18398_v8 = vrot.slane %v14765_v59, 7  ;;  %18403 = vst [vmem:[#allocation39_spill] sm:$0xff] %v14965_v62  ;;  %vm14986_vm15 = vcmp.gt.s32.totalorder %v3741_v58, 0  ;;  %vm15005_vm0 = vcmp.gt.s32.totalorder %v3755_v63, 0  ;;  %v15025_v13 = vadd.f32 %v14867_v55, %v14916_v47 }
 0x38e   :  { %10554 = vmatprep.mubr.msk.f32.mxu0 %vm2738_vm10, %v14750_v4  ;;  %v14903_v26 = vsel %vm4546_vm11, %v4503_v21, %v4504_v22  ;;  %v14907_v7 = vsel %vm4546_vm11, %v4504_v22, %v4505_v50  ;;  %v18395_v21 = vrot.slane %v14645_v43, 7  ;;  %v18396_v22 = vrot.slane %v14635_v2, 7 }
 0x38f   :  { %18392 = vst [vmem:[#allocation32_spill] sm:$0xff] %v14903_v26  ;;  %18393 = vst [vmem:[#allocation33_spill] sm:$0xff] %v14907_v7  ;;  %v14938_v7 = vsel %vm4546_vm11, %v18399_v48, %v18398_v8  ;;  %v4509_v26 = vrot.slane %v14878_v23, 7  ;;  %v4510_v48 = vrot.slane %v14897_v24, 7  ;;  %v14959_v8 = vadd.f32 %v3187_v12, %v14794_v19 }
 0x390   :  { %v10351_v17 = vpop.f32.mrb[18].mxu0  ;;  %v14918_v18 = vpop.f32.mrb[18].mxu1  ;;  %v14930_v37 = vsel %vm4546_vm11, %v18396_v22, %v18395_v21  ;;  %18400 = vst [vmem:[#allocation36_spill] sm:$0xff] %v14938_v7  ;;  %v14952_v21 = vsel %vm4546_vm11, %v4505_v50, %v4506_v29  ;;  %v14956_v22 = vadd.f32 %v10337_v20, %v14794_v19  ;;  %v4493_v7 = vrot.slane %v14789_v11, 7  ;;  %18421 = vst [vmem:[#allocation46_spill] sm:$0xff] %v15025_v13 }
 0x391   :  { %18397 = vst [vmem:[#allocation35_spill] sm:$0xff] %v14930_v37  ;;  %v3279_v27 = vpop.f32.mrb[19].mxu0  ;;  %v14946_v10 = vpop.f32.mrb[19].mxu1  ;;  %10555 = vmatmul.mubr.msk.f32.gmra.mrb[48].mxu0 %vm2738_vm10, %v14747_v61  ;;  %18402 = vst [vmem:[#allocation38_spill] sm:$0xff] %v14952_v21  ;;  %v18404_v50 = vmov 0  ;;  %v14974_v20 = vadd.s32 128, %v18366_v1  ;;  %v14984_v29 = vsel %vm4546_vm11, %v18409_v39, %v18408_v5  ;;  %v14999_v43 = vadd.f32 %v3269_v54, %v14916_v47 }
 0x392   :  { %10557 = vmatprep.mubr.msk.f32.mxu0 %vm2738_vm10, %v14778_v60  ;;  %v18405_v50 = vsel %vm14968_vm14, 4294967295, %v18404_v50  ;;  %v18412_v21 = vrot.slane %v14765_v59, 7  ;;  %vm15009_vm1 = vcmp.gt.s32.totalorder %v3769_v14, 0  ;;  %v15015_v54 = vsel %vm4546_vm11, %v4507_v28, %v4508_v45 }
 0x393   :  { %18406 = vst [vmem:[#allocation40_spill] sm:$0xff] %v18405_v50  ;;  %18407 = vst [vmem:[#allocation41_spill] sm:$0xff] %v14974_v20  ;;  %v15019_v62 = vsel %vm4546_vm11, %v4508_v45, %v4509_v26  ;;  %v4513_v59 = vrot.slane %v14956_v22, 7  ;;  %v4512_v63 = vrot.slane %v14959_v8, 7  ;;  %v15031_v14 = vsel %vm4546_vm11, %v4509_v26, %v4510_v48 }
 0x394   :  { %v10354_v19 = vpop.f32.mrb[20].mxu0  ;;  %v14976_v12 = vpop.f32.mrb[20].mxu1  ;;  %v14994_v11 = vsel %vm4546_vm11, %v18412_v21, %v4492_v49  ;;  %v18416_v21 = vmov 0  ;;  %18419 = vst [vmem:[#allocation44_spill] sm:$0xff] %v15015_v54  ;;  %18420 = vst [vmem:[#allocation45_spill] sm:$0xff] %v15019_v62  ;;  %v15035_v54 = vstv %s14910_s12  ;;  %v15039_v45 = vsel %vm4546_vm11, %v4492_v49, %v4493_v7 }
 0x395   :  { %18413 = vst [vmem:[#allocation42_spill] sm:$0xff] %v14994_v11  ;;  %v3289_v39 = vpop.f32.mrb[21].mxu0  ;;  %v15001_v5 = vpop.f32.mrb[21].mxu1  ;;  %10558 = vmatmul.mubr.msk.f32.gmra.mrb[50].mxu0 %vm2738_vm10, %v14772_v25  ;;  %v18417_v21 = vsel %vm15009_vm1, 4294967295, %v18416_v21  ;;  %18422 = vst [vmem:[#allocation47_spill] sm:$0xff] %v15031_v14  ;;  %v15045_v37 = vstv %s14920_s1  ;;  %v15048_v2 = vstv %s14922_s13  ;;  %v4514_v49 = vrot.slane %v14999_v43, 7 }
 0x396   :  { %18418 = vst [vmem:[#allocation43_spill] sm:$0xff] %v18417_v21  ;;  %10560 = vmatprep.mubr.msk.f32.mxu0 %vm2738_vm10, %v14811_v15  ;;  %18423 = vst [vmem:[#allocation48_spill] sm:$0xff] %v15039_v45  ;;  %v15058_v14 = vadd.f32 %v10351_v17, %v14916_v47  ;;  %v15061_v62 = vadd.f32 %v3279_v27, %v14916_v47  ;;  %v15069_v26 = vsel %vm4546_vm11, %v4510_v48, %v4511_v46 }
 0x397   :  { %18425 = vst [vmem:[#allocation50_spill] sm:$0xff] %v15069_v26  ;;  %v4515_v28 = vrot.slane %v15025_v13, 7  ;;  %v15073_v11 = vadd.f32 %v3289_v39, %v14916_v47  ;;  %v15079_v27 = vsel %vm4546_vm11, %v4511_v46, %v4512_v63  ;;  %v15083_v17 = vsel %vm4546_vm11, %v4512_v63, %v4513_v59 }
 0x398   :  { %v10357_v52 = vpop.f32.mrb[22].mxu0  ;;  %v15042_v55 = vpop.f32.mrb[22].mxu1  ;;  %18424 = vst [vmem:[#allocation49_spill] sm:$0xff] %v15058_v14  ;;  %18427 = vst [vmem:[#allocation52_spill] sm:$0xff] %v15079_v27  ;;  %v3713_v48 = vand.u32 15, %v18366_v1  ;;  %v18429_v26 = vrot.slane %v14792_v31, 7  ;;  %v15114_v27 = vadd.f32 %v10354_v19, %v14916_v47  ;;  %v15122_v16 = vsel %vm4546_vm11, %v4513_v59, %v4514_v49 }
 0x399   :  { %v3299_v20 = vpop.f32.mrb[23].mxu0  ;;  %v15063_v45 = vpop.f32.mrb[23].mxu1  ;;  %10561 = vmatmul.mubr.msk.f32.gmra.mrb[52].mxu0 %vm2738_vm10, %v14801_v0  ;;  %18426 = vst [vmem:[#allocation51_spill] sm:$0xff] %v15073_v11  ;;  %18428 = vst [vmem:[#allocation53_spill] sm:$0xff] %v15083_v17  ;;  %v18433_v39 = vrot.slane %v14724_v35, 7  ;;  %v15133_v19 = vsel %vm4546_vm11, %v4514_v49, %v4515_v28  ;;  %v18456_v21 = vrot.slane %v14724_v35, 1 }
 0x39a   :  { %10563 = vmatprep.mubr.msk.f32.mxu0 %vm2738_vm10, %v14854_v51  ;;  %v15094_v13 = vsel %vm4546_vm11, %v4493_v7, %v18429_v26  ;;  %v4517_v7 = vrot.slane %v15058_v14, 7  ;;  %v4516_v26 = vrot.slane %v15061_v62, 7  ;;  %18435 = vst [vmem:[#allocation57_spill] sm:$0xff] %v15122_v16  ;;  %18437 = vst [vmem:[#allocation59_spill] sm:$0xff] %v15133_v19  ;;  %v4519_v59 = vrot.slane %v15114_v27, 7 }
 0x39b   :  { %18430 = vst [vmem:[#allocation54_spill] sm:$0xff] %v15094_v13  ;;  %v15109_v31 = vsel %vm4546_vm11, %v18433_v39, %v18432_v53  ;;  %v4518_v39 = vrot.slane %v15073_v11, 7  ;;  %v15165_v16 = vadd.f32 %v10357_v52, %v14916_v47  ;;  %vm15178_vm2 = vcmp.gt.s32.totalorder %v3713_v48, 0 }
 0x39c   :  { %v15099_v17 = vpop.f32.mrb[24].mxu0  ;;  %v15101_v50 = vpop.f32.mrb[24].mxu1  ;;  %18434 = vst [vmem:[#allocation56_spill] sm:$0xff] %v15109_v31  ;;  %v15161_v49 = vsel %vm4546_vm11, %v4516_v26, %v4517_v7  ;;  %v15199_v48 = vadd.f32 %v14946_v10, %v15035_v54  ;;  %v15203_v52 = vadd.f32 %v14976_v12, %v15035_v54  ;;  %v15220_v12 = vadd.f32 %v15042_v55, %v15035_v54 }
 0x39d   :  { %18431 = vst [vmem:[#allocation55_spill] sm:$0xff] %v15101_v50  ;;  %v3493_v46 = vpop.f32.mrb[25].mxu0  ;;  %v15116_v63 = vpop.f32.mrb[25].mxu1  ;;  %10564 = vmatmul.mubr.msk.f32.gmra.mrb[54].mxu0 %vm2738_vm10, %v14837_v56  ;;  %v15127_v50 = vadd.f32 %v3299_v20, %v14916_v47  ;;  %v15157_v20 = vsel %vm4546_vm11, %v4515_v28, %v4516_v26  ;;  %18441 = vst [vmem:[#allocation63_spill] sm:$0xff] %v15161_v49  ;;  %v15185_v49 = vadd.f32 %v14869_v42, %v15035_v54 }
 0x39e   :  { %10566 = vmatprep.mubr.msk.f32.mxu0 %vm2738_vm10, %v14851_v9  ;;  %18440 = vst [vmem:[#allocation62_spill] sm:$0xff] %v15157_v20  ;;  %18442 = vst [vmem:[#allocation64_spill] sm:$0xff] %v15165_v16  ;;  %v15193_v20 = vadd.f32 %v14918_v18, %v15035_v54  ;;  %v15207_v42 = vadd.f32 %v15001_v5, %v15035_v54  ;;  %v15215_v18 = vsel %vm4546_vm11, %v4518_v39, %v4519_v59 }
 0x39f   :  { %18436 = vst [vmem:[#allocation58_spill] sm:$0xff] %v15127_v50  ;;  %v4520_v14 = vrot.slane %v15127_v50, 7  ;;  %18449 = vst [vmem:[#allocation69_spill] sm:$0xff] %v15215_v18  ;;  %v4521_v10 = vrot.slane %v15165_v16, 7  ;;  %v6062_v58 = vrot.slane %v15114_v27, 1 }
 0x3a0   :  { %v10391_v11 = vpop.f32.mrb[26].mxu0  ;;  %v15141_v40 = vpop.f32.mrb[26].mxu1  ;;  %18447 = vst [vmem:[#allocation67_spill] sm:$0xff] %v15207_v42  ;;  %18450 = vst [vmem:[#allocation70_spill] sm:$0xff] %v15220_v12  ;;  %v4525_v55 = vrot.slane %v15193_v20, 7  ;;  %v18492_v57 = vld [vmem:[#allocation51_spill] sm:$0xff] }
 0x3a1   :  { %18438 = vst [vmem:[#allocation60_spill] sm:$0xff] %v15141_v40  ;;  %v3503_v53 = vpop.f32.mrb[27].mxu0  ;;  %v15151_v19 = vpop.f32.mrb[27].mxu1  ;;  %10567 = vmatmul.mubr.msk.f32.gmra.mrb[56].mxu0 %vm2738_vm10, %v14827_v33  ;;  %v15172_v40 = vsel %vm4546_vm11, %v4517_v7, %v4518_v39  ;;  %v15189_v7 = vadd.f32 %v14883_v30, %v15035_v54  ;;  %v15226_v5 = vsel %vm4546_vm11, %v4519_v59, %v4520_v14 }
 0x3a2   :  { %18439 = vst [vmem:[#allocation61_spill] sm:$0xff] %v15151_v19  ;;  %10569 = vmatprep.mubr.msk.f32.mxu0 %vm2738_vm10, %v14881_v36  ;;  %18443 = vst [vmem:[#allocation65_spill] sm:$0xff] %v15172_v40  ;;  %v18452_v40 = vrot.slane %v14729_v44, 1  ;;  %v15244_v59 = vadd.f32 %v15099_v17, %v15045_v37  ;;  %v15249_v19 = vadd.f32 %v3493_v46, %v15045_v37  ;;  %v4526_v46 = vrot.slane %v15207_v42, 7 }
 0x3a3   :  { %18451 = vst [vmem:[#allocation71_spill] sm:$0xff] %v15226_v5  ;;  %v4523_v5 = vrot.slane %v15185_v49, 7  ;;  %v15276_v16 = vsel %vm4546_vm11, %v4520_v14, %v4521_v10 }
 0x3a4   :  { %v10394_v28 = vpop.f32.mrb[28].mxu0  ;;  %v15195_v13 = vpop.f32.mrb[28].mxu1  ;;  %18459 = vst [vmem:[#allocation75_spill] sm:$0xff] %v15276_v16  ;;  %v4531_v50 = vrot.slane %v15244_v59, 7  ;;  %v4530_v35 = vrot.slane %v15249_v19, 7 }
 0x3a5   :  { %18446 = vst [vmem:[#allocation66_spill] sm:$0xff] %v15195_v13  ;;  %v3513_v30 = vpop.f32.mrb[29].mxu0  ;;  %v15209_v26 = vpop.f32.mrb[29].mxu1  ;;  %10570 = vmatmul.mubr.msk.f32.gmra.mrb[58].mxu0 %vm2738_vm10, %v14878_v23  ;;  %v18453_v13 = vrot.slane %v14697_v41, 1  ;;  %v4522_v41 = vrot.slane %v15189_v7, 7 }
 0x3a6   :  { %18448 = vst [vmem:[#allocation68_spill] sm:$0xff] %v15209_v26  ;;  %10572 = vmatprep.mubr.msk.f32.mxu0 %vm2738_vm10, %v14897_v24  ;;  %v15240_v26 = vadd.f32 %v15063_v45, %v15035_v54  ;;  %v4524_v54 = vrot.slane %v15199_v48, 7  ;;  %v4527_v45 = vrot.slane %v15203_v52, 7  ;;  %v18457_v24 = vrot.slane %v14729_v44, 1 }
 0x3a7   :  { %v15234_v39 = vsel %vm6089_vm12, %v18453_v13, %v18452_v40  ;;  %v15252_v40 = vadd.f32 %v10391_v11, %v15045_v37  ;;  %v4529_v11 = vrot.slane %v15220_v12, 7  ;;  %v15281_v12 = vadd.f32 %v3503_v53, %v15045_v37  ;;  %v18460_v53 = vld [vmem:[#allocation7_spill] sm:$0xff] }
 0x3a8   :  { %18454 = vst [vmem:[#allocation72_spill] sm:$0xff] %v15234_v39  ;;  %v10397_v13 = vpop.f32.mrb[30].mxu0  ;;  %v10417_v18 = vpop.f32.mrb[30].mxu1  ;;  %v18461_v16 = vrot.slane %v18460_v53, 7  ;;  %v15334_v47 = vsel %vm4546_vm11, %v4526_v46, %v4527_v45 }
 0x3a9   :  { %v15258_v17 = vadd.f32 %v10417_v18, %v15048_v2  ;;  %v3523_v39 = vpop.f32.mrb[31].mxu0  ;;  %v3635_v31 = vpop.f32.mrb[31].mxu1  ;;  %10573 = vmatmul.mubr.msk.f32.gmra.mrb[60].mxu0 %vm2738_vm10, %v14944_v3  ;;  %v15272_v18 = vsel %vm6089_vm12, %v18457_v24, %v18456_v21  ;;  %v4528_v3 = vrot.slane %v15240_v26, 7  ;;  %v4533_v44 = vrot.slane %v15252_v40, 7 }
 0x3aa   :  { %10575 = vmatprep.mubr.msk.f32.mxu0 %vm2738_vm10, %v14959_v8  ;;  %18458 = vst [vmem:[#allocation74_spill] sm:$0xff] %v15272_v18  ;;  %v15287_v24 = vadd.f32 %v10394_v28, %v15045_v37  ;;  %v15290_v21 = vadd.f32 %v3513_v30, %v15045_v37  ;;  %v15293_v14 = vadd.f32 %v10397_v13, %v15045_v37 }
 0x3ab   :  { %18455 = vst [vmem:[#allocation73_spill] sm:$0xff] %v15258_v17  ;;  %v18343_v42 = vrot.slane %v15258_v17, 7  ;;  %v15305_v28 = vsel %vm4546_vm11, %v4521_v10, %v4522_v41  ;;  %v15309_v30 = vsel %vm4546_vm11, %v4522_v41, %v4523_v5  ;;  %v15312_v13 = vadd.f32 %v3523_v39, %v15045_v37  ;;  %v18467_v39 = vld [vmem:[#allocation46_spill] sm:$0xff] }
 0x3ac   :  { %v15324_v10 = vsel %vm4546_vm11, %v4524_v54, %v4525_v55  ;;  %v4532_v41 = vrot.slane %v15281_v12, 7  ;;  %v15330_v37 = vsel %vm4546_vm11, %v4525_v55, %v4526_v46  ;;  %v18464_v55 = vrot.slane %v14726_v6, 1 }
 0x3ad   :  { %10576 = vmatmul.mubr.msk.f32.gmra.mrb[62].mxu0 %vm2738_vm10, %v14956_v22  ;;  %v4610_v18 = vsel %vm4546_vm11, %v18343_v42, %v18461_v16  ;;  %v15320_v16 = vsel %vm4546_vm11, %v4523_v5, %v4524_v54  ;;  %v15338_v5 = vsel %vm4546_vm11, %v4527_v45, %v4528_v3  ;;  %v15343_v54 = vadd.f32 %v15116_v63, %v15048_v2 }
 0x3ae   :  { %10578 = vmatprep.mubr.msk.f32.mxu0 %vm2738_vm10, %v14999_v43  ;;  %v4803_v53 = vsel %vm15178_vm2, %v4610_v18, 0.0  ;;  %18462 = vst [vmem:[#allocation76_spill] sm:$0xff] %v15338_v5  ;;  %v4534_v18 = vrot.slane %v15290_v21, 7  ;;  %v18465_v46 = vrot.slane %v14731_v34, 1  ;;  %v4535_v45 = vrot.slane %v15287_v24, 7 }
 0x3af   :  { %10426 = vmatprep.mubr.msk.f32.mxu1 %vm2738_vm10, %v4803_v53  ;;  %v18463_v53 = vld [vmem:[#allocation35_spill] sm:$0xff]  ;;  %v18466_v63 = vsel %vm14887_vm13, %v14984_v29, 0.0  ;;  %v15370_v5 = vsel %vm4546_vm11, %v4529_v11, %v4530_v35  ;;  %v4537_v29 = vrot.slane %v15293_v14, 7 }
 0x3b0   :  { %10427 = vmatmul.mubr.msk.f32.vlgmr.msra.gmra.mrb[32].mxu1 %vm2738_vm10, %v18463_v53  ;;  %v15354_v42 = vsel %vm6089_vm12, %v18465_v46, %v18464_v55  ;;  %v15366_v53 = vsel %vm4546_vm11, %v4528_v3, %v4529_v11  ;;  %18469 = vst [vmem:[#allocation46_spill] sm:$0xff] %v15370_v5  ;;  %v18470_v55 = vrot.slane %v14750_v4, 1  ;;  %v18471_v46 = vrot.slane %v14726_v6, 1 }
 0x3b1   :  { %10429 = vmatprep.mubr.msk.f32.mxu1 %vm2738_vm10, %v18466_v63  ;;  %10579 = vmatmul.mubr.msk.f32.gmra.mrb[64].mxu0 %vm2738_vm10, %v18467_v39  ;;  %18468 = vst [vmem:[#allocation35_spill] sm:$0xff] %v15366_v53  ;;  %v4536_v63 = vrot.slane %v15312_v13, 7  ;;  %v18473_v3 = vrot.slane %v14747_v61, 1  ;;  %v15394_v6 = vsel %vm4546_vm11, %v4530_v35, %v4531_v50  ;;  %v18478_v4 = vrot.slane %v14772_v25, 1 }
 0x3b2   :  { %v15378_v38 = vsel %vm6089_vm12, %v18471_v46, %v18470_v55  ;;  %10581 = vmatprep.mubr.msk.f32.mxu0 %vm2738_vm10, %v15061_v62  ;;  %v18474_v11 = vmov %v18470_v55  ;;  %v15398_v55 = vsel %vm4546_vm11, %v4531_v50, %v4532_v41  ;;  %v18476_v46 = vrot.slane %v14778_v60, 1 }
 0x3b3   :  { %18472 = vst [vmem:[#allocation77_spill] sm:$0xff] %v15378_v38  ;;  %v15390_v5 = vsel %vm6089_vm12, %v18474_v11, %v18473_v3  ;;  %18475 = vst [vmem:[#allocation78_spill] sm:$0xff] %v15398_v55  ;;  %v18477_v38 = vmov %v18473_v3  ;;  %v15418_v50 = vsel %vm4546_vm11, %v4532_v41, %v4533_v44  ;;  %v6058_v11 = vrot.slane %v18467_v39, 1  ;;  %v18480_v55 = vld [vmem:[#allocation10_spill] sm:$0xff] }
 0x3b4   :  { %v15406_v53 = vsel %vm6089_vm12, %v18477_v38, %v18476_v46  ;;  %v18479_v3 = vmov %v18476_v46  ;;  %10430 = vmatmul.mubr.msk.f32.gmra.mrb[34].mxu1 %vm2738_vm10, %v18480_v55  ;;  %v15426_v38 = vsel %vm4546_vm11, %v4533_v44, %v4534_v18  ;;  %v18482_v60 = vrot.slane %v14811_v15, 1  ;;  %v18485_v55 = vld [vmem:[#allocation12_spill] sm:$0xff]  ;;  %v18487_v44 = vld [vmem:[#allocation49_spill] sm:$0xff] }
 0x3b5   :  { %v15414_v35 = vsel %vm6089_vm12, %v18479_v3, %v18478_v4  ;;  %18481 = vst [vmem:[#allocation10_spill] sm:$0xff] %v15426_v38  ;;  %v18483_v46 = vmov %v18478_v4  ;;  %v15438_v39 = vadd.f32 %v3635_v31, %v15048_v2  ;;  %v18486_v3 = vsel %vm14986_vm15, %v18485_v55, 0.0  ;;  %10582 = vmatmul.mubr.msk.f32.gmra.mrb[66].mxu0 %vm2738_vm10, %v18487_v44  ;;  %v18537_v38 = vld [vmem:[#allocation56_spill] sm:$0xff] }
 0x3b6   :  { %v15434_v4 = vsel %vm6089_vm12, %v18483_v46, %v18482_v60  ;;  %10432 = vmatprep.mubr.msk.f32.mxu1 %vm2738_vm10, %v18486_v3  ;;  %v18488_v25 = vrot.slane %v14801_v0, 1  ;;  %v18489_v61 = vmov %v18482_v60  ;;  %v15457_v31 = vsel %vm4546_vm11, %v4534_v18, %v4535_v45  ;;  %10584 = vmatprep.mubr.msk.f32.mxu0 %vm2738_vm10, %v18492_v57 }
 0x3b7   :  { %18484 = vst [vmem:[#allocation79_spill] sm:$0xff] %v15434_v4  ;;  %18491 = vst [vmem:[#allocation49_spill] sm:$0xff] %v15457_v31  ;;  %v15463_v46 = vsel %vm4546_vm11, %v4535_v45, %v4536_v63  ;;  %v18494_v55 = vrot.slane %v14854_v51, 1  ;;  %v15483_v45 = vsel %vm4546_vm11, %v4536_v63, %v4537_v29  ;;  %v6057_v41 = vrot.slane %v14999_v43, 1  ;;  %v18530_v31 = vld [vmem:[#allocation70_spill] sm:$0xff]  ;;  %v18531_v4 = vld [vmem:[#allocation17_spill] sm:$0xff] }
 0x3b8   :  { %v15453_v60 = vsel %vm6089_vm12, %v18489_v61, %v18488_v25  ;;  %18493 = vst [vmem:[#allocation51_spill] sm:$0xff] %v15463_v46  ;;  %v18495_v3 = vmov %v18488_v25  ;;  %v18497_v61 = vrot.slane %v14837_v56, 1  ;;  %18500 = vst [vmem:[#allocation82_spill] sm:$0xff] %v15483_v45  ;;  %v6065_v0 = vrot.slane %v15189_v7, 1  ;;  %v18506_v45 = vld [vmem:[#allocation13_spill] sm:$0xff] }
 0x3b9   :  { %18490 = vst [vmem:[#allocation12_spill] sm:$0xff] %v15453_v60  ;;  %v15471_v15 = vsel %vm6089_vm12, %v18495_v3, %v18494_v55  ;;  %v18498_v18 = vmov %v18494_v55  ;;  %v18501_v46 = vrot.slane %v15343_v54, 7  ;;  %v18503_v51 = vrot.slane %v14851_v9, 1  ;;  %10433 = vmatmul.mubr.msk.f32.gmra.mrb[36].mxu1 %vm2738_vm10, %v18506_v45  ;;  %10585 = vmatmul.mubr.msk.f32.gmra.mrb[68].mxu0 %vm2738_vm10, %v15114_v27 }
 0x3ba   :  { %18496 = vst [vmem:[#allocation80_spill] sm:$0xff] %v15471_v15  ;;  %v15479_v25 = vsel %vm6089_vm12, %v18498_v18, %v18497_v61  ;;  %v18504_v3 = vmov %v18497_v61  ;;  %v6060_v63 = vrot.slane %v18487_v44, 1  ;;  %v6068_v43 = vrot.slane %v15193_v20, 1 }
 0x3bb   :  { %18499 = vst [vmem:[#allocation81_spill] sm:$0xff] %v15479_v25  ;;  %v15491_v55 = vsel %vm4546_vm11, %v4537_v29, %v18501_v46  ;;  %v15499_v61 = vsel %vm6089_vm12, %v18504_v3, %v18503_v51  ;;  %v6059_v18 = vrot.slane %v15061_v62, 1  ;;  %v18507_v25 = vld [vmem:[#allocation29_spill] sm:$0xff]  ;;  %v18511_v56 = vrot.slane %v14827_v33, 1 }
 0x3bc   :  { %18502 = vst [vmem:[#allocation83_spill] sm:$0xff] %v15491_v55  ;;  %18505 = vst [vmem:[#allocation84_spill] sm:$0xff] %v15499_v61  ;;  %v18508_v29 = vand.u32 15, %v18507_v25  ;;  %v6067_v3 = vrot.slane %v15199_v48, 1  ;;  %v18513_v25 = vsel %vm15005_vm0, %v14756_v32, 0.0  ;;  %v18514_v45 = vrot.slane %v14881_v36, 1 }
 0x3bd   :  { %v15518_v44 = vsel %vm6089_vm12, %v18503_v51, %v18511_v56  ;;  %10435 = vmatprep.mubr.msk.f32.mxu1 %vm2738_vm10, %v18513_v25  ;;  %v18515_v9 = vmov %v18511_v56  ;;  %v18517_v56 = vrot.slane %v14878_v23, 1  ;;  %v6070_v25 = vrot.slane %v15203_v52, 1  ;;  %v18521_v61 = vld [vmem:[#allocation58_spill] sm:$0xff]  ;;  %v18523_v36 = vld [vmem:[#allocation31_spill] sm:$0xff] }
 0x3be   :  { %vm15508_vm3 = vcmp.gt.s32.totalorder %v18508_v29, 0  ;;  %18512 = vst [vmem:[#allocation13_spill] sm:$0xff] %v15518_v44  ;;  %v15535_v29 = vsel %vm6089_vm12, %v18515_v9, %v18514_v45  ;;  %v18518_v51 = vmov %v18514_v45  ;;  %v6061_v62 = vrot.slane %v18492_v57, 1  ;;  %v18520_v44 = vld [vmem:[#allocation67_spill] sm:$0xff]  ;;  %10587 = vmatprep.mubr.msk.f32.mxu0 %vm2738_vm10, %v18521_v61  ;;  %v18522_v45 = vld [vmem:[#allocation64_spill] sm:$0xff]  ;;  %10436 = vmatmul.mubr.msk.f32.gmra.mrb[38].mxu1 %vm2738_vm10, %v18531_v4 }
 0x3bf   :  { %18516 = vst [vmem:[#allocation29_spill] sm:$0xff] %v15535_v29  ;;  %v15543_v32 = vsel %vm6089_vm12, %v18518_v51, %v18517_v56  ;;  %v6069_v33 = vrot.slane %v18520_v44, 1  ;;  %v6064_v9 = vrot.slane %v18522_v45, 1  ;;  %v6063_v29 = vrot.slane %v18521_v61, 1  ;;  %v18526_v51 = vld [vmem:[#allocation37_spill] sm:$0xff]  ;;  %10588 = vmatmul.mubr.msk.f32.gmra.mrb[70].mxu0 %vm2738_vm10, %v18522_v45 }
 0x3c0   :  { %18519 = vst [vmem:[#allocation85_spill] sm:$0xff] %v15543_v32  ;;  %v18524_v55 = vrot.slane %v18523_v36, 1  ;;  %v18527_v32 = vrot.slane %v18526_v51, 1  ;;  %v6072_v60 = vrot.slane %v18530_v31, 1  ;;  %v6071_v61 = vrot.slane %v15240_v26, 1  ;;  %10590 = vmatprep.mubr.msk.f32.mxu0 %vm2738_vm10, %v15189_v7 }
 0x3c1   :  { %v18532_v23 = vrot.slane %v14959_v8, 1  ;;  %v18534_v36 = vrot.slane %v14956_v22, 1  ;;  %v6073_v4 = vrot.slane %v15249_v19, 1  ;;  %v18538_v51 = vsel %vm15009_vm1, %v18537_v38, 0.0 }
 0x3c2   :  { %v15559_v27 = vsel %vm6089_vm12, %v18517_v56, %v18524_v55  ;;  %v18528_v57 = vmov %v18524_v55  ;;  %v18533_v55 = vmov %v18527_v32  ;;  %10438 = vmatprep.mubr.msk.f32.mxu1 %vm2738_vm10, %v18538_v51  ;;  %v18545_v38 = vrot.slane %v14956_v22, 1 }
 0x3c3   :  { %18525 = vst [vmem:[#allocation67_spill] sm:$0xff] %v15559_v27  ;;  %v15567_v15 = vsel %vm6089_vm12, %v18528_v57, %v18527_v32  ;;  %v15579_v56 = vsel %vm6089_vm12, %v18533_v55, %v18532_v23  ;;  %v18535_v32 = vmov %v18532_v23  ;;  %v18539_v23 = vld [vmem:[#allocation34_spill] sm:$0xff]  ;;  %v6076_v45 = vrot.slane %v15252_v40, 1  ;;  %10591 = vmatmul.mubr.msk.f32.gmra.mrb[72].mxu0 %vm2738_vm10, %v15185_v49 }
 0x3c4   :  { %18529 = vst [vmem:[#allocation58_spill] sm:$0xff] %v15567_v15  ;;  %v15587_v57 = vsel %vm6089_vm12, %v18535_v32, %v18534_v36  ;;  %v6074_v15 = vrot.slane %v15244_v59, 1  ;;  %v18540_v55 = vand.u32 15, %v18539_v23  ;;  %v18543_v36 = vrot.slane %v15258_v17, 7  ;;  %10593 = vmatprep.mubr.msk.f32.mxu0 %vm2738_vm10, %v15199_v48 }
 0x3c5   :  { %v18544_v32 = vrot.slane %v15438_v39, 7  ;;  %v15616_v51 = vsel %vm6089_vm12, %v18545_v38, %v6057_v41  ;;  %v15623_v23 = vsel %vm6089_vm12, %v6057_v41, %v6058_v11  ;;  %v15631_v22 = vsel %vm6089_vm12, %v6059_v18, %v6060_v63 }
 0x3c6   :  { %vm15600_vm4 = vcmp.gt.s32.totalorder %v18540_v55, 0  ;;  %v15627_v55 = vsel %vm6089_vm12, %v6058_v11, %v6059_v18  ;;  %18546 = vst [vmem:[#allocation64_spill] sm:$0xff] %v15631_v22  ;;  %v15640_v7 = vsel %vm6089_vm12, %v6061_v62, %v6062_v58  ;;  %v15644_v41 = vsel %vm6089_vm12, %v6062_v58, %v6063_v29  ;;  %v18549_v18 = vld [vmem:[#allocation36_spill] sm:$0xff]  ;;  %v18552_v58 = vld [vmem:[#allocation42_spill] sm:$0xff] }
 0x3c7   :  { %v15610_v27 = vsel %vm4546_vm11, %v18544_v32, %v18543_v36  ;;  %v6075_v36 = vrot.slane %v15281_v12, 1  ;;  %v15636_v32 = vsel %vm6089_vm12, %v6060_v63, %v6061_v62  ;;  %18547 = vst [vmem:[#allocation31_spill] sm:$0xff] %v15640_v7  ;;  %18548 = vst [vmem:[#allocation37_spill] sm:$0xff] %v15644_v41  ;;  %v6078_v11 = vrot.slane %v15287_v24, 1  ;;  %10439 = vmatmul.mubr.msk.f32.gmra.mrb[40].mxu1 %vm2738_vm10, %v18549_v18 }
 0x3c8   :  { %v6077_v38 = vrot.slane %v15290_v21, 1  ;;  %v15652_v22 = vsel %vm6089_vm12, %v6063_v29, %v6064_v9  ;;  %v15656_v63 = vsel %vm6089_vm12, %v6064_v9, %v6065_v0  ;;  %v6079_v62 = vrot.slane %v15312_v13, 1  ;;  %10594 = vmatmul.mubr.msk.f32.gmra.mrb[74].mxu0 %vm2738_vm10, %v15193_v20 }
 0x3c9   :  { %18550 = vst [vmem:[#allocation70_spill] sm:$0xff] %v15656_v63  ;;  %v18553_v41 = vsel %vm14968_vm14, %v18552_v58, 0.0  ;;  %v18554_v18 = vrot.slane %v15185_v49, 1  ;;  %v15680_v7 = vsel %vm6089_vm12, %v6067_v3, %v6068_v43  ;;  %v15687_v58 = vsel %vm6089_vm12, %v6068_v43, %v6069_v33  ;;  %10596 = vmatprep.mubr.msk.f32.mxu0 %vm2738_vm10, %v18520_v44 }
 0x3ca   :  { %10441 = vmatprep.mubr.msk.f32.mxu1 %vm2738_vm10, %v18553_v41  ;;  %18556 = vst [vmem:[#allocation17_spill] sm:$0xff] %v15680_v7  ;;  %v6080_v41 = vrot.slane %v15293_v14, 1  ;;  %18557 = vst [vmem:[#allocation43_spill] sm:$0xff] %v15687_v58  ;;  %v15691_v49 = vsel %vm6089_vm12, %v6069_v33, %v6070_v25  ;;  %v18561_v7 = vld [vmem:[#allocation25_spill] sm:$0xff]  ;;  %v15708_v58 = vsel %vm6089_vm12, %v6071_v61, %v6072_v60 }
 0x3cb   :  { %v15670_v29 = vsel %vm6089_vm12, %v6065_v0, %v18554_v18  ;;  %v18555_v9 = vmov %v18554_v18  ;;  %v15695_v0 = vsel %vm6089_vm12, %v6070_v25, %v6071_v61  ;;  %v18559_v18 = vld [vmem:[#allocation54_spill] sm:$0xff]  ;;  %v18562_v48 = vrot.slane %v18561_v7, 7 }
 0x3cc   :  { %v15676_v63 = vsel %vm6089_vm12, %v18555_v9, %v6067_v3  ;;  %18558 = vst [vmem:[#allocation56_spill] sm:$0xff] %v15695_v0  ;;  %v4815_v3 = vsel %vm15508_vm3, %v18559_v18, 0.0  ;;  %v18560_v9 = vrot.slane %v14731_v34, 7  ;;  %v15712_v33 = vsel %vm6089_vm12, %v6072_v60, %v6073_v4  ;;  %v18563_v0 = vld [vmem:[#allocation48_spill] sm:$0xff]  ;;  %10597 = vmatmul.mubr.msk.f32.gmra.mrb[76].mxu0 %vm2738_vm10, %v15203_v52 }
 0x3cd   :  { %v18345_v25 = vrot.slane %v15343_v54, 1  ;;  %10442 = vmatmul.mubr.msk.f32.gmra.mrb[42].mxu1 %vm2738_vm10, %v18563_v0  ;;  %v15719_v46 = vsel %vm6089_vm12, %v6073_v4, %v6074_v15  ;;  %v15723_v18 = vsel %vm6089_vm12, %v6074_v15, %v6075_v36  ;;  %v15727_v61 = vsel %vm6089_vm12, %v6075_v36, %v6076_v45  ;;  %10599 = vmatprep.mubr.msk.f32.mxu0 %vm2738_vm10, %v15240_v26  ;;  %v18573_v26 = vld [vmem:[#allocation26_spill] sm:$0xff] }
 0x3ce   :  { %v4596_v43 = vsel %vm4546_vm11, %v18562_v48, %v18560_v9  ;;  %10444 = vmatprep.mubr.msk.f32.mxu1 %vm2738_vm10, %v4815_v3  ;;  %v3663_v60 = vadd.s32 144, %v18366_v1  ;;  %v15735_v0 = vsel %vm6089_vm12, %v6076_v45, %v6077_v38  ;;  %v15739_v4 = vsel %vm6089_vm12, %v6077_v38, %v6078_v11  ;;  %v18566_v38 = vld [vmem:[#allocation22_spill] sm:$0xff] }
 0x3cf   :  { %v15743_v15 = vsel %vm6089_vm12, %v6078_v11, %v6079_v62  ;;  %v15749_v20 = vsel %vm6089_vm12, %v6079_v62, %v6080_v41  ;;  %v15755_v45 = vsel %vm6089_vm12, %v6080_v41, %v18345_v25  ;;  %v18565_v36 = vmov %v18562_v48  ;;  %v18568_v62 = vld [vmem:[#allocation41_spill] sm:$0xff] }
 0x3d0   :  { %18564 = vst [vmem:[#allocation34_spill] sm:$0xff] %v15755_v45  ;;  %v18567_v3 = vrot.slane %v18566_v38, 7  ;;  %v4817_v44 = vsel %vm15600_vm4, %v4596_v43, 0.0  ;;  %v18569_v41 = vand.u32 15, %v18568_v62  ;;  %v3839_v9 = vand.u32 15, %v3663_v60  ;;  %10600 = vmatmul.mubr.msk.f32.gmra.mrb[78].mxu0 %vm2738_vm10, %v18530_v31  ;;  %v18572_v60 = vld [vmem:[#allocation24_spill] sm:$0xff] }
 0x3d1   :  { %v3665_v48 = vadd.s32 160, %v18366_v1  ;;  %v3667_v43 = vadd.s32 176, %v18366_v1  ;;  %10602 = vmatprep.mubr.msk.f32.mxu0 %vm2738_vm10, %v15249_v19  ;;  %v3669_v31 = vadd.s32 192, %v18366_v1  ;;  %v18574_v62 = vld [vmem:[#allocation27_spill] sm:$0xff]  ;;  %v18575_v19 = vld [vmem:[#allocation28_spill] sm:$0xff] }
 0x3d2   :  { %v4597_v11 = vsel %vm4546_vm11, %v18567_v3, %v18565_v36  ;;  %vm4627_vm5 = vcmp.gt.s32.totalorder %v18569_v41, 0  ;;  %v18570_v36 = vld [vmem:[#allocation20_spill] sm:$0xff]  ;;  %v18571_v3 = vld [vmem:[#allocation23_spill] sm:$0xff]  ;;  %vm4629_vm6 = vcmp.gt.s32.totalorder %v3839_v9, 0 }
 0x3d3   :  { %10445 = vmatmul.mubr.msk.f32.gmra.mrb[44].mxu1 %vm2738_vm10, %v4597_v11  ;;  %v4819_v8 = vsel %vm4627_vm5, %v18571_v3, 0.0  ;;  %v3853_v52 = vand.u32 15, %v3665_v48  ;;  %v4821_v11 = vsel %vm4629_vm6, %v18573_v26, 0.0  ;;  %v3881_v9 = vand.u32 15, %v3669_v31  ;;  %v18576_v48 = vld [vmem:[#allocation30_spill] sm:$0xff] }
 0x3d4   :  { %10447 = vmatprep.mubr.msk.f32.mxu1 %vm2738_vm10, %v4817_v44  ;;  %10603 = vmatmul.mubr.msk.f32.gmra.mrb[80].mxu0 %vm2738_vm10, %v15244_v59  ;;  %v3867_v44 = vand.u32 15, %v3667_v43  ;;  %v3671_v59 = vadd.s32 208, %v18366_v1  ;;  %v18578_v43 = vld [vmem:[#allocation33_spill] sm:$0xff]  ;;  %v3675_v26 = vadd.s32 240, %v18366_v1  ;;  %v3646_v31 = vadd.s32 8, %v18366_v1 }
 0x3d5   :  { %vm4631_vm7 = vcmp.gt.s32.totalorder %v3853_v52, 0  ;;  %10605 = vmatprep.mubr.msk.f32.mxu0 %vm2738_vm10, %v15281_v12  ;;  %v18577_v12 = vld [vmem:[#allocation32_spill] sm:$0xff]  ;;  %vm4635_vm9 = vcmp.gt.s32.totalorder %v3881_v9, 0 }
 0x3d6   :  { %v4823_v41 = vsel %vm4631_vm7, %v18575_v19, 0.0  ;;  %vm4633_vm8 = vcmp.gt.s32.totalorder %v3867_v44, 0  ;;  %v3895_v3 = vand.u32 15, %v3671_v59  ;;  %v3923_v59 = vand.u32 15, %v3675_v26  ;;  %v18588_v26 = vld [vmem:[#allocation8_spill] sm:$0xff] }
 0x3d7   :  { %10448 = vmatmul.mubr.msk.f32.gmra.mrb[46].mxu1 %vm2738_vm10, %v18570_v36  ;;  %v4825_v36 = vsel %vm4633_vm8, %v18577_v12, 0.0  ;;  %v18584_v12 = vld [vmem:[#allocation60_spill] sm:$0xff] }
 0x3d8   :  { %10450 = vmatprep.mubr.msk.f32.mxu1 %vm2738_vm10, %v4819_v8  ;;  %10606 = vmatmul.mubr.msk.f32.gmra.mrb[82].mxu0 %vm2738_vm10, %v15252_v40  ;;  %v3673_v40 = vadd.s32 224, %v18366_v1  ;;  %v9767_v8 = vld [vmem:[%s18281_s3 + $0x28] sm:$0xff]  ;;  %vm4637_vm13 = vcmp.gt.s32.totalorder %v3895_v3, 0  ;;  %v3720_v3 = vand.u32 15, %v3646_v31  ;;  %vm4641_vm15 = vcmp.gt.s32.totalorder %v3923_v59, 0 }
 0x3d9   :  { %10608 = vmatprep.mubr.msk.f32.mxu0 %vm2738_vm10, %v15290_v21  ;;  %v9766_v21 = vld [vmem:[%s18281_s3 + $0x20] sm:$0xff]  ;;  %v18589_v31 = vld [vmem:[#allocation7_spill] sm:$0xff] }
 0x3da   :  { %v10978_v52 = vpack.c.bf16 %v9767_v8, %v9766_v21  ;;  %v18586_v8 = vld [vmem:[#allocation45_spill] sm:$0xff] }
 0x3db   :  { %10451 = vmatmul.mubr.msk.f32.gmra.mrb[48].mxu1 %vm2738_vm10, %v18572_v60 }
 0x3dc   :  { %10453 = vmatprep.mubr.msk.f32.mxu1 %vm2738_vm10, %v4821_v11  ;;  %10609 = vmatmul.mubr.msk.f32.gmra.mrb[84].mxu0 %vm2738_vm10, %v15287_v24  ;;  %v18579_v24 = vld [vmem:[#allocation38_spill] sm:$0xff]  ;;  %v18580_v11 = vld [vmem:[#allocation55_spill] sm:$0xff] }
 0x3dd   :  { %10611 = vmatprep.mubr.msk.f32.mxu0 %vm2738_vm10, %v15312_v13  ;;  %v4827_v60 = vsel %vm4635_vm9, %v18579_v24, 0.0  ;;  %v3909_v13 = vand.u32 15, %v3673_v40  ;;  %10979 = vmatprep.subr.bf16.mxu1 %v10978_v52  ;;  %v15827_v44 = vadd.f32 %v18580_v11, %v15048_v2  ;;  %v18585_v40 = vld [vmem:[#allocation68_spill] sm:$0xff]  ;;  %v3648_v24 = vadd.s32 24, %v18366_v1 }
 0x3de   :  { %10981 = vmatpush3.bf16.msra.mxu1 %v10978_v52  ;;  %v15849_v21 = vadd.f32 %v18585_v40, %v15048_v2  ;;  %v18587_v52 = vld [vmem:[#allocation47_spill] sm:$0xff]  ;;  %v6026_v11 = vrot.slane %v18588_v26, 1  ;;  %v18592_v40 = vld [vmem:[#allocation52_spill] sm:$0xff] }
 0x3df   :  { %10454 = vmatmul.mubr.msk.f32.gmra.mrb[50].mxu1 %vm2738_vm10, %v18574_v62  ;;  %v18581_v62 = vld [vmem:[#allocation61_spill] sm:$0xff]  ;;  %vm4639_vm14 = vcmp.gt.s32.totalorder %v3909_v13, 0  ;;  %v3679_v13 = vadd.s32 272, %v18366_v1  ;;  %v4833_v59 = vsel %vm4641_vm15, %v18592_v40, 0.0 }
 0x3e0   :  { %10456 = vmatprep.mubr.msk.f32.mxu1 %vm2738_vm10, %v4823_v41  ;;  %10612 = vmatmul.mubr.msk.f32.gmra.mrb[86].mxu0 %vm2738_vm10, %v15293_v14  ;;  %v15832_v19 = vadd.f32 %v18581_v62, %v15048_v2  ;;  %v18582_v14 = vld [vmem:[#allocation39_spill] sm:$0xff]  ;;  %v18583_v41 = vld [vmem:[#allocation44_spill] sm:$0xff]  ;;  %v18344_v62 = vrot.slane %v18589_v31, 1  ;;  %v18609_v31 = vld [vmem:[#allocation69_spill] sm:$0xff] }
 0x3e1   :  { %10614 = vmatprep.mubr.msk.f32.mxu0 %vm2738_vm10, %v15343_v54  ;;  %v4829_v9 = vsel %vm4637_vm13, %v18583_v41, 0.0 }
 0x3e3   :  { %10457 = vmatmul.mubr.msk.f32.gmra.mrb[52].mxu1 %vm2738_vm10, %v18576_v48  ;;  %v3677_v48 = vadd.s32 256, %v18366_v1 }
 0x3e4   :  { %10459 = vmatprep.mubr.msk.f32.mxu1 %vm2738_vm10, %v4825_v36  ;;  %10615 = vmatmul.mubr.msk.f32.gmra.mrb[88].mxu0 %vm2738_vm10, %v15827_v44  ;;  %v15845_v36 = vadd.f32 %v18584_v12, %v15048_v2  ;;  %v18591_v12 = vld [vmem:[#allocation50_spill] sm:$0xff] }
 0x3e5   :  { %10617 = vmatprep.mubr.msk.f32.mxu0 %vm2738_vm10, %v15832_v19 }
 0x3e7   :  { %10460 = vmatmul.mubr.msk.f32.gmra.mrb[54].mxu1 %vm2738_vm10, %v18578_v43  ;;  %v4831_v43 = vsel %vm4639_vm14, %v18587_v52, 0.0  ;;  %v3951_v52 = vand.u32 15, %v3679_v13  ;;  %v18595_v13 = vld [vmem:[#allocation9_spill] sm:$0xff] }
 0x3e8   :  { %10462 = vmatprep.mubr.msk.f32.mxu1 %vm2738_vm10, %v4827_v60  ;;  %10618 = vmatmul.mubr.msk.f32.gmra.mrb[90].mxu0 %vm2738_vm10, %v15845_v36  ;;  %v3937_v60 = vand.u32 15, %v3677_v48  ;;  %v3734_v48 = vand.u32 15, %v3648_v24  ;;  %v18594_v24 = vld [vmem:[#allocation57_spill] sm:$0xff]  ;;  %v18596_v40 = vrot.slane %v18595_v13, 1  ;;  %v18599_v13 = vld [vmem:[#allocation11_spill] sm:$0xff] }
 0x3e9   :  { %10620 = vmatprep.mubr.msk.f32.mxu0 %vm2738_vm10, %v15849_v21  ;;  %vm4645_vm2 = vcmp.gt.s32.totalorder %v3951_v52, 0 }
 0x3ea   :  { %vm4643_vm0 = vcmp.gt.s32.totalorder %v3937_v60, 0  ;;  %v3652_v60 = vadd.s32 56, %v18366_v1 }
 0x3eb   :  { %10463 = vmatmul.mubr.msk.f32.gmra.mrb[56].mxu1 %vm2738_vm10, %v18582_v14  ;;  %v18590_v14 = vld [vmem:[#allocation66_spill] sm:$0xff]  ;;  %v4835_v26 = vsel %vm4643_vm0, %v18594_v24, 0.0 }
 0x3ec   :  { %10465 = vmatprep.mubr.msk.f32.mxu1 %vm2738_vm10, %v4829_v9  ;;  %v15865_v41 = vadd.f32 %v18590_v14, %v15048_v2  ;;  %v6155_v9 = vadd.s32 1, %v3720_v3  ;;  %v6152_v2 = vsel %vm6089_vm12, %v18344_v62, %v6026_v11  ;;  %v18593_v3 = vld [vmem:[#allocation53_spill] sm:$0xff]  ;;  %v6157_v14 = vadd.s32 1, %v3734_v48  ;;  %v18598_v24 = vld [vmem:[#allocation62_spill] sm:$0xff] }
 0x3ed   :  { %v3654_v48 = vadd.s32 72, %v18366_v1  ;;  %v3762_v52 = vand.u32 15, %v3652_v60  ;;  %v18602_v60 = vld [vmem:[#allocation6_spill] sm:$0xff] }
 0x3ee   :  { %10621 = vmatmul.mubr.msk.f32.gmra.mrb[92].mxu0 %vm2738_vm10, %v15865_v41  ;;  %vm6219_vm1 = vcmp.lt.s32.totalorder %v6155_v9, 16  ;;  %vm6221_vm3 = vcmp.lt.s32.totalorder %v6157_v14, 16  ;;  %v18601_v9 = vld [vmem:[#allocation65_spill] sm:$0xff] }
 0x3ef   :  { %10466 = vmatmul.mubr.msk.f32.gmra.mrb[58].mxu1 %vm2738_vm10, %v18586_v8  ;;  %v3650_v8 = vadd.s32 40, %v18366_v1  ;;  %10623 = vmatprep.mubr.msk.f32.mxu0 %vm2738_vm10, %v15438_v39 }
 0x3f0   :  { %10468 = vmatprep.mubr.msk.f32.mxu1 %vm2738_vm10, %v4831_v43  ;;  %v3681_v43 = vadd.s32 288, %v18366_v1 }
 0x3f2   :  { %10624 = vmatmul.mubr.msk.f32.gmra.mrb[94].mxu0 %vm2738_vm10, %v15258_v17  ;;  %v3965_v62 = vand.u32 15, %v3681_v43  ;;  %v18611_v17 = vld [vmem:[#allocation72_spill] sm:$0xff] }
 0x3f3   :  { %10469 = vmatmul.mubr.msk.f32.gmra.mrb[60].mxu1 %vm2738_vm10, %v18591_v12  ;;  %v3748_v12 = vand.u32 15, %v3650_v8  ;;  %10634 = vmatprep.mubr.msk.f32.mxu0 %vm2738_vm10, %v6152_v2  ;;  %v18597_v8 = vld [vmem:[#allocation59_spill] sm:$0xff]  ;;  %v3685_v2 = vadd.s32 320, %v18366_v1 }
 0x3f4   :  { %10471 = vmatprep.mubr.msk.f32.mxu1 %vm2738_vm10, %v4833_v59  ;;  %v6151_v59 = vsel %vm6089_vm12, %v6026_v11, %v18596_v40  ;;  %vm4647_vm4 = vcmp.gt.s32.totalorder %v3965_v62, 0  ;;  %v3776_v40 = vand.u32 15, %v3654_v48 }
 0x3f5   :  { %v6411_v25 = vsel %vm6219_vm1, %v6151_v59, 0.0  ;;  %v6159_v43 = vadd.s32 1, %v3748_v12  ;;  %v4839_v14 = vsel %vm4647_vm4, %v18601_v9, 0.0  ;;  %v6413_v59 = vsel %vm6221_vm3, %v18602_v60, 0.0  ;;  %v18607_v9 = vld [vmem:[#allocation14_spill] sm:$0xff] }
 0x3f6   :  { %10635 = vmatmul.mubr.msk.f32.vlgmr.msra.gmra.mrb[32].mxu0 %vm2738_vm10, %v6411_v25  ;;  %v3993_v62 = vand.u32 15, %v3685_v2  ;;  %v3687_v12 = vadd.s32 336, %v18366_v1  ;;  %v3689_v25 = vadd.s32 352, %v18366_v1 }
 0x3f7   :  { %10472 = vmatmul.mubr.msk.f32.gmra.mrb[62].mxu1 %vm2738_vm10, %v18593_v3  ;;  %v3683_v3 = vadd.s32 304, %v18366_v1  ;;  %10637 = vmatprep.mubr.msk.f32.mxu0 %vm2738_vm10, %v18599_v13  ;;  %vm6223_vm6 = vcmp.lt.s32.totalorder %v6159_v43, 16  ;;  %v18606_v13 = vld [vmem:[#allocation16_spill] sm:$0xff]  ;;  %v18610_v43 = vld [vmem:[#allocation71_spill] sm:$0xff] }
 0x3f8   :  { %10474 = vmatprep.mubr.msk.f32.mxu1 %vm2738_vm10, %v4835_v26  ;;  %v4837_v26 = vsel %vm4645_vm2, %v18598_v24, 0.0  ;;  %v18600_v24 = vld [vmem:[#allocation63_spill] sm:$0xff]  ;;  %vm15930_vm8 = vcmp.gt.s32.totalorder %v3993_v62, 0 }
 0x3f9   :  { %v3979_v11 = vand.u32 15, %v3683_v3  ;;  %v18605_v3 = vld [vmem:[#allocation18_spill] sm:$0xff] }
 0x3fa   :  { %10638 = vmatmul.mubr.msk.f32.gmra.mrb[34].mxu0 %vm2738_vm10, %v6413_v59  ;;  %v6034_v48 = vrot.slane %v18605_v3, 1  ;;  %v18608_v59 = vld [vmem:[#allocation19_spill] sm:$0xff]  ;;  %v6415_v3 = vsel %vm6223_vm6, %v18611_v17, 0.0 }
 0x3fb   :  { %10475 = vmatmul.mubr.msk.f32.gmra.mrb[64].mxu1 %vm2738_vm10, %v18597_v8  ;;  %v3656_v8 = vadd.s32 88, %v18366_v1  ;;  %vm15911_vm5 = vcmp.gt.s32.totalorder %v3979_v11, 0  ;;  %10640 = vmatprep.mubr.msk.f32.mxu0 %vm2738_vm10, %v18607_v9  ;;  %v6035_v11 = vrot.slane %v18608_v59, 1  ;;  %v4007_v9 = vand.u32 15, %v3687_v12  ;;  %v18616_v59 = vld [vmem:[#allocation74_spill] sm:$0xff] }
 0x3fc   :  { %10477 = vmatprep.mubr.msk.f32.mxu1 %vm2738_vm10, %v4837_v26  ;;  %v6161_v26 = vadd.s32 1, %v3762_v52  ;;  %v6163_v52 = vadd.s32 1, %v3776_v40  ;;  %v4841_v2 = vsel %vm15911_vm5, %v18610_v43, 0.0  ;;  %v4843_v12 = vsel %vm15930_vm8, %v15305_v28, 0.0 }
 0x3fd   :  { %v3790_v60 = vand.u32 15, %v3656_v8  ;;  %v18614_v8 = vld [vmem:[#allocation15_spill] sm:$0xff]  ;;  %vm4653_vm13 = vcmp.gt.s32.totalorder %v4007_v9, 0 }
 0x3fe   :  { %vm6225_vm7 = vcmp.lt.s32.totalorder %v6161_v26, 16  ;;  %10641 = vmatmul.mubr.msk.f32.gmra.mrb[36].mxu0 %vm2738_vm10, %v6415_v3  ;;  %vm6227_vm9 = vcmp.lt.s32.totalorder %v6163_v52, 16  ;;  %v18617_v3 = vld [vmem:[#allocation21_spill] sm:$0xff]  ;;  %v3662_v26 = vadd.s32 136, %v18366_v1 }
 0x3ff   :  { %10478 = vmatmul.mubr.msk.f32.gmra.mrb[66].mxu1 %vm2738_vm10, %v18600_v24  ;;  %v6033_v24 = vrot.slane %v18606_v13, 1  ;;  %v18615_v13 = vrot.slane %v18614_v8, 1  ;;  %10643 = vmatprep.mubr.msk.f32.mxu0 %vm2738_vm10, %v18616_v59  ;;  %v6165_v43 = vadd.s32 1, %v3790_v60  ;;  %v6036_v45 = vrot.slane %v18617_v3, 1  ;;  %v18618_v8 = vld [vmem:[#allocation75_spill] sm:$0xff] }
 0x400   :  { %10480 = vmatprep.mubr.msk.f32.mxu1 %vm2738_vm10, %v4839_v14  ;;  %v3658_v14 = vadd.s32 104, %v18366_v1  ;;  %v6143_v59 = vsel %vm6089_vm12, %v6034_v48, %v6035_v11  ;;  %v4021_v60 = vand.u32 15, %v3689_v25 }
 0x401   :  { %v6144_v17 = vsel %vm6089_vm12, %v6033_v24, %v6034_v48  ;;  %vm6229_vm14 = vcmp.lt.s32.totalorder %v6165_v43, 16  ;;  %v6419_v48 = vsel %vm6227_vm9, %v6143_v59, 0.0  ;;  %v6142_v9 = vsel %vm6089_vm12, %v6035_v11, %v6036_v45 }
 0x402   :  { %v3804_v62 = vand.u32 15, %v3658_v14  ;;  %v3691_v14 = vadd.s32 368, %v18366_v1  ;;  %vm4655_vm15 = vcmp.gt.s32.totalorder %v4021_v60, 0  ;;  %v3666_v60 = vadd.s32 168, %v18366_v1 }
 0x403   :  { %10481 = vmatmul.mubr.msk.f32.gmra.mrb[68].mxu1 %vm2738_vm10, %v18609_v31  ;;  %v6145_v31 = vsel %vm6089_vm12, %v18615_v13, %v6033_v24  ;;  %v6037_v24 = vrot.slane %v18566_v38, 1  ;;  %v4845_v38 = vsel %vm4653_vm13, %v15320_v16, 0.0  ;;  %v3832_v16 = vand.u32 15, %v3662_v26 }
 0x404   :  { %10483 = vmatprep.mubr.msk.f32.mxu1 %vm2738_vm10, %v4841_v2  ;;  %v3660_v2 = vadd.s32 120, %v18366_v1  ;;  %v6417_v13 = vsel %vm6225_vm7, %v6145_v31, 0.0  ;;  %v6167_v40 = vadd.s32 1, %v3804_v62  ;;  %v6038_v31 = vrot.slane %v18561_v7, 1 }
 0x405   :  { %10644 = vmatmul.mubr.msk.f32.gmra.mrb[38].mxu0 %vm2738_vm10, %v6417_v13  ;;  %v6141_v25 = vsel %vm6089_vm12, %v6036_v45, %v6037_v24  ;;  %v3693_v7 = vadd.s32 384, %v18366_v1  ;;  %v4847_v52 = vsel %vm4655_vm15, %v15330_v37, 0.0  ;;  %v3664_v45 = vadd.s32 152, %v18366_v1 }
 0x406   :  { %10646 = vmatprep.mubr.msk.f32.mxu0 %vm2738_vm10, %v6144_v17  ;;  %v3818_v28 = vand.u32 15, %v3660_v2  ;;  %v4035_v17 = vand.u32 15, %v3691_v14  ;;  %vm6231_vm0 = vcmp.lt.s32.totalorder %v6167_v40, 16  ;;  %v6421_v11 = vsel %vm6229_vm14, %v6141_v25, 0.0  ;;  %v18622_v14 = vld [vmem:[#allocation46_spill] sm:$0xff] }
 0x407   :  { %10484 = vmatmul.mubr.msk.f32.gmra.mrb[70].mxu1 %vm2738_vm10, %v18618_v8  ;;  %v6140_v62 = vsel %vm6089_vm12, %v6037_v24, %v6038_v31  ;;  %v18619_v2 = vrot.slane %v14731_v34, 1  ;;  %v3695_v37 = vadd.s32 400, %v18366_v1  ;;  %v6171_v43 = vadd.s32 1, %v3832_v16  ;;  %v18620_v8 = vld [vmem:[#allocation76_spill] sm:$0xff] }
 0x408   :  { %10486 = vmatprep.mubr.msk.f32.mxu1 %vm2738_vm10, %v4843_v12  ;;  %vm4657_vm1 = vcmp.gt.s32.totalorder %v4035_v17, 0  ;;  %v3846_v59 = vand.u32 15, %v3664_v45  ;;  %v3697_v24 = vadd.s32 416, %v18366_v1  ;;  %v3670_v25 = vadd.s32 200, %v18366_v1  ;;  %v18624_v17 = vld [vmem:[#allocation78_spill] sm:$0xff] }
 0x409   :  { %10647 = vmatmul.mubr.msk.f32.gmra.mrb[40].mxu0 %vm2738_vm10, %v6419_v48  ;;  %v6139_v3 = vsel %vm6089_vm12, %v6038_v31, %v18619_v2  ;;  %v4849_v12 = vsel %vm4657_vm1, %v18620_v8, 0.0  ;;  %v4063_v34 = vand.u32 15, %v3695_v37  ;;  %vm6235_vm4 = vcmp.lt.s32.totalorder %v6171_v43, 16  ;;  %v18626_v2 = vld [vmem:[#allocation79_spill] sm:$0xff]  ;;  %v18629_v8 = vld [vmem:[#allocation12_spill] sm:$0xff] }
 0x40a   :  { %10649 = vmatprep.mubr.msk.f32.mxu0 %vm2738_vm10, %v6142_v9  ;;  %v6423_v13 = vsel %vm6231_vm0, %v6139_v3, 0.0  ;;  %v6173_v31 = vadd.s32 1, %v3846_v59  ;;  %v4077_v48 = vand.u32 15, %v3697_v24  ;;  %v3699_v9 = vadd.s32 432, %v18366_v1  ;;  %v18630_v59 = vld [vmem:[#allocation49_spill] sm:$0xff] }
 0x40b   :  { %10487 = vmatmul.mubr.msk.f32.gmra.mrb[72].mxu1 %vm2738_vm10, %v15309_v30  ;;  %v6169_v30 = vadd.s32 1, %v3818_v28  ;;  %v18623_v28 = vld [vmem:[#allocation77_spill] sm:$0xff]  ;;  %vm4661_vm5 = vcmp.gt.s32.totalorder %v4063_v34, 0  ;;  %v3703_v37 = vadd.s32 464, %v18366_v1  ;;  %v18631_v34 = vld [vmem:[#allocation51_spill] sm:$0xff] }
 0x40c   :  { %10489 = vmatprep.mubr.msk.f32.mxu1 %vm2738_vm10, %v4845_v38  ;;  %v3668_v38 = vadd.s32 184, %v18366_v1  ;;  %vm6237_vm6 = vcmp.lt.s32.totalorder %v6173_v31, 16  ;;  %vm4663_vm7 = vcmp.gt.s32.totalorder %v4077_v48, 0 }
 0x40d   :  { %10650 = vmatmul.mubr.msk.f32.gmra.mrb[42].mxu0 %vm2738_vm10, %v6421_v11  ;;  %vm6233_vm2 = vcmp.lt.s32.totalorder %v6169_v30, 16  ;;  %v6427_v30 = vsel %vm6235_vm4, %v15406_v53, 0.0  ;;  %v18625_v53 = vld [vmem:[#allocation10_spill] sm:$0xff]  ;;  %v6429_v3 = vsel %vm6237_vm6, %v18626_v2, 0.0  ;;  %v3707_v2 = vadd.s32 496, %v18366_v1 }
 0x40e   :  { %10652 = vmatprep.mubr.msk.f32.mxu0 %vm2738_vm10, %v6140_v62  ;;  %v6425_v26 = vsel %vm6233_vm2, %v18623_v28, 0.0  ;;  %v3874_v16 = vand.u32 15, %v3668_v38  ;;  %v3672_v62 = vadd.s32 216, %v18366_v1  ;;  %v4855_v45 = vsel %vm4663_vm7, %v18625_v53, 0.0  ;;  %v9769_v28 = vld [vmem:[%s18281_s3 + $0x38] sm:$0xff] }
 0x40f   :  { %10490 = vmatmul.mubr.msk.f32.gmra.mrb[74].mxu1 %vm2738_vm10, %v15324_v10  ;;  %v4049_v10 = vand.u32 15, %v3693_v7  ;;  %v4853_v7 = vsel %vm4661_vm5, %v18624_v17, 0.0  ;;  %v3705_v38 = vadd.s32 480, %v18366_v1 }
 0x410   :  { %10492 = vmatprep.mubr.msk.f32.mxu1 %vm2738_vm10, %v4847_v52  ;;  %v4091_v52 = vand.u32 15, %v3699_v9  ;;  %v18635_v9 = vld [vmem:[#allocation81_spill] sm:$0xff] }
 0x411   :  { %10653 = vmatmul.mubr.msk.f32.gmra.mrb[44].mxu0 %vm2738_vm10, %v6423_v13  ;;  %vm4659_vm3 = vcmp.gt.s32.totalorder %v4049_v10, 0  ;;  %v6177_v10 = vadd.s32 1, %v3874_v16  ;;  %v3674_v13 = vadd.s32 232, %v18366_v1 }
 0x412   :  { %10655 = vmatprep.mubr.msk.f32.mxu0 %vm2738_vm10, %v15354_v42  ;;  %v4851_v40 = vsel %vm4659_vm3, %v18622_v14, 0.0  ;;  %v3860_v42 = vand.u32 15, %v3666_v60  ;;  %vm16026_vm8 = vcmp.gt.s32.totalorder %v4091_v52, 0  ;;  %v18632_v60 = vld [vmem:[#allocation80_spill] sm:$0xff]  ;;  %v4119_v14 = vand.u32 15, %v3703_v37 }
 0x413   :  { %10493 = vmatmul.mubr.msk.f32.gmra.mrb[76].mxu1 %vm2738_vm10, %v15334_v47  ;;  %v18621_v47 = vld [vmem:[#allocation35_spill] sm:$0xff]  ;;  %v4857_v24 = vsel %vm16026_vm8, %v18631_v34, 0.0  ;;  %vm6241_vm13 = vcmp.lt.s32.totalorder %v6177_v10, 16  ;;  %v3916_v17 = vand.u32 15, %v3674_v13  ;;  %v18638_v52 = vld [vmem:[#allocation84_spill] sm:$0xff]  ;;  %v4541_v10 = vrot.slane %v15845_v36, 7 }
 0x414   :  { %10495 = vmatprep.mubr.msk.f32.mxu1 %vm2738_vm10, %v4849_v12  ;;  %v6175_v11 = vadd.s32 1, %v3860_v42  ;;  %v3902_v12 = vand.u32 15, %v3672_v62  ;;  %v4539_v42 = vrot.slane %v15827_v44, 7  ;;  %vm16063_vm0 = vcmp.gt.s32.totalorder %v4119_v14, 0 }
 0x415   :  { %10656 = vmatmul.mubr.msk.f32.gmra.mrb[46].mxu0 %vm2738_vm10, %v6425_v26  ;;  %v4540_v26 = vrot.slane %v15832_v19, 7  ;;  %v4542_v62 = vrot.slane %v15849_v21, 7  ;;  %v18642_v37 = vrot.slane %v15343_v54, 7  ;;  %v6183_v13 = vadd.s32 1, %v3916_v17  ;;  %v18647_v17 = vld [vmem:[#allocation58_spill] sm:$0xff] }
 0x416   :  { %10658 = vmatprep.mubr.msk.f32.mxu0 %vm2738_vm10, %v15390_v5  ;;  %v3701_v5 = vadd.s32 448, %v18366_v1  ;;  %vm6239_vm9 = vcmp.lt.s32.totalorder %v6175_v11, 16  ;;  %v6433_v11 = vsel %vm6241_vm13, %v18638_v52, 0.0  ;;  %v4543_v14 = vrot.slane %v15865_v41, 7 }
 0x417   :  { %10496 = vmatmul.mubr.msk.f32.gmra.mrb[78].mxu1 %vm2738_vm10, %v18621_v47  ;;  %v6431_v47 = vsel %vm6239_vm9, %v18632_v60, 0.0  ;;  %v4552_v53 = vsel %vm4546_vm11, %v4539_v42, %v4540_v26  ;;  %v4553_v43 = vsel %vm4546_vm11, %v18642_v37, %v4539_v42  ;;  %v4550_v34 = vsel %vm4546_vm11, %v4541_v10, %v4542_v62  ;;  %v18650_v37 = vld [vmem:[#allocation37_spill] sm:$0xff] }
 0x418   :  { %10498 = vmatprep.mubr.msk.f32.mxu1 %vm2738_vm10, %v4851_v40  ;;  %v9768_v40 = vld [vmem:[%s18281_s3 + $0x30] sm:$0xff]  ;;  %v3678_v60 = vadd.s32 264, %v18366_v1  ;;  %vm6247_vm3 = vcmp.lt.s32.totalorder %v6183_v13, 16 }
 0x419   :  { %10659 = vmatmul.mubr.msk.f32.gmra.mrb[48].mxu0 %vm2738_vm10, %v6427_v30  ;;  %v10982_v48 = vpack.c.bf16 %v9769_v28, %v9768_v40  ;;  %v18637_v30 = vld [vmem:[#allocation83_spill] sm:$0xff] }
 0x41a   :  { %10661 = vmatprep.mubr.msk.f32.mxu0 %vm2738_vm10, %v15414_v35  ;;  %v4105_v35 = vand.u32 15, %v3701_v5  ;;  %v18645_v28 = vld [vmem:[#allocation67_spill] sm:$0xff]  ;;  %v3944_v42 = vand.u32 15, %v3678_v60 }
 0x41b   :  { %10499 = vmatmul.mubr.msk.f32.gmra.mrb[80].mxu1 %vm2738_vm10, %v15394_v6  ;;  %v3888_v6 = vand.u32 15, %v3670_v25  ;;  %v6181_v25 = vadd.s32 1, %v3902_v12  ;;  %10983 = vmatprep.subr.bf16.mxu1 %v10982_v48 }
 0x41c   :  { %10501 = vmatprep.mubr.msk.f32.mxu1 %vm2738_vm10, %v4853_v7  ;;  %vm16048_vm14 = vcmp.gt.s32.totalorder %v4105_v35, 0  ;;  %v18636_v7 = vld [vmem:[#allocation82_spill] sm:$0xff]  ;;  %10985 = vmatpush3.bf16.msra.mxu1 %v10982_v48  ;;  %v4861_v35 = vsel %vm16063_vm0, %v4552_v53, 0.0  ;;  %v18646_v48 = vrot.slane %v15438_v39, 7 }
 0x41d   :  { %10662 = vmatmul.mubr.msk.f32.gmra.mrb[50].mxu0 %vm2738_vm10, %v6429_v3  ;;  %v4859_v16 = vsel %vm16048_vm14, %v18637_v30, 0.0  ;;  %v18641_v3 = vld [vmem:[#allocation13_spill] sm:$0xff]  ;;  %vm6245_vm1 = vcmp.lt.s32.totalorder %v6181_v25, 16  ;;  %v4549_v25 = vsel %vm4546_vm11, %v4542_v62, %v4543_v14  ;;  %v6439_v30 = vsel %vm6247_vm3, %v15579_v56, 0.0 }
 0x41e   :  { %10664 = vmatprep.mubr.msk.f32.mxu0 %vm2738_vm10, %v18629_v8  ;;  %v18643_v8 = vld [vmem:[#allocation29_spill] sm:$0xff]  ;;  %v6437_v31 = vsel %vm6245_vm1, %v18645_v28, 0.0  ;;  %v3684_v62 = vadd.s32 312, %v18366_v1 }
 0x41f   :  { %10502 = vmatmul.mubr.msk.f32.gmra.mrb[82].mxu1 %vm2738_vm10, %v15418_v50  ;;  %v6179_v50 = vadd.s32 1, %v3888_v6  ;;  %v3676_v6 = vadd.s32 248, %v18366_v1 }
 0x420   :  { %10504 = vmatprep.mubr.msk.f32.mxu1 %vm2738_vm10, %v4855_v45  ;;  %v4133_v45 = vand.u32 15, %v3705_v38  ;;  %v3680_v38 = vadd.s32 280, %v18366_v1 }
 0x421   :  { %10665 = vmatmul.mubr.msk.f32.gmra.mrb[52].mxu0 %vm2738_vm10, %v6431_v47  ;;  %vm6243_vm15 = vcmp.lt.s32.totalorder %v6179_v50, 16  ;;  %v18644_v47 = vld [vmem:[#allocation85_spill] sm:$0xff]  ;;  %v4551_v50 = vsel %vm4546_vm11, %v4540_v26, %v4541_v10 }
 0x422   :  { %10667 = vmatprep.mubr.msk.f32.mxu0 %vm2738_vm10, %v18635_v9  ;;  %v6435_v12 = vsel %vm6243_vm15, %v18643_v8, 0.0  ;;  %vm4671_vm2 = vcmp.gt.s32.totalorder %v4133_v45, 0  ;;  %v4548_v9 = vsel %vm4546_vm11, %v4543_v14, %v18646_v48  ;;  %v3958_v52 = vand.u32 15, %v3680_v38 }
 0x423   :  { %10505 = vmatmul.mubr.msk.f32.gmra.mrb[84].mxu1 %vm2738_vm10, %v18630_v59  ;;  %v3930_v59 = vand.u32 15, %v3676_v6  ;;  %v4863_v40 = vsel %vm4671_vm2, %v4550_v34, 0.0  ;;  %v3986_v45 = vand.u32 15, %v3684_v62  ;;  %v3706_v62 = vadd.s32 488, %v18366_v1 }
 0x424   :  { %10507 = vmatprep.mubr.msk.f32.mxu1 %vm2738_vm10, %v4857_v24  ;;  %v4147_v24 = vand.u32 15, %v3707_v2  ;;  %v6189_v56 = vadd.s32 1, %v3958_v52 }
 0x425   :  { %10668 = vmatmul.mubr.msk.f32.gmra.mrb[54].mxu0 %vm2738_vm10, %v6433_v11  ;;  %v6185_v26 = vadd.s32 1, %v3930_v59  ;;  %v3682_v11 = vadd.s32 296, %v18366_v1 }
 0x426   :  { %10670 = vmatprep.mubr.msk.f32.mxu0 %vm2738_vm10, %v18641_v3  ;;  %vm4673_vm4 = vcmp.gt.s32.totalorder %v4147_v24, 0  ;;  %vm6253_vm6 = vcmp.lt.s32.totalorder %v6189_v56, 16  ;;  %v6193_v3 = vadd.s32 1, %v3986_v45  ;;  %v3692_v24 = vadd.s32 376, %v18366_v1 }
 0x427   :  { %10508 = vmatmul.mubr.msk.f32.gmra.mrb[86].mxu1 %vm2738_vm10, %v18636_v7  ;;  %v4865_v7 = vsel %vm4673_vm4, %v4548_v9, 0.0  ;;  %vm6249_vm5 = vcmp.lt.s32.totalorder %v6185_v26, 16  ;;  %v3972_v6 = vand.u32 15, %v3682_v11  ;;  %v6445_v2 = vsel %vm6253_vm6, %v15636_v32, 0.0  ;;  %v18651_v32 = vld [vmem:[#allocation70_spill] sm:$0xff] }
 0x428   :  { %10510 = vmatprep.mubr.msk.f32.mxu1 %vm2738_vm10, %v4859_v16  ;;  %v6187_v16 = vadd.s32 1, %v3944_v42  ;;  %v6441_v5 = vsel %vm6249_vm5, %v15616_v51, 0.0  ;;  %v18648_v51 = vld [vmem:[#allocation64_spill] sm:$0xff]  ;;  %vm6257_vm8 = vcmp.lt.s32.totalorder %v6193_v3, 16  ;;  %v4042_v14 = vand.u32 15, %v3692_v24 }
 0x429   :  { %10671 = vmatmul.mubr.msk.f32.gmra.mrb[56].mxu0 %vm2738_vm10, %v6435_v12  ;;  %v3690_v12 = vadd.s32 360, %v18366_v1  ;;  %v6449_v13 = vsel %vm6257_vm8, %v18651_v32, 0.0  ;;  %v3698_v42 = vadd.s32 424, %v18366_v1  ;;  %v3704_v11 = vadd.s32 472, %v18366_v1 }
 0x42a   :  { %10673 = vmatprep.mubr.msk.f32.mxu0 %vm2738_vm10, %v18644_v47  ;;  %vm6251_vm11 = vcmp.lt.s32.totalorder %v6187_v16, 16 }
 0x42b   :  { %10511 = vmatmul.mubr.msk.f32.gmra.mrb[88].mxu1 %vm2738_vm10, %v4553_v43  ;;  %v6443_v53 = vsel %vm6251_vm11, %v15627_v55, 0.0  ;;  %v18649_v55 = vld [vmem:[#allocation31_spill] sm:$0xff]  ;;  %v4028_v34 = vand.u32 15, %v3690_v12  ;;  %v4126_v56 = vand.u32 15, %v3704_v11  ;;  %v18657_v12 = vld [vmem:[#allocation73_spill] sm:$0xff] }
 0x42c   :  { %10513 = vmatprep.mubr.msk.f32.mxu1 %vm2738_vm10, %v4861_v35  ;;  %v6088_v32 = vrot.slane %v18657_v12, 1 }
 0x42d   :  { %10674 = vmatmul.mubr.msk.f32.gmra.mrb[58].mxu0 %vm2738_vm10, %v6437_v31  ;;  %v6199_v47 = vadd.s32 1, %v4028_v34  ;;  %v6201_v31 = vadd.s32 1, %v4042_v14  ;;  %v18658_v34 = vld [vmem:[#allocation7_spill] sm:$0xff] }
 0x42e   :  { %10676 = vmatprep.mubr.msk.f32.mxu0 %vm2738_vm10, %v18647_v17  ;;  %v18659_v24 = vrot.slane %v18658_v34, 1 }
 0x42f   :  { %10514 = vmatmul.mubr.msk.f32.gmra.mrb[90].mxu1 %vm2738_vm10, %v4551_v50  ;;  %v18652_v50 = vld [vmem:[#allocation17_spill] sm:$0xff]  ;;  %vm6263_vm14 = vcmp.lt.s32.totalorder %v6199_v47, 16  ;;  %vm6265_vm15 = vcmp.lt.s32.totalorder %v6201_v31, 16 }
 0x430   :  { %10516 = vmatprep.mubr.msk.f32.mxu1 %vm2738_vm10, %v4863_v40  ;;  %v18653_v40 = vld [vmem:[#allocation43_spill] sm:$0xff]  ;;  %v6457_v17 = vsel %vm6265_vm15, %v15712_v33, 0.0 }
 0x431   :  { %10677 = vmatmul.mubr.msk.f32.gmra.mrb[60].mxu0 %vm2738_vm10, %v6439_v30  ;;  %v3702_v30 = vadd.s32 456, %v18366_v1 }
 0x432   :  { %10679 = vmatprep.mubr.msk.f32.mxu0 %vm2738_vm10, %v15587_v57  ;;  %v6191_v57 = vadd.s32 1, %v3972_v6 }
 0x433   :  { %10517 = vmatmul.mubr.msk.f32.gmra.mrb[92].mxu1 %vm2738_vm10, %v4549_v25  ;;  %v4112_v33 = vand.u32 15, %v3702_v30 }
 0x434   :  { %10519 = vmatprep.mubr.msk.f32.mxu1 %vm2738_vm10, %v4865_v7  ;;  %vm6255_vm7 = vcmp.lt.s32.totalorder %v6191_v57, 16  ;;  %v4084_v7 = vand.u32 15, %v3698_v42  ;;  %v18655_v57 = vld [vmem:[#allocation34_spill] sm:$0xff] }
 0x435   :  { %10680 = vmatmul.mubr.msk.f32.gmra.mrb[62].mxu0 %vm2738_vm10, %v6441_v5  ;;  %v6447_v43 = vsel %vm6255_vm7, %v18650_v37, 0.0 }
 0x436   :  { %10682 = vmatprep.mubr.msk.f32.mxu0 %vm2738_vm10, %v15623_v23  ;;  %v3688_v23 = vadd.s32 344, %v18366_v1 }
 0x437   :  { %10520 = vmatmul.mubr.msk.f32.gmra.mrb[94].mxu1 %vm2738_vm10, %v15610_v27  ;;  %v3686_v27 = vadd.s32 328, %v18366_v1 }
 0x438   :  { %v4014_v8 = vand.u32 15, %v3688_v23 }
 0x439   :  { %10683 = vmatmul.mubr.msk.f32.gmra.mrb[64].mxu0 %vm2738_vm10, %v6443_v53  ;;  %v4000_v10 = vand.u32 15, %v3686_v27  ;;  %v6083_v53 = vrot.slane %v15832_v19, 1  ;;  %v4140_v27 = vand.u32 15, %v3706_v62  ;;  %v7185_v19 = vld [vmem:[%s18281_s3 + $0x8] sm:$0xff] }
 0x43a   :  { %10685 = vmatprep.mubr.msk.f32.mxu0 %vm2738_vm10, %v18648_v51  ;;  %v6197_v59 = vadd.s32 1, %v4014_v8  ;;  %v6085_v51 = vrot.slane %v15849_v21, 1 }
 0x43b   :  { %v6195_v35 = vadd.s32 1, %v4000_v10  ;;  %v6215_v23 = vadd.s32 1, %v4140_v27 }
 0x43c   :  { %vm6261_vm13 = vcmp.lt.s32.totalorder %v6197_v59, 16 }
 0x43d   :  { %10686 = vmatmul.mubr.msk.f32.gmra.mrb[66].mxu0 %vm2738_vm10, %v6445_v2  ;;  %vm6259_vm9 = vcmp.lt.s32.totalorder %v6195_v35, 16  ;;  %v6453_v28 = vsel %vm6261_vm13, %v18653_v40, 0.0  ;;  %vm6279_vm11 = vcmp.lt.s32.totalorder %v6215_v23, 16 }
 0x43e   :  { %10688 = vmatprep.mubr.msk.f32.mxu0 %vm2738_vm10, %v18649_v55  ;;  %v6451_v60 = vsel %vm6259_vm9, %v15676_v63, 0.0  ;;  %v18654_v63 = vld [vmem:[#allocation56_spill] sm:$0xff]  ;;  %v6086_v55 = vrot.slane %v15865_v41, 1 }
 0x43f   :  { %v6455_v48 = vsel %vm6263_vm14, %v18654_v63, 0.0 }
 0x440   :  { %v6092_v41 = vsel %vm6089_vm12, %v6085_v51, %v6086_v55 }
 0x441   :  { %10689 = vmatmul.mubr.msk.f32.gmra.mrb[68].mxu0 %vm2738_vm10, %v6447_v43 }
 0x442   :  { %10691 = vmatprep.mubr.msk.f32.mxu0 %vm2738_vm10, %v15652_v22  ;;  %v3694_v22 = vadd.s32 392, %v18366_v1 }
 0x444   :  { %v4056_v38 = vand.u32 15, %v3694_v22 }
 0x445   :  { %10692 = vmatmul.mubr.msk.f32.gmra.mrb[70].mxu0 %vm2738_vm10, %v6449_v13 }
 0x446   :  { %10694 = vmatprep.mubr.msk.f32.mxu0 %vm2738_vm10, %v15670_v29  ;;  %v3696_v29 = vadd.s32 408, %v18366_v1  ;;  %v6203_v9 = vadd.s32 1, %v4056_v38 }
 0x448   :  { %v4070_v26 = vand.u32 15, %v3696_v29  ;;  %vm6267_vm0 = vcmp.lt.s32.totalorder %v6203_v9, 16 }
 0x449   :  { %10695 = vmatmul.mubr.msk.f32.gmra.mrb[72].mxu0 %vm2738_vm10, %v6451_v60  ;;  %v6459_v16 = vsel %vm6267_vm0, %v15723_v18, 0.0  ;;  %v6211_v18 = vadd.s32 1, %v4112_v33  ;;  %v6153_v60 = vsel %vm6089_vm12, %v6088_v32, %v18659_v24 }
 0x44a   :  { %10697 = vmatprep.mubr.msk.f32.mxu0 %vm2738_vm10, %v18652_v50  ;;  %v6205_v25 = vadd.s32 1, %v4070_v26 }
 0x44b   :  { %vm6275_vm4 = vcmp.lt.s32.totalorder %v6211_v18, 16 }
 0x44c   :  { %vm6269_vm1 = vcmp.lt.s32.totalorder %v6205_v25, 16 }
 0x44d   :  { %10698 = vmatmul.mubr.msk.f32.gmra.mrb[74].mxu0 %vm2738_vm10, %v6453_v28  ;;  %v6461_v5 = vsel %vm6269_vm1, %v15735_v0, 0.0  ;;  %v6213_v0 = vadd.s32 1, %v4126_v56 }
 0x44e   :  { %10700 = vmatprep.mubr.msk.f32.mxu0 %vm2738_vm10, %v15691_v49  ;;  %v3700_v49 = vadd.s32 440, %v18366_v1 }
 0x44f   :  { %vm6277_vm5 = vcmp.lt.s32.totalorder %v6213_v0, 16 }
 0x450   :  { %v4098_v52 = vand.u32 15, %v3700_v49 }
 0x451   :  { %10701 = vmatmul.mubr.msk.f32.gmra.mrb[76].mxu0 %vm2738_vm10, %v6455_v48 }
 0x452   :  { %10703 = vmatprep.mubr.msk.f32.mxu0 %vm2738_vm10, %v15708_v58  ;;  %v6207_v58 = vadd.s32 1, %v4084_v7 }
 0x454   :  { %vm6271_vm2 = vcmp.lt.s32.totalorder %v6207_v58, 16 }
 0x455   :  { %10704 = vmatmul.mubr.msk.f32.gmra.mrb[78].mxu0 %vm2738_vm10, %v6457_v17  ;;  %v6463_v6 = vsel %vm6271_vm2, %v15743_v15, 0.0  ;;  %v3708_v15 = vadd.s32 504, %v18366_v1 }
 0x456   :  { %10706 = vmatprep.mubr.msk.f32.mxu0 %vm2738_vm10, %v15719_v46  ;;  %v6209_v46 = vadd.s32 1, %v4098_v52 }
 0x457   :  { %v4154_v21 = vand.u32 15, %v3708_v15 }
 0x458   :  { %vm6273_vm3 = vcmp.lt.s32.totalorder %v6209_v46, 16 }
 0x459   :  { %10707 = vmatmul.mubr.msk.f32.gmra.mrb[80].mxu0 %vm2738_vm10, %v6459_v16  ;;  %v6465_v45 = vsel %vm6273_vm3, %v18655_v57, 0.0  ;;  %v6217_v8 = vadd.s32 1, %v4154_v21 }
 0x45a   :  { %10709 = vmatprep.mubr.msk.f32.mxu0 %vm2738_vm10, %v15727_v61  ;;  %v6082_v61 = vrot.slane %v15827_v44, 1  ;;  %v7184_v44 = vld [vmem:[%s18281_s3] sm:$0xff] }
 0x45b   :  { %v16198_v3 = vpack.c.bf16 %v7185_v19, %v7184_v44  ;;  %vm6281_vm6 = vcmp.lt.s32.totalorder %v6217_v8, 16 }
 0x45c   :  { %v6095_v2 = vsel %vm6089_vm12, %v6082_v61, %v6083_v53  ;;  %v6473_v47 = vsel %vm6281_vm6, %v6153_v60, 0.0 }
 0x45d   :  { %10710 = vmatmul.mubr.msk.f32.gmra.mrb[82].mxu0 %vm2738_vm10, %v6461_v5  ;;  %10987 = vmatprep.subr.bf16.mxu1 %v16198_v3  ;;  %v6467_v10 = vsel %vm6275_vm4, %v6095_v2, 0.0 }
 0x45e   :  { %10712 = vmatprep.mubr.msk.f32.mxu0 %vm2738_vm10, %v15739_v4  ;;  %v6084_v4 = vrot.slane %v15845_v36, 1 }
 0x460   :  { %v6094_v37 = vsel %vm6089_vm12, %v6083_v53, %v6084_v4  ;;  %v6093_v43 = vsel %vm6089_vm12, %v6084_v4, %v6085_v51 }
 0x461   :  { %10713 = vmatmul.mubr.msk.f32.gmra.mrb[84].mxu0 %vm2738_vm10, %v6463_v6  ;;  %v6469_v35 = vsel %vm6277_vm5, %v6093_v43, 0.0 }
 0x462   :  { %10715 = vmatprep.mubr.msk.f32.mxu0 %vm2738_vm10, %v15749_v20  ;;  %v18656_v20 = vrot.slane %v15343_v54, 1  ;;  %v6087_v54 = vrot.slane %v15438_v39, 1 }
 0x464   :  { %v6096_v36 = vsel %vm6089_vm12, %v18656_v20, %v6082_v61  ;;  %v6091_v39 = vsel %vm6089_vm12, %v6086_v55, %v6087_v54  ;;  %v6090_v59 = vsel %vm6089_vm12, %v6087_v54, %v6088_v32 }
 0x465   :  { %10716 = vmatmul.mubr.msk.f32.gmra.mrb[86].mxu0 %vm2738_vm10, %v6465_v45  ;;  %v6471_v13 = vsel %vm6279_vm11, %v6091_v39, 0.0 }
 0x466   :  { %10718 = vmatprep.mubr.msk.f32.mxu0 %vm2738_vm10, %v6096_v36 }
 0x469   :  { %10719 = vmatmul.mubr.msk.f32.gmra.mrb[88].mxu0 %vm2738_vm10, %v6467_v10 }
 0x46a   :  { %10721 = vmatprep.mubr.msk.f32.mxu0 %vm2738_vm10, %v6094_v37 }
 0x46d   :  { %10722 = vmatmul.mubr.msk.f32.gmra.mrb[90].mxu0 %vm2738_vm10, %v6469_v35 }
 0x46e   :  { %10724 = vmatprep.mubr.msk.f32.mxu0 %vm2738_vm10, %v6092_v41 }
 0x471   :  { %10725 = vmatmul.mubr.msk.f32.gmra.mrb[92].mxu0 %vm2738_vm10, %v6471_v13 }
 0x472   :  { %10727 = vmatprep.mubr.msk.f32.mxu0 %vm2738_vm10, %v6090_v59 }
 0x475   :  { %10728 = vmatmul.mubr.msk.f32.gmra.mrb[94].mxu0 %vm2738_vm10, %v6473_v47 }
 0x483   :  { %v10428_v14 = vpop.f32.mrb[32].mxu1 }
 0x484   :  { %v5129_v22 = vpop.f32.mrb[33].mxu1 }
 0x487   :  { %v10431_v50 = vpop.f32.mrb[34].mxu1 }
 0x488   :  { %v5139_v40 = vpop.f32.mrb[35].mxu1 }
 0x48c   :  { %v10434_v28 = vpop.f32.mrb[36].mxu1 }
 0x48d   :  { %v5149_v31 = vpop.f32.mrb[37].mxu1 }
 0x491   :  { %v10437_v38 = vpop.f32.mrb[38].mxu1 }
 0x492   :  { %v5159_v29 = vpop.f32.mrb[39].mxu1 }
 0x49a   :  { %v10440_v63 = vpop.f32.mrb[40].mxu1 }
 0x49b   :  { %v5169_v48 = vpop.f32.mrb[41].mxu1 }
 0x4a0   :  { %v10443_v9 = vpop.f32.mrb[42].mxu1 }
 0x4a1   :  { %v5179_v26 = vpop.f32.mrb[43].mxu1 }
 0x4a6   :  { %v16226_v42 = vpop.f32.mrb[44].mxu1 }
 0x4a7   :  { %v16228_v17 = vpop.f32.mrb[45].mxu1 }
 0x4aa   :  { %v16230_v25 = vpop.f32.mrb[46].mxu1 }
 0x4ab   :  { %v16232_v7 = vpop.f32.mrb[47].mxu1 }
 0x4ae   :  { %v16234_v49 = vpop.f32.mrb[48].mxu1 }
 0x4af   :  { %v16236_v30 = vpop.f32.mrb[49].mxu1 }
 0x4b2   :  { %v16238_v16 = vpop.f32.mrb[50].mxu1 }
 0x4b3   :  { %v16240_v58 = vpop.f32.mrb[51].mxu1 }
 0x4b6   :  { %v16242_v52 = vpop.f32.mrb[52].mxu1 }
 0x4b7   :  { %v16244_v33 = vpop.f32.mrb[53].mxu1 }
 0x4ba   :  { %v16246_v11 = vpop.f32.mrb[54].mxu1 }
 0x4bb   :  { %v16248_v5 = vpop.f32.mrb[55].mxu1 }
 0x4be   :  { %v16250_v46 = vpop.f32.mrb[56].mxu1 }
 0x4bf   :  { %v16252_v18 = vpop.f32.mrb[57].mxu1 }
 0x4c2   :  { %v16254_v56 = vpop.f32.mrb[58].mxu1 }
 0x4c3   :  { %v16256_v6 = vpop.f32.mrb[59].mxu1 }
 0x4c6   :  { %v16258_v62 = vpop.f32.mrb[60].mxu1 }
 0x4c7   :  { %v16260_v61 = vpop.f32.mrb[61].mxu1 }
 0x4c9   :  { %v10636_v45 = vpop.f32.mrb[32].mxu0 }
 0x4ca   :  { %v16262_v53 = vpop.f32.mrb[62].mxu1  ;;  %v16270_v27 = vadd.f32 %v10636_v45, %v10428_v14  ;;  %v6737_v15 = vpop.f32.mrb[33].mxu0  ;;  %v7186_v14 = vld [vmem:[%s18281_s3 + $0x10] sm:$0xff] }
 0x4cb   :  { %v16264_v0 = vpop.f32.mrb[63].mxu1  ;;  %v16272_v44 = vadd.f32 %v6737_v15, %v5129_v22  ;;  %v7187_v22 = vld [vmem:[%s18281_s3 + $0x18] sm:$0xff] }
 0x4cd   :  { %v10639_v20 = vpop.f32.mrb[34].mxu0 }
 0x4ce   :  { %v16266_v4 = vpop.f32.mrb[64].mxu1  ;;  %v16278_v36 = vadd.f32 %v10639_v20, %v10431_v50  ;;  %v6747_v2 = vpop.f32.mrb[35].mxu0  ;;  %v9787_v20 = vld [vmem:[%s18281_s3 + $0x48] sm:$0xff] }
 0x4cf   :  { %v16268_v57 = vpop.f32.mrb[65].mxu1  ;;  %v16280_v10 = vadd.f32 %v6747_v2, %v5139_v40 }
 0x4d1   :  { %v10642_v55 = vpop.f32.mrb[36].mxu0 }
 0x4d2   :  { %v16274_v19 = vpop.f32.mrb[66].mxu1  ;;  %v16286_v54 = vadd.f32 %v10642_v55, %v10434_v28  ;;  %v6757_v37 = vpop.f32.mrb[37].mxu0 }
 0x4d3   :  { %v16276_v51 = vpop.f32.mrb[67].mxu1  ;;  %v16288_v43 = vadd.f32 %v6757_v37, %v5149_v31 }
 0x4d6   :  { %v16282_v23 = vpop.f32.mrb[68].mxu1 }
 0x4d7   :  { %v16284_v21 = vpop.f32.mrb[69].mxu1 }
 0x4d8   :  { %v10645_v12 = vpop.f32.mrb[38].mxu0 }
 0x4d9   :  { %v16294_v32 = vadd.f32 %v10645_v12, %v10437_v38  ;;  %v6767_v41 = vpop.f32.mrb[39].mxu0 }
 0x4da   :  { %v16290_v35 = vpop.f32.mrb[70].mxu1  ;;  %v16296_v39 = vadd.f32 %v6767_v41, %v5159_v29 }
 0x4db   :  { %v16292_v8 = vpop.f32.mrb[71].mxu1 }
 0x4dc   :  { %v10648_v34 = vpop.f32.mrb[40].mxu0 }
 0x4dd   :  { %v11050_v24 = vadd.f32 %v10648_v34, %v10440_v63  ;;  %v6777_v60 = vpop.f32.mrb[41].mxu0  ;;  %v10990_v63 = vpack.c.bf16 %v7187_v22, %v7186_v14 }
 0x4de   :  { %v16298_v13 = vpop.f32.mrb[72].mxu1  ;;  %v11051_v47 = vadd.f32 %v6777_v60, %v5169_v48  ;;  %v9786_v48 = vld [vmem:[%s18281_s3 + $0x40] sm:$0xff] }
 0x4df   :  { %v16300_v59 = vpop.f32.mrb[73].mxu1  ;;  %v7129_v38 = vmax.f32 %v11050_v24, 0.0  ;;  %v10994_v34 = vpack.c.bf16 %v9787_v20, %v9786_v48 }
 0x4e0   :  { %v7128_v40 = vmax.f32 %v11051_v47, 0.0  ;;  %v10651_v31 = vpop.f32.mrb[42].mxu0 }
 0x4e1   :  { %v11052_v29 = vadd.f32 %v10651_v31, %v10443_v9  ;;  %v6787_v45 = vpop.f32.mrb[43].mxu0 }
 0x4e2   :  { %v16308_v50 = vpop.f32.mrb[74].mxu1  ;;  %v11053_v15 = vadd.f32 %v6787_v45, %v5179_v26  ;;  %10738 = vmatprep.mubr.msk.f32.mxu1 %vm2738_vm10, %v7128_v40 }
 0x4e3   :  { %v16310_v28 = vpop.f32.mrb[75].mxu1  ;;  %10739 = vmatmul.mubr.msk.f32.vlgmr.msra.gmra.mrb[96].mxu1 %vm2738_vm10, %v7129_v38  ;;  %v7131_v37 = vmax.f32 %v11052_v29, 0.0 }
 0x4e4   :  { %v7130_v55 = vmax.f32 %v11053_v15, 0.0  ;;  %10989 = vmatpush3.bf16.msra.mxu1 %v16198_v3  ;;  %v10654_v26 = vpop.f32.mrb[44].mxu0 }
 0x4e5   :  { %v11054_v12 = vadd.f32 %v10654_v26, %v16226_v42  ;;  %v6797_v41 = vpop.f32.mrb[45].mxu0  ;;  %10991 = vmatprep.subr.bf16.mxu1 %v10990_v63 }
 0x4e6   :  { %v16319_v2 = vpop.f32.mrb[76].mxu1  ;;  %v11055_v24 = vadd.f32 %v6797_v41, %v16228_v17  ;;  %10741 = vmatprep.mubr.msk.f32.mxu1 %vm2738_vm10, %v7130_v55  ;;  %v9789_v55 = vld [vmem:[%s18281_s3 + $0x58] sm:$0xff] }
 0x4e7   :  { %v16323_v9 = vpop.f32.mrb[77].mxu1  ;;  %10742 = vmatmul.mubr.msk.f32.gmra.mrb[98].mxu1 %vm2738_vm10, %v7131_v37  ;;  %v7133_v22 = vmax.f32 %v11054_v12, 0.0 }
 0x4e8   :  { %v7132_v47 = vmax.f32 %v11055_v24, 0.0  ;;  %v10657_v3 = vpop.f32.mrb[46].mxu0  ;;  %10993 = vmatpush3.bf16.msra.mxu1 %v10990_v63  ;;  %v7122_v24 = vmax.f32 %v16280_v10, 0.0 }
 0x4e9   :  { %v11056_v40 = vadd.f32 %v10657_v3, %v16230_v25  ;;  %v6807_v42 = vpop.f32.mrb[47].mxu0  ;;  %10995 = vmatprep.subr.bf16.mxu1 %v10994_v34  ;;  %v7120_v25 = vmax.f32 %v16272_v44, 0.0  ;;  %v9798_v3 = vld [vmem:[%s18281_s3 + $0x60] sm:$0xff] }
 0x4ea   :  { %v16328_v60 = vpop.f32.mrb[78].mxu1  ;;  %v11057_v31 = vadd.f32 %v6807_v42, %v16232_v7  ;;  %10744 = vmatprep.mubr.msk.f32.mxu1 %vm2738_vm10, %v7132_v47  ;;  %v9788_v7 = vld [vmem:[%s18281_s3 + $0x50] sm:$0xff] }
 0x4eb   :  { %v16331_v14 = vpop.f32.mrb[79].mxu1  ;;  %10745 = vmatmul.mubr.msk.f32.gmra.mrb[96].mxu1 %vm2738_vm10, %v7133_v22  ;;  %v7135_v15 = vmax.f32 %v11056_v40, 0.0  ;;  %v10998_v41 = vpack.c.bf16 %v9789_v55, %v9788_v7  ;;  %v9799_v22 = vld [vmem:[%s18281_s3 + $0x68] sm:$0xff] }
 0x4ec   :  { %v7134_v38 = vmax.f32 %v11057_v31, 0.0  ;;  %v10660_v45 = vpop.f32.mrb[48].mxu0  ;;  %v11002_v31 = vpack.c.bf16 %v9799_v22, %v9798_v3 }
 0x4ed   :  { %v16342_v63 = vadd.f32 %v10660_v45, %v16234_v49  ;;  %v6817_v48 = vpop.f32.mrb[49].mxu0 }
 0x4ee   :  { %v16336_v17 = vpop.f32.mrb[80].mxu1  ;;  %v11059_v20 = vadd.f32 %v6817_v48, %v16236_v30  ;;  %10747 = vmatprep.mubr.msk.f32.mxu1 %vm2738_vm10, %v7134_v38  ;;  %v7121_v30 = vmax.f32 %v16270_v27, 0.0  ;;  %v7124_v38 = vmax.f32 %v16288_v43, 0.0  ;;  %v7126_v43 = vmax.f32 %v16296_v39, 0.0 }
 0x4ef   :  { %v16339_v29 = vpop.f32.mrb[81].mxu1  ;;  %10748 = vmatmul.mubr.msk.f32.gmra.mrb[98].mxu1 %vm2738_vm10, %v7135_v15 }
 0x4f0   :  { %v10663_v37 = vpop.f32.mrb[50].mxu0  ;;  %10758 = vmatprep.mubr.msk.f32.mxu1 %vm2738_vm10, %v7120_v25 }
 0x4f1   :  { %v16361_v44 = vadd.f32 %v10663_v37, %v16238_v16  ;;  %v6827_v12 = vpop.f32.mrb[51].mxu0 }
 0x4f2   :  { %v16353_v26 = vpop.f32.mrb[82].mxu1  ;;  %v11061_v47 = vadd.f32 %v6827_v12, %v16240_v58  ;;  %v7123_v58 = vmax.f32 %v16278_v36, 0.0  ;;  %v7136_v12 = vmax.f32 %v11059_v20, 0.0  ;;  %v7137_v20 = vmax.f32 %v16342_v63, 0.0 }
 0x4f3   :  { %v16356_v49 = vpop.f32.mrb[83].mxu1  ;;  %10759 = vmatmul.mubr.msk.f32.vlgmr.msra.gmra.mrb[96].mxu1 %vm2738_vm10, %v7121_v30 }
 0x4f4   :  { %10997 = vmatpush3.bf16.msra.mxu1 %v10994_v34  ;;  %v10666_v27 = vpop.f32.mrb[52].mxu0  ;;  %10761 = vmatprep.mubr.msk.f32.mxu1 %vm2738_vm10, %v7122_v24 }
 0x4f5   :  { %v16379_v10 = vadd.f32 %v10666_v27, %v16242_v52  ;;  %v6837_v42 = vpop.f32.mrb[53].mxu0  ;;  %10999 = vmatprep.subr.bf16.mxu1 %v10998_v41  ;;  %v7125_v52 = vmax.f32 %v16286_v54, 0.0  ;;  %v7127_v54 = vmax.f32 %v16294_v32, 0.0  ;;  %v7138_v27 = vmax.f32 %v11061_v47, 0.0 }
 0x4f6   :  { %v16371_v40 = vpop.f32.mrb[84].mxu1  ;;  %v11063_v45 = vadd.f32 %v6837_v42, %v16244_v33  ;;  %v9810_v42 = vld [vmem:[%s18281_s3 + $0x80] sm:$0xff] }
 0x4f7   :  { %v16374_v16 = vpop.f32.mrb[85].mxu1  ;;  %10762 = vmatmul.mubr.msk.f32.gmra.mrb[98].mxu1 %vm2738_vm10, %v7123_v58 }
 0x4f8   :  { %v10669_v48 = vpop.f32.mrb[54].mxu0  ;;  %10764 = vmatprep.mubr.msk.f32.mxu1 %vm2738_vm10, %v7124_v38  ;;  %11001 = vmatpush3.bf16.msra.mxu1 %v10998_v41  ;;  %v9801_v41 = vld [vmem:[%s18281_s3 + $0x78] sm:$0xff]  ;;  %v9811_v38 = vld [vmem:[%s18281_s3 + $0x88] sm:$0xff] }
 0x4f9   :  { %v16391_v36 = vadd.f32 %v10669_v48, %v16246_v11  ;;  %v6847_v25 = vpop.f32.mrb[55].mxu0  ;;  %11003 = vmatprep.subr.bf16.mxu1 %v11002_v31 }
 0x4fa   :  { %v16383_v15 = vpop.f32.mrb[86].mxu1  ;;  %v11065_v33 = vadd.f32 %v6847_v25, %v16248_v5  ;;  %v9800_v5 = vld [vmem:[%s18281_s3 + $0x70] sm:$0xff]  ;;  %v11010_v25 = vpack.c.bf16 %v9811_v38, %v9810_v42  ;;  %v9822_v42 = vld [vmem:[%s18281_s3 + $0xa0] sm:$0xff]  ;;  %v9823_v38 = vld [vmem:[%s18281_s3 + $0xa8] sm:$0xff] }
 0x4fb   :  { %v16386_v34 = vpop.f32.mrb[87].mxu1  ;;  %10765 = vmatmul.mubr.msk.f32.gmra.mrb[96].mxu1 %vm2738_vm10, %v7125_v52  ;;  %v11006_v22 = vpack.c.bf16 %v9801_v41, %v9800_v5  ;;  %v7143_v41 = vmax.f32 %v16391_v36, 0.0 }
 0x4fc   :  { %v10672_v37 = vpop.f32.mrb[56].mxu0  ;;  %10767 = vmatprep.mubr.msk.f32.mxu1 %vm2738_vm10, %v7126_v43  ;;  %v7140_v43 = vmax.f32 %v11063_v45, 0.0  ;;  %v7142_v5 = vmax.f32 %v11065_v33, 0.0 }
 0x4fd   :  { %v16403_v11 = vadd.f32 %v10672_v37, %v16250_v46  ;;  %v6857_v30 = vpop.f32.mrb[57].mxu0 }
 0x4fe   :  { %v16395_v7 = vpop.f32.mrb[88].mxu1  ;;  %v11067_v39 = vadd.f32 %v6857_v30, %v16252_v18 }
 0x4ff   :  { %v16398_v55 = vpop.f32.mrb[89].mxu1  ;;  %10768 = vmatmul.mubr.msk.f32.gmra.mrb[98].mxu1 %vm2738_vm10, %v7127_v54  ;;  %v7145_v36 = vmax.f32 %v16403_v11, 0.0 }
 0x500   :  { %v10675_v46 = vpop.f32.mrb[58].mxu0  ;;  %10778 = vmatprep.mubr.msk.f32.mxu1 %vm2738_vm10, %v7136_v12 }
 0x501   :  { %v16420_v18 = vadd.f32 %v10675_v46, %v16254_v56  ;;  %v6867_v3 = vpop.f32.mrb[59].mxu0 }
 0x502   :  { %v16412_v24 = vpop.f32.mrb[90].mxu1  ;;  %v11069_v58 = vadd.f32 %v6867_v3, %v16256_v6  ;;  %v7139_v6 = vmax.f32 %v16361_v44, 0.0  ;;  %v7141_v44 = vmax.f32 %v16379_v10, 0.0  ;;  %v7144_v3 = vmax.f32 %v11067_v39, 0.0 }
 0x503   :  { %v16415_v32 = vpop.f32.mrb[91].mxu1  ;;  %10779 = vmatmul.mubr.msk.f32.vlgmr.msra.gmra.mrb[96].mxu1 %vm2738_vm10, %v7137_v20 }
 0x504   :  { %11005 = vmatpush3.bf16.msra.mxu1 %v11002_v31  ;;  %v10678_v63 = vpop.f32.mrb[60].mxu0  ;;  %10781 = vmatprep.mubr.msk.f32.mxu1 %vm2738_vm10, %v7138_v27 }
 0x505   :  { %v11070_v47 = vadd.f32 %v10678_v63, %v16258_v62  ;;  %v6877_v52 = vpop.f32.mrb[61].mxu0  ;;  %11007 = vmatprep.subr.bf16.mxu1 %v11006_v22 }
 0x506   :  { %v16429_v48 = vpop.f32.mrb[92].mxu1  ;;  %v11071_v37 = vadd.f32 %v6877_v52, %v16260_v61 }
 0x507   :  { %v16432_v56 = vpop.f32.mrb[93].mxu1  ;;  %10782 = vmatmul.mubr.msk.f32.gmra.mrb[98].mxu1 %vm2738_vm10, %v7139_v6 }
 0x508   :  { %v10681_v30 = vpop.f32.mrb[62].mxu0  ;;  %10784 = vmatprep.mubr.msk.f32.mxu1 %vm2738_vm10, %v7140_v43  ;;  %11009 = vmatpush3.bf16.msra.mxu1 %v11006_v22  ;;  %v7148_v6 = vmax.f32 %v11071_v37, 0.0 }
 0x509   :  { %v11072_v62 = vadd.f32 %v10681_v30, %v16262_v53  ;;  %v6887_v12 = vpop.f32.mrb[63].mxu0  ;;  %11011 = vmatprep.subr.bf16.mxu1 %v11010_v25  ;;  %v9812_v53 = vld [vmem:[%s18281_s3 + $0x90] sm:$0xff] }
 0x50a   :  { %v16438_v54 = vpop.f32.mrb[94].mxu1  ;;  %v11073_v45 = vadd.f32 %v6887_v12, %v16264_v0  ;;  %v9813_v0 = vld [vmem:[%s18281_s3 + $0x98] sm:$0xff] }
 0x50b   :  { %v16441_v31 = vpop.f32.mrb[95].mxu1  ;;  %10785 = vmatmul.mubr.msk.f32.gmra.mrb[96].mxu1 %vm2738_vm10, %v7141_v44  ;;  %v11014_v22 = vpack.c.bf16 %v9813_v0, %v9812_v53  ;;  %v9835_v53 = vld [vmem:[%s18281_s3 + $0xc8] sm:$0xff] }
 0x50c   :  { %v10684_v61 = vpop.f32.mrb[64].mxu0  ;;  %10787 = vmatprep.mubr.msk.f32.mxu1 %vm2738_vm10, %v7142_v5 }
 0x50d   :  { %v11074_v46 = vadd.f32 %v10684_v61, %v16266_v4  ;;  %v6897_v20 = vpop.f32.mrb[65].mxu0 }
 0x50e   :  { %v11075_v10 = vadd.f32 %v6897_v20, %v16268_v57  ;;  %v7146_v57 = vmax.f32 %v11069_v58, 0.0 }
 0x50f   :  { %10788 = vmatmul.mubr.msk.f32.gmra.mrb[98].mxu1 %vm2738_vm10, %v7143_v41 }
 0x510   :  { %v10687_v33 = vpop.f32.mrb[66].mxu0  ;;  %10798 = vmatprep.mubr.msk.f32.mxu1 %vm2738_vm10, %v7144_v3  ;;  %v7152_v61 = vmax.f32 %v11075_v10, 0.0  ;;  %v9834_v10 = vld [vmem:[%s18281_s3 + $0xc0] sm:$0xff] }
 0x511   :  { %v11076_v4 = vadd.f32 %v10687_v33, %v16274_v19  ;;  %v6907_v39 = vpop.f32.mrb[67].mxu0  ;;  %v7147_v19 = vmax.f32 %v16420_v18, 0.0  ;;  %v7150_v18 = vmax.f32 %v11073_v45, 0.0 }
 0x512   :  { %v11077_v27 = vadd.f32 %v6907_v39, %v16276_v51  ;;  %v11018_v51 = vpack.c.bf16 %v9823_v38, %v9822_v42 }
 0x513   :  { %10799 = vmatmul.mubr.msk.f32.vlgmr.msra.gmra.mrb[96].mxu1 %vm2738_vm10, %v7145_v36 }
 0x514   :  { %11013 = vmatpush3.bf16.msra.mxu1 %v11010_v25  ;;  %v10690_v63 = vpop.f32.mrb[68].mxu0  ;;  %10801 = vmatprep.mubr.msk.f32.mxu1 %vm2738_vm10, %v7146_v57  ;;  %v7149_v25 = vmax.f32 %v11070_v47, 0.0  ;;  %v7154_v3 = vmax.f32 %v11077_v27, 0.0 }
 0x515   :  { %v11078_v11 = vadd.f32 %v10690_v63, %v16282_v23  ;;  %v6917_v58 = vpop.f32.mrb[69].mxu0  ;;  %11015 = vmatprep.subr.bf16.mxu1 %v11014_v22 }
 0x516   :  { %v11079_v52 = vadd.f32 %v6917_v58, %v16284_v21  ;;  %v7151_v21 = vmax.f32 %v11072_v62, 0.0  ;;  %v7153_v62 = vmax.f32 %v11074_v46, 0.0 }
 0x517   :  { %10802 = vmatmul.mubr.msk.f32.gmra.mrb[98].mxu1 %vm2738_vm10, %v7147_v19  ;;  %v7157_v57 = vmax.f32 %v11078_v11, 0.0 }
 0x518   :  { %v10693_v43 = vpop.f32.mrb[70].mxu0  ;;  %10804 = vmatprep.mubr.msk.f32.mxu1 %vm2738_vm10, %v7148_v6  ;;  %11017 = vmatpush3.bf16.msra.mxu1 %v11014_v22  ;;  %v7156_v36 = vmax.f32 %v11079_v52, 0.0 }
 0x519   :  { %v11080_v30 = vadd.f32 %v10693_v43, %v16290_v35  ;;  %v6927_v44 = vpop.f32.mrb[71].mxu0  ;;  %11019 = vmatprep.subr.bf16.mxu1 %v11018_v51  ;;  %v9824_v35 = vld [vmem:[%s18281_s3 + $0xb0] sm:$0xff] }
 0x51a   :  { %v11081_v23 = vadd.f32 %v6927_v44, %v16292_v8  ;;  %v9825_v8 = vld [vmem:[%s18281_s3 + $0xb8] sm:$0xff]  ;;  %v9847_v44 = vld [vmem:[%s18281_s3 + $0xe8] sm:$0xff] }
 0x51b   :  { %10805 = vmatmul.mubr.msk.f32.gmra.mrb[96].mxu1 %vm2738_vm10, %v7149_v25  ;;  %v11022_v20 = vpack.c.bf16 %v9825_v8, %v9824_v35 }
 0x51c   :  { %v10696_v12 = vpop.f32.mrb[72].mxu0  ;;  %10807 = vmatprep.mubr.msk.f32.mxu1 %vm2738_vm10, %v7150_v18 }
 0x51d   :  { %v11082_v37 = vadd.f32 %v10696_v12, %v16298_v13  ;;  %v6937_v5 = vpop.f32.mrb[73].mxu0 }
 0x51e   :  { %v11083_v41 = vadd.f32 %v6937_v5, %v16300_v59 }
 0x51f   :  { %10808 = vmatmul.mubr.msk.f32.gmra.mrb[98].mxu1 %vm2738_vm10, %v7151_v21  ;;  %v7161_v6 = vmax.f32 %v11082_v37, 0.0 }
 0x520   :  { %v10699_v47 = vpop.f32.mrb[74].mxu0  ;;  %10818 = vmatprep.mubr.msk.f32.mxu1 %vm2738_vm10, %v7152_v61  ;;  %v7160_v58 = vmax.f32 %v11083_v41, 0.0 }
 0x521   :  { %v11084_v13 = vadd.f32 %v10699_v47, %v16308_v50  ;;  %v6947_v45 = vpop.f32.mrb[75].mxu0  ;;  %v7155_v50 = vmax.f32 %v11076_v4, 0.0  ;;  %v7158_v4 = vmax.f32 %v11081_v23, 0.0 }
 0x522   :  { %v11085_v59 = vadd.f32 %v6947_v45, %v16310_v28  ;;  %v11026_v28 = vpack.c.bf16 %v9835_v53, %v9834_v10 }
 0x523   :  { %10819 = vmatmul.mubr.msk.f32.vlgmr.msra.gmra.mrb[96].mxu1 %vm2738_vm10, %v7153_v62 }
 0x524   :  { %11021 = vmatpush3.bf16.msra.mxu1 %v11018_v51  ;;  %v10702_v0 = vpop.f32.mrb[76].mxu0  ;;  %10821 = vmatprep.mubr.msk.f32.mxu1 %vm2738_vm10, %v7154_v3  ;;  %v7162_v25 = vmax.f32 %v11085_v59, 0.0 }
 0x525   :  { %v11086_v46 = vadd.f32 %v10702_v0, %v16319_v2  ;;  %v6957_v33 = vpop.f32.mrb[77].mxu0  ;;  %11023 = vmatprep.subr.bf16.mxu1 %v11022_v20 }
 0x526   :  { %v11087_v39 = vadd.f32 %v6957_v33, %v16323_v9  ;;  %v7159_v9 = vmax.f32 %v11080_v30, 0.0  ;;  %v9846_v30 = vld [vmem:[%s18281_s3 + $0xe0] sm:$0xff] }
 0x527   :  { %10822 = vmatmul.mubr.msk.f32.gmra.mrb[98].mxu1 %vm2738_vm10, %v7155_v50  ;;  %v7165_v61 = vmax.f32 %v11086_v46, 0.0 }
 0x528   :  { %v10705_v22 = vpop.f32.mrb[78].mxu0  ;;  %10824 = vmatprep.mubr.msk.f32.mxu1 %vm2738_vm10, %v7156_v36  ;;  %11025 = vmatpush3.bf16.msra.mxu1 %v11022_v20  ;;  %v7164_v21 = vmax.f32 %v11087_v39, 0.0 }
 0x529   :  { %v11088_v27 = vadd.f32 %v10705_v22, %v16328_v60  ;;  %v6967_v42 = vpop.f32.mrb[79].mxu0  ;;  %11027 = vmatprep.subr.bf16.mxu1 %v11026_v28  ;;  %v9836_v60 = vld [vmem:[%s18281_s3 + $0xd0] sm:$0xff] }
 0x52a   :  { %v11089_v2 = vadd.f32 %v6967_v42, %v16331_v14  ;;  %v9837_v14 = vld [vmem:[%s18281_s3 + $0xd8] sm:$0xff] }
 0x52b   :  { %10825 = vmatmul.mubr.msk.f32.gmra.mrb[96].mxu1 %vm2738_vm10, %v7157_v57  ;;  %v11030_v43 = vpack.c.bf16 %v9837_v14, %v9836_v60 }
 0x52c   :  { %v10708_v38 = vpop.f32.mrb[80].mxu0  ;;  %10827 = vmatprep.mubr.msk.f32.mxu1 %vm2738_vm10, %v7158_v4  ;;  %v7166_v8 = vmax.f32 %v11089_v2, 0.0 }
 0x52d   :  { %v11090_v63 = vadd.f32 %v10708_v38, %v16336_v17  ;;  %v6977_v19 = vpop.f32.mrb[81].mxu0 }
 0x52e   :  { %v11091_v51 = vadd.f32 %v6977_v19, %v16339_v29  ;;  %v8309_v19 = vstv %s8308_s25 }
 0x52f   :  { %10828 = vmatmul.mubr.msk.f32.gmra.mrb[98].mxu1 %vm2738_vm10, %v7159_v9  ;;  %v7169_v59 = vmax.f32 %v11090_v63, 0.0 }
 0x530   :  { %v10711_v11 = vpop.f32.mrb[82].mxu0  ;;  %10838 = vmatprep.mubr.msk.f32.mxu1 %vm2738_vm10, %v7160_v58  ;;  %v7168_v45 = vmax.f32 %v11091_v51, 0.0 }
 0x531   :  { %v11092_v17 = vadd.f32 %v10711_v11, %v16353_v26  ;;  %v6987_v52 = vpop.f32.mrb[83].mxu0  ;;  %v7163_v26 = vmax.f32 %v11084_v13, 0.0 }
 0x532   :  { %v11093_v29 = vadd.f32 %v6987_v52, %v16356_v49  ;;  %v11034_v49 = vpack.c.bf16 %v9847_v44, %v9846_v30 }
 0x533   :  { %10839 = vmatmul.mubr.msk.f32.vlgmr.msra.gmra.mrb[96].mxu1 %vm2738_vm10, %v7161_v6  ;;  %v7171_v46 = vmax.f32 %v11092_v17, 0.0 }
 0x534   :  { %11029 = vmatpush3.bf16.msra.mxu1 %v11026_v28  ;;  %v10714_v18 = vpop.f32.mrb[84].mxu0  ;;  %10841 = vmatprep.mubr.msk.f32.mxu1 %vm2738_vm10, %v7162_v25  ;;  %v7170_v0 = vmax.f32 %v11093_v29, 0.0 }
 0x535   :  { %v11094_v23 = vadd.f32 %v10714_v18, %v16371_v40  ;;  %v6997_v12 = vpop.f32.mrb[85].mxu0  ;;  %11031 = vmatprep.subr.bf16.mxu1 %v11030_v43 }
 0x536   :  { %v11095_v37 = vadd.f32 %v6997_v12, %v16374_v16  ;;  %v7167_v16 = vmax.f32 %v11088_v27, 0.0 }
 0x537   :  { %10842 = vmatmul.mubr.msk.f32.gmra.mrb[98].mxu1 %vm2738_vm10, %v7163_v26 }
 0x538   :  { %v10717_v5 = vpop.f32.mrb[86].mxu0  ;;  %10844 = vmatprep.mubr.msk.f32.mxu1 %vm2738_vm10, %v7164_v21  ;;  %11033 = vmatpush3.bf16.msra.mxu1 %v11030_v43  ;;  %v7172_v36 = vmax.f32 %v11095_v37, 0.0 }
 0x539   :  { %v11096_v41 = vadd.f32 %v10717_v5, %v16383_v15  ;;  %v7007_v35 = vpop.f32.mrb[87].mxu0  ;;  %11035 = vmatprep.subr.bf16.mxu1 %v11034_v49  ;;  %v9848_v15 = vld [vmem:[%s18281_s3 + $0xf0] sm:$0xff]  ;;  %v8344_v5 = vsub.s32 0, %v18366_v1 }
 0x53a   :  { %v11097_v40 = vadd.f32 %v7007_v35, %v16386_v34  ;;  %v9849_v34 = vld [vmem:[%s18281_s3 + $0xf8] sm:$0xff] }
 0x53b   :  { %10845 = vmatmul.mubr.msk.f32.gmra.mrb[96].mxu1 %vm2738_vm10, %v7165_v61  ;;  %v11038_v53 = vpack.c.bf16 %v9849_v34, %v9848_v15  ;;  %v16586_v34 = vsub.s32 3, %v18366_v1 }
 0x53c   :  { %v10720_v47 = vpop.f32.mrb[88].mxu0  ;;  %10847 = vmatprep.mubr.msk.f32.mxu1 %vm2738_vm10, %v7166_v8  ;;  %v7174_v27 = vmax.f32 %v11097_v40, 0.0 }
 0x53d   :  { %v11098_v62 = vadd.f32 %v10720_v47, %v16395_v7  ;;  %v7017_v13 = vpop.f32.mrb[89].mxu0 }
 0x53e   :  { %v11099_v20 = vadd.f32 %v7017_v13, %v16398_v55  ;;  %v16577_v13 = vsub.s32 1, %v18366_v1 }
 0x53f   :  { %10848 = vmatmul.mubr.msk.f32.gmra.mrb[98].mxu1 %vm2738_vm10, %v7167_v16 }
 0x540   :  { %v10723_v3 = vpop.f32.mrb[90].mxu0  ;;  %10858 = vmatprep.mubr.msk.f32.mxu1 %vm2738_vm10, %v7168_v45  ;;  %v7176_v4 = vmax.f32 %v11099_v20, 0.0  ;;  %v16580_v45 = vsub.s32 2, %v18366_v1 }
 0x541   :  { %v11100_v7 = vadd.f32 %v10723_v3, %v16412_v24  ;;  %v7027_v10 = vpop.f32.mrb[91].mxu0  ;;  %v16589_v3 = vsub.s32 4, %v18366_v1 }
 0x542   :  { %v11101_v55 = vadd.f32 %v7027_v10, %v16415_v32  ;;  %v7173_v32 = vmax.f32 %v11094_v23, 0.0  ;;  %v16598_v10 = vsub.s32 7, %v18366_v1 }
 0x543   :  { %10859 = vmatmul.mubr.msk.f32.vlgmr.msra.gmra.mrb[96].mxu1 %vm2738_vm10, %v7169_v59  ;;  %v16592_v59 = vsub.s32 5, %v18366_v1 }
 0x544   :  { %11037 = vmatpush3.bf16.msra.mxu1 %v11034_v49  ;;  %v10726_v50 = vpop.f32.mrb[92].mxu0  ;;  %10861 = vmatprep.mubr.msk.f32.mxu1 %vm2738_vm10, %v7170_v0  ;;  %v7178_v2 = vmax.f32 %v11101_v55, 0.0 }
 0x545   :  { %v11102_v33 = vadd.f32 %v10726_v50, %v16429_v48  ;;  %v7037_v28 = vpop.f32.mrb[93].mxu0  ;;  %11039 = vmatprep.subr.bf16.mxu1 %v11038_v53  ;;  %v7175_v48 = vmax.f32 %v11096_v41, 0.0 }
 0x546   :  { %v11103_v39 = vadd.f32 %v7037_v28, %v16432_v56  ;;  %v7177_v56 = vmax.f32 %v11098_v62, 0.0 }
 0x547   :  { %10862 = vmatmul.mubr.msk.f32.gmra.mrb[98].mxu1 %vm2738_vm10, %v7171_v46 }
 0x548   :  { %v10729_v24 = vpop.f32.mrb[94].mxu0  ;;  %10864 = vmatprep.mubr.msk.f32.mxu1 %vm2738_vm10, %v7172_v36  ;;  %11041 = vmatpush3.bf16.msra.mxu1 %v11038_v53  ;;  %v7180_v38 = vmax.f32 %v11103_v39, 0.0 }
 0x549   :  { %v11104_v22 = vadd.f32 %v10729_v24, %v16438_v54  ;;  %v7047_v57 = vpop.f32.mrb[95].mxu0  ;;  %v7179_v54 = vmax.f32 %v11100_v7, 0.0  ;;  %v16595_v7 = vsub.s32 6, %v18366_v1 }
 0x54a   :  { %v11105_v42 = vadd.f32 %v7047_v57, %v16441_v31  ;;  %v7181_v31 = vmax.f32 %v11102_v33, 0.0 }
 0x54b   :  { %10865 = vmatmul.mubr.msk.f32.gmra.mrb[96].mxu1 %vm2738_vm10, %v7173_v32  ;;  %v7183_v63 = vmax.f32 %v11104_v22, 0.0 }
 0x54c   :  { %10867 = vmatprep.mubr.msk.f32.mxu1 %vm2738_vm10, %v7174_v27  ;;  %v7182_v9 = vmax.f32 %v11105_v42, 0.0 }
 0x54f   :  { %10868 = vmatmul.mubr.msk.f32.gmra.mrb[98].mxu1 %vm2738_vm10, %v7175_v48 }
 0x550   :  { %10878 = vmatprep.mubr.msk.f32.mxu1 %vm2738_vm10, %v7176_v4 }
 0x553   :  { %10879 = vmatmul.mubr.msk.f32.vlgmr.msra.gmra.mrb[96].mxu1 %vm2738_vm10, %v7177_v56 }
 0x554   :  { %10881 = vmatprep.mubr.msk.f32.mxu1 %vm2738_vm10, %v7178_v2 }
 0x557   :  { %10882 = vmatmul.mubr.msk.f32.gmra.mrb[98].mxu1 %vm2738_vm10, %v7179_v54 }
 0x558   :  { %10884 = vmatprep.mubr.msk.f32.mxu1 %vm2738_vm10, %v7180_v38 }
 0x55b   :  { %10885 = vmatmul.mubr.msk.f32.gmra.mrb[96].mxu1 %vm2738_vm10, %v7181_v31 }
 0x55c   :  { %10887 = vmatprep.mubr.msk.f32.mxu1 %vm2738_vm10, %v7182_v9 }
 0x55f   :  { %10888 = vmatmul.mubr.msk.f32.gmra.mrb[98].mxu1 %vm2738_vm10, %v7183_v63 }
 0x62e   :  { %v10886_v58 = vpop.f32.mrb[96].mxu1 }
 0x62f   :  { %v8311_v51 = vadd.f32 %v10886_v58, %v8309_v19  ;;  %v8276_v60 = vpop.f32.mrb[97].mxu1 }
 0x630   :  { %v8310_v14 = vadd.f32 %v8309_v19, %v8276_v60 }
 0x631   :  { %v9859_v11 = vmul.f32 -1.442695, %v8311_v51 }
 0x632   :  { %v9858_v6 = vmul.f32 -1.442695, %v8310_v14  ;;  %v10889_v17 = vpop.f32.mrb[98].mxu1 }
 0x633   :  { %11231 = vpow2.f32 %v9859_v11  ;;  %v8313_v52 = vadd.f32 %v10889_v17, %v8309_v19  ;;  %v8286_v43 = vpop.f32.mrb[99].mxu1  ;;  %v11451_v17 = vld [vmem:[%s18278_s0 + $0x210] sm:$0xff] }
 0x634   :  { %11233 = vpow2.f32 %v9858_v6  ;;  %v8312_v25 = vadd.f32 %v8309_v19, %v8286_v43  ;;  %v11452_v43 = vld [vmem:[%s18278_s0 + $0x218] sm:$0xff] }
 0x635   :  { %v9861_v29 = vmul.f32 -1.442695, %v8313_v52 }
 0x636   :  { %v9860_v30 = vmul.f32 -1.442695, %v8312_v25 }
 0x637   :  { %11235 = vpow2.f32 %v9861_v29  ;;  %v11453_v29 = vld [vmem:[%s18278_s0 + $0x200] sm:$0xff] }
 0x638   :  { %11237 = vpow2.f32 %v9860_v30 }
 0x63d   :  { %v11232_v44 = vpop.eup %11231 }
 0x63e   :  { %v11234_v18 = vpop.eup %11233  ;;  %v8327_v26 = vadd.f32 1.0, %v11232_v44  ;;  %v11454_v44 = vld [vmem:[%s18278_s0 + $0x208] sm:$0xff] }
 0x63f   :  { %v8326_v23 = vadd.f32 1.0, %v11234_v18 }
 0x640   :  { %11239 = vrcp.f32 %v8327_v26 }
 0x641   :  { %v11236_v12 = vpop.eup %11235  ;;  %11241 = vrcp.f32 %v8326_v23 }
 0x642   :  { %v11238_v49 = vpop.eup %11237  ;;  %v8329_v21 = vadd.f32 1.0, %v11236_v12  ;;  %v11455_v12 = vld [vmem:[%s18278_s0 + $0x230] sm:$0xff] }
 0x643   :  { %v8328_v37 = vadd.f32 1.0, %v11238_v49 }
 0x644   :  { %11243 = vrcp.f32 %v8329_v21  ;;  %v11456_v21 = vld [vmem:[%s18278_s0 + $0x238] sm:$0xff] }
 0x645   :  { %11245 = vrcp.f32 %v8328_v37 }
 0x64a   :  { %v11240_v61 = vpop.eup %11239 }
 0x64b   :  { %v11242_v41 = vpop.eup %11241  ;;  %v16571_v35 = vmul.f32 2.0, %v11240_v61 }
 0x64c   :  { %v16573_v8 = vmul.f32 2.0, %v11242_v41  ;;  %v11458_v41 = vld [vmem:[%s18278_s0 + $0x228] sm:$0xff] }
 0x64d   :  { %v8497_v40 = vrot.slane %v16571_v35, %v8344_v5  ;;  %v8516_v57 = vrot.slane %v16571_v35, %v16577_v13  ;;  %v8535_v4 = vrot.slane %v16571_v35, %v16580_v45  ;;  %v8554_v56 = vrot.slane %v16571_v35, %v16586_v34 }
 0x64e   :  { %v11244_v47 = vpop.eup %11243  ;;  %v16583_v20 = vrot.slane %v16573_v8, %v8344_v5  ;;  %v8573_v2 = vrot.slane %v16571_v35, %v16589_v3  ;;  %v8592_v54 = vrot.slane %v16571_v35, %v16592_v59  ;;  %v8611_v38 = vrot.slane %v16571_v35, %v16595_v7 }
 0x64f   :  { %v11246_v16 = vpop.eup %11245  ;;  %v8341_v62 = vmul.f32 2.0, %v11244_v47  ;;  %8503 = vbcast.lane.b32.xlu1 %v8497_v40, 264  ;;  %8499 = vbcast.lane.b32.xlu0 %v8497_v40, 256  ;;  %v8630_v31 = vrot.slane %v16571_v35, %v16598_v10  ;;  %v8364_v9 = vrot.slane %v16573_v8, %v16577_v13  ;;  %v8383_v63 = vrot.slane %v16573_v8, %v16580_v45  ;;  %v11459_v47 = vld [vmem:[%s18278_s0 + $0x250] sm:$0xff] }
 0x650   :  { %v8340_v15 = vmul.f32 2.0, %v11246_v16  ;;  %v8402_v19 = vrot.slane %v16573_v8, %v16586_v34  ;;  %v8421_v58 = vrot.slane %v16573_v8, %v16589_v3  ;;  %v8440_v51 = vrot.slane %v16573_v8, %v16592_v59 }
 0x651   :  { %v16600_v53 = vrot.slane %v8341_v62, %v8344_v5  ;;  %v16603_v0 = vrot.slane %v8341_v62, %v16577_v13  ;;  %v16606_v55 = vrot.slane %v8341_v62, %v16580_v45  ;;  %v16609_v50 = vrot.slane %v8341_v62, %v16586_v34 }
 0x652   :  { %v16612_v46 = vrot.slane %v8341_v62, %v16589_v3  ;;  %v16615_v33 = vrot.slane %v8341_v62, %v16592_v59  ;;  %v16618_v1 = vrot.slane %v8341_v62, %v16595_v7  ;;  %v16621_v28 = vrot.slane %v8341_v62, %v16598_v10  ;;  %v11460_v62 = vld [vmem:[%s18278_s0 + $0x258] sm:$0xff] }
 0x653   :  { %8511 = vbcast.lane.b32.xlu1 %v8497_v40, 280  ;;  %8507 = vbcast.lane.b32.xlu0 %v8497_v40, 272  ;;  %v16623_v36 = vrot.slane %v8340_v15, %v8344_v5  ;;  %v16626_v39 = vrot.slane %v8340_v15, %v16577_v13  ;;  %v16629_v24 = vrot.slane %v8340_v15, %v16580_v45  ;;  %v11457_v5 = vld [vmem:[%s18278_s0 + $0x220] sm:$0xff] }
 0x654   :  { %v16632_v32 = vrot.slane %v8340_v15, %v16586_v34  ;;  %v16635_v22 = vrot.slane %v8340_v15, %v16589_v3  ;;  %v16640_v27 = vrot.slane %v8340_v15, %v16592_v59  ;;  %v16643_v42 = vrot.slane %v8340_v15, %v16595_v7  ;;  %v11461_v45 = vld [vmem:[%s18278_s0 + $0x240] sm:$0xff] }
 0x655   :  { %v16646_v48 = vrot.slane %v8340_v15, %v16598_v10  ;;  %v8459_v60 = vrot.slane %v16573_v8, %v16595_v7  ;;  %v8478_v6 = vrot.slane %v16573_v8, %v16598_v10  ;;  %v11462_v15 = vld [vmem:[%s18278_s0 + $0x248] sm:$0xff]  ;;  %v11463_v7 = vld [vmem:[%s18278_s0 + $0x270] sm:$0xff] }
 0x657   :  { %8522 = vbcast.lane.b32.xlu1 %v8516_v57, 264  ;;  %8518 = vbcast.lane.b32.xlu0 %v8516_v57, 256 }
 0x65b   :  { %8530 = vbcast.lane.b32.xlu1 %v8516_v57, 280  ;;  %8526 = vbcast.lane.b32.xlu0 %v8516_v57, 272  ;;  %v11464_v57 = vld [vmem:[%s18278_s0 + $0x278] sm:$0xff] }
 0x65f   :  { %8541 = vbcast.lane.b32.xlu1 %v8535_v4, 264  ;;  %8537 = vbcast.lane.b32.xlu0 %v8535_v4, 256 }
 0x663   :  { %8549 = vbcast.lane.b32.xlu1 %v8535_v4, 280  ;;  %8545 = vbcast.lane.b32.xlu0 %v8535_v4, 272 }
 0x667   :  { %8560 = vbcast.lane.b32.xlu1 %v8554_v56, 264  ;;  %8556 = vbcast.lane.b32.xlu0 %v8554_v56, 256 }
 0x66b   :  { %8568 = vbcast.lane.b32.xlu1 %v8554_v56, 280  ;;  %8564 = vbcast.lane.b32.xlu0 %v8554_v56, 272  ;;  %v11465_v56 = vld [vmem:[%s18278_s0 + $0x260] sm:$0xff] }
 0x66f   :  { %8579 = vbcast.lane.b32.xlu1 %v8573_v2, 264  ;;  %8575 = vbcast.lane.b32.xlu0 %v8573_v2, 256 }
 0x673   :  { %8587 = vbcast.lane.b32.xlu1 %v8573_v2, 280  ;;  %8583 = vbcast.lane.b32.xlu0 %v8573_v2, 272 }
 0x677   :  { %8598 = vbcast.lane.b32.xlu1 %v8592_v54, 264  ;;  %8594 = vbcast.lane.b32.xlu0 %v8592_v54, 256 }
 0x67b   :  { %8606 = vbcast.lane.b32.xlu1 %v8592_v54, 280  ;;  %8602 = vbcast.lane.b32.xlu0 %v8592_v54, 272  ;;  %v11466_v54 = vld [vmem:[%s18278_s0 + $0x268] sm:$0xff] }
 0x67f   :  { %8617 = vbcast.lane.b32.xlu1 %v8611_v38, 264  ;;  %8613 = vbcast.lane.b32.xlu0 %v8611_v38, 256 }
 0x683   :  { %8625 = vbcast.lane.b32.xlu1 %v8611_v38, 280  ;;  %8621 = vbcast.lane.b32.xlu0 %v8611_v38, 272 }
 0x687   :  { %8636 = vbcast.lane.b32.xlu1 %v8630_v31, 264  ;;  %8632 = vbcast.lane.b32.xlu0 %v8630_v31, 256 }
 0x68b   :  { %8644 = vbcast.lane.b32.xlu1 %v8630_v31, 280  ;;  %8640 = vbcast.lane.b32.xlu0 %v8630_v31, 272 }
 0x68f   :  { %8351 = vbcast.lane.b32.xlu1 %v16583_v20, 264  ;;  %8347 = vbcast.lane.b32.xlu0 %v16583_v20, 256 }
 0x693   :  { %8355 = vbcast.lane.b32.xlu1 %v16583_v20, 272  ;;  %8366 = vbcast.lane.b32.xlu0 %v8364_v9, 256 }
 0x697   :  { %8359 = vbcast.lane.b32.xlu1 %v16583_v20, 280  ;;  %8374 = vbcast.lane.b32.xlu0 %v8364_v9, 272 }
 0x69b   :  { %8370 = vbcast.lane.b32.xlu1 %v8364_v9, 264  ;;  %8385 = vbcast.lane.b32.xlu0 %v8383_v63, 256 }
 0x69f   :  { %8378 = vbcast.lane.b32.xlu1 %v8364_v9, 280  ;;  %8393 = vbcast.lane.b32.xlu0 %v8383_v63, 272 }
 0x6a3   :  { %8389 = vbcast.lane.b32.xlu1 %v8383_v63, 264  ;;  %8404 = vbcast.lane.b32.xlu0 %v8402_v19, 256 }
 0x6a7   :  { %8397 = vbcast.lane.b32.xlu1 %v8383_v63, 280  ;;  %8412 = vbcast.lane.b32.xlu0 %v8402_v19, 272  ;;  %v11467_v63 = vld [vmem:[%s18278_s0 + $0x290] sm:$0xff] }
 0x6ab   :  { %8408 = vbcast.lane.b32.xlu1 %v8402_v19, 264  ;;  %8423 = vbcast.lane.b32.xlu0 %v8421_v58, 256 }
 0x6af   :  { %8416 = vbcast.lane.b32.xlu1 %v8402_v19, 280  ;;  %8431 = vbcast.lane.b32.xlu0 %v8421_v58, 272 }
 0x6b3   :  { %8427 = vbcast.lane.b32.xlu1 %v8421_v58, 264  ;;  %8442 = vbcast.lane.b32.xlu0 %v8440_v51, 256 }
 0x6b7   :  { %8435 = vbcast.lane.b32.xlu1 %v8421_v58, 280  ;;  %8450 = vbcast.lane.b32.xlu0 %v8440_v51, 272  ;;  %v11468_v58 = vld [vmem:[%s18278_s0 + $0x298] sm:$0xff] }
 0x6bb   :  { %8446 = vbcast.lane.b32.xlu1 %v8440_v51, 264  ;;  %8461 = vbcast.lane.b32.xlu0 %v8459_v60, 256 }
 0x6bf   :  { %8454 = vbcast.lane.b32.xlu1 %v8440_v51, 280  ;;  %8469 = vbcast.lane.b32.xlu0 %v8459_v60, 272 }
 0x6c1   :  { %v8504_v14 = vpop.permute.xlu1 %8503  ;;  %v8500_v11 = vpop.permute.xlu0 %8499 }
 0x6c2   :  { %v9016_v52 = vmul.f32 %v11451_v17, %v8504_v14  ;;  %v9017_v25 = vmul.f32 %v11452_v43, %v8504_v14  ;;  %v9014_v30 = vmul.f32 %v11453_v29, %v8500_v11  ;;  %v9015_v18 = vmul.f32 %v11454_v44, %v8500_v11  ;;  %v11470_v11 = vld [vmem:[%s18278_s0 + $0x288] sm:$0xff]  ;;  %v11471_v43 = vld [vmem:[%s18278_s0 + $0x2b0] sm:$0xff]  ;;  %v11472_v29 = vld [vmem:[%s18278_s0 + $0x2b8] sm:$0xff] }
 0x6c3   :  { %8465 = vbcast.lane.b32.xlu1 %v8459_v60, 264  ;;  %8480 = vbcast.lane.b32.xlu0 %v8478_v6, 256  ;;  %v11473_v44 = vld [vmem:[%s18278_s0 + $0x2a0] sm:$0xff] }
 0x6c4   :  { %9272 = vst [vmem:[%s18284_s6 + $0x210] sm:$0xff] %v9016_v52  ;;  %9273 = vst [vmem:[%s18284_s6 + $0x218] sm:$0xff] %v9017_v25 }
 0x6c5   :  { %9270 = vst [vmem:[%s18284_s6 + $0x200] sm:$0xff] %v9014_v30  ;;  %9271 = vst [vmem:[%s18284_s6 + $0x208] sm:$0xff] %v9015_v18  ;;  %v8512_v26 = vpop.permute.xlu1 %8511  ;;  %v8508_v23 = vpop.permute.xlu0 %8507 }
 0x6c6   :  { %v9020_v49 = vmul.f32 %v11455_v12, %v8512_v26  ;;  %v9021_v37 = vmul.f32 %v11456_v21, %v8512_v26  ;;  %v9018_v61 = vmul.f32 %v11457_v5, %v8508_v23  ;;  %v9019_v35 = vmul.f32 %v11458_v41, %v8508_v23  ;;  %v11474_v26 = vld [vmem:[%s18278_s0 + $0x2a8] sm:$0xff] }
 0x6c7   :  { %8473 = vbcast.lane.b32.xlu1 %v8459_v60, 280  ;;  %8488 = vbcast.lane.b32.xlu0 %v8478_v6, 272  ;;  %v11469_v60 = vld [vmem:[%s18278_s0 + $0x280] sm:$0xff] }
 0x6c8   :  { %9276 = vst [vmem:[%s18284_s6 + $0x230] sm:$0xff] %v9020_v49  ;;  %9277 = vst [vmem:[%s18284_s6 + $0x238] sm:$0xff] %v9021_v37  ;;  %v11475_v49 = vld [vmem:[%s18278_s0 + $0x2d0] sm:$0xff]  ;;  %v11476_v37 = vld [vmem:[%s18278_s0 + $0x2d8] sm:$0xff] }
 0x6c9   :  { %9274 = vst [vmem:[%s18284_s6 + $0x220] sm:$0xff] %v9018_v61  ;;  %9275 = vst [vmem:[%s18284_s6 + $0x228] sm:$0xff] %v9019_v35  ;;  %v8523_v8 = vpop.permute.xlu1 %8522  ;;  %v8519_v40 = vpop.permute.xlu0 %8518  ;;  %v11477_v61 = vld [vmem:[%s18278_s0 + $0x2c0] sm:$0xff]  ;;  %v11478_v35 = vld [vmem:[%s18278_s0 + $0x2c8] sm:$0xff] }
 0x6ca   :  { %v9024_v16 = vmul.f32 %v11459_v47, %v8523_v8  ;;  %v9025_v13 = vmul.f32 %v11460_v62, %v8523_v8  ;;  %v9022_v20 = vmul.f32 %v11461_v45, %v8519_v40  ;;  %v9023_v34 = vmul.f32 %v11462_v15, %v8519_v40 }
 0x6cb   :  { %8484 = vbcast.lane.b32.xlu1 %v8478_v6, 264  ;;  %8803 = vbcast.lane.b32.xlu0 %v16600_v53, 256 }
 0x6cc   :  { %9280 = vst [vmem:[%s18284_s6 + $0x250] sm:$0xff] %v9024_v16  ;;  %9281 = vst [vmem:[%s18284_s6 + $0x258] sm:$0xff] %v9025_v13  ;;  %v11479_v16 = vld [vmem:[%s18278_s0 + $0x2f0] sm:$0xff]  ;;  %v11480_v13 = vld [vmem:[%s18278_s0 + $0x2f8] sm:$0xff] }
 0x6cd   :  { %9278 = vst [vmem:[%s18284_s6 + $0x240] sm:$0xff] %v9022_v20  ;;  %9279 = vst [vmem:[%s18284_s6 + $0x248] sm:$0xff] %v9023_v34  ;;  %v8531_v3 = vpop.permute.xlu1 %8530  ;;  %v8527_v59 = vpop.permute.xlu0 %8526  ;;  %v11481_v20 = vld [vmem:[%s18278_s0 + $0x2e0] sm:$0xff]  ;;  %v11482_v34 = vld [vmem:[%s18278_s0 + $0x2e8] sm:$0xff] }
 0x6ce   :  { %v9028_v10 = vmul.f32 %v11463_v7, %v8531_v3  ;;  %v9029_v4 = vmul.f32 %v11464_v57, %v8531_v3  ;;  %v9026_v2 = vmul.f32 %v11465_v56, %v8527_v59  ;;  %v9027_v38 = vmul.f32 %v11466_v54, %v8527_v59  ;;  %v11483_v7 = vld [vmem:[%s18278_s0 + $0x310] sm:$0xff]  ;;  %v11484_v57 = vld [vmem:[%s18278_s0 + $0x318] sm:$0xff]  ;;  %v11485_v56 = vld [vmem:[%s18278_s0 + $0x300] sm:$0xff] }
 0x6cf   :  { %8492 = vbcast.lane.b32.xlu1 %v8478_v6, 280  ;;  %8811 = vbcast.lane.b32.xlu0 %v16600_v53, 272  ;;  %v11486_v54 = vld [vmem:[%s18278_s0 + $0x308] sm:$0xff] }
 0x6d0   :  { %9284 = vst [vmem:[%s18284_s6 + $0x270] sm:$0xff] %v9028_v10  ;;  %9285 = vst [vmem:[%s18284_s6 + $0x278] sm:$0xff] %v9029_v4 }
 0x6d1   :  { %9282 = vst [vmem:[%s18284_s6 + $0x260] sm:$0xff] %v9026_v2  ;;  %9283 = vst [vmem:[%s18284_s6 + $0x268] sm:$0xff] %v9027_v38  ;;  %v8542_v31 = vpop.permute.xlu1 %8541  ;;  %v8538_v9 = vpop.permute.xlu0 %8537 }
 0x6d2   :  { %v9032_v19 = vmul.f32 %v11467_v63, %v8542_v31  ;;  %v9033_v51 = vmul.f32 %v11468_v58, %v8542_v31  ;;  %v9030_v14 = vmul.f32 %v11469_v60, %v8538_v9  ;;  %v9031_v6 = vmul.f32 %v11470_v11, %v8538_v9  ;;  %v11487_v63 = vld [vmem:[%s18278_s0 + $0x330] sm:$0xff]  ;;  %v11488_v58 = vld [vmem:[%s18278_s0 + $0x338] sm:$0xff]  ;;  %v11489_v60 = vld [vmem:[%s18278_s0 + $0x320] sm:$0xff] }
 0x6d3   :  { %8807 = vbcast.lane.b32.xlu1 %v16600_v53, 264  ;;  %8822 = vbcast.lane.b32.xlu0 %v16603_v0, 256  ;;  %v11490_v11 = vld [vmem:[%s18278_s0 + $0x328] sm:$0xff] }
 0x6d4   :  { %9288 = vst [vmem:[%s18284_s6 + $0x290] sm:$0xff] %v9032_v19  ;;  %9289 = vst [vmem:[%s18284_s6 + $0x298] sm:$0xff] %v9033_v51 }
 0x6d5   :  { %9286 = vst [vmem:[%s18284_s6 + $0x280] sm:$0xff] %v9030_v14  ;;  %9287 = vst [vmem:[%s18284_s6 + $0x288] sm:$0xff] %v9031_v6  ;;  %v8550_v17 = vpop.permute.xlu1 %8549  ;;  %v8546_v52 = vpop.permute.xlu0 %8545 }
 0x6d6   :  { %v9036_v25 = vmul.f32 %v11471_v43, %v8550_v17  ;;  %v9037_v30 = vmul.f32 %v11472_v29, %v8550_v17  ;;  %v9034_v18 = vmul.f32 %v11473_v44, %v8546_v52  ;;  %v9035_v23 = vmul.f32 %v11474_v26, %v8546_v52  ;;  %v11491_v52 = vld [vmem:[%s18278_s0 + $0x350] sm:$0xff] }
 0x6d7   :  { %8815 = vbcast.lane.b32.xlu1 %v16600_v53, 280  ;;  %8830 = vbcast.lane.b32.xlu0 %v16603_v0, 272 }
 0x6d8   :  { %9292 = vst [vmem:[%s18284_s6 + $0x2b0] sm:$0xff] %v9036_v25  ;;  %9293 = vst [vmem:[%s18284_s6 + $0x2b8] sm:$0xff] %v9037_v30  ;;  %v11492_v25 = vld [vmem:[%s18278_s0 + $0x358] sm:$0xff]  ;;  %v11493_v30 = vld [vmem:[%s18278_s0 + $0x340] sm:$0xff] }
 0x6d9   :  { %9290 = vst [vmem:[%s18284_s6 + $0x2a0] sm:$0xff] %v9034_v18  ;;  %9291 = vst [vmem:[%s18284_s6 + $0x2a8] sm:$0xff] %v9035_v23  ;;  %v8561_v12 = vpop.permute.xlu1 %8560  ;;  %v8557_v53 = vpop.permute.xlu0 %8556  ;;  %v11494_v18 = vld [vmem:[%s18278_s0 + $0x348] sm:$0xff] }
 0x6da   :  { %v9040_v21 = vmul.f32 %v11475_v49, %v8561_v12  ;;  %v9041_v5 = vmul.f32 %v11476_v37, %v8561_v12  ;;  %v9038_v41 = vmul.f32 %v11477_v61, %v8557_v53  ;;  %v9039_v8 = vmul.f32 %v11478_v35, %v8557_v53  ;;  %v11495_v53 = vld [vmem:[%s18278_s0 + $0x370] sm:$0xff] }
 0x6db   :  { %8826 = vbcast.lane.b32.xlu1 %v16603_v0, 264  ;;  %8841 = vbcast.lane.b32.xlu0 %v16606_v55, 256 }
 0x6dc   :  { %9296 = vst [vmem:[%s18284_s6 + $0x2d0] sm:$0xff] %v9040_v21  ;;  %9297 = vst [vmem:[%s18284_s6 + $0x2d8] sm:$0xff] %v9041_v5  ;;  %v11496_v21 = vld [vmem:[%s18278_s0 + $0x378] sm:$0xff]  ;;  %v11497_v5 = vld [vmem:[%s18278_s0 + $0x360] sm:$0xff] }
 0x6dd   :  { %9294 = vst [vmem:[%s18284_s6 + $0x2c0] sm:$0xff] %v9038_v41  ;;  %9295 = vst [vmem:[%s18284_s6 + $0x2c8] sm:$0xff] %v9039_v8  ;;  %v8569_v40 = vpop.permute.xlu1 %8568  ;;  %v8565_v47 = vpop.permute.xlu0 %8564  ;;  %v11498_v41 = vld [vmem:[%s18278_s0 + $0x368] sm:$0xff] }
 0x6de   :  { %v9044_v62 = vmul.f32 %v11479_v16, %v8569_v40  ;;  %v9045_v45 = vmul.f32 %v11480_v13, %v8569_v40  ;;  %v9042_v15 = vmul.f32 %v11481_v20, %v8565_v47  ;;  %v9043_v3 = vmul.f32 %v11482_v34, %v8565_v47  ;;  %v11499_v40 = vld [vmem:[%s18278_s0 + $0x390] sm:$0xff]  ;;  %v11500_v16 = vld [vmem:[%s18278_s0 + $0x398] sm:$0xff]  ;;  %v11501_v13 = vld [vmem:[%s18278_s0 + $0x380] sm:$0xff] }
 0x6df   :  { %8834 = vbcast.lane.b32.xlu1 %v16603_v0, 280  ;;  %8849 = vbcast.lane.b32.xlu0 %v16606_v55, 272  ;;  %v11502_v20 = vld [vmem:[%s18278_s0 + $0x388] sm:$0xff] }
 0x6e0   :  { %9300 = vst [vmem:[%s18284_s6 + $0x2f0] sm:$0xff] %v9044_v62  ;;  %9301 = vst [vmem:[%s18284_s6 + $0x2f8] sm:$0xff] %v9045_v45 }
 0x6e1   :  { %9298 = vst [vmem:[%s18284_s6 + $0x2e0] sm:$0xff] %v9042_v15  ;;  %9299 = vst [vmem:[%s18284_s6 + $0x2e8] sm:$0xff] %v9043_v3  ;;  %v8580_v59 = vpop.permute.xlu1 %8579  ;;  %v8576_v0 = vpop.permute.xlu0 %8575 }
 0x6e2   :  { %v9048_v10 = vmul.f32 %v11483_v7, %v8580_v59  ;;  %v9049_v4 = vmul.f32 %v11484_v57, %v8580_v59  ;;  %v9046_v2 = vmul.f32 %v11485_v56, %v8576_v0  ;;  %v9047_v38 = vmul.f32 %v11486_v54, %v8576_v0  ;;  %v11503_v59 = vld [vmem:[%s18278_s0 + $0x3b0] sm:$0xff]  ;;  %v11504_v7 = vld [vmem:[%s18278_s0 + $0x3b8] sm:$0xff]  ;;  %v11505_v57 = vld [vmem:[%s18278_s0 + $0x3a0] sm:$0xff] }
 0x6e3   :  { %8845 = vbcast.lane.b32.xlu1 %v16606_v55, 264  ;;  %8860 = vbcast.lane.b32.xlu0 %v16609_v50, 256  ;;  %v11506_v56 = vld [vmem:[%s18278_s0 + $0x3a8] sm:$0xff] }
 0x6e4   :  { %9304 = vst [vmem:[%s18284_s6 + $0x310] sm:$0xff] %v9048_v10  ;;  %9305 = vst [vmem:[%s18284_s6 + $0x318] sm:$0xff] %v9049_v4 }
 0x6e5   :  { %9302 = vst [vmem:[%s18284_s6 + $0x300] sm:$0xff] %v9046_v2  ;;  %9303 = vst [vmem:[%s18284_s6 + $0x308] sm:$0xff] %v9047_v38  ;;  %v8588_v31 = vpop.permute.xlu1 %8587  ;;  %v8584_v9 = vpop.permute.xlu0 %8583  ;;  %v11507_v38 = vld [vmem:[%s18278_s0 + $0x3d0] sm:$0xff] }
 0x6e6   :  { %v9052_v19 = vmul.f32 %v11487_v63, %v8588_v31  ;;  %v9053_v51 = vmul.f32 %v11488_v58, %v8588_v31  ;;  %v9050_v14 = vmul.f32 %v11489_v60, %v8584_v9  ;;  %v9051_v6 = vmul.f32 %v11490_v11, %v8584_v9  ;;  %v11508_v9 = vld [vmem:[%s18278_s0 + $0x3d8] sm:$0xff] }
 0x6e7   :  { %8853 = vbcast.lane.b32.xlu1 %v16606_v55, 280  ;;  %8868 = vbcast.lane.b32.xlu0 %v16609_v50, 272 }
 0x6e8   :  { %9308 = vst [vmem:[%s18284_s6 + $0x330] sm:$0xff] %v9052_v19  ;;  %9309 = vst [vmem:[%s18284_s6 + $0x338] sm:$0xff] %v9053_v51  ;;  %v11509_v19 = vld [vmem:[%s18278_s0 + $0x3c0] sm:$0xff]  ;;  %v11510_v51 = vld [vmem:[%s18278_s0 + $0x3c8] sm:$0xff] }
 0x6e9   :  { %9306 = vst [vmem:[%s18284_s6 + $0x320] sm:$0xff] %v9050_v14  ;;  %9307 = vst [vmem:[%s18284_s6 + $0x328] sm:$0xff] %v9051_v6  ;;  %v8599_v17 = vpop.permute.xlu1 %8598  ;;  %v8595_v55 = vpop.permute.xlu0 %8594  ;;  %v11511_v6 = vld [vmem:[%s18278_s0 + $0x3f0] sm:$0xff] }
 0x6ea   :  { %v9056_v43 = vmul.f32 %v11491_v52, %v8599_v17  ;;  %v9057_v29 = vmul.f32 %v11492_v25, %v8599_v17  ;;  %v9054_v44 = vmul.f32 %v11493_v30, %v8595_v55  ;;  %v9055_v26 = vmul.f32 %v11494_v18, %v8595_v55  ;;  %v11512_v55 = vld [vmem:[%s18278_s0 + $0x3f8] sm:$0xff]  ;;  %v11515_v18 = vld [vmem:[%s18278_s0 + $0x10] sm:$0xff] }
 0x6eb   :  { %8864 = vbcast.lane.b32.xlu1 %v16609_v50, 264  ;;  %8879 = vbcast.lane.b32.xlu0 %v16612_v46, 256 }
 0x6ec   :  { %9312 = vst [vmem:[%s18284_s6 + $0x350] sm:$0xff] %v9056_v43  ;;  %9313 = vst [vmem:[%s18284_s6 + $0x358] sm:$0xff] %v9057_v29  ;;  %v11513_v43 = vld [vmem:[%s18278_s0 + $0x3e0] sm:$0xff]  ;;  %v11514_v29 = vld [vmem:[%s18278_s0 + $0x3e8] sm:$0xff] }
 0x6ed   :  { %9310 = vst [vmem:[%s18284_s6 + $0x340] sm:$0xff] %v9054_v44  ;;  %9311 = vst [vmem:[%s18284_s6 + $0x348] sm:$0xff] %v9055_v26  ;;  %v8607_v23 = vpop.permute.xlu1 %8606  ;;  %v8603_v12 = vpop.permute.xlu0 %8602 }
 0x6ee   :  { %v9060_v49 = vmul.f32 %v11495_v53, %v8607_v23  ;;  %v9061_v37 = vmul.f32 %v11496_v21, %v8607_v23  ;;  %v9058_v61 = vmul.f32 %v11497_v5, %v8603_v12  ;;  %v9059_v35 = vmul.f32 %v11498_v41, %v8603_v12  ;;  %v11516_v23 = vld [vmem:[%s18278_s0 + $0x18] sm:$0xff]  ;;  %v11517_v53 = vld [vmem:[%s18278_s0] sm:$0xff]  ;;  %v11518_v21 = vld [vmem:[%s18278_s0 + $0x8] sm:$0xff] }
 0x6ef   :  { %8872 = vbcast.lane.b32.xlu1 %v16609_v50, 280  ;;  %8887 = vbcast.lane.b32.xlu0 %v16612_v46, 272  ;;  %v11519_v41 = vld [vmem:[%s18278_s0 + $0x20] sm:$0xff] }
 0x6f0   :  { %9316 = vst [vmem:[%s18284_s6 + $0x370] sm:$0xff] %v9060_v49  ;;  %9317 = vst [vmem:[%s18284_s6 + $0x378] sm:$0xff] %v9061_v37 }
 0x6f1   :  { %9314 = vst [vmem:[%s18284_s6 + $0x360] sm:$0xff] %v9058_v61  ;;  %9315 = vst [vmem:[%s18284_s6 + $0x368] sm:$0xff] %v9059_v35  ;;  %v8618_v8 = vpop.permute.xlu1 %8617  ;;  %v8614_v50 = vpop.permute.xlu0 %8613 }
 0x6f2   :  { %v9064_v47 = vmul.f32 %v11499_v40, %v8618_v8  ;;  %v9065_v62 = vmul.f32 %v11500_v16, %v8618_v8  ;;  %v9062_v45 = vmul.f32 %v11501_v13, %v8614_v50  ;;  %v9063_v15 = vmul.f32 %v11502_v20, %v8614_v50  ;;  %v11520_v8 = vld [vmem:[%s18278_s0 + $0x28] sm:$0xff]  ;;  %v11521_v40 = vld [vmem:[%s18278_s0 + $0x40] sm:$0xff] }
 0x6f3   :  { %8883 = vbcast.lane.b32.xlu1 %v16612_v46, 264  ;;  %8898 = vbcast.lane.b32.xlu0 %v16615_v33, 256  ;;  %v11522_v16 = vld [vmem:[%s18278_s0 + $0x48] sm:$0xff] }
 0x6f4   :  { %9320 = vst [vmem:[%s18284_s6 + $0x390] sm:$0xff] %v9064_v47  ;;  %9321 = vst [vmem:[%s18284_s6 + $0x398] sm:$0xff] %v9065_v62 }
 0x6f5   :  { %9318 = vst [vmem:[%s18284_s6 + $0x380] sm:$0xff] %v9062_v45  ;;  %9319 = vst [vmem:[%s18284_s6 + $0x388] sm:$0xff] %v9063_v15  ;;  %v8626_v34 = vpop.permute.xlu1 %8625  ;;  %v8622_v3 = vpop.permute.xlu0 %8621  ;;  %v11523_v45 = vld [vmem:[%s18278_s0 + $0x30] sm:$0xff]  ;;  %v11524_v15 = vld [vmem:[%s18278_s0 + $0x38] sm:$0xff] }
 0x6f6   :  { %v9068_v0 = vmul.f32 %v11503_v59, %v8626_v34  ;;  %v9069_v10 = vmul.f32 %v11504_v7, %v8626_v34  ;;  %v9066_v4 = vmul.f32 %v11505_v57, %v8622_v3  ;;  %v9067_v2 = vmul.f32 %v11506_v56, %v8622_v3  ;;  %v11525_v3 = vld [vmem:[%s18278_s0 + $0x60] sm:$0xff] }
 0x6f7   :  { %8891 = vbcast.lane.b32.xlu1 %v16612_v46, 280  ;;  %8906 = vbcast.lane.b32.xlu0 %v16615_v33, 272 }
 0x6f8   :  { %9324 = vst [vmem:[%s18284_s6 + $0x3b0] sm:$0xff] %v9068_v0  ;;  %9325 = vst [vmem:[%s18284_s6 + $0x3b8] sm:$0xff] %v9069_v10  ;;  %v11526_v0 = vld [vmem:[%s18278_s0 + $0x68] sm:$0xff] }
 0x6f9   :  { %9322 = vst [vmem:[%s18284_s6 + $0x3a0] sm:$0xff] %v9066_v4  ;;  %9323 = vst [vmem:[%s18284_s6 + $0x3a8] sm:$0xff] %v9067_v2  ;;  %v8637_v54 = vpop.permute.xlu1 %8636  ;;  %v8633_v46 = vpop.permute.xlu0 %8632  ;;  %v11527_v4 = vld [vmem:[%s18278_s0 + $0x50] sm:$0xff]  ;;  %v11528_v2 = vld [vmem:[%s18278_s0 + $0x58] sm:$0xff] }
 0x6fa   :  { %v9072_v31 = vmul.f32 %v11507_v38, %v8637_v54  ;;  %v9073_v63 = vmul.f32 %v11508_v9, %v8637_v54  ;;  %v9070_v58 = vmul.f32 %v11509_v19, %v8633_v46  ;;  %v9071_v60 = vmul.f32 %v11510_v51, %v8633_v46  ;;  %v11529_v46 = vld [vmem:[%s18278_s0 + $0x80] sm:$0xff] }
 0x6fb   :  { %8902 = vbcast.lane.b32.xlu1 %v16615_v33, 264  ;;  %8917 = vbcast.lane.b32.xlu0 %v16618_v1, 256 }
 0x6fc   :  { %9328 = vst [vmem:[%s18284_s6 + $0x3d0] sm:$0xff] %v9072_v31  ;;  %9329 = vst [vmem:[%s18284_s6 + $0x3d8] sm:$0xff] %v9073_v63  ;;  %v11530_v31 = vld [vmem:[%s18278_s0 + $0x88] sm:$0xff] }
 0x6fd   :  { %9326 = vst [vmem:[%s18284_s6 + $0x3c0] sm:$0xff] %v9070_v58  ;;  %9327 = vst [vmem:[%s18284_s6 + $0x3c8] sm:$0xff] %v9071_v60  ;;  %v8645_v14 = vpop.permute.xlu1 %8644  ;;  %v8641_v11 = vpop.permute.xlu0 %8640  ;;  %v11531_v58 = vld [vmem:[%s18278_s0 + $0x70] sm:$0xff]  ;;  %v11532_v60 = vld [vmem:[%s18278_s0 + $0x78] sm:$0xff] }
 0x6fe   :  { %v9076_v17 = vmul.f32 %v11511_v6, %v8645_v14  ;;  %v9077_v52 = vmul.f32 %v11512_v55, %v8645_v14  ;;  %v9074_v25 = vmul.f32 %v11513_v43, %v8641_v11  ;;  %v9075_v30 = vmul.f32 %v11514_v29, %v8641_v11  ;;  %v11533_v11 = vld [vmem:[%s18278_s0 + $0xa0] sm:$0xff]  ;;  %v11535_v43 = vld [vmem:[%s18278_s0 + $0x90] sm:$0xff]  ;;  %v11536_v29 = vld [vmem:[%s18278_s0 + $0x98] sm:$0xff] }
 0x6ff   :  { %8910 = vbcast.lane.b32.xlu1 %v16615_v33, 280  ;;  %8925 = vbcast.lane.b32.xlu0 %v16618_v1, 272 }
 0x700   :  { %9332 = vst [vmem:[%s18284_s6 + $0x3f0] sm:$0xff] %v9076_v17  ;;  %9333 = vst [vmem:[%s18284_s6 + $0x3f8] sm:$0xff] %v9077_v52  ;;  %v11534_v17 = vld [vmem:[%s18278_s0 + $0xa8] sm:$0xff] }
 0x701   :  { %9330 = vst [vmem:[%s18284_s6 + $0x3e0] sm:$0xff] %v9074_v25  ;;  %9331 = vst [vmem:[%s18284_s6 + $0x3e8] sm:$0xff] %v9075_v30  ;;  %v8352_v44 = vpop.permute.xlu1 %8351  ;;  %v8348_v33 = vpop.permute.xlu0 %8347 }
 0x702   :  { %v8952_v26 = vmul.f32 %v11515_v18, %v8352_v44  ;;  %v8953_v12 = vmul.f32 %v11516_v23, %v8352_v44  ;;  %v8950_v49 = vmul.f32 %v11517_v53, %v8348_v33  ;;  %v8951_v37 = vmul.f32 %v11518_v21, %v8348_v33  ;;  %v11537_v44 = vld [vmem:[%s18278_s0 + $0xc0] sm:$0xff]  ;;  %v11538_v18 = vld [vmem:[%s18278_s0 + $0xc8] sm:$0xff]  ;;  %v11539_v53 = vld [vmem:[%s18278_s0 + $0xb0] sm:$0xff] }
 0x703   :  { %8921 = vbcast.lane.b32.xlu1 %v16618_v1, 264  ;;  %8936 = vbcast.lane.b32.xlu0 %v16621_v28, 256  ;;  %v11540_v21 = vld [vmem:[%s18278_s0 + $0xb8] sm:$0xff] }
 0x704   :  { %9208 = vst [vmem:[%s18284_s6 + $0x10] sm:$0xff] %v8952_v26  ;;  %9209 = vst [vmem:[%s18284_s6 + $0x18] sm:$0xff] %v8953_v12 }
 0x705   :  { %9206 = vst [vmem:[%s18284_s6] sm:$0xff] %v8950_v49  ;;  %9207 = vst [vmem:[%s18284_s6 + $0x8] sm:$0xff] %v8951_v37  ;;  %v8356_v5 = vpop.permute.xlu1 %8355  ;;  %v8367_v61 = vpop.permute.xlu0 %8366 }
 0x706   :  { %v8954_v35 = vmul.f32 %v11519_v41, %v8356_v5  ;;  %v8955_v50 = vmul.f32 %v11520_v8, %v8356_v5  ;;  %v8958_v47 = vmul.f32 %v11521_v40, %v8367_v61  ;;  %v8959_v62 = vmul.f32 %v11522_v16, %v8367_v61  ;;  %v11541_v5 = vld [vmem:[%s18278_s0 + $0xe0] sm:$0xff]  ;;  %v11542_v41 = vld [vmem:[%s18278_s0 + $0xe8] sm:$0xff] }
 0x707   :  { %8929 = vbcast.lane.b32.xlu1 %v16618_v1, 280  ;;  %8651 = vbcast.lane.b32.xlu0 %v16623_v36, 256 }
 0x708   :  { %9210 = vst [vmem:[%s18284_s6 + $0x20] sm:$0xff] %v8954_v35  ;;  %9211 = vst [vmem:[%s18284_s6 + $0x28] sm:$0xff] %v8955_v50  ;;  %v11543_v50 = vld [vmem:[%s18278_s0 + $0xd0] sm:$0xff] }
 0x709   :  { %9214 = vst [vmem:[%s18284_s6 + $0x40] sm:$0xff] %v8958_v47  ;;  %9215 = vst [vmem:[%s18284_s6 + $0x48] sm:$0xff] %v8959_v62  ;;  %v8360_v13 = vpop.permute.xlu1 %8359  ;;  %v8375_v1 = vpop.permute.xlu0 %8374  ;;  %v11544_v47 = vld [vmem:[%s18278_s0 + $0xd8] sm:$0xff]  ;;  %v11545_v62 = vld [vmem:[%s18278_s0 + $0x100] sm:$0xff] }
 0x70a   :  { %v8956_v20 = vmul.f32 %v11523_v45, %v8360_v13  ;;  %v8957_v34 = vmul.f32 %v11524_v15, %v8360_v13  ;;  %v8962_v59 = vmul.f32 %v11525_v3, %v8375_v1  ;;  %v8963_v7 = vmul.f32 %v11526_v0, %v8375_v1  ;;  %v11546_v1 = vld [vmem:[%s18278_s0 + $0x108] sm:$0xff] }
 0x70b   :  { %8940 = vbcast.lane.b32.xlu1 %v16621_v28, 264  ;;  %8659 = vbcast.lane.b32.xlu0 %v16623_v36, 272 }
 0x70c   :  { %9212 = vst [vmem:[%s18284_s6 + $0x30] sm:$0xff] %v8956_v20  ;;  %9213 = vst [vmem:[%s18284_s6 + $0x38] sm:$0xff] %v8957_v34  ;;  %v11547_v34 = vld [vmem:[%s18278_s0 + $0xf0] sm:$0xff] }
 0x70d   :  { %9218 = vst [vmem:[%s18284_s6 + $0x60] sm:$0xff] %v8962_v59  ;;  %9219 = vst [vmem:[%s18284_s6 + $0x68] sm:$0xff] %v8963_v7  ;;  %v8371_v10 = vpop.permute.xlu1 %8370  ;;  %v8386_v57 = vpop.permute.xlu0 %8385  ;;  %v11548_v59 = vld [vmem:[%s18278_s0 + $0xf8] sm:$0xff]  ;;  %v11549_v7 = vld [vmem:[%s18278_s0 + $0x120] sm:$0xff] }
 0x70e   :  { %v8960_v56 = vmul.f32 %v11527_v4, %v8371_v10  ;;  %v8961_v54 = vmul.f32 %v11528_v2, %v8371_v10  ;;  %v8966_v38 = vmul.f32 %v11529_v46, %v8386_v57  ;;  %v8967_v9 = vmul.f32 %v11530_v31, %v8386_v57  ;;  %v11550_v57 = vld [vmem:[%s18278_s0 + $0x128] sm:$0xff]  ;;  %v11551_v2 = vld [vmem:[%s18278_s0 + $0x110] sm:$0xff]  ;;  %v11552_v46 = vld [vmem:[%s18278_s0 + $0x118] sm:$0xff] }
 0x70f   :  { %8655 = vbcast.lane.b32.xlu1 %v16623_v36, 264  ;;  %8670 = vbcast.lane.b32.xlu0 %v16626_v39, 256  ;;  %v11553_v31 = vld [vmem:[%s18278_s0 + $0x140] sm:$0xff] }
 0x710   :  { %9216 = vst [vmem:[%s18284_s6 + $0x50] sm:$0xff] %v8960_v56  ;;  %9217 = vst [vmem:[%s18284_s6 + $0x58] sm:$0xff] %v8961_v54 }
 0x711   :  { %9222 = vst [vmem:[%s18284_s6 + $0x80] sm:$0xff] %v8966_v38  ;;  %9223 = vst [vmem:[%s18284_s6 + $0x88] sm:$0xff] %v8967_v9  ;;  %v8379_v63 = vpop.permute.xlu1 %8378  ;;  %v8394_v19 = vpop.permute.xlu0 %8393 }
 0x712   :  { %v8964_v51 = vmul.f32 %v11531_v58, %v8379_v63  ;;  %v8965_v14 = vmul.f32 %v11532_v60, %v8379_v63  ;;  %v8970_v6 = vmul.f32 %v11533_v11, %v8394_v19  ;;  %v8971_v55 = vmul.f32 %v11534_v17, %v8394_v19  ;;  %v11554_v63 = vld [vmem:[%s18278_s0 + $0x148] sm:$0xff]  ;;  %v11555_v60 = vld [vmem:[%s18278_s0 + $0x130] sm:$0xff]  ;;  %v11556_v11 = vld [vmem:[%s18278_s0 + $0x138] sm:$0xff] }
 0x713   :  { %8663 = vbcast.lane.b32.xlu1 %v16623_v36, 280  ;;  %8678 = vbcast.lane.b32.xlu0 %v16626_v39, 272  ;;  %v11557_v17 = vld [vmem:[%s18278_s0 + $0x160] sm:$0xff] }
 0x714   :  { %9220 = vst [vmem:[%s18284_s6 + $0x70] sm:$0xff] %v8964_v51  ;;  %9221 = vst [vmem:[%s18284_s6 + $0x78] sm:$0xff] %v8965_v14 }
 0x715   :  { %9226 = vst [vmem:[%s18284_s6 + $0xa0] sm:$0xff] %v8970_v6  ;;  %9227 = vst [vmem:[%s18284_s6 + $0xa8] sm:$0xff] %v8971_v55  ;;  %v8390_v52 = vpop.permute.xlu1 %8389  ;;  %v8405_v36 = vpop.permute.xlu0 %8404 }
 0x716   :  { %v8968_v25 = vmul.f32 %v11535_v43, %v8390_v52  ;;  %v8969_v30 = vmul.f32 %v11536_v29, %v8390_v52  ;;  %v8974_v33 = vmul.f32 %v11537_v44, %v8405_v36  ;;  %v8975_v26 = vmul.f32 %v11538_v18, %v8405_v36  ;;  %v11558_v52 = vld [vmem:[%s18278_s0 + $0x168] sm:$0xff] }
 0x717   :  { %8674 = vbcast.lane.b32.xlu1 %v16626_v39, 264  ;;  %8689 = vbcast.lane.b32.xlu0 %v16629_v24, 256 }
 0x718   :  { %9224 = vst [vmem:[%s18284_s6 + $0x90] sm:$0xff] %v8968_v25  ;;  %9225 = vst [vmem:[%s18284_s6 + $0x98] sm:$0xff] %v8969_v30  ;;  %v11559_v25 = vld [vmem:[%s18278_s0 + $0x150] sm:$0xff]  ;;  %v11560_v30 = vld [vmem:[%s18278_s0 + $0x158] sm:$0xff] }
 0x719   :  { %9230 = vst [vmem:[%s18284_s6 + $0xc0] sm:$0xff] %v8974_v33  ;;  %9231 = vst [vmem:[%s18284_s6 + $0xc8] sm:$0xff] %v8975_v26  ;;  %v8398_v23 = vpop.permute.xlu1 %8397  ;;  %v8413_v12 = vpop.permute.xlu0 %8412  ;;  %v11561_v33 = vld [vmem:[%s18278_s0 + $0x180] sm:$0xff]  ;;  %v11562_v26 = vld [vmem:[%s18278_s0 + $0x188] sm:$0xff] }
 0x71a   :  { %v8972_v49 = vmul.f32 %v11539_v53, %v8398_v23  ;;  %v8973_v37 = vmul.f32 %v11540_v21, %v8398_v23  ;;  %v8978_v61 = vmul.f32 %v11541_v5, %v8413_v12  ;;  %v8979_v35 = vmul.f32 %v11542_v41, %v8413_v12 }
 0x71b   :  { %8682 = vbcast.lane.b32.xlu1 %v16626_v39, 280  ;;  %8697 = vbcast.lane.b32.xlu0 %v16629_v24, 272 }
 0x71c   :  { %9228 = vst [vmem:[%s18284_s6 + $0xb0] sm:$0xff] %v8972_v49  ;;  %9229 = vst [vmem:[%s18284_s6 + $0xb8] sm:$0xff] %v8973_v37  ;;  %v11563_v49 = vld [vmem:[%s18278_s0 + $0x170] sm:$0xff]  ;;  %v11564_v37 = vld [vmem:[%s18278_s0 + $0x178] sm:$0xff] }
 0x71d   :  { %9234 = vst [vmem:[%s18284_s6 + $0xe0] sm:$0xff] %v8978_v61  ;;  %9235 = vst [vmem:[%s18284_s6 + $0xe8] sm:$0xff] %v8979_v35  ;;  %v8409_v8 = vpop.permute.xlu1 %8408  ;;  %v8424_v39 = vpop.permute.xlu0 %8423  ;;  %v11565_v61 = vld [vmem:[%s18278_s0 + $0x1a0] sm:$0xff]  ;;  %v11566_v35 = vld [vmem:[%s18278_s0 + $0x1a8] sm:$0xff] }
 0x71e   :  { %v8976_v40 = vmul.f32 %v11543_v50, %v8409_v8  ;;  %v8977_v16 = vmul.f32 %v11544_v47, %v8409_v8  ;;  %v8982_v13 = vmul.f32 %v11545_v62, %v8424_v39  ;;  %v8983_v45 = vmul.f32 %v11546_v1, %v8424_v39  ;;  %v11567_v50 = vld [vmem:[%s18278_s0 + $0x190] sm:$0xff]  ;;  %v11568_v47 = vld [vmem:[%s18278_s0 + $0x198] sm:$0xff]  ;;  %v11569_v62 = vld [vmem:[%s18278_s0 + $0x1c0] sm:$0xff] }
 0x71f   :  { %8693 = vbcast.lane.b32.xlu1 %v16629_v24, 264  ;;  %8708 = vbcast.lane.b32.xlu0 %v16632_v32, 256  ;;  %v11570_v1 = vld [vmem:[%s18278_s0 + $0x1c8] sm:$0xff] }
 0x720   :  { %9232 = vst [vmem:[%s18284_s6 + $0xd0] sm:$0xff] %v8976_v40  ;;  %9233 = vst [vmem:[%s18284_s6 + $0xd8] sm:$0xff] %v8977_v16 }
 0x721   :  { %9238 = vst [vmem:[%s18284_s6 + $0x100] sm:$0xff] %v8982_v13  ;;  %9239 = vst [vmem:[%s18284_s6 + $0x108] sm:$0xff] %v8983_v45  ;;  %v8417_v20 = vpop.permute.xlu1 %8416  ;;  %v8432_v15 = vpop.permute.xlu0 %8431 }
 0x722   :  { %v8980_v3 = vmul.f32 %v11547_v34, %v8417_v20  ;;  %v8981_v0 = vmul.f32 %v11548_v59, %v8417_v20  ;;  %v8986_v10 = vmul.f32 %v11549_v7, %v8432_v15  ;;  %v8987_v4 = vmul.f32 %v11550_v57, %v8432_v15  ;;  %v11571_v34 = vld [vmem:[%s18278_s0 + $0x1b0] sm:$0xff]  ;;  %v11572_v59 = vld [vmem:[%s18278_s0 + $0x1b8] sm:$0xff]  ;;  %v11573_v7 = vld [vmem:[%s18278_s0 + $0x1e0] sm:$0xff] }
 0x723   :  { %8701 = vbcast.lane.b32.xlu1 %v16629_v24, 280  ;;  %8716 = vbcast.lane.b32.xlu0 %v16632_v32, 272  ;;  %v11574_v57 = vld [vmem:[%s18278_s0 + $0x1e8] sm:$0xff] }
 0x724   :  { %9236 = vst [vmem:[%s18284_s6 + $0xf0] sm:$0xff] %v8980_v3  ;;  %9237 = vst [vmem:[%s18284_s6 + $0xf8] sm:$0xff] %v8981_v0 }
 0x725   :  { %9242 = vst [vmem:[%s18284_s6 + $0x120] sm:$0xff] %v8986_v10  ;;  %9243 = vst [vmem:[%s18284_s6 + $0x128] sm:$0xff] %v8987_v4  ;;  %v8428_v56 = vpop.permute.xlu1 %8427  ;;  %v8443_v24 = vpop.permute.xlu0 %8442 }
 0x726   :  { %v8984_v54 = vmul.f32 %v11551_v2, %v8428_v56  ;;  %v8985_v38 = vmul.f32 %v11552_v46, %v8428_v56  ;;  %v8990_v9 = vmul.f32 %v11553_v31, %v8443_v24  ;;  %v8991_v19 = vmul.f32 %v11554_v63, %v8443_v24  ;;  %v11575_v24 = vld [vmem:[%s18278_s0 + $0x1d0] sm:$0xff] }
 0x727   :  { %8712 = vbcast.lane.b32.xlu1 %v16632_v32, 264  ;;  %8727 = vbcast.lane.b32.xlu0 %v16635_v22, 256 }
 0x728   :  { %9240 = vst [vmem:[%s18284_s6 + $0x110] sm:$0xff] %v8984_v54  ;;  %9241 = vst [vmem:[%s18284_s6 + $0x118] sm:$0xff] %v8985_v38  ;;  %v11576_v54 = vld [vmem:[%s18278_s0 + $0x1d8] sm:$0xff]  ;;  %v11577_v38 = vld [vmem:[%s18278_s0 + $0x600] sm:$0xff] }
 0x729   :  { %9246 = vst [vmem:[%s18284_s6 + $0x140] sm:$0xff] %v8990_v9  ;;  %9247 = vst [vmem:[%s18284_s6 + $0x148] sm:$0xff] %v8991_v19  ;;  %v8436_v58 = vpop.permute.xlu1 %8435  ;;  %v8451_v51 = vpop.permute.xlu0 %8450  ;;  %v11578_v9 = vld [vmem:[%s18278_s0 + $0x608] sm:$0xff] }
 0x72a   :  { %v8988_v14 = vmul.f32 %v11555_v60, %v8436_v58  ;;  %v8989_v6 = vmul.f32 %v11556_v11, %v8436_v58  ;;  %v8994_v55 = vmul.f32 %v11557_v17, %v8451_v51  ;;  %v8995_v36 = vmul.f32 %v11558_v52, %v8451_v51  ;;  %v11579_v51 = vld [vmem:[%s18278_s0 + $0x1f0] sm:$0xff] }
 0x72b   :  { %8720 = vbcast.lane.b32.xlu1 %v16632_v32, 280  ;;  %8735 = vbcast.lane.b32.xlu0 %v16635_v22, 272 }
 0x72c   :  { %9244 = vst [vmem:[%s18284_s6 + $0x130] sm:$0xff] %v8988_v14  ;;  %9245 = vst [vmem:[%s18284_s6 + $0x138] sm:$0xff] %v8989_v6  ;;  %v11580_v14 = vld [vmem:[%s18278_s0 + $0x1f8] sm:$0xff]  ;;  %v11581_v6 = vld [vmem:[%s18278_s0 + $0x620] sm:$0xff] }
 0x72d   :  { %9250 = vst [vmem:[%s18284_s6 + $0x160] sm:$0xff] %v8994_v55  ;;  %9251 = vst [vmem:[%s18284_s6 + $0x168] sm:$0xff] %v8995_v36  ;;  %v8447_v43 = vpop.permute.xlu1 %8446  ;;  %v8462_v32 = vpop.permute.xlu0 %8461  ;;  %v11582_v55 = vld [vmem:[%s18278_s0 + $0x628] sm:$0xff] }
 0x72e   :  { %v8992_v29 = vmul.f32 %v11559_v25, %v8447_v43  ;;  %v8993_v44 = vmul.f32 %v11560_v30, %v8447_v43  ;;  %v8998_v18 = vmul.f32 %v11561_v33, %v8462_v32  ;;  %v8999_v23 = vmul.f32 %v11562_v26, %v8462_v32  ;;  %v11583_v43 = vld [vmem:[%s18278_s0 + $0x610] sm:$0xff]  ;;  %v11584_v25 = vld [vmem:[%s18278_s0 + $0x618] sm:$0xff]  ;;  %v11585_v30 = vld [vmem:[%s18278_s0 + $0x640] sm:$0xff] }
 0x72f   :  { %8731 = vbcast.lane.b32.xlu1 %v16635_v22, 264  ;;  %8746 = vbcast.lane.b32.xlu0 %v16640_v27, 256  ;;  %v11586_v33 = vld [vmem:[%s18278_s0 + $0x648] sm:$0xff] }
 0x730   :  { %9248 = vst [vmem:[%s18284_s6 + $0x150] sm:$0xff] %v8992_v29  ;;  %9249 = vst [vmem:[%s18284_s6 + $0x158] sm:$0xff] %v8993_v44 }
 0x731   :  { %9254 = vst [vmem:[%s18284_s6 + $0x180] sm:$0xff] %v8998_v18  ;;  %9255 = vst [vmem:[%s18284_s6 + $0x188] sm:$0xff] %v8999_v23  ;;  %v8455_v12 = vpop.permute.xlu1 %8454  ;;  %v8470_v53 = vpop.permute.xlu0 %8469 }
 0x732   :  { %v8996_v21 = vmul.f32 %v11563_v49, %v8455_v12  ;;  %v8997_v5 = vmul.f32 %v11564_v37, %v8455_v12  ;;  %v9002_v41 = vmul.f32 %v11565_v61, %v8470_v53  ;;  %v9003_v8 = vmul.f32 %v11566_v35, %v8470_v53  ;;  %v11587_v12 = vld [vmem:[%s18278_s0 + $0x630] sm:$0xff]  ;;  %v11588_v49 = vld [vmem:[%s18278_s0 + $0x638] sm:$0xff]  ;;  %v11589_v37 = vld [vmem:[%s18278_s0 + $0x660] sm:$0xff] }
 0x733   :  { %8739 = vbcast.lane.b32.xlu1 %v16635_v22, 280  ;;  %8754 = vbcast.lane.b32.xlu0 %v16640_v27, 272  ;;  %v11590_v61 = vld [vmem:[%s18278_s0 + $0x668] sm:$0xff] }
 0x734   :  { %9252 = vst [vmem:[%s18284_s6 + $0x170] sm:$0xff] %v8996_v21  ;;  %9253 = vst [vmem:[%s18284_s6 + $0x178] sm:$0xff] %v8997_v5 }
 0x735   :  { %9258 = vst [vmem:[%s18284_s6 + $0x1a0] sm:$0xff] %v9002_v41  ;;  %9259 = vst [vmem:[%s18284_s6 + $0x1a8] sm:$0xff] %v9003_v8  ;;  %v8466_v39 = vpop.permute.xlu1 %8465  ;;  %v8481_v22 = vpop.permute.xlu0 %8480 }
 0x736   :  { %v9000_v40 = vmul.f32 %v11567_v50, %v8466_v39  ;;  %v9001_v16 = vmul.f32 %v11568_v47, %v8466_v39  ;;  %v9006_v13 = vmul.f32 %v11569_v62, %v8481_v22  ;;  %v9007_v45 = vmul.f32 %v11570_v1, %v8481_v22  ;;  %v11592_v22 = vld [vmem:[%s18278_s0 + $0x658] sm:$0xff] }
 0x737   :  { %8750 = vbcast.lane.b32.xlu1 %v16640_v27, 264  ;;  %8765 = vbcast.lane.b32.xlu0 %v16643_v42, 256 }
 0x738   :  { %9256 = vst [vmem:[%s18284_s6 + $0x190] sm:$0xff] %v9000_v40  ;;  %9257 = vst [vmem:[%s18284_s6 + $0x198] sm:$0xff] %v9001_v16  ;;  %v11593_v40 = vld [vmem:[%s18278_s0 + $0x680] sm:$0xff]  ;;  %v11594_v16 = vld [vmem:[%s18278_s0 + $0x688] sm:$0xff] }
 0x739   :  { %9262 = vst [vmem:[%s18284_s6 + $0x1c0] sm:$0xff] %v9006_v13  ;;  %9263 = vst [vmem:[%s18284_s6 + $0x1c8] sm:$0xff] %v9007_v45  ;;  %v8474_v20 = vpop.permute.xlu1 %8473  ;;  %v8489_v15 = vpop.permute.xlu0 %8488 }
 0x73a   :  { %v9004_v3 = vmul.f32 %v11571_v34, %v8474_v20  ;;  %v9005_v0 = vmul.f32 %v11572_v59, %v8474_v20  ;;  %v9010_v10 = vmul.f32 %v11573_v7, %v8489_v15  ;;  %v9011_v4 = vmul.f32 %v11574_v57, %v8489_v15  ;;  %v11596_v20 = vld [vmem:[%s18278_s0 + $0x678] sm:$0xff]  ;;  %v11597_v34 = vld [vmem:[%s18278_s0 + $0x6a0] sm:$0xff]  ;;  %v11598_v59 = vld [vmem:[%s18278_s0 + $0x6a8] sm:$0xff] }
 0x73b   :  { %8758 = vbcast.lane.b32.xlu1 %v16640_v27, 280  ;;  %8773 = vbcast.lane.b32.xlu0 %v16643_v42, 272  ;;  %v11599_v57 = vld [vmem:[%s18278_s0 + $0x690] sm:$0xff] }
 0x73c   :  { %9260 = vst [vmem:[%s18284_s6 + $0x1b0] sm:$0xff] %v9004_v3  ;;  %9261 = vst [vmem:[%s18284_s6 + $0x1b8] sm:$0xff] %v9005_v0 }
 0x73d   :  { %9266 = vst [vmem:[%s18284_s6 + $0x1e0] sm:$0xff] %v9010_v10  ;;  %9267 = vst [vmem:[%s18284_s6 + $0x1e8] sm:$0xff] %v9011_v4  ;;  %v8485_v56 = vpop.permute.xlu1 %8484  ;;  %v8804_v27 = vpop.permute.xlu0 %8803 }
 0x73e   :  { %v9008_v2 = vmul.f32 %v11575_v24, %v8485_v56  ;;  %v9009_v46 = vmul.f32 %v11576_v54, %v8485_v56  ;;  %v9142_v31 = vmul.f32 %v11577_v38, %v8804_v27  ;;  %v9143_v63 = vmul.f32 %v11578_v9, %v8804_v27  ;;  %v11600_v56 = vld [vmem:[%s18278_s0 + $0x698] sm:$0xff]  ;;  %v11601_v24 = vld [vmem:[%s18278_s0 + $0x6c0] sm:$0xff]  ;;  %v11602_v54 = vld [vmem:[%s18278_s0 + $0x6c8] sm:$0xff] }
 0x73f   :  { %8769 = vbcast.lane.b32.xlu1 %v16643_v42, 264  ;;  %8784 = vbcast.lane.b32.xlu0 %v16646_v48, 256  ;;  %v11603_v9 = vld [vmem:[%s18278_s0 + $0x6b0] sm:$0xff] }
 0x740   :  { %9264 = vst [vmem:[%s18284_s6 + $0x1d0] sm:$0xff] %v9008_v2  ;;  %9265 = vst [vmem:[%s18284_s6 + $0x1d8] sm:$0xff] %v9009_v46 }
 0x741   :  { %9398 = vst [vmem:[%s18284_s6 + $0x600] sm:$0xff] %v9142_v31  ;;  %9399 = vst [vmem:[%s18284_s6 + $0x608] sm:$0xff] %v9143_v63  ;;  %v8493_v19 = vpop.permute.xlu1 %8492  ;;  %v8812_v58 = vpop.permute.xlu0 %8811 }
 0x742   :  { %v9012_v60 = vmul.f32 %v11579_v51, %v8493_v19  ;;  %v9013_v11 = vmul.f32 %v11580_v14, %v8493_v19  ;;  %v9146_v17 = vmul.f32 %v11581_v6, %v8812_v58  ;;  %v9147_v52 = vmul.f32 %v11582_v55, %v8812_v58  ;;  %v11604_v19 = vld [vmem:[%s18278_s0 + $0x6b8] sm:$0xff]  ;;  %v11605_v51 = vld [vmem:[%s18278_s0 + $0x6e0] sm:$0xff]  ;;  %v11606_v14 = vld [vmem:[%s18278_s0 + $0x6e8] sm:$0xff] }
 0x743   :  { %8777 = vbcast.lane.b32.xlu1 %v16643_v42, 280  ;;  %8792 = vbcast.lane.b32.xlu0 %v16646_v48, 272  ;;  %v11607_v55 = vld [vmem:[%s18278_s0 + $0x6d0] sm:$0xff] }
 0x744   :  { %9268 = vst [vmem:[%s18284_s6 + $0x1f0] sm:$0xff] %v9012_v60  ;;  %9269 = vst [vmem:[%s18284_s6 + $0x1f8] sm:$0xff] %v9013_v11 }
 0x745   :  { %9402 = vst [vmem:[%s18284_s6 + $0x620] sm:$0xff] %v9146_v17  ;;  %9403 = vst [vmem:[%s18284_s6 + $0x628] sm:$0xff] %v9147_v52  ;;  %v8808_v36 = vpop.permute.xlu1 %8807  ;;  %v8823_v42 = vpop.permute.xlu0 %8822 }
 0x746   :  { %v9144_v32 = vmul.f32 %v11583_v43, %v8808_v36  ;;  %v9145_v29 = vmul.f32 %v11584_v25, %v8808_v36  ;;  %v9150_v44 = vmul.f32 %v11585_v30, %v8823_v42  ;;  %v9151_v18 = vmul.f32 %v11586_v33, %v8823_v42  ;;  %v11608_v36 = vld [vmem:[%s18278_s0 + $0x6d8] sm:$0xff]  ;;  %v11609_v43 = vld [vmem:[%s18278_s0 + $0x700] sm:$0xff]  ;;  %v11610_v25 = vld [vmem:[%s18278_s0 + $0x708] sm:$0xff] }
 0x747   :  { %8788 = vbcast.lane.b32.xlu1 %v16646_v48, 264  ;;  %8944 = vbcast.lane.b32.xlu0 %v16621_v28, 272  ;;  %v11611_v33 = vld [vmem:[%s18278_s0 + $0x6f0] sm:$0xff] }
 0x748   :  { %9400 = vst [vmem:[%s18284_s6 + $0x610] sm:$0xff] %v9144_v32  ;;  %9401 = vst [vmem:[%s18284_s6 + $0x618] sm:$0xff] %v9145_v29 }
 0x749   :  { %9406 = vst [vmem:[%s18284_s6 + $0x640] sm:$0xff] %v9150_v44  ;;  %9407 = vst [vmem:[%s18284_s6 + $0x648] sm:$0xff] %v9151_v18  ;;  %v8816_v26 = vpop.permute.xlu1 %8815  ;;  %v8831_v23 = vpop.permute.xlu0 %8830 }
 0x74a   :  { %v9148_v53 = vmul.f32 %v11587_v12, %v8816_v26  ;;  %v9149_v21 = vmul.f32 %v11588_v49, %v8816_v26  ;;  %v9154_v5 = vmul.f32 %v11589_v37, %v8831_v23  ;;  %v9155_v41 = vmul.f32 %v11590_v61, %v8831_v23  ;;  %v11612_v26 = vld [vmem:[%s18278_s0 + $0x6f8] sm:$0xff]  ;;  %v11613_v12 = vld [vmem:[%s18278_s0 + $0x720] sm:$0xff]  ;;  %v11614_v49 = vld [vmem:[%s18278_s0 + $0x728] sm:$0xff] }
 0x74b   :  { %8796 = vbcast.lane.b32.xlu1 %v16646_v48, 280  ;;  %v11591_v48 = vld [vmem:[%s18278_s0 + $0x650] sm:$0xff] }
 0x74c   :  { %9404 = vst [vmem:[%s18284_s6 + $0x630] sm:$0xff] %v9148_v53  ;;  %9405 = vst [vmem:[%s18284_s6 + $0x638] sm:$0xff] %v9149_v21  ;;  %v11615_v61 = vld [vmem:[%s18278_s0 + $0x710] sm:$0xff] }
 0x74d   :  { %9410 = vst [vmem:[%s18284_s6 + $0x660] sm:$0xff] %v9154_v5  ;;  %9411 = vst [vmem:[%s18284_s6 + $0x668] sm:$0xff] %v9155_v41  ;;  %v8827_v35 = vpop.permute.xlu1 %8826  ;;  %v8842_v8 = vpop.permute.xlu0 %8841 }
 0x74e   :  { %v9152_v39 = vmul.f32 %v11591_v48, %v8827_v35  ;;  %v9153_v50 = vmul.f32 %v11592_v22, %v8827_v35  ;;  %v9158_v47 = vmul.f32 %v11593_v40, %v8842_v8  ;;  %v9159_v62 = vmul.f32 %v11594_v16, %v8842_v8  ;;  %v11616_v35 = vld [vmem:[%s18278_s0 + $0x718] sm:$0xff]  ;;  %v11617_v48 = vld [vmem:[%s18278_s0 + $0x740] sm:$0xff]  ;;  %v11618_v22 = vld [vmem:[%s18278_s0 + $0x748] sm:$0xff] }
 0x74f   :  { %8948 = vbcast.lane.b32.xlu1 %v16621_v28, 280  ;;  %v11595_v28 = vld [vmem:[%s18278_s0 + $0x670] sm:$0xff] }
 0x750   :  { %9408 = vst [vmem:[%s18284_s6 + $0x650] sm:$0xff] %v9152_v39  ;;  %9409 = vst [vmem:[%s18284_s6 + $0x658] sm:$0xff] %v9153_v50  ;;  %v11619_v16 = vld [vmem:[%s18278_s0 + $0x730] sm:$0xff] }
 0x751   :  { %9414 = vst [vmem:[%s18284_s6 + $0x680] sm:$0xff] %v9158_v47  ;;  %9415 = vst [vmem:[%s18284_s6 + $0x688] sm:$0xff] %v9159_v62  ;;  %v8835_v13 = vpop.permute.xlu1 %8834  ;;  %v8850_v1 = vpop.permute.xlu0 %8849 }
 0x752   :  { %v9156_v45 = vmul.f32 %v11595_v28, %v8835_v13  ;;  %v9157_v15 = vmul.f32 %v11596_v20, %v8835_v13  ;;  %v9162_v3 = vmul.f32 %v11597_v34, %v8850_v1  ;;  %v9163_v0 = vmul.f32 %v11598_v59, %v8850_v1  ;;  %v11620_v13 = vld [vmem:[%s18278_s0 + $0x738] sm:$0xff]  ;;  %v11621_v28 = vld [vmem:[%s18278_s0 + $0x760] sm:$0xff]  ;;  %v11622_v20 = vld [vmem:[%s18278_s0 + $0x768] sm:$0xff] }
 0x753   :  { %v11623_v59 = vld [vmem:[%s18278_s0 + $0x750] sm:$0xff] }
 0x754   :  { %9412 = vst [vmem:[%s18284_s6 + $0x670] sm:$0xff] %v9156_v45  ;;  %9413 = vst [vmem:[%s18284_s6 + $0x678] sm:$0xff] %v9157_v15 }
 0x755   :  { %9418 = vst [vmem:[%s18284_s6 + $0x6a0] sm:$0xff] %v9162_v3  ;;  %9419 = vst [vmem:[%s18284_s6 + $0x6a8] sm:$0xff] %v9163_v0  ;;  %v8846_v7 = vpop.permute.xlu1 %8845  ;;  %v8861_v10 = vpop.permute.xlu0 %8860 }
 0x756   :  { %v9160_v4 = vmul.f32 %v11599_v57, %v8846_v7  ;;  %v9161_v27 = vmul.f32 %v11600_v56, %v8846_v7  ;;  %v9166_v2 = vmul.f32 %v11601_v24, %v8861_v10  ;;  %v9167_v46 = vmul.f32 %v11602_v54, %v8861_v10  ;;  %v11624_v7 = vld [vmem:[%s18278_s0 + $0x758] sm:$0xff]  ;;  %v11625_v57 = vld [vmem:[%s18278_s0 + $0x780] sm:$0xff]  ;;  %v11626_v56 = vld [vmem:[%s18278_s0 + $0x788] sm:$0xff] }
 0x757   :  { %v11627_v54 = vld [vmem:[%s18278_s0 + $0x770] sm:$0xff] }
 0x758   :  { %9416 = vst [vmem:[%s18284_s6 + $0x690] sm:$0xff] %v9160_v4  ;;  %9417 = vst [vmem:[%s18284_s6 + $0x698] sm:$0xff] %v9161_v27 }
 0x759   :  { %9422 = vst [vmem:[%s18284_s6 + $0x6c0] sm:$0xff] %v9166_v2  ;;  %9423 = vst [vmem:[%s18284_s6 + $0x6c8] sm:$0xff] %v9167_v46  ;;  %v8854_v38 = vpop.permute.xlu1 %8853  ;;  %v8869_v31 = vpop.permute.xlu0 %8868 }
 0x75a   :  { %v9164_v63 = vmul.f32 %v11603_v9, %v8854_v38  ;;  %v9165_v58 = vmul.f32 %v11604_v19, %v8854_v38  ;;  %v9170_v60 = vmul.f32 %v11605_v51, %v8869_v31  ;;  %v9171_v11 = vmul.f32 %v11606_v14, %v8869_v31  ;;  %v11628_v38 = vld [vmem:[%s18278_s0 + $0x778] sm:$0xff]  ;;  %v11629_v9 = vld [vmem:[%s18278_s0 + $0x7a0] sm:$0xff]  ;;  %v11630_v19 = vld [vmem:[%s18278_s0 + $0x7a8] sm:$0xff] }
 0x75b   :  { %v11631_v14 = vld [vmem:[%s18278_s0 + $0x790] sm:$0xff] }
 0x75c   :  { %9420 = vst [vmem:[%s18284_s6 + $0x6b0] sm:$0xff] %v9164_v63  ;;  %9421 = vst [vmem:[%s18284_s6 + $0x6b8] sm:$0xff] %v9165_v58 }
 0x75d   :  { %9426 = vst [vmem:[%s18284_s6 + $0x6e0] sm:$0xff] %v9170_v60  ;;  %9427 = vst [vmem:[%s18284_s6 + $0x6e8] sm:$0xff] %v9171_v11  ;;  %v8865_v6 = vpop.permute.xlu1 %8864  ;;  %v8880_v17 = vpop.permute.xlu0 %8879 }
 0x75e   :  { %v9168_v52 = vmul.f32 %v11607_v55, %v8865_v6  ;;  %v9169_v42 = vmul.f32 %v11608_v36, %v8865_v6  ;;  %v9174_v32 = vmul.f32 %v11609_v43, %v8880_v17  ;;  %v9175_v29 = vmul.f32 %v11610_v25, %v8880_v17  ;;  %v11632_v6 = vld [vmem:[%s18278_s0 + $0x798] sm:$0xff]  ;;  %v11633_v55 = vld [vmem:[%s18278_s0 + $0x7c0] sm:$0xff]  ;;  %v11634_v36 = vld [vmem:[%s18278_s0 + $0x7c8] sm:$0xff] }
 0x75f   :  { %v11635_v25 = vld [vmem:[%s18278_s0 + $0x7b0] sm:$0xff] }
 0x760   :  { %9424 = vst [vmem:[%s18284_s6 + $0x6d0] sm:$0xff] %v9168_v52  ;;  %9425 = vst [vmem:[%s18284_s6 + $0x6d8] sm:$0xff] %v9169_v42 }
 0x761   :  { %9430 = vst [vmem:[%s18284_s6 + $0x700] sm:$0xff] %v9174_v32  ;;  %9431 = vst [vmem:[%s18284_s6 + $0x708] sm:$0xff] %v9175_v29  ;;  %v8873_v30 = vpop.permute.xlu1 %8872  ;;  %v8888_v44 = vpop.permute.xlu0 %8887 }
 0x762   :  { %v9172_v18 = vmul.f32 %v11611_v33, %v8873_v30  ;;  %v9173_v23 = vmul.f32 %v11612_v26, %v8873_v30  ;;  %v9178_v53 = vmul.f32 %v11613_v12, %v8888_v44  ;;  %v9179_v21 = vmul.f32 %v11614_v49, %v8888_v44  ;;  %v11636_v30 = vld [vmem:[%s18278_s0 + $0x7b8] sm:$0xff]  ;;  %v11637_v33 = vld [vmem:[%s18278_s0 + $0x400] sm:$0xff]  ;;  %v11638_v26 = vld [vmem:[%s18278_s0 + $0x408] sm:$0xff] }
 0x763   :  { %v11639_v49 = vld [vmem:[%s18278_s0 + $0x7d0] sm:$0xff] }
 0x764   :  { %9428 = vst [vmem:[%s18284_s6 + $0x6f0] sm:$0xff] %v9172_v18  ;;  %9429 = vst [vmem:[%s18284_s6 + $0x6f8] sm:$0xff] %v9173_v23 }
 0x765   :  { %9434 = vst [vmem:[%s18284_s6 + $0x720] sm:$0xff] %v9178_v53  ;;  %9435 = vst [vmem:[%s18284_s6 + $0x728] sm:$0xff] %v9179_v21  ;;  %v8884_v37 = vpop.permute.xlu1 %8883  ;;  %v8899_v5 = vpop.permute.xlu0 %8898 }
 0x766   :  { %v9176_v41 = vmul.f32 %v11615_v61, %v8884_v37  ;;  %v9177_v8 = vmul.f32 %v11616_v35, %v8884_v37  ;;  %v9182_v39 = vmul.f32 %v11617_v48, %v8899_v5  ;;  %v9183_v50 = vmul.f32 %v11618_v22, %v8899_v5  ;;  %v11640_v37 = vld [vmem:[%s18278_s0 + $0x7d8] sm:$0xff]  ;;  %v11641_v61 = vld [vmem:[%s18278_s0 + $0x420] sm:$0xff]  ;;  %v11642_v35 = vld [vmem:[%s18278_s0 + $0x428] sm:$0xff] }
 0x767   :  { %v11643_v22 = vld [vmem:[%s18278_s0 + $0x410] sm:$0xff] }
 0x768   :  { %9432 = vst [vmem:[%s18284_s6 + $0x710] sm:$0xff] %v9176_v41  ;;  %9433 = vst [vmem:[%s18284_s6 + $0x718] sm:$0xff] %v9177_v8 }
 0x769   :  { %9438 = vst [vmem:[%s18284_s6 + $0x740] sm:$0xff] %v9182_v39  ;;  %9439 = vst [vmem:[%s18284_s6 + $0x748] sm:$0xff] %v9183_v50  ;;  %v8892_v40 = vpop.permute.xlu1 %8891  ;;  %v8907_v47 = vpop.permute.xlu0 %8906 }
 0x76a   :  { %v9180_v62 = vmul.f32 %v11619_v16, %v8892_v40  ;;  %v9181_v1 = vmul.f32 %v11620_v13, %v8892_v40  ;;  %v9186_v45 = vmul.f32 %v11621_v28, %v8907_v47  ;;  %v9187_v15 = vmul.f32 %v11622_v20, %v8907_v47  ;;  %v11644_v40 = vld [vmem:[%s18278_s0 + $0x418] sm:$0xff]  ;;  %v11645_v16 = vld [vmem:[%s18278_s0 + $0x440] sm:$0xff]  ;;  %v11646_v13 = vld [vmem:[%s18278_s0 + $0x448] sm:$0xff] }
 0x76b   :  { %v11647_v20 = vld [vmem:[%s18278_s0 + $0x430] sm:$0xff] }
 0x76c   :  { %9436 = vst [vmem:[%s18284_s6 + $0x730] sm:$0xff] %v9180_v62  ;;  %9437 = vst [vmem:[%s18284_s6 + $0x738] sm:$0xff] %v9181_v1 }
 0x76d   :  { %9442 = vst [vmem:[%s18284_s6 + $0x760] sm:$0xff] %v9186_v45  ;;  %9443 = vst [vmem:[%s18284_s6 + $0x768] sm:$0xff] %v9187_v15  ;;  %v8903_v34 = vpop.permute.xlu1 %8902  ;;  %v8918_v3 = vpop.permute.xlu0 %8917 }
 0x76e   :  { %v9184_v0 = vmul.f32 %v11623_v59, %v8903_v34  ;;  %v9185_v10 = vmul.f32 %v11624_v7, %v8903_v34  ;;  %v9190_v4 = vmul.f32 %v11625_v57, %v8918_v3  ;;  %v9191_v27 = vmul.f32 %v11626_v56, %v8918_v3  ;;  %v11648_v34 = vld [vmem:[%s18278_s0 + $0x438] sm:$0xff]  ;;  %v11649_v59 = vld [vmem:[%s18278_s0 + $0x460] sm:$0xff]  ;;  %v11650_v7 = vld [vmem:[%s18278_s0 + $0x468] sm:$0xff] }
 0x76f   :  { %v11651_v56 = vld [vmem:[%s18278_s0 + $0x450] sm:$0xff] }
 0x770   :  { %9440 = vst [vmem:[%s18284_s6 + $0x750] sm:$0xff] %v9184_v0  ;;  %9441 = vst [vmem:[%s18284_s6 + $0x758] sm:$0xff] %v9185_v10 }
 0x771   :  { %9446 = vst [vmem:[%s18284_s6 + $0x780] sm:$0xff] %v9190_v4  ;;  %9447 = vst [vmem:[%s18284_s6 + $0x788] sm:$0xff] %v9191_v27  ;;  %v8911_v24 = vpop.permute.xlu1 %8910  ;;  %v8926_v2 = vpop.permute.xlu0 %8925 }
 0x772   :  { %v9188_v46 = vmul.f32 %v11627_v54, %v8911_v24  ;;  %v9189_v31 = vmul.f32 %v11628_v38, %v8911_v24  ;;  %v9194_v63 = vmul.f32 %v11629_v9, %v8926_v2  ;;  %v9195_v58 = vmul.f32 %v11630_v19, %v8926_v2  ;;  %v11652_v24 = vld [vmem:[%s18278_s0 + $0x458] sm:$0xff]  ;;  %v11653_v54 = vld [vmem:[%s18278_s0 + $0x480] sm:$0xff]  ;;  %v11654_v38 = vld [vmem:[%s18278_s0 + $0x488] sm:$0xff] }
 0x773   :  { %v11655_v19 = vld [vmem:[%s18278_s0 + $0x470] sm:$0xff] }
 0x774   :  { %9444 = vst [vmem:[%s18284_s6 + $0x770] sm:$0xff] %v9188_v46  ;;  %9445 = vst [vmem:[%s18284_s6 + $0x778] sm:$0xff] %v9189_v31 }
 0x775   :  { %9450 = vst [vmem:[%s18284_s6 + $0x7a0] sm:$0xff] %v9194_v63  ;;  %9451 = vst [vmem:[%s18284_s6 + $0x7a8] sm:$0xff] %v9195_v58  ;;  %v8922_v51 = vpop.permute.xlu1 %8921  ;;  %v8937_v60 = vpop.permute.xlu0 %8936 }
 0x776   :  { %v9192_v11 = vmul.f32 %v11631_v14, %v8922_v51  ;;  %v9193_v17 = vmul.f32 %v11632_v6, %v8922_v51  ;;  %v9198_v52 = vmul.f32 %v11633_v55, %v8937_v60  ;;  %v9199_v42 = vmul.f32 %v11634_v36, %v8937_v60  ;;  %v11656_v51 = vld [vmem:[%s18278_s0 + $0x478] sm:$0xff]  ;;  %v11657_v14 = vld [vmem:[%s18278_s0 + $0x4a0] sm:$0xff]  ;;  %v11658_v6 = vld [vmem:[%s18278_s0 + $0x4a8] sm:$0xff] }
 0x777   :  { %v11659_v36 = vld [vmem:[%s18278_s0 + $0x490] sm:$0xff] }
 0x778   :  { %9448 = vst [vmem:[%s18284_s6 + $0x790] sm:$0xff] %v9192_v11  ;;  %9449 = vst [vmem:[%s18284_s6 + $0x798] sm:$0xff] %v9193_v17 }
 0x779   :  { %9454 = vst [vmem:[%s18284_s6 + $0x7c0] sm:$0xff] %v9198_v52  ;;  %9455 = vst [vmem:[%s18284_s6 + $0x7c8] sm:$0xff] %v9199_v42  ;;  %v8930_v43 = vpop.permute.xlu1 %8929  ;;  %v8652_v32 = vpop.permute.xlu0 %8651 }
 0x77a   :  { %v9196_v29 = vmul.f32 %v11635_v25, %v8930_v43  ;;  %v9197_v44 = vmul.f32 %v11636_v30, %v8930_v43  ;;  %v9078_v18 = vmul.f32 %v11637_v33, %v8652_v32  ;;  %v9079_v23 = vmul.f32 %v11638_v26, %v8652_v32  ;;  %v11660_v43 = vld [vmem:[%s18278_s0 + $0x498] sm:$0xff]  ;;  %v11661_v25 = vld [vmem:[%s18278_s0 + $0x4c0] sm:$0xff]  ;;  %v11662_v30 = vld [vmem:[%s18278_s0 + $0x4c8] sm:$0xff] }
 0x77b   :  { %v11663_v26 = vld [vmem:[%s18278_s0 + $0x4b0] sm:$0xff] }
 0x77c   :  { %9452 = vst [vmem:[%s18284_s6 + $0x7b0] sm:$0xff] %v9196_v29  ;;  %9453 = vst [vmem:[%s18284_s6 + $0x7b8] sm:$0xff] %v9197_v44 }
 0x77d   :  { %9334 = vst [vmem:[%s18284_s6 + $0x400] sm:$0xff] %v9078_v18  ;;  %9335 = vst [vmem:[%s18284_s6 + $0x408] sm:$0xff] %v9079_v23  ;;  %v8941_v12 = vpop.permute.xlu1 %8940  ;;  %v8660_v53 = vpop.permute.xlu0 %8659 }
 0x77e   :  { %v9200_v21 = vmul.f32 %v11639_v49, %v8941_v12  ;;  %v9201_v5 = vmul.f32 %v11640_v37, %v8941_v12  ;;  %v9082_v41 = vmul.f32 %v11641_v61, %v8660_v53  ;;  %v9083_v8 = vmul.f32 %v11642_v35, %v8660_v53  ;;  %v11664_v12 = vld [vmem:[%s18278_s0 + $0x4b8] sm:$0xff]  ;;  %v11665_v49 = vld [vmem:[%s18278_s0 + $0x4e0] sm:$0xff]  ;;  %v11666_v37 = vld [vmem:[%s18278_s0 + $0x4e8] sm:$0xff] }
 0x77f   :  { %v11667_v35 = vld [vmem:[%s18278_s0 + $0x4d0] sm:$0xff] }
 0x780   :  { %9456 = vst [vmem:[%s18284_s6 + $0x7d0] sm:$0xff] %v9200_v21  ;;  %9457 = vst [vmem:[%s18284_s6 + $0x7d8] sm:$0xff] %v9201_v5 }
 0x781   :  { %9338 = vst [vmem:[%s18284_s6 + $0x420] sm:$0xff] %v9082_v41  ;;  %9339 = vst [vmem:[%s18284_s6 + $0x428] sm:$0xff] %v9083_v8  ;;  %v8656_v48 = vpop.permute.xlu1 %8655  ;;  %v8671_v39 = vpop.permute.xlu0 %8670 }
 0x782   :  { %v9080_v50 = vmul.f32 %v11643_v22, %v8656_v48  ;;  %v9081_v47 = vmul.f32 %v11644_v40, %v8656_v48  ;;  %v9086_v62 = vmul.f32 %v11645_v16, %v8671_v39  ;;  %v9087_v1 = vmul.f32 %v11646_v13, %v8671_v39  ;;  %v11668_v48 = vld [vmem:[%s18278_s0 + $0x4d8] sm:$0xff]  ;;  %v11669_v22 = vld [vmem:[%s18278_s0 + $0x500] sm:$0xff]  ;;  %v11670_v40 = vld [vmem:[%s18278_s0 + $0x508] sm:$0xff] }
 0x783   :  { %v11671_v13 = vld [vmem:[%s18278_s0 + $0x4f0] sm:$0xff] }
 0x784   :  { %9336 = vst [vmem:[%s18284_s6 + $0x410] sm:$0xff] %v9080_v50  ;;  %9337 = vst [vmem:[%s18284_s6 + $0x418] sm:$0xff] %v9081_v47 }
 0x785   :  { %9342 = vst [vmem:[%s18284_s6 + $0x440] sm:$0xff] %v9086_v62  ;;  %9343 = vst [vmem:[%s18284_s6 + $0x448] sm:$0xff] %v9087_v1  ;;  %v8664_v28 = vpop.permute.xlu1 %8663  ;;  %v8679_v45 = vpop.permute.xlu0 %8678 }
 0x786   :  { %v9084_v15 = vmul.f32 %v11647_v20, %v8664_v28  ;;  %v9085_v3 = vmul.f32 %v11648_v34, %v8664_v28  ;;  %v9090_v0 = vmul.f32 %v11649_v59, %v8679_v45  ;;  %v9091_v10 = vmul.f32 %v11650_v7, %v8679_v45  ;;  %v11672_v28 = vld [vmem:[%s18278_s0 + $0x4f8] sm:$0xff]  ;;  %v11673_v20 = vld [vmem:[%s18278_s0 + $0x520] sm:$0xff]  ;;  %v11674_v34 = vld [vmem:[%s18278_s0 + $0x528] sm:$0xff] }
 0x787   :  { %v11675_v7 = vld [vmem:[%s18278_s0 + $0x510] sm:$0xff] }
 0x788   :  { %9340 = vst [vmem:[%s18284_s6 + $0x430] sm:$0xff] %v9084_v15  ;;  %9341 = vst [vmem:[%s18284_s6 + $0x438] sm:$0xff] %v9085_v3 }
 0x789   :  { %9346 = vst [vmem:[%s18284_s6 + $0x460] sm:$0xff] %v9090_v0  ;;  %9347 = vst [vmem:[%s18284_s6 + $0x468] sm:$0xff] %v9091_v10  ;;  %v8675_v57 = vpop.permute.xlu1 %8674  ;;  %v8690_v4 = vpop.permute.xlu0 %8689 }
 0x78a   :  { %v9088_v27 = vmul.f32 %v11651_v56, %v8675_v57  ;;  %v9089_v2 = vmul.f32 %v11652_v24, %v8675_v57  ;;  %v9094_v46 = vmul.f32 %v11653_v54, %v8690_v4  ;;  %v9095_v31 = vmul.f32 %v11654_v38, %v8690_v4  ;;  %v11676_v57 = vld [vmem:[%s18278_s0 + $0x518] sm:$0xff]  ;;  %v11677_v56 = vld [vmem:[%s18278_s0 + $0x540] sm:$0xff]  ;;  %v11678_v24 = vld [vmem:[%s18278_s0 + $0x548] sm:$0xff] }
 0x78b   :  { %v11679_v38 = vld [vmem:[%s18278_s0 + $0x530] sm:$0xff] }
 0x78c   :  { %9344 = vst [vmem:[%s18284_s6 + $0x450] sm:$0xff] %v9088_v27  ;;  %9345 = vst [vmem:[%s18284_s6 + $0x458] sm:$0xff] %v9089_v2 }
 0x78d   :  { %9350 = vst [vmem:[%s18284_s6 + $0x480] sm:$0xff] %v9094_v46  ;;  %9351 = vst [vmem:[%s18284_s6 + $0x488] sm:$0xff] %v9095_v31  ;;  %v8683_v9 = vpop.permute.xlu1 %8682  ;;  %v8698_v63 = vpop.permute.xlu0 %8697 }
 0x78e   :  { %v9092_v58 = vmul.f32 %v11655_v19, %v8683_v9  ;;  %v9093_v60 = vmul.f32 %v11656_v51, %v8683_v9  ;;  %v9098_v11 = vmul.f32 %v11657_v14, %v8698_v63  ;;  %v9099_v17 = vmul.f32 %v11658_v6, %v8698_v63  ;;  %v11680_v9 = vld [vmem:[%s18278_s0 + $0x538] sm:$0xff]  ;;  %v11681_v19 = vld [vmem:[%s18278_s0 + $0x560] sm:$0xff]  ;;  %v11682_v51 = vld [vmem:[%s18278_s0 + $0x568] sm:$0xff] }
 0x78f   :  { %v11683_v6 = vld [vmem:[%s18278_s0 + $0x550] sm:$0xff] }
 0x790   :  { %9348 = vst [vmem:[%s18284_s6 + $0x470] sm:$0xff] %v9092_v58  ;;  %9349 = vst [vmem:[%s18284_s6 + $0x478] sm:$0xff] %v9093_v60 }
 0x791   :  { %9354 = vst [vmem:[%s18284_s6 + $0x4a0] sm:$0xff] %v9098_v11  ;;  %9355 = vst [vmem:[%s18284_s6 + $0x4a8] sm:$0xff] %v9099_v17  ;;  %v8694_v55 = vpop.permute.xlu1 %8693  ;;  %v8709_v52 = vpop.permute.xlu0 %8708 }
 0x792   :  { %v9096_v42 = vmul.f32 %v11659_v36, %v8694_v55  ;;  %v9097_v32 = vmul.f32 %v11660_v43, %v8694_v55  ;;  %v9102_v29 = vmul.f32 %v11661_v25, %v8709_v52  ;;  %v9103_v44 = vmul.f32 %v11662_v30, %v8709_v52  ;;  %v11684_v55 = vld [vmem:[%s18278_s0 + $0x558] sm:$0xff]  ;;  %v11685_v36 = vld [vmem:[%s18278_s0 + $0x580] sm:$0xff]  ;;  %v11686_v43 = vld [vmem:[%s18278_s0 + $0x588] sm:$0xff] }
 0x793   :  { %v11687_v30 = vld [vmem:[%s18278_s0 + $0x570] sm:$0xff] }
 0x794   :  { %9352 = vst [vmem:[%s18284_s6 + $0x490] sm:$0xff] %v9096_v42  ;;  %9353 = vst [vmem:[%s18284_s6 + $0x498] sm:$0xff] %v9097_v32 }
 0x795   :  { %9358 = vst [vmem:[%s18284_s6 + $0x4c0] sm:$0xff] %v9102_v29  ;;  %9359 = vst [vmem:[%s18284_s6 + $0x4c8] sm:$0xff] %v9103_v44  ;;  %v8702_v33 = vpop.permute.xlu1 %8701  ;;  %v8717_v18 = vpop.permute.xlu0 %8716 }
 0x796   :  { %v9100_v23 = vmul.f32 %v11663_v26, %v8702_v33  ;;  %v9101_v53 = vmul.f32 %v11664_v12, %v8702_v33  ;;  %v9106_v21 = vmul.f32 %v11665_v49, %v8717_v18  ;;  %v9107_v5 = vmul.f32 %v11666_v37, %v8717_v18  ;;  %v11688_v33 = vld [vmem:[%s18278_s0 + $0x578] sm:$0xff]  ;;  %v11689_v26 = vld [vmem:[%s18278_s0 + $0x5a0] sm:$0xff]  ;;  %v11690_v12 = vld [vmem:[%s18278_s0 + $0x5a8] sm:$0xff] }
 0x797   :  { %v11691_v37 = vld [vmem:[%s18278_s0 + $0x590] sm:$0xff] }
 0x798   :  { %9356 = vst [vmem:[%s18284_s6 + $0x4b0] sm:$0xff] %v9100_v23  ;;  %9357 = vst [vmem:[%s18284_s6 + $0x4b8] sm:$0xff] %v9101_v53 }
 0x799   :  { %9362 = vst [vmem:[%s18284_s6 + $0x4e0] sm:$0xff] %v9106_v21  ;;  %9363 = vst [vmem:[%s18284_s6 + $0x4e8] sm:$0xff] %v9107_v5  ;;  %v8713_v61 = vpop.permute.xlu1 %8712  ;;  %v8728_v41 = vpop.permute.xlu0 %8727 }
 0x79a   :  { %v9104_v8 = vmul.f32 %v11667_v35, %v8713_v61  ;;  %v9105_v39 = vmul.f32 %v11668_v48, %v8713_v61  ;;  %v9110_v50 = vmul.f32 %v11669_v22, %v8728_v41  ;;  %v9111_v47 = vmul.f32 %v11670_v40, %v8728_v41  ;;  %v11692_v61 = vld [vmem:[%s18278_s0 + $0x598] sm:$0xff]  ;;  %v11693_v35 = vld [vmem:[%s18278_s0 + $0x5c0] sm:$0xff]  ;;  %v11694_v48 = vld [vmem:[%s18278_s0 + $0x5c8] sm:$0xff] }
 0x79b   :  { %v11695_v40 = vld [vmem:[%s18278_s0 + $0x5b0] sm:$0xff] }
 0x79c   :  { %9360 = vst [vmem:[%s18284_s6 + $0x4d0] sm:$0xff] %v9104_v8  ;;  %9361 = vst [vmem:[%s18284_s6 + $0x4d8] sm:$0xff] %v9105_v39 }
 0x79d   :  { %9366 = vst [vmem:[%s18284_s6 + $0x500] sm:$0xff] %v9110_v50  ;;  %9367 = vst [vmem:[%s18284_s6 + $0x508] sm:$0xff] %v9111_v47  ;;  %v8721_v16 = vpop.permute.xlu1 %8720  ;;  %v8736_v62 = vpop.permute.xlu0 %8735 }
 0x79e   :  { %v9108_v1 = vmul.f32 %v11671_v13, %v8721_v16  ;;  %v9109_v45 = vmul.f32 %v11672_v28, %v8721_v16  ;;  %v9114_v15 = vmul.f32 %v11673_v20, %v8736_v62  ;;  %v9115_v3 = vmul.f32 %v11674_v34, %v8736_v62  ;;  %v11696_v16 = vld [vmem:[%s18278_s0 + $0x5b8] sm:$0xff]  ;;  %v11697_v13 = vld [vmem:[%s18278_s0 + $0x5e0] sm:$0xff]  ;;  %v11698_v28 = vld [vmem:[%s18278_s0 + $0x5e8] sm:$0xff] }
 0x79f   :  { %v11699_v34 = vld [vmem:[%s18278_s0 + $0x5d0] sm:$0xff] }
 0x7a0   :  { %9364 = vst [vmem:[%s18284_s6 + $0x4f0] sm:$0xff] %v9108_v1  ;;  %9365 = vst [vmem:[%s18284_s6 + $0x4f8] sm:$0xff] %v9109_v45 }
 0x7a1   :  { %9370 = vst [vmem:[%s18284_s6 + $0x520] sm:$0xff] %v9114_v15  ;;  %9371 = vst [vmem:[%s18284_s6 + $0x528] sm:$0xff] %v9115_v3  ;;  %v8732_v59 = vpop.permute.xlu1 %8731  ;;  %v8747_v0 = vpop.permute.xlu0 %8746 }
 0x7a2   :  { %v9112_v10 = vmul.f32 %v11675_v7, %v8732_v59  ;;  %v9113_v4 = vmul.f32 %v11676_v57, %v8732_v59  ;;  %v9118_v27 = vmul.f32 %v11677_v56, %v8747_v0  ;;  %v9119_v2 = vmul.f32 %v11678_v24, %v8747_v0  ;;  %v11700_v59 = vld [vmem:[%s18278_s0 + $0x5d8] sm:$0xff]  ;;  %v11701_v7 = vld [vmem:[%s18278_s0 + $0x7e0] sm:$0xff]  ;;  %v11702_v57 = vld [vmem:[%s18278_s0 + $0x7e8] sm:$0xff] }
 0x7a4   :  { %9368 = vst [vmem:[%s18284_s6 + $0x510] sm:$0xff] %v9112_v10  ;;  %9369 = vst [vmem:[%s18284_s6 + $0x518] sm:$0xff] %v9113_v4 }
 0x7a5   :  { %9374 = vst [vmem:[%s18284_s6 + $0x540] sm:$0xff] %v9118_v27  ;;  %9375 = vst [vmem:[%s18284_s6 + $0x548] sm:$0xff] %v9119_v2  ;;  %v8740_v54 = vpop.permute.xlu1 %8739  ;;  %v8755_v46 = vpop.permute.xlu0 %8754  ;;  %v11703_v27 = vld [vmem:[%s18278_s0 + $0x5f0] sm:$0xff]  ;;  %v11704_v2 = vld [vmem:[%s18278_s0 + $0x5f8] sm:$0xff] }
 0x7a6   :  { %v9116_v31 = vmul.f32 %v11679_v38, %v8740_v54  ;;  %v9117_v63 = vmul.f32 %v11680_v9, %v8740_v54  ;;  %v9122_v58 = vmul.f32 %v11681_v19, %v8755_v46  ;;  %v9123_v60 = vmul.f32 %v11682_v51, %v8755_v46  ;;  %v11705_v38 = vld [vmem:[%s18278_s0 + $0x7f0] sm:$0xff]  ;;  %v11706_v9 = vld [vmem:[%s18278_s0 + $0x7f8] sm:$0xff] }
 0x7a8   :  { %9372 = vst [vmem:[%s18284_s6 + $0x530] sm:$0xff] %v9116_v31  ;;  %9373 = vst [vmem:[%s18284_s6 + $0x538] sm:$0xff] %v9117_v63 }
 0x7a9   :  { %9378 = vst [vmem:[%s18284_s6 + $0x560] sm:$0xff] %v9122_v58  ;;  %9379 = vst [vmem:[%s18284_s6 + $0x568] sm:$0xff] %v9123_v60  ;;  %v8751_v14 = vpop.permute.xlu1 %8750  ;;  %v8766_v11 = vpop.permute.xlu0 %8765 }
 0x7aa   :  { %v9120_v17 = vmul.f32 %v11683_v6, %v8751_v14  ;;  %v9121_v52 = vmul.f32 %v11684_v55, %v8751_v14  ;;  %v9126_v42 = vmul.f32 %v11685_v36, %v8766_v11  ;;  %v9127_v32 = vmul.f32 %v11686_v43, %v8766_v11 }
 0x7ac   :  { %9376 = vst [vmem:[%s18284_s6 + $0x550] sm:$0xff] %v9120_v17  ;;  %9377 = vst [vmem:[%s18284_s6 + $0x558] sm:$0xff] %v9121_v52 }
 0x7ad   :  { %9382 = vst [vmem:[%s18284_s6 + $0x580] sm:$0xff] %v9126_v42  ;;  %9383 = vst [vmem:[%s18284_s6 + $0x588] sm:$0xff] %v9127_v32  ;;  %v8759_v25 = vpop.permute.xlu1 %8758  ;;  %v8774_v29 = vpop.permute.xlu0 %8773 }
 0x7ae   :  { %v9124_v44 = vmul.f32 %v11687_v30, %v8759_v25  ;;  %v9125_v18 = vmul.f32 %v11688_v33, %v8759_v25  ;;  %v9130_v23 = vmul.f32 %v11689_v26, %v8774_v29  ;;  %v9131_v53 = vmul.f32 %v11690_v12, %v8774_v29 }
 0x7b0   :  { %9380 = vst [vmem:[%s18284_s6 + $0x570] sm:$0xff] %v9124_v44  ;;  %9381 = vst [vmem:[%s18284_s6 + $0x578] sm:$0xff] %v9125_v18 }
 0x7b1   :  { %9386 = vst [vmem:[%s18284_s6 + $0x5a0] sm:$0xff] %v9130_v23  ;;  %9387 = vst [vmem:[%s18284_s6 + $0x5a8] sm:$0xff] %v9131_v53  ;;  %v8770_v49 = vpop.permute.xlu1 %8769  ;;  %v8785_v21 = vpop.permute.xlu0 %8784 }
 0x7b2   :  { %v9128_v5 = vmul.f32 %v11691_v37, %v8770_v49  ;;  %v9129_v41 = vmul.f32 %v11692_v61, %v8770_v49  ;;  %v9134_v8 = vmul.f32 %v11693_v35, %v8785_v21  ;;  %v9135_v39 = vmul.f32 %v11694_v48, %v8785_v21 }
 0x7b4   :  { %9384 = vst [vmem:[%s18284_s6 + $0x590] sm:$0xff] %v9128_v5  ;;  %9385 = vst [vmem:[%s18284_s6 + $0x598] sm:$0xff] %v9129_v41 }
 0x7b5   :  { %9390 = vst [vmem:[%s18284_s6 + $0x5c0] sm:$0xff] %v9134_v8  ;;  %9391 = vst [vmem:[%s18284_s6 + $0x5c8] sm:$0xff] %v9135_v39  ;;  %v8778_v22 = vpop.permute.xlu1 %8777  ;;  %v8793_v50 = vpop.permute.xlu0 %8792 }
 0x7b6   :  { %v9132_v47 = vmul.f32 %v11695_v40, %v8778_v22  ;;  %v9133_v62 = vmul.f32 %v11696_v16, %v8778_v22  ;;  %v9138_v1 = vmul.f32 %v11697_v13, %v8793_v50  ;;  %v9139_v45 = vmul.f32 %v11698_v28, %v8793_v50 }
 0x7b8   :  { %9388 = vst [vmem:[%s18284_s6 + $0x5b0] sm:$0xff] %v9132_v47  ;;  %9389 = vst [vmem:[%s18284_s6 + $0x5b8] sm:$0xff] %v9133_v62 }
 0x7b9   :  { %9394 = vst [vmem:[%s18284_s6 + $0x5e0] sm:$0xff] %v9138_v1  ;;  %9395 = vst [vmem:[%s18284_s6 + $0x5e8] sm:$0xff] %v9139_v45  ;;  %v8789_v20 = vpop.permute.xlu1 %8788  ;;  %v8945_v15 = vpop.permute.xlu0 %8944 }
 0x7ba   :  { %v9136_v3 = vmul.f32 %v11699_v34, %v8789_v20  ;;  %v9137_v0 = vmul.f32 %v11700_v59, %v8789_v20  ;;  %v9202_v10 = vmul.f32 %v11701_v7, %v8945_v15  ;;  %v9203_v4 = vmul.f32 %v11702_v57, %v8945_v15 }
 0x7bc   :  { %9392 = vst [vmem:[%s18284_s6 + $0x5d0] sm:$0xff] %v9136_v3  ;;  %9393 = vst [vmem:[%s18284_s6 + $0x5d8] sm:$0xff] %v9137_v0 }
 0x7bd   :  { %9458 = vst [vmem:[%s18284_s6 + $0x7e0] sm:$0xff] %v9202_v10  ;;  %9459 = vst [vmem:[%s18284_s6 + $0x7e8] sm:$0xff] %v9203_v4  ;;  %v8797_v56 = vpop.permute.xlu1 %8796 }
 0x7be   :  { %v9140_v24 = vmul.f32 %v11703_v27, %v8797_v56  ;;  %v9141_v54 = vmul.f32 %v11704_v2, %v8797_v56 }
 0x7c0   :  { %9396 = vst [vmem:[%s18284_s6 + $0x5f0] sm:$0xff] %v9140_v24  ;;  %9397 = vst [vmem:[%s18284_s6 + $0x5f8] sm:$0xff] %v9141_v54 }
 0x7c1   :  { %v8949_v46 = vpop.permute.xlu1 %8948 }
 0x7c2   :  { %v9204_v31 = vmul.f32 %v11705_v38, %v8949_v46  ;;  %v9205_v63 = vmul.f32 %v11706_v9, %v8949_v46 }
 0x7c4   :  { %9460 = vst [vmem:[%s18284_s6 + $0x7f0] sm:$0xff] %v9204_v31  ;;  %9461 = vst [vmem:[%s18284_s6 + $0x7f8] sm:$0xff] %v9205_v63 }
 0x7c5   :  { %9466 = vsyncpa [#allocation4], 1 }

</bundles_post_ra>
